<compile_context>
chip_gen: v7x
topology: tpu7x:2x2x1
jax: 0.10.0
libtpu: 0.0.40
codegen_flags: <defaults>
</compile_context>

<pallas_src>
import math

import jax
import jax.numpy as jnp
from jax.experimental import pallas as pl
from jax.experimental.pallas import tpu as pltpu

LANE = 128      # lane-width quantum for last-dim padding
SUBLANE = 8     # f32 sublane quantum for batch padding


def _rup(n, m):
    return ((n + m - 1) // m) * m


# ----------------------------------------------------------------------------
# Pallas kernel: a whole stacked-LSTM (MLLSTM) forward in one launch
# ----------------------------------------------------------------------------
def _make_stack_kernel(num_layers, unroll):
    L = num_layers

    def kernel(*refs):
        x_ref = refs[0]                        # (T, Bp, F0p) f32
        w_refs = refs[1:1 + 3 * L]             # per layer: wih(bf16), whh(f32), bias(f32)
        y_ref = refs[1 + 3 * L]                # (T, Bp, H_last_p) f32
        scratch = refs[2 + 3 * L:]
        gate_s = scratch[:L]                   # (T, Bp, 4*Hp_l) f32 pre-gate buffers
        act_s = scratch[L:]                    # (T, Bp, Hp_l)   f32 inter-layer acts
        T, B, _ = x_ref.shape

        cur = x_ref
        for l in range(L):
            wih_ref = w_refs[3 * l]
            whh_ref = w_refs[3 * l + 1]
            b_ref = w_refs[3 * l + 2]
            Hp = whh_ref.shape[0]
            Fp = cur.shape[2]
            out = y_ref if l == L - 1 else act_s[l]
            xg_ref = gate_s[l]

            # (1) Input projection for ALL timesteps: one tall bf16 MXU matmul
            #     with f32 accumulation; bias folded in once, outside the loop.
            x_all = cur[...].reshape(T * B, Fp).astype(jnp.bfloat16)
            xg = jnp.dot(x_all, wih_ref[...],
                         preferred_element_type=jnp.float32) + b_ref[...]
            xg_ref[...] = xg.reshape(T, B, 4 * Hp)

            whh = whh_ref[...]                 # f32 recurrent weights (hoisted)

            # (2) Serial recurrence: only h @ Whh + elementwise per step.
            def step(t, carry, _xg=xg_ref, _out=out, _whh=whh, _Hp=Hp):
                h, c = carry
                gates = _xg[t] + jnp.dot(h, _whh,
                                         preferred_element_type=jnp.float32)
                # Gate layout (i, f, o | g): one contiguous sigmoid slab,
                # one contiguous tanh slab (both lane-aligned, Hp % 128 == 0).
                sig = jax.nn.sigmoid(gates[:, :3 * _Hp])
                i_g = sig[:, 0 * _Hp:1 * _Hp]
                f_g = sig[:, 1 * _Hp:2 * _Hp]
                o_g = sig[:, 2 * _Hp:3 * _Hp]
                g_g = jnp.tanh(gates[:, 3 * _Hp:])
                c_new = f_g * c + i_g * g_g
                h_new = o_g * jnp.tanh(c_new)
                _out[t] = h_new                # lane-dense, unmasked store
                return h_new, c_new

            init = (jnp.zeros((B, Hp), jnp.float32),
                    jnp.zeros((B, Hp), jnp.float32))
            jax.lax.fori_loop(0, T, step, init, unroll=unroll)
            cur = out

    return kernel


def mllstm_forward_pallas(x_tm, prepared, h_dims_p):
    """Run a whole MLLSTM stack in a single pallas_call.

    x_tm: (T, Bp, F0p) padded, time-major.  Returns (T, Bp, H_last_p) f32.
    """
    T, Bp, _ = x_tm.shape
    L = len(prepared)
    # Small static T -> full unroll for LLO visibility; bounded unroll for long T.
    unroll = True if T <= 16 else 4
    kernel = _make_stack_kernel(L, unroll)
    vmem = pl.BlockSpec(memory_space=pltpu.MemorySpace.VMEM)
    flat_w = [w for layer in prepared for w in layer]
    scratch_shapes = (
        [pltpu.VMEM((T, Bp, 4 * h), jnp.float32) for h in h_dims_p]
        + [pltpu.VMEM((T, Bp, h), jnp.float32) for h in h_dims_p[:-1]])
    return pl.pallas_call(
        kernel,
        out_shape=jax.ShapeDtypeStruct((T, Bp, h_dims_p[-1]), jnp.float32),
        in_specs=[vmem] * (1 + 3 * L),
        out_specs=vmem,
        scratch_shapes=scratch_shapes,
    )(x_tm, *flat_w)


# ----------------------------------------------------------------------------
# Parameter preparation: fuse gates, reorder (i,f,g,o) -> (i,f,o,g), zero-pad
# each gate block to 128 lanes, cast Wih to bf16 once.
# ----------------------------------------------------------------------------
def prepare_layer(raw, in_pad, h_pad):
    w_ih, w_hh, b_ih, b_hh = raw     # PyTorch shapes: (4H,in), (4H,H), (4H,), (4H,)
    H = w_hh.shape[1]
    b = b_ih + b_hh
    # PyTorch gate order is (i, f, g, o); kernel layout is (i, f, o | g).
    order = (0, 1, 3, 2)

    def pad_block(m, rp, cp):
        return jnp.zeros((rp, cp), m.dtype).at[:m.shape[0], :m.shape[1]].set(m)

    wih_blocks, whh_blocks, b_blocks = [], [], []
    for g in order:
        wih_blocks.append(pad_block(w_ih[g * H:(g + 1) * H, :].T, in_pad, h_pad))
        whh_blocks.append(pad_block(w_hh[g * H:(g + 1) * H, :].T, h_pad, h_pad))
        b_blocks.append(pad_block(b[g * H:(g + 1) * H][None, :], 1, h_pad))

    wih_f = jnp.concatenate(wih_blocks, axis=1).astype(jnp.bfloat16)  # (in_pad, 4*h_pad)
    whh_f = jnp.concatenate(whh_blocks, axis=1)                       # (h_pad, 4*h_pad) f32
    bias_f = jnp.concatenate(b_blocks, axis=1)                        # (1, 4*h_pad) f32
    return wih_f, whh_f, bias_f


def prepare_stack(raw_params, dims):
    in_dims_p = [_rup(d, LANE) for d in dims[:-1]]
    h_dims_p = [_rup(d, LANE) for d in dims[1:]]
    prepared = [prepare_layer(raw, in_dims_p[l], h_dims_p[l])
                for l, raw in enumerate(raw_params)]
    return prepared, in_dims_p, h_dims_p


# ----------------------------------------------------------------------------
# DynRNN forward (Pallas): encoder stack + decoder stack = 2 kernel launches
# ----------------------------------------------------------------------------
def dynrnn_forward(x, enc_raw, dec_raw, enc_dims, dec_dims):
    B, T, F = x.shape
    Bp = _rup(B, SUBLANE)

    enc_prep, enc_in_p, enc_h_p = prepare_stack(enc_raw, enc_dims)
    dec_prep, dec_in_p, dec_h_p = prepare_stack(dec_raw, dec_dims)
    assert enc_h_p[-1] == dec_in_p[0]

    x_tm = jnp.transpose(x, (1, 0, 2))                       # time-major
    x_pad = jnp.zeros((T, Bp, enc_in_p[0]), jnp.float32).at[:, :B, :F].set(x_tm)

    enc_out = mllstm_forward_pallas(x_pad, enc_prep, enc_h_p)    # (T, Bp, OUTp)
    hx = enc_out[-1, :B, :enc_dims[-1]]

    # Encoder's padded output feeds the decoder directly: padded lanes are
    # exactly zero and the decoder's padded Wih rows are zero, so no repack.
    dec_out = mllstm_forward_pallas(enc_out, dec_prep, dec_h_p)  # (T, Bp, INp)
    x_pred = dec_out[-1, :B, :dec_dims[-1]]
    return hx, x_pred


# ----------------------------------------------------------------------------
# Pure-JAX f32 reference (PyTorch nn.LSTM math, unfused/unpadded params)
# ----------------------------------------------------------------------------
def _lstm_layer_ref(x_tm, params):
    w_ih, w_hh, b_ih, b_hh = params
    H = w_hh.shape[1]
    B = x_tm.shape[1]

    def step(carry, x_t):
        h, c = carry
        gates = x_t @ w_ih.T + h @ w_hh.T + b_ih + b_hh
        i = jax.nn.sigmoid(gates[:, 0 * H:1 * H])
        f = jax.nn.sigmoid(gates[:, 1 * H:2 * H])
        g = jnp.tanh(gates[:, 2 * H:3 * H])
        o = jax.nn.sigmoid(gates[:, 3 * H:4 * H])
        c = f * c + i * g
        h = o * jnp.tanh(c)
        return (h, c), h

    init = (jnp.zeros((B, H), jnp.float32), jnp.zeros((B, H), jnp.float32))
    _, ys = jax.lax.scan(step, init, x_tm)
    return ys


def dynrnn_reference(x, enc_raw, dec_raw):
    cur = jnp.transpose(x, (1, 0, 2))
    for p in enc_raw:
        cur = _lstm_layer_ref(cur, p)
    hx = cur[-1]
    d = cur
    for p in dec_raw:
        d = _lstm_layer_ref(d, p)
    return hx, d[-1]


# ----------------------------------------------------------------------------
# Parameter init (matches nn.LSTM default U(-1/sqrt(H), 1/sqrt(H)))
# ----------------------------------------------------------------------------
def init_lstm_layer(key, in_dim, hidden):
    k = 1.0 / math.sqrt(hidden)
    k1, k2, k3, k4 = jax.random.split(key, 4)
    w_ih = jax.random.uniform(k1, (4 * hidden, in_dim), jnp.float32, -k, k)
    w_hh = jax.random.uniform(k2, (4 * hidden, hidden), jnp.float32, -k, k)
    b_ih = jax.random.uniform(k3, (4 * hidden,), jnp.float32, -k, k)
    b_hh = jax.random.uniform(k4, (4 * hidden,), jnp.float32, -k, k)
    return w_ih, w_hh, b_ih, b_hh


def init_mllstm(key, dims):
    return [init_lstm_layer(jax.random.fold_in(key, i), dims[i], dims[i + 1])
            for i in range(len(dims) - 1)]


# ----------------------------------------------------------------------------
# Main
# ----------------------------------------------------------------------------
if __name__ == "__main__":
    B, T = 2, 8                    # batch, sequence length
    INPUT_DIM = 32                 # stands in for num_nodes (= x_dim)
    OUTPUT_DIM = 32                # output_dim == x_dim in the original spec
    N_UNITS = [64, 32, 16]

    key = jax.random.PRNGKey(0)
    kx, ke, kd = jax.random.split(key, 3)

    x = jax.random.normal(kx, (B, T, INPUT_DIM), jnp.float32)

    # encoder: MLLSTM(input_dim, output_dim, n_units)
    enc_dims = [INPUT_DIM] + N_UNITS + [OUTPUT_DIM]          # [32, 64, 32, 16, 32]
    # decoder: MLLSTM(output_dim, input_dim, n_units[::-1])
    dec_dims = [OUTPUT_DIM] + N_UNITS[::-1] + [INPUT_DIM]    # [32, 16, 32, 64, 32]

    enc_raw = init_mllstm(ke, enc_dims)
    dec_raw = init_mllstm(kd, dec_dims)

    hx, x_pred = dynrnn_forward(x, enc_raw, dec_raw, enc_dims, dec_dims)
    hx = jax.block_until_ready(hx)
    x_pred = jax.block_until_ready(x_pred)

    hx_ref, x_pred_ref = dynrnn_reference(x, enc_raw, dec_raw)

    assert hx.shape == (B, OUTPUT_DIM)
    assert x_pred.shape == (B, INPUT_DIM)
    # bf16 input-projection operands vs the full-f32 reference -> modest tol.
    assert jnp.allclose(hx, hx_ref, atol=3e-2, rtol=3e-2), "hx mismatch"
    assert jnp.allclose(x_pred, x_pred_ref, atol=3e-2, rtol=3e-2), "x_pred mismatch"

    print("KERNEL_OK")
</pallas_src>

<mosaic_0001>
module attributes {stable_mosaic.version = 11 : i64} {
  func.func @kernel(%arg0: memref<8x8x128xf32, #tpu.memory_space<vmem>>, %arg1: memref<128x512xbf16, #tpu.memory_space<vmem>>, %arg2: memref<128x512xf32, #tpu.memory_space<vmem>>, %arg3: memref<1x512xf32, #tpu.memory_space<vmem>>, %arg4: memref<128x512xbf16, #tpu.memory_space<vmem>>, %arg5: memref<128x512xf32, #tpu.memory_space<vmem>>, %arg6: memref<1x512xf32, #tpu.memory_space<vmem>>, %arg7: memref<128x512xbf16, #tpu.memory_space<vmem>>, %arg8: memref<128x512xf32, #tpu.memory_space<vmem>>, %arg9: memref<1x512xf32, #tpu.memory_space<vmem>>, %arg10: memref<128x512xbf16, #tpu.memory_space<vmem>>, %arg11: memref<128x512xf32, #tpu.memory_space<vmem>>, %arg12: memref<1x512xf32, #tpu.memory_space<vmem>>, %arg13: memref<8x8x128xf32, #tpu.memory_space<vmem>>, %arg14: memref<8x8x512xf32, #tpu.memory_space<vmem>>, %arg15: memref<8x8x512xf32, #tpu.memory_space<vmem>>, %arg16: memref<8x8x512xf32, #tpu.memory_space<vmem>>, %arg17: memref<8x8x512xf32, #tpu.memory_space<vmem>>, %arg18: memref<8x8x128xf32, #tpu.memory_space<vmem>>, %arg19: memref<8x8x128xf32, #tpu.memory_space<vmem>>, %arg20: memref<8x8x128xf32, #tpu.memory_space<vmem>>) attributes {dimension_semantics = [], scalar_prefetch = 0 : i64, scratch_operands = 7 : i64, tpu.core_type = #tpu.core_type<tc>} {
    %c0 = arith.constant 0 : index
    %c0_0 = arith.constant 0 : index
    %c0_1 = arith.constant 0 : index
    %0 = vector.load %arg0[%c0, %c0_0, %c0_1] : memref<8x8x128xf32, #tpu.memory_space<vmem>>, vector<8x8x128xf32>
    %1 = vector.shape_cast %0 : vector<8x8x128xf32> to vector<64x128xf32>
    %2 = arith.truncf %1 : vector<64x128xf32> to vector<64x128xbf16>
    %c0_2 = arith.constant 0 : index
    %c0_3 = arith.constant 0 : index
    %3 = vector.load %arg1[%c0_2, %c0_3] : memref<128x512xbf16, #tpu.memory_space<vmem>>, vector<128x512xbf16>
    %cst = arith.constant dense<0.000000e+00> : vector<64x512xf32>
    %4 = tpu.matmul %2, %3, %cst {dimension_numbers = #tpu.dot_dimension_numbers<[1], [0], [0], [1], [0, 0, 1, 1], [], []>} : vector<64x128xbf16>, vector<128x512xbf16>, vector<64x512xf32> -> vector<64x512xf32>
    %c0_4 = arith.constant 0 : index
    %c0_5 = arith.constant 0 : index
    %5 = vector.load %arg3[%c0_4, %c0_5] : memref<1x512xf32, #tpu.memory_space<vmem>>, vector<1x512xf32>
    %6 = vector.broadcast %5 : vector<1x512xf32> to vector<64x512xf32>
    %7 = arith.addf %4, %6 : vector<64x512xf32>
    %8 = vector.shape_cast %7 : vector<64x512xf32> to vector<8x8x512xf32>
    %c0_6 = arith.constant 0 : index
    %c0_7 = arith.constant 0 : index
    %c0_8 = arith.constant 0 : index
    %9 = vector.load %arg14[%c0_6, %c0_7, %c0_8] : memref<8x8x512xf32, #tpu.memory_space<vmem>>, vector<8x8x512xf32>
    tpu.vector_store %arg14[%c0_6, %c0_7, %c0_8], %8 {strides = array<i32>} : memref<8x8x512xf32, #tpu.memory_space<vmem>>, vector<8x8x512xf32>,
    %c0_9 = arith.constant 0 : index
    %c0_10 = arith.constant 0 : index
    %10 = vector.load %arg2[%c0_9, %c0_10] : memref<128x512xf32, #tpu.memory_space<vmem>>, vector<128x512xf32>
    %cst_11 = arith.constant 0.000000e+00 : f32
    %11 = vector.broadcast %cst_11 : f32 to vector<8x128xf32>
    %cst_12 = arith.constant 0.000000e+00 : f32
    %12 = vector.broadcast %cst_12 : f32 to vector<8x128xf32>
    %c0_i32 = arith.constant 0 : i32
    %13 = arith.index_cast %c0_i32 : i32 to index
    %c0_13 = arith.constant 0 : index
    %c0_14 = arith.constant 0 : index
    %14 = vector.load %arg14[%13, %c0_13, %c0_14] : memref<8x8x512xf32, #tpu.memory_space<vmem>>, vector<1x8x512xf32>
    %15 = vector.shape_cast %14 : vector<1x8x512xf32> to vector<8x512xf32>
    %cst_15 = arith.constant dense<0.000000e+00> : vector<8x512xf32>
    %16 = tpu.matmul %11, %10, %cst_15 {dimension_numbers = #tpu.dot_dimension_numbers<[1], [0], [0], [1], [0, 0, 1, 1], [], []>} : vector<8x128xf32>, vector<128x512xf32>, vector<8x512xf32> -> vector<8x512xf32>
    %17 = arith.addf %15, %16 : vector<8x512xf32>
    %18 = vector.extract_strided_slice %17 {offsets = [0, 0], sizes = [8, 384], strides = [1, 1]} : vector<8x512xf32> to vector<8x384xf32>
    %19 = arith.negf %18 : vector<8x384xf32>
    %20 = math.exp %19 : vector<8x384xf32>
    %cst_16 = arith.constant 1.000000e+00 : f32
    %21 = vector.broadcast %cst_16 : f32 to vector<8x384xf32>
    %22 = arith.addf %21, %20 : vector<8x384xf32>
    %23 = arith.divf %21, %22 : vector<8x384xf32>
    %24 = vector.extract_strided_slice %23 {offsets = [0, 0], sizes = [8, 128], strides = [1, 1]} : vector<8x384xf32> to vector<8x128xf32>
    %25 = vector.extract_strided_slice %23 {offsets = [0, 128], sizes = [8, 128], strides = [1, 1]} : vector<8x384xf32> to vector<8x128xf32>
    %26 = vector.extract_strided_slice %23 {offsets = [0, 256], sizes = [8, 128], strides = [1, 1]} : vector<8x384xf32> to vector<8x128xf32>
    %27 = vector.extract_strided_slice %17 {offsets = [0, 384], sizes = [8, 128], strides = [1, 1]} : vector<8x512xf32> to vector<8x128xf32>
    %28 = math.tanh %27 : vector<8x128xf32>
    %29 = arith.mulf %25, %12 : vector<8x128xf32>
    %30 = arith.mulf %24, %28 : vector<8x128xf32>
    %31 = arith.addf %29, %30 : vector<8x128xf32>
    %32 = math.tanh %31 : vector<8x128xf32>
    %33 = arith.mulf %26, %32 : vector<8x128xf32>
    %34 = arith.index_cast %c0_i32 : i32 to index
    %c0_17 = arith.constant 0 : index
    %c0_18 = arith.constant 0 : index
    %35 = vector.load %arg18[%34, %c0_17, %c0_18] : memref<8x8x128xf32, #tpu.memory_space<vmem>>, vector<1x8x128xf32>
    %36 = vector.shape_cast %35 : vector<1x8x128xf32> to vector<8x128xf32>
    %37 = vector.shape_cast %33 : vector<8x128xf32> to vector<1x8x128xf32>
    tpu.vector_store %arg18[%34, %c0_17, %c0_18], %37 {strides = array<i32>} : memref<8x8x128xf32, #tpu.memory_space<vmem>>, vector<1x8x128xf32>,
    %c1_i32 = arith.constant 1 : i32
    %38 = arith.index_cast %c1_i32 : i32 to index
    %c0_19 = arith.constant 0 : index
    %c0_20 = arith.constant 0 : index
    %39 = vector.load %arg14[%38, %c0_19, %c0_20] : memref<8x8x512xf32, #tpu.memory_space<vmem>>, vector<1x8x512xf32>
    %40 = vector.shape_cast %39 : vector<1x8x512xf32> to vector<8x512xf32>
    %cst_21 = arith.constant dense<0.000000e+00> : vector<8x512xf32>
    %41 = tpu.matmul %33, %10, %cst_21 {dimension_numbers = #tpu.dot_dimension_numbers<[1], [0], [0], [1], [0, 0, 1, 1], [], []>} : vector<8x128xf32>, vector<128x512xf32>, vector<8x512xf32> -> vector<8x512xf32>
    %42 = arith.addf %40, %41 : vector<8x512xf32>
    %43 = vector.extract_strided_slice %42 {offsets = [0, 0], sizes = [8, 384], strides = [1, 1]} : vector<8x512xf32> to vector<8x384xf32>
    %44 = arith.negf %43 : vector<8x384xf32>
    %45 = math.exp %44 : vector<8x384xf32>
    %cst_22 = arith.constant 1.000000e+00 : f32
    %46 = vector.broadcast %cst_22 : f32 to vector<8x384xf32>
    %47 = arith.addf %46, %45 : vector<8x384xf32>
    %48 = arith.divf %46, %47 : vector<8x384xf32>
    %49 = vector.extract_strided_slice %48 {offsets = [0, 0], sizes = [8, 128], strides = [1, 1]} : vector<8x384xf32> to vector<8x128xf32>
    %50 = vector.extract_strided_slice %48 {offsets = [0, 128], sizes = [8, 128], strides = [1, 1]} : vector<8x384xf32> to vector<8x128xf32>
    %51 = vector.extract_strided_slice %48 {offsets = [0, 256], sizes = [8, 128], strides = [1, 1]} : vector<8x384xf32> to vector<8x128xf32>
    %52 = vector.extract_strided_slice %42 {offsets = [0, 384], sizes = [8, 128], strides = [1, 1]} : vector<8x512xf32> to vector<8x128xf32>
    %53 = math.tanh %52 : vector<8x128xf32>
    %54 = arith.mulf %50, %31 : vector<8x128xf32>
    %55 = arith.mulf %49, %53 : vector<8x128xf32>
    %56 = arith.addf %54, %55 : vector<8x128xf32>
    %57 = math.tanh %56 : vector<8x128xf32>
    %58 = arith.mulf %51, %57 : vector<8x128xf32>
    %59 = arith.index_cast %c1_i32 : i32 to index
    %c0_23 = arith.constant 0 : index
    %c0_24 = arith.constant 0 : index
    %60 = vector.load %arg18[%59, %c0_23, %c0_24] : memref<8x8x128xf32, #tpu.memory_space<vmem>>, vector<1x8x128xf32>
    %61 = vector.shape_cast %60 : vector<1x8x128xf32> to vector<8x128xf32>
    %62 = vector.shape_cast %58 : vector<8x128xf32> to vector<1x8x128xf32>
    tpu.vector_store %arg18[%59, %c0_23, %c0_24], %62 {strides = array<i32>} : memref<8x8x128xf32, #tpu.memory_space<vmem>>, vector<1x8x128xf32>,
    %c2_i32 = arith.constant 2 : i32
    %63 = arith.index_cast %c2_i32 : i32 to index
    %c0_25 = arith.constant 0 : index
    %c0_26 = arith.constant 0 : index
    %64 = vector.load %arg14[%63, %c0_25, %c0_26] : memref<8x8x512xf32, #tpu.memory_space<vmem>>, vector<1x8x512xf32>
    %65 = vector.shape_cast %64 : vector<1x8x512xf32> to vector<8x512xf32>
    %cst_27 = arith.constant dense<0.000000e+00> : vector<8x512xf32>
    %66 = tpu.matmul %58, %10, %cst_27 {dimension_numbers = #tpu.dot_dimension_numbers<[1], [0], [0], [1], [0, 0, 1, 1], [], []>} : vector<8x128xf32>, vector<128x512xf32>, vector<8x512xf32> -> vector<8x512xf32>
    %67 = arith.addf %65, %66 : vector<8x512xf32>
    %68 = vector.extract_strided_slice %67 {offsets = [0, 0], sizes = [8, 384], strides = [1, 1]} : vector<8x512xf32> to vector<8x384xf32>
    %69 = arith.negf %68 : vector<8x384xf32>
    %70 = math.exp %69 : vector<8x384xf32>
    %cst_28 = arith.constant 1.000000e+00 : f32
    %71 = vector.broadcast %cst_28 : f32 to vector<8x384xf32>
    %72 = arith.addf %71, %70 : vector<8x384xf32>
    %73 = arith.divf %71, %72 : vector<8x384xf32>
    %74 = vector.extract_strided_slice %73 {offsets = [0, 0], sizes = [8, 128], strides = [1, 1]} : vector<8x384xf32> to vector<8x128xf32>
    %75 = vector.extract_strided_slice %73 {offsets = [0, 128], sizes = [8, 128], strides = [1, 1]} : vector<8x384xf32> to vector<8x128xf32>
    %76 = vector.extract_strided_slice %73 {offsets = [0, 256], sizes = [8, 128], strides = [1, 1]} : vector<8x384xf32> to vector<8x128xf32>
    %77 = vector.extract_strided_slice %67 {offsets = [0, 384], sizes = [8, 128], strides = [1, 1]} : vector<8x512xf32> to vector<8x128xf32>
    %78 = math.tanh %77 : vector<8x128xf32>
    %79 = arith.mulf %75, %56 : vector<8x128xf32>
    %80 = arith.mulf %74, %78 : vector<8x128xf32>
    %81 = arith.addf %79, %80 : vector<8x128xf32>
    %82 = math.tanh %81 : vector<8x128xf32>
    %83 = arith.mulf %76, %82 : vector<8x128xf32>
    %84 = arith.index_cast %c2_i32 : i32 to index
    %c0_29 = arith.constant 0 : index
    %c0_30 = arith.constant 0 : index
    %85 = vector.load %arg18[%84, %c0_29, %c0_30] : memref<8x8x128xf32, #tpu.memory_space<vmem>>, vector<1x8x128xf32>
    %86 = vector.shape_cast %85 : vector<1x8x128xf32> to vector<8x128xf32>
    %87 = vector.shape_cast %83 : vector<8x128xf32> to vector<1x8x128xf32>
    tpu.vector_store %arg18[%84, %c0_29, %c0_30], %87 {strides = array<i32>} : memref<8x8x128xf32, #tpu.memory_space<vmem>>, vector<1x8x128xf32>,
    %c3_i32 = arith.constant 3 : i32
    %88 = arith.index_cast %c3_i32 : i32 to index
    %c0_31 = arith.constant 0 : index
    %c0_32 = arith.constant 0 : index
    %89 = vector.load %arg14[%88, %c0_31, %c0_32] : memref<8x8x512xf32, #tpu.memory_space<vmem>>, vector<1x8x512xf32>
    %90 = vector.shape_cast %89 : vector<1x8x512xf32> to vector<8x512xf32>
    %cst_33 = arith.constant dense<0.000000e+00> : vector<8x512xf32>
    %91 = tpu.matmul %83, %10, %cst_33 {dimension_numbers = #tpu.dot_dimension_numbers<[1], [0], [0], [1], [0, 0, 1, 1], [], []>} : vector<8x128xf32>, vector<128x512xf32>, vector<8x512xf32> -> vector<8x512xf32>
    %92 = arith.addf %90, %91 : vector<8x512xf32>
    %93 = vector.extract_strided_slice %92 {offsets = [0, 0], sizes = [8, 384], strides = [1, 1]} : vector<8x512xf32> to vector<8x384xf32>
    %94 = arith.negf %93 : vector<8x384xf32>
    %95 = math.exp %94 : vector<8x384xf32>
    %cst_34 = arith.constant 1.000000e+00 : f32
    %96 = vector.broadcast %cst_34 : f32 to vector<8x384xf32>
    %97 = arith.addf %96, %95 : vector<8x384xf32>
    %98 = arith.divf %96, %97 : vector<8x384xf32>
    %99 = vector.extract_strided_slice %98 {offsets = [0, 0], sizes = [8, 128], strides = [1, 1]} : vector<8x384xf32> to vector<8x128xf32>
    %100 = vector.extract_strided_slice %98 {offsets = [0, 128], sizes = [8, 128], strides = [1, 1]} : vector<8x384xf32> to vector<8x128xf32>
    %101 = vector.extract_strided_slice %98 {offsets = [0, 256], sizes = [8, 128], strides = [1, 1]} : vector<8x384xf32> to vector<8x128xf32>
    %102 = vector.extract_strided_slice %92 {offsets = [0, 384], sizes = [8, 128], strides = [1, 1]} : vector<8x512xf32> to vector<8x128xf32>
    %103 = math.tanh %102 : vector<8x128xf32>
    %104 = arith.mulf %100, %81 : vector<8x128xf32>
    %105 = arith.mulf %99, %103 : vector<8x128xf32>
    %106 = arith.addf %104, %105 : vector<8x128xf32>
    %107 = math.tanh %106 : vector<8x128xf32>
    %108 = arith.mulf %101, %107 : vector<8x128xf32>
    %109 = arith.index_cast %c3_i32 : i32 to index
    %c0_35 = arith.constant 0 : index
    %c0_36 = arith.constant 0 : index
    %110 = vector.load %arg18[%109, %c0_35, %c0_36] : memref<8x8x128xf32, #tpu.memory_space<vmem>>, vector<1x8x128xf32>
    %111 = vector.shape_cast %110 : vector<1x8x128xf32> to vector<8x128xf32>
    %112 = vector.shape_cast %108 : vector<8x128xf32> to vector<1x8x128xf32>
    tpu.vector_store %arg18[%109, %c0_35, %c0_36], %112 {strides = array<i32>} : memref<8x8x128xf32, #tpu.memory_space<vmem>>, vector<1x8x128xf32>,
    %c4_i32 = arith.constant 4 : i32
    %113 = arith.index_cast %c4_i32 : i32 to index
    %c0_37 = arith.constant 0 : index
    %c0_38 = arith.constant 0 : index
    %114 = vector.load %arg14[%113, %c0_37, %c0_38] : memref<8x8x512xf32, #tpu.memory_space<vmem>>, vector<1x8x512xf32>
    %115 = vector.shape_cast %114 : vector<1x8x512xf32> to vector<8x512xf32>
    %cst_39 = arith.constant dense<0.000000e+00> : vector<8x512xf32>
    %116 = tpu.matmul %108, %10, %cst_39 {dimension_numbers = #tpu.dot_dimension_numbers<[1], [0], [0], [1], [0, 0, 1, 1], [], []>} : vector<8x128xf32>, vector<128x512xf32>, vector<8x512xf32> -> vector<8x512xf32>
    %117 = arith.addf %115, %116 : vector<8x512xf32>
    %118 = vector.extract_strided_slice %117 {offsets = [0, 0], sizes = [8, 384], strides = [1, 1]} : vector<8x512xf32> to vector<8x384xf32>
    %119 = arith.negf %118 : vector<8x384xf32>
    %120 = math.exp %119 : vector<8x384xf32>
    %cst_40 = arith.constant 1.000000e+00 : f32
    %121 = vector.broadcast %cst_40 : f32 to vector<8x384xf32>
    %122 = arith.addf %121, %120 : vector<8x384xf32>
    %123 = arith.divf %121, %122 : vector<8x384xf32>
    %124 = vector.extract_strided_slice %123 {offsets = [0, 0], sizes = [8, 128], strides = [1, 1]} : vector<8x384xf32> to vector<8x128xf32>
    %125 = vector.extract_strided_slice %123 {offsets = [0, 128], sizes = [8, 128], strides = [1, 1]} : vector<8x384xf32> to vector<8x128xf32>
    %126 = vector.extract_strided_slice %123 {offsets = [0, 256], sizes = [8, 128], strides = [1, 1]} : vector<8x384xf32> to vector<8x128xf32>
    %127 = vector.extract_strided_slice %117 {offsets = [0, 384], sizes = [8, 128], strides = [1, 1]} : vector<8x512xf32> to vector<8x128xf32>
    %128 = math.tanh %127 : vector<8x128xf32>
    %129 = arith.mulf %125, %106 : vector<8x128xf32>
    %130 = arith.mulf %124, %128 : vector<8x128xf32>
    %131 = arith.addf %129, %130 : vector<8x128xf32>
    %132 = math.tanh %131 : vector<8x128xf32>
    %133 = arith.mulf %126, %132 : vector<8x128xf32>
    %134 = arith.index_cast %c4_i32 : i32 to index
    %c0_41 = arith.constant 0 : index
    %c0_42 = arith.constant 0 : index
    %135 = vector.load %arg18[%134, %c0_41, %c0_42] : memref<8x8x128xf32, #tpu.memory_space<vmem>>, vector<1x8x128xf32>
    %136 = vector.shape_cast %135 : vector<1x8x128xf32> to vector<8x128xf32>
    %137 = vector.shape_cast %133 : vector<8x128xf32> to vector<1x8x128xf32>
    tpu.vector_store %arg18[%134, %c0_41, %c0_42], %137 {strides = array<i32>} : memref<8x8x128xf32, #tpu.memory_space<vmem>>, vector<1x8x128xf32>,
    %c5_i32 = arith.constant 5 : i32
    %138 = arith.index_cast %c5_i32 : i32 to index
    %c0_43 = arith.constant 0 : index
    %c0_44 = arith.constant 0 : index
    %139 = vector.load %arg14[%138, %c0_43, %c0_44] : memref<8x8x512xf32, #tpu.memory_space<vmem>>, vector<1x8x512xf32>
    %140 = vector.shape_cast %139 : vector<1x8x512xf32> to vector<8x512xf32>
    %cst_45 = arith.constant dense<0.000000e+00> : vector<8x512xf32>
    %141 = tpu.matmul %133, %10, %cst_45 {dimension_numbers = #tpu.dot_dimension_numbers<[1], [0], [0], [1], [0, 0, 1, 1], [], []>} : vector<8x128xf32>, vector<128x512xf32>, vector<8x512xf32> -> vector<8x512xf32>
    %142 = arith.addf %140, %141 : vector<8x512xf32>
    %143 = vector.extract_strided_slice %142 {offsets = [0, 0], sizes = [8, 384], strides = [1, 1]} : vector<8x512xf32> to vector<8x384xf32>
    %144 = arith.negf %143 : vector<8x384xf32>
    %145 = math.exp %144 : vector<8x384xf32>
    %cst_46 = arith.constant 1.000000e+00 : f32
    %146 = vector.broadcast %cst_46 : f32 to vector<8x384xf32>
    %147 = arith.addf %146, %145 : vector<8x384xf32>
    %148 = arith.divf %146, %147 : vector<8x384xf32>
    %149 = vector.extract_strided_slice %148 {offsets = [0, 0], sizes = [8, 128], strides = [1, 1]} : vector<8x384xf32> to vector<8x128xf32>
    %150 = vector.extract_strided_slice %148 {offsets = [0, 128], sizes = [8, 128], strides = [1, 1]} : vector<8x384xf32> to vector<8x128xf32>
    %151 = vector.extract_strided_slice %148 {offsets = [0, 256], sizes = [8, 128], strides = [1, 1]} : vector<8x384xf32> to vector<8x128xf32>
    %152 = vector.extract_strided_slice %142 {offsets = [0, 384], sizes = [8, 128], strides = [1, 1]} : vector<8x512xf32> to vector<8x128xf32>
    %153 = math.tanh %152 : vector<8x128xf32>
    %154 = arith.mulf %150, %131 : vector<8x128xf32>
    %155 = arith.mulf %149, %153 : vector<8x128xf32>
    %156 = arith.addf %154, %155 : vector<8x128xf32>
    %157 = math.tanh %156 : vector<8x128xf32>
    %158 = arith.mulf %151, %157 : vector<8x128xf32>
    %159 = arith.index_cast %c5_i32 : i32 to index
    %c0_47 = arith.constant 0 : index
    %c0_48 = arith.constant 0 : index
    %160 = vector.load %arg18[%159, %c0_47, %c0_48] : memref<8x8x128xf32, #tpu.memory_space<vmem>>, vector<1x8x128xf32>
    %161 = vector.shape_cast %160 : vector<1x8x128xf32> to vector<8x128xf32>
    %162 = vector.shape_cast %158 : vector<8x128xf32> to vector<1x8x128xf32>
    tpu.vector_store %arg18[%159, %c0_47, %c0_48], %162 {strides = array<i32>} : memref<8x8x128xf32, #tpu.memory_space<vmem>>, vector<1x8x128xf32>,
    %c6_i32 = arith.constant 6 : i32
    %163 = arith.index_cast %c6_i32 : i32 to index
    %c0_49 = arith.constant 0 : index
    %c0_50 = arith.constant 0 : index
    %164 = vector.load %arg14[%163, %c0_49, %c0_50] : memref<8x8x512xf32, #tpu.memory_space<vmem>>, vector<1x8x512xf32>
    %165 = vector.shape_cast %164 : vector<1x8x512xf32> to vector<8x512xf32>
    %cst_51 = arith.constant dense<0.000000e+00> : vector<8x512xf32>
    %166 = tpu.matmul %158, %10, %cst_51 {dimension_numbers = #tpu.dot_dimension_numbers<[1], [0], [0], [1], [0, 0, 1, 1], [], []>} : vector<8x128xf32>, vector<128x512xf32>, vector<8x512xf32> -> vector<8x512xf32>
    %167 = arith.addf %165, %166 : vector<8x512xf32>
    %168 = vector.extract_strided_slice %167 {offsets = [0, 0], sizes = [8, 384], strides = [1, 1]} : vector<8x512xf32> to vector<8x384xf32>
    %169 = arith.negf %168 : vector<8x384xf32>
    %170 = math.exp %169 : vector<8x384xf32>
    %cst_52 = arith.constant 1.000000e+00 : f32
    %171 = vector.broadcast %cst_52 : f32 to vector<8x384xf32>
    %172 = arith.addf %171, %170 : vector<8x384xf32>
    %173 = arith.divf %171, %172 : vector<8x384xf32>
    %174 = vector.extract_strided_slice %173 {offsets = [0, 0], sizes = [8, 128], strides = [1, 1]} : vector<8x384xf32> to vector<8x128xf32>
    %175 = vector.extract_strided_slice %173 {offsets = [0, 128], sizes = [8, 128], strides = [1, 1]} : vector<8x384xf32> to vector<8x128xf32>
    %176 = vector.extract_strided_slice %173 {offsets = [0, 256], sizes = [8, 128], strides = [1, 1]} : vector<8x384xf32> to vector<8x128xf32>
    %177 = vector.extract_strided_slice %167 {offsets = [0, 384], sizes = [8, 128], strides = [1, 1]} : vector<8x512xf32> to vector<8x128xf32>
    %178 = math.tanh %177 : vector<8x128xf32>
    %179 = arith.mulf %175, %156 : vector<8x128xf32>
    %180 = arith.mulf %174, %178 : vector<8x128xf32>
    %181 = arith.addf %179, %180 : vector<8x128xf32>
    %182 = math.tanh %181 : vector<8x128xf32>
    %183 = arith.mulf %176, %182 : vector<8x128xf32>
    %184 = arith.index_cast %c6_i32 : i32 to index
    %c0_53 = arith.constant 0 : index
    %c0_54 = arith.constant 0 : index
    %185 = vector.load %arg18[%184, %c0_53, %c0_54] : memref<8x8x128xf32, #tpu.memory_space<vmem>>, vector<1x8x128xf32>
    %186 = vector.shape_cast %185 : vector<1x8x128xf32> to vector<8x128xf32>
    %187 = vector.shape_cast %183 : vector<8x128xf32> to vector<1x8x128xf32>
    tpu.vector_store %arg18[%184, %c0_53, %c0_54], %187 {strides = array<i32>} : memref<8x8x128xf32, #tpu.memory_space<vmem>>, vector<1x8x128xf32>,
    %c7_i32 = arith.constant 7 : i32
    %188 = arith.index_cast %c7_i32 : i32 to index
    %c0_55 = arith.constant 0 : index
    %c0_56 = arith.constant 0 : index
    %189 = vector.load %arg14[%188, %c0_55, %c0_56] : memref<8x8x512xf32, #tpu.memory_space<vmem>>, vector<1x8x512xf32>
    %190 = vector.shape_cast %189 : vector<1x8x512xf32> to vector<8x512xf32>
    %cst_57 = arith.constant dense<0.000000e+00> : vector<8x512xf32>
    %191 = tpu.matmul %183, %10, %cst_57 {dimension_numbers = #tpu.dot_dimension_numbers<[1], [0], [0], [1], [0, 0, 1, 1], [], []>} : vector<8x128xf32>, vector<128x512xf32>, vector<8x512xf32> -> vector<8x512xf32>
    %192 = arith.addf %190, %191 : vector<8x512xf32>
    %193 = vector.extract_strided_slice %192 {offsets = [0, 0], sizes = [8, 384], strides = [1, 1]} : vector<8x512xf32> to vector<8x384xf32>
    %194 = arith.negf %193 : vector<8x384xf32>
    %195 = math.exp %194 : vector<8x384xf32>
    %cst_58 = arith.constant 1.000000e+00 : f32
    %196 = vector.broadcast %cst_58 : f32 to vector<8x384xf32>
    %197 = arith.addf %196, %195 : vector<8x384xf32>
    %198 = arith.divf %196, %197 : vector<8x384xf32>
    %199 = vector.extract_strided_slice %198 {offsets = [0, 0], sizes = [8, 128], strides = [1, 1]} : vector<8x384xf32> to vector<8x128xf32>
    %200 = vector.extract_strided_slice %198 {offsets = [0, 128], sizes = [8, 128], strides = [1, 1]} : vector<8x384xf32> to vector<8x128xf32>
    %201 = vector.extract_strided_slice %198 {offsets = [0, 256], sizes = [8, 128], strides = [1, 1]} : vector<8x384xf32> to vector<8x128xf32>
    %202 = vector.extract_strided_slice %192 {offsets = [0, 384], sizes = [8, 128], strides = [1, 1]} : vector<8x512xf32> to vector<8x128xf32>
    %203 = math.tanh %202 : vector<8x128xf32>
    %204 = arith.mulf %200, %181 : vector<8x128xf32>
    %205 = arith.mulf %199, %203 : vector<8x128xf32>
    %206 = arith.addf %204, %205 : vector<8x128xf32>
    %207 = math.tanh %206 : vector<8x128xf32>
    %208 = arith.mulf %201, %207 : vector<8x128xf32>
    %209 = arith.index_cast %c7_i32 : i32 to index
    %c0_59 = arith.constant 0 : index
    %c0_60 = arith.constant 0 : index
    %210 = vector.load %arg18[%209, %c0_59, %c0_60] : memref<8x8x128xf32, #tpu.memory_space<vmem>>, vector<1x8x128xf32>
    %211 = vector.shape_cast %210 : vector<1x8x128xf32> to vector<8x128xf32>
    %212 = vector.shape_cast %208 : vector<8x128xf32> to vector<1x8x128xf32>
    tpu.vector_store %arg18[%209, %c0_59, %c0_60], %212 {strides = array<i32>} : memref<8x8x128xf32, #tpu.memory_space<vmem>>, vector<1x8x128xf32>,
    %c8_i32 = arith.constant 8 : i32
    %c0_61 = arith.constant 0 : index
    %c0_62 = arith.constant 0 : index
    %c0_63 = arith.constant 0 : index
    %213 = vector.load %arg18[%c0_61, %c0_62, %c0_63] : memref<8x8x128xf32, #tpu.memory_space<vmem>>, vector<8x8x128xf32>
    %214 = vector.shape_cast %213 : vector<8x8x128xf32> to vector<64x128xf32>
    %215 = arith.truncf %214 : vector<64x128xf32> to vector<64x128xbf16>
    %c0_64 = arith.constant 0 : index
    %c0_65 = arith.constant 0 : index
    %216 = vector.load %arg4[%c0_64, %c0_65] : memref<128x512xbf16, #tpu.memory_space<vmem>>, vector<128x512xbf16>
    %cst_66 = arith.constant dense<0.000000e+00> : vector<64x512xf32>
    %217 = tpu.matmul %215, %216, %cst_66 {dimension_numbers = #tpu.dot_dimension_numbers<[1], [0], [0], [1], [0, 0, 1, 1], [], []>} : vector<64x128xbf16>, vector<128x512xbf16>, vector<64x512xf32> -> vector<64x512xf32>
    %c0_67 = arith.constant 0 : index
    %c0_68 = arith.constant 0 : index
    %218 = vector.load %arg6[%c0_67, %c0_68] : memref<1x512xf32, #tpu.memory_space<vmem>>, vector<1x512xf32>
    %219 = vector.broadcast %218 : vector<1x512xf32> to vector<64x512xf32>
    %220 = arith.addf %217, %219 : vector<64x512xf32>
    %221 = vector.shape_cast %220 : vector<64x512xf32> to vector<8x8x512xf32>
    %c0_69 = arith.constant 0 : index
    %c0_70 = arith.constant 0 : index
    %c0_71 = arith.constant 0 : index
    %222 = vector.load %arg15[%c0_69, %c0_70, %c0_71] : memref<8x8x512xf32, #tpu.memory_space<vmem>>, vector<8x8x512xf32>
    tpu.vector_store %arg15[%c0_69, %c0_70, %c0_71], %221 {strides = array<i32>} : memref<8x8x512xf32, #tpu.memory_space<vmem>>, vector<8x8x512xf32>,
    %c0_72 = arith.constant 0 : index
    %c0_73 = arith.constant 0 : index
    %223 = vector.load %arg5[%c0_72, %c0_73] : memref<128x512xf32, #tpu.memory_space<vmem>>, vector<128x512xf32>
    %cst_74 = arith.constant 0.000000e+00 : f32
    %224 = vector.broadcast %cst_74 : f32 to vector<8x128xf32>
    %cst_75 = arith.constant 0.000000e+00 : f32
    %225 = vector.broadcast %cst_75 : f32 to vector<8x128xf32>
    %c0_i32_76 = arith.constant 0 : i32
    %226 = arith.index_cast %c0_i32_76 : i32 to index
    %c0_77 = arith.constant 0 : index
    %c0_78 = arith.constant 0 : index
    %227 = vector.load %arg15[%226, %c0_77, %c0_78] : memref<8x8x512xf32, #tpu.memory_space<vmem>>, vector<1x8x512xf32>
    %228 = vector.shape_cast %227 : vector<1x8x512xf32> to vector<8x512xf32>
    %cst_79 = arith.constant dense<0.000000e+00> : vector<8x512xf32>
    %229 = tpu.matmul %224, %223, %cst_79 {dimension_numbers = #tpu.dot_dimension_numbers<[1], [0], [0], [1], [0, 0, 1, 1], [], []>} : vector<8x128xf32>, vector<128x512xf32>, vector<8x512xf32> -> vector<8x512xf32>
    %230 = arith.addf %228, %229 : vector<8x512xf32>
    %231 = vector.extract_strided_slice %230 {offsets = [0, 0], sizes = [8, 384], strides = [1, 1]} : vector<8x512xf32> to vector<8x384xf32>
    %232 = arith.negf %231 : vector<8x384xf32>
    %233 = math.exp %232 : vector<8x384xf32>
    %cst_80 = arith.constant 1.000000e+00 : f32
    %234 = vector.broadcast %cst_80 : f32 to vector<8x384xf32>
    %235 = arith.addf %234, %233 : vector<8x384xf32>
    %236 = arith.divf %234, %235 : vector<8x384xf32>
    %237 = vector.extract_strided_slice %236 {offsets = [0, 0], sizes = [8, 128], strides = [1, 1]} : vector<8x384xf32> to vector<8x128xf32>
    %238 = vector.extract_strided_slice %236 {offsets = [0, 128], sizes = [8, 128], strides = [1, 1]} : vector<8x384xf32> to vector<8x128xf32>
    %239 = vector.extract_strided_slice %236 {offsets = [0, 256], sizes = [8, 128], strides = [1, 1]} : vector<8x384xf32> to vector<8x128xf32>
    %240 = vector.extract_strided_slice %230 {offsets = [0, 384], sizes = [8, 128], strides = [1, 1]} : vector<8x512xf32> to vector<8x128xf32>
    %241 = math.tanh %240 : vector<8x128xf32>
    %242 = arith.mulf %238, %225 : vector<8x128xf32>
    %243 = arith.mulf %237, %241 : vector<8x128xf32>
    %244 = arith.addf %242, %243 : vector<8x128xf32>
    %245 = math.tanh %244 : vector<8x128xf32>
    %246 = arith.mulf %239, %245 : vector<8x128xf32>
    %247 = arith.index_cast %c0_i32_76 : i32 to index
    %c0_81 = arith.constant 0 : index
    %c0_82 = arith.constant 0 : index
    %248 = vector.load %arg19[%247, %c0_81, %c0_82] : memref<8x8x128xf32, #tpu.memory_space<vmem>>, vector<1x8x128xf32>
    %249 = vector.shape_cast %248 : vector<1x8x128xf32> to vector<8x128xf32>
    %250 = vector.shape_cast %246 : vector<8x128xf32> to vector<1x8x128xf32>
    tpu.vector_store %arg19[%247, %c0_81, %c0_82], %250 {strides = array<i32>} : memref<8x8x128xf32, #tpu.memory_space<vmem>>, vector<1x8x128xf32>,
    %c1_i32_83 = arith.constant 1 : i32
    %251 = arith.index_cast %c1_i32_83 : i32 to index
    %c0_84 = arith.constant 0 : index
    %c0_85 = arith.constant 0 : index
    %252 = vector.load %arg15[%251, %c0_84, %c0_85] : memref<8x8x512xf32, #tpu.memory_space<vmem>>, vector<1x8x512xf32>
    %253 = vector.shape_cast %252 : vector<1x8x512xf32> to vector<8x512xf32>
    %cst_86 = arith.constant dense<0.000000e+00> : vector<8x512xf32>
    %254 = tpu.matmul %246, %223, %cst_86 {dimension_numbers = #tpu.dot_dimension_numbers<[1], [0], [0], [1], [0, 0, 1, 1], [], []>} : vector<8x128xf32>, vector<128x512xf32>, vector<8x512xf32> -> vector<8x512xf32>
    %255 = arith.addf %253, %254 : vector<8x512xf32>
    %256 = vector.extract_strided_slice %255 {offsets = [0, 0], sizes = [8, 384], strides = [1, 1]} : vector<8x512xf32> to vector<8x384xf32>
    %257 = arith.negf %256 : vector<8x384xf32>
    %258 = math.exp %257 : vector<8x384xf32>
    %cst_87 = arith.constant 1.000000e+00 : f32
    %259 = vector.broadcast %cst_87 : f32 to vector<8x384xf32>
    %260 = arith.addf %259, %258 : vector<8x384xf32>
    %261 = arith.divf %259, %260 : vector<8x384xf32>
    %262 = vector.extract_strided_slice %261 {offsets = [0, 0], sizes = [8, 128], strides = [1, 1]} : vector<8x384xf32> to vector<8x128xf32>
    %263 = vector.extract_strided_slice %261 {offsets = [0, 128], sizes = [8, 128], strides = [1, 1]} : vector<8x384xf32> to vector<8x128xf32>
    %264 = vector.extract_strided_slice %261 {offsets = [0, 256], sizes = [8, 128], strides = [1, 1]} : vector<8x384xf32> to vector<8x128xf32>
    %265 = vector.extract_strided_slice %255 {offsets = [0, 384], sizes = [8, 128], strides = [1, 1]} : vector<8x512xf32> to vector<8x128xf32>
    %266 = math.tanh %265 : vector<8x128xf32>
    %267 = arith.mulf %263, %244 : vector<8x128xf32>
    %268 = arith.mulf %262, %266 : vector<8x128xf32>
    %269 = arith.addf %267, %268 : vector<8x128xf32>
    %270 = math.tanh %269 : vector<8x128xf32>
    %271 = arith.mulf %264, %270 : vector<8x128xf32>
    %272 = arith.index_cast %c1_i32_83 : i32 to index
    %c0_88 = arith.constant 0 : index
    %c0_89 = arith.constant 0 : index
    %273 = vector.load %arg19[%272, %c0_88, %c0_89] : memref<8x8x128xf32, #tpu.memory_space<vmem>>, vector<1x8x128xf32>
    %274 = vector.shape_cast %273 : vector<1x8x128xf32> to vector<8x128xf32>
    %275 = vector.shape_cast %271 : vector<8x128xf32> to vector<1x8x128xf32>
    tpu.vector_store %arg19[%272, %c0_88, %c0_89], %275 {strides = array<i32>} : memref<8x8x128xf32, #tpu.memory_space<vmem>>, vector<1x8x128xf32>,
    %c2_i32_90 = arith.constant 2 : i32
    %276 = arith.index_cast %c2_i32_90 : i32 to index
    %c0_91 = arith.constant 0 : index
    %c0_92 = arith.constant 0 : index
    %277 = vector.load %arg15[%276, %c0_91, %c0_92] : memref<8x8x512xf32, #tpu.memory_space<vmem>>, vector<1x8x512xf32>
    %278 = vector.shape_cast %277 : vector<1x8x512xf32> to vector<8x512xf32>
    %cst_93 = arith.constant dense<0.000000e+00> : vector<8x512xf32>
    %279 = tpu.matmul %271, %223, %cst_93 {dimension_numbers = #tpu.dot_dimension_numbers<[1], [0], [0], [1], [0, 0, 1, 1], [], []>} : vector<8x128xf32>, vector<128x512xf32>, vector<8x512xf32> -> vector<8x512xf32>
    %280 = arith.addf %278, %279 : vector<8x512xf32>
    %281 = vector.extract_strided_slice %280 {offsets = [0, 0], sizes = [8, 384], strides = [1, 1]} : vector<8x512xf32> to vector<8x384xf32>
    %282 = arith.negf %281 : vector<8x384xf32>
    %283 = math.exp %282 : vector<8x384xf32>
    %cst_94 = arith.constant 1.000000e+00 : f32
    %284 = vector.broadcast %cst_94 : f32 to vector<8x384xf32>
    %285 = arith.addf %284, %283 : vector<8x384xf32>
    %286 = arith.divf %284, %285 : vector<8x384xf32>
    %287 = vector.extract_strided_slice %286 {offsets = [0, 0], sizes = [8, 128], strides = [1, 1]} : vector<8x384xf32> to vector<8x128xf32>
    %288 = vector.extract_strided_slice %286 {offsets = [0, 128], sizes = [8, 128], strides = [1, 1]} : vector<8x384xf32> to vector<8x128xf32>
    %289 = vector.extract_strided_slice %286 {offsets = [0, 256], sizes = [8, 128], strides = [1, 1]} : vector<8x384xf32> to vector<8x128xf32>
    %290 = vector.extract_strided_slice %280 {offsets = [0, 384], sizes = [8, 128], strides = [1, 1]} : vector<8x512xf32> to vector<8x128xf32>
    %291 = math.tanh %290 : vector<8x128xf32>
    %292 = arith.mulf %288, %269 : vector<8x128xf32>
    %293 = arith.mulf %287, %291 : vector<8x128xf32>
    %294 = arith.addf %292, %293 : vector<8x128xf32>
    %295 = math.tanh %294 : vector<8x128xf32>
    %296 = arith.mulf %289, %295 : vector<8x128xf32>
    %297 = arith.index_cast %c2_i32_90 : i32 to index
    %c0_95 = arith.constant 0 : index
    %c0_96 = arith.constant 0 : index
    %298 = vector.load %arg19[%297, %c0_95, %c0_96] : memref<8x8x128xf32, #tpu.memory_space<vmem>>, vector<1x8x128xf32>
    %299 = vector.shape_cast %298 : vector<1x8x128xf32> to vector<8x128xf32>
    %300 = vector.shape_cast %296 : vector<8x128xf32> to vector<1x8x128xf32>
    tpu.vector_store %arg19[%297, %c0_95, %c0_96], %300 {strides = array<i32>} : memref<8x8x128xf32, #tpu.memory_space<vmem>>, vector<1x8x128xf32>,
    %c3_i32_97 = arith.constant 3 : i32
    %301 = arith.index_cast %c3_i32_97 : i32 to index
    %c0_98 = arith.constant 0 : index
    %c0_99 = arith.constant 0 : index
    %302 = vector.load %arg15[%301, %c0_98, %c0_99] : memref<8x8x512xf32, #tpu.memory_space<vmem>>, vector<1x8x512xf32>
    %303 = vector.shape_cast %302 : vector<1x8x512xf32> to vector<8x512xf32>
    %cst_100 = arith.constant dense<0.000000e+00> : vector<8x512xf32>
    %304 = tpu.matmul %296, %223, %cst_100 {dimension_numbers = #tpu.dot_dimension_numbers<[1], [0], [0], [1], [0, 0, 1, 1], [], []>} : vector<8x128xf32>, vector<128x512xf32>, vector<8x512xf32> -> vector<8x512xf32>
    %305 = arith.addf %303, %304 : vector<8x512xf32>
    %306 = vector.extract_strided_slice %305 {offsets = [0, 0], sizes = [8, 384], strides = [1, 1]} : vector<8x512xf32> to vector<8x384xf32>
    %307 = arith.negf %306 : vector<8x384xf32>
    %308 = math.exp %307 : vector<8x384xf32>
    %cst_101 = arith.constant 1.000000e+00 : f32
    %309 = vector.broadcast %cst_101 : f32 to vector<8x384xf32>
    %310 = arith.addf %309, %308 : vector<8x384xf32>
    %311 = arith.divf %309, %310 : vector<8x384xf32>
    %312 = vector.extract_strided_slice %311 {offsets = [0, 0], sizes = [8, 128], strides = [1, 1]} : vector<8x384xf32> to vector<8x128xf32>
    %313 = vector.extract_strided_slice %311 {offsets = [0, 128], sizes = [8, 128], strides = [1, 1]} : vector<8x384xf32> to vector<8x128xf32>
    %314 = vector.extract_strided_slice %311 {offsets = [0, 256], sizes = [8, 128], strides = [1, 1]} : vector<8x384xf32> to vector<8x128xf32>
    %315 = vector.extract_strided_slice %305 {offsets = [0, 384], sizes = [8, 128], strides = [1, 1]} : vector<8x512xf32> to vector<8x128xf32>
    %316 = math.tanh %315 : vector<8x128xf32>
    %317 = arith.mulf %313, %294 : vector<8x128xf32>
    %318 = arith.mulf %312, %316 : vector<8x128xf32>
    %319 = arith.addf %317, %318 : vector<8x128xf32>
    %320 = math.tanh %319 : vector<8x128xf32>
    %321 = arith.mulf %314, %320 : vector<8x128xf32>
    %322 = arith.index_cast %c3_i32_97 : i32 to index
    %c0_102 = arith.constant 0 : index
    %c0_103 = arith.constant 0 : index
    %323 = vector.load %arg19[%322, %c0_102, %c0_103] : memref<8x8x128xf32, #tpu.memory_space<vmem>>, vector<1x8x128xf32>
    %324 = vector.shape_cast %323 : vector<1x8x128xf32> to vector<8x128xf32>
    %325 = vector.shape_cast %321 : vector<8x128xf32> to vector<1x8x128xf32>
    tpu.vector_store %arg19[%322, %c0_102, %c0_103], %325 {strides = array<i32>} : memref<8x8x128xf32, #tpu.memory_space<vmem>>, vector<1x8x128xf32>,
    %c4_i32_104 = arith.constant 4 : i32
    %326 = arith.index_cast %c4_i32_104 : i32 to index
    %c0_105 = arith.constant 0 : index
    %c0_106 = arith.constant 0 : index
    %327 = vector.load %arg15[%326, %c0_105, %c0_106] : memref<8x8x512xf32, #tpu.memory_space<vmem>>, vector<1x8x512xf32>
    %328 = vector.shape_cast %327 : vector<1x8x512xf32> to vector<8x512xf32>
    %cst_107 = arith.constant dense<0.000000e+00> : vector<8x512xf32>
    %329 = tpu.matmul %321, %223, %cst_107 {dimension_numbers = #tpu.dot_dimension_numbers<[1], [0], [0], [1], [0, 0, 1, 1], [], []>} : vector<8x128xf32>, vector<128x512xf32>, vector<8x512xf32> -> vector<8x512xf32>
    %330 = arith.addf %328, %329 : vector<8x512xf32>
    %331 = vector.extract_strided_slice %330 {offsets = [0, 0], sizes = [8, 384], strides = [1, 1]} : vector<8x512xf32> to vector<8x384xf32>
    %332 = arith.negf %331 : vector<8x384xf32>
    %333 = math.exp %332 : vector<8x384xf32>
    %cst_108 = arith.constant 1.000000e+00 : f32
    %334 = vector.broadcast %cst_108 : f32 to vector<8x384xf32>
    %335 = arith.addf %334, %333 : vector<8x384xf32>
    %336 = arith.divf %334, %335 : vector<8x384xf32>
    %337 = vector.extract_strided_slice %336 {offsets = [0, 0], sizes = [8, 128], strides = [1, 1]} : vector<8x384xf32> to vector<8x128xf32>
    %338 = vector.extract_strided_slice %336 {offsets = [0, 128], sizes = [8, 128], strides = [1, 1]} : vector<8x384xf32> to vector<8x128xf32>
    %339 = vector.extract_strided_slice %336 {offsets = [0, 256], sizes = [8, 128], strides = [1, 1]} : vector<8x384xf32> to vector<8x128xf32>
    %340 = vector.extract_strided_slice %330 {offsets = [0, 384], sizes = [8, 128], strides = [1, 1]} : vector<8x512xf32> to vector<8x128xf32>
    %341 = math.tanh %340 : vector<8x128xf32>
    %342 = arith.mulf %338, %319 : vector<8x128xf32>
    %343 = arith.mulf %337, %341 : vector<8x128xf32>
    %344 = arith.addf %342, %343 : vector<8x128xf32>
    %345 = math.tanh %344 : vector<8x128xf32>
    %346 = arith.mulf %339, %345 : vector<8x128xf32>
    %347 = arith.index_cast %c4_i32_104 : i32 to index
    %c0_109 = arith.constant 0 : index
    %c0_110 = arith.constant 0 : index
    %348 = vector.load %arg19[%347, %c0_109, %c0_110] : memref<8x8x128xf32, #tpu.memory_space<vmem>>, vector<1x8x128xf32>
    %349 = vector.shape_cast %348 : vector<1x8x128xf32> to vector<8x128xf32>
    %350 = vector.shape_cast %346 : vector<8x128xf32> to vector<1x8x128xf32>
    tpu.vector_store %arg19[%347, %c0_109, %c0_110], %350 {strides = array<i32>} : memref<8x8x128xf32, #tpu.memory_space<vmem>>, vector<1x8x128xf32>,
    %c5_i32_111 = arith.constant 5 : i32
    %351 = arith.index_cast %c5_i32_111 : i32 to index
    %c0_112 = arith.constant 0 : index
    %c0_113 = arith.constant 0 : index
    %352 = vector.load %arg15[%351, %c0_112, %c0_113] : memref<8x8x512xf32, #tpu.memory_space<vmem>>, vector<1x8x512xf32>
    %353 = vector.shape_cast %352 : vector<1x8x512xf32> to vector<8x512xf32>
    %cst_114 = arith.constant dense<0.000000e+00> : vector<8x512xf32>
    %354 = tpu.matmul %346, %223, %cst_114 {dimension_numbers = #tpu.dot_dimension_numbers<[1], [0], [0], [1], [0, 0, 1, 1], [], []>} : vector<8x128xf32>, vector<128x512xf32>, vector<8x512xf32> -> vector<8x512xf32>
    %355 = arith.addf %353, %354 : vector<8x512xf32>
    %356 = vector.extract_strided_slice %355 {offsets = [0, 0], sizes = [8, 384], strides = [1, 1]} : vector<8x512xf32> to vector<8x384xf32>
    %357 = arith.negf %356 : vector<8x384xf32>
    %358 = math.exp %357 : vector<8x384xf32>
    %cst_115 = arith.constant 1.000000e+00 : f32
    %359 = vector.broadcast %cst_115 : f32 to vector<8x384xf32>
    %360 = arith.addf %359, %358 : vector<8x384xf32>
    %361 = arith.divf %359, %360 : vector<8x384xf32>
    %362 = vector.extract_strided_slice %361 {offsets = [0, 0], sizes = [8, 128], strides = [1, 1]} : vector<8x384xf32> to vector<8x128xf32>
    %363 = vector.extract_strided_slice %361 {offsets = [0, 128], sizes = [8, 128], strides = [1, 1]} : vector<8x384xf32> to vector<8x128xf32>
    %364 = vector.extract_strided_slice %361 {offsets = [0, 256], sizes = [8, 128], strides = [1, 1]} : vector<8x384xf32> to vector<8x128xf32>
    %365 = vector.extract_strided_slice %355 {offsets = [0, 384], sizes = [8, 128], strides = [1, 1]} : vector<8x512xf32> to vector<8x128xf32>
    %366 = math.tanh %365 : vector<8x128xf32>
    %367 = arith.mulf %363, %344 : vector<8x128xf32>
    %368 = arith.mulf %362, %366 : vector<8x128xf32>
    %369 = arith.addf %367, %368 : vector<8x128xf32>
    %370 = math.tanh %369 : vector<8x128xf32>
    %371 = arith.mulf %364, %370 : vector<8x128xf32>
    %372 = arith.index_cast %c5_i32_111 : i32 to index
    %c0_116 = arith.constant 0 : index
    %c0_117 = arith.constant 0 : index
    %373 = vector.load %arg19[%372, %c0_116, %c0_117] : memref<8x8x128xf32, #tpu.memory_space<vmem>>, vector<1x8x128xf32>
    %374 = vector.shape_cast %373 : vector<1x8x128xf32> to vector<8x128xf32>
    %375 = vector.shape_cast %371 : vector<8x128xf32> to vector<1x8x128xf32>
    tpu.vector_store %arg19[%372, %c0_116, %c0_117], %375 {strides = array<i32>} : memref<8x8x128xf32, #tpu.memory_space<vmem>>, vector<1x8x128xf32>,
    %c6_i32_118 = arith.constant 6 : i32
    %376 = arith.index_cast %c6_i32_118 : i32 to index
    %c0_119 = arith.constant 0 : index
    %c0_120 = arith.constant 0 : index
    %377 = vector.load %arg15[%376, %c0_119, %c0_120] : memref<8x8x512xf32, #tpu.memory_space<vmem>>, vector<1x8x512xf32>
    %378 = vector.shape_cast %377 : vector<1x8x512xf32> to vector<8x512xf32>
    %cst_121 = arith.constant dense<0.000000e+00> : vector<8x512xf32>
    %379 = tpu.matmul %371, %223, %cst_121 {dimension_numbers = #tpu.dot_dimension_numbers<[1], [0], [0], [1], [0, 0, 1, 1], [], []>} : vector<8x128xf32>, vector<128x512xf32>, vector<8x512xf32> -> vector<8x512xf32>
    %380 = arith.addf %378, %379 : vector<8x512xf32>
    %381 = vector.extract_strided_slice %380 {offsets = [0, 0], sizes = [8, 384], strides = [1, 1]} : vector<8x512xf32> to vector<8x384xf32>
    %382 = arith.negf %381 : vector<8x384xf32>
    %383 = math.exp %382 : vector<8x384xf32>
    %cst_122 = arith.constant 1.000000e+00 : f32
    %384 = vector.broadcast %cst_122 : f32 to vector<8x384xf32>
    %385 = arith.addf %384, %383 : vector<8x384xf32>
    %386 = arith.divf %384, %385 : vector<8x384xf32>
    %387 = vector.extract_strided_slice %386 {offsets = [0, 0], sizes = [8, 128], strides = [1, 1]} : vector<8x384xf32> to vector<8x128xf32>
    %388 = vector.extract_strided_slice %386 {offsets = [0, 128], sizes = [8, 128], strides = [1, 1]} : vector<8x384xf32> to vector<8x128xf32>
    %389 = vector.extract_strided_slice %386 {offsets = [0, 256], sizes = [8, 128], strides = [1, 1]} : vector<8x384xf32> to vector<8x128xf32>
    %390 = vector.extract_strided_slice %380 {offsets = [0, 384], sizes = [8, 128], strides = [1, 1]} : vector<8x512xf32> to vector<8x128xf32>
    %391 = math.tanh %390 : vector<8x128xf32>
    %392 = arith.mulf %388, %369 : vector<8x128xf32>
    %393 = arith.mulf %387, %391 : vector<8x128xf32>
    %394 = arith.addf %392, %393 : vector<8x128xf32>
    %395 = math.tanh %394 : vector<8x128xf32>
    %396 = arith.mulf %389, %395 : vector<8x128xf32>
    %397 = arith.index_cast %c6_i32_118 : i32 to index
    %c0_123 = arith.constant 0 : index
    %c0_124 = arith.constant 0 : index
    %398 = vector.load %arg19[%397, %c0_123, %c0_124] : memref<8x8x128xf32, #tpu.memory_space<vmem>>, vector<1x8x128xf32>
    %399 = vector.shape_cast %398 : vector<1x8x128xf32> to vector<8x128xf32>
    %400 = vector.shape_cast %396 : vector<8x128xf32> to vector<1x8x128xf32>
    tpu.vector_store %arg19[%397, %c0_123, %c0_124], %400 {strides = array<i32>} : memref<8x8x128xf32, #tpu.memory_space<vmem>>, vector<1x8x128xf32>,
    %c7_i32_125 = arith.constant 7 : i32
    %401 = arith.index_cast %c7_i32_125 : i32 to index
    %c0_126 = arith.constant 0 : index
    %c0_127 = arith.constant 0 : index
    %402 = vector.load %arg15[%401, %c0_126, %c0_127] : memref<8x8x512xf32, #tpu.memory_space<vmem>>, vector<1x8x512xf32>
    %403 = vector.shape_cast %402 : vector<1x8x512xf32> to vector<8x512xf32>
    %cst_128 = arith.constant dense<0.000000e+00> : vector<8x512xf32>
    %404 = tpu.matmul %396, %223, %cst_128 {dimension_numbers = #tpu.dot_dimension_numbers<[1], [0], [0], [1], [0, 0, 1, 1], [], []>} : vector<8x128xf32>, vector<128x512xf32>, vector<8x512xf32> -> vector<8x512xf32>
    %405 = arith.addf %403, %404 : vector<8x512xf32>
    %406 = vector.extract_strided_slice %405 {offsets = [0, 0], sizes = [8, 384], strides = [1, 1]} : vector<8x512xf32> to vector<8x384xf32>
    %407 = arith.negf %406 : vector<8x384xf32>
    %408 = math.exp %407 : vector<8x384xf32>
    %cst_129 = arith.constant 1.000000e+00 : f32
    %409 = vector.broadcast %cst_129 : f32 to vector<8x384xf32>
    %410 = arith.addf %409, %408 : vector<8x384xf32>
    %411 = arith.divf %409, %410 : vector<8x384xf32>
    %412 = vector.extract_strided_slice %411 {offsets = [0, 0], sizes = [8, 128], strides = [1, 1]} : vector<8x384xf32> to vector<8x128xf32>
    %413 = vector.extract_strided_slice %411 {offsets = [0, 128], sizes = [8, 128], strides = [1, 1]} : vector<8x384xf32> to vector<8x128xf32>
    %414 = vector.extract_strided_slice %411 {offsets = [0, 256], sizes = [8, 128], strides = [1, 1]} : vector<8x384xf32> to vector<8x128xf32>
    %415 = vector.extract_strided_slice %405 {offsets = [0, 384], sizes = [8, 128], strides = [1, 1]} : vector<8x512xf32> to vector<8x128xf32>
    %416 = math.tanh %415 : vector<8x128xf32>
    %417 = arith.mulf %413, %394 : vector<8x128xf32>
    %418 = arith.mulf %412, %416 : vector<8x128xf32>
    %419 = arith.addf %417, %418 : vector<8x128xf32>
    %420 = math.tanh %419 : vector<8x128xf32>
    %421 = arith.mulf %414, %420 : vector<8x128xf32>
    %422 = arith.index_cast %c7_i32_125 : i32 to index
    %c0_130 = arith.constant 0 : index
    %c0_131 = arith.constant 0 : index
    %423 = vector.load %arg19[%422, %c0_130, %c0_131] : memref<8x8x128xf32, #tpu.memory_space<vmem>>, vector<1x8x128xf32>
    %424 = vector.shape_cast %423 : vector<1x8x128xf32> to vector<8x128xf32>
    %425 = vector.shape_cast %421 : vector<8x128xf32> to vector<1x8x128xf32>
    tpu.vector_store %arg19[%422, %c0_130, %c0_131], %425 {strides = array<i32>} : memref<8x8x128xf32, #tpu.memory_space<vmem>>, vector<1x8x128xf32>,
    %c8_i32_132 = arith.constant 8 : i32
    %c0_133 = arith.constant 0 : index
    %c0_134 = arith.constant 0 : index
    %c0_135 = arith.constant 0 : index
    %426 = vector.load %arg19[%c0_133, %c0_134, %c0_135] : memref<8x8x128xf32, #tpu.memory_space<vmem>>, vector<8x8x128xf32>
    %427 = vector.shape_cast %426 : vector<8x8x128xf32> to vector<64x128xf32>
    %428 = arith.truncf %427 : vector<64x128xf32> to vector<64x128xbf16>
    %c0_136 = arith.constant 0 : index
    %c0_137 = arith.constant 0 : index
    %429 = vector.load %arg7[%c0_136, %c0_137] : memref<128x512xbf16, #tpu.memory_space<vmem>>, vector<128x512xbf16>
    %cst_138 = arith.constant dense<0.000000e+00> : vector<64x512xf32>
    %430 = tpu.matmul %428, %429, %cst_138 {dimension_numbers = #tpu.dot_dimension_numbers<[1], [0], [0], [1], [0, 0, 1, 1], [], []>} : vector<64x128xbf16>, vector<128x512xbf16>, vector<64x512xf32> -> vector<64x512xf32>
    %c0_139 = arith.constant 0 : index
    %c0_140 = arith.constant 0 : index
    %431 = vector.load %arg9[%c0_139, %c0_140] : memref<1x512xf32, #tpu.memory_space<vmem>>, vector<1x512xf32>
    %432 = vector.broadcast %431 : vector<1x512xf32> to vector<64x512xf32>
    %433 = arith.addf %430, %432 : vector<64x512xf32>
    %434 = vector.shape_cast %433 : vector<64x512xf32> to vector<8x8x512xf32>
    %c0_141 = arith.constant 0 : index
    %c0_142 = arith.constant 0 : index
    %c0_143 = arith.constant 0 : index
    %435 = vector.load %arg16[%c0_141, %c0_142, %c0_143] : memref<8x8x512xf32, #tpu.memory_space<vmem>>, vector<8x8x512xf32>
    tpu.vector_store %arg16[%c0_141, %c0_142, %c0_143], %434 {strides = array<i32>} : memref<8x8x512xf32, #tpu.memory_space<vmem>>, vector<8x8x512xf32>,
    %c0_144 = arith.constant 0 : index
    %c0_145 = arith.constant 0 : index
    %436 = vector.load %arg8[%c0_144, %c0_145] : memref<128x512xf32, #tpu.memory_space<vmem>>, vector<128x512xf32>
    %cst_146 = arith.constant 0.000000e+00 : f32
    %437 = vector.broadcast %cst_146 : f32 to vector<8x128xf32>
    %cst_147 = arith.constant 0.000000e+00 : f32
    %438 = vector.broadcast %cst_147 : f32 to vector<8x128xf32>
    %c0_i32_148 = arith.constant 0 : i32
    %439 = arith.index_cast %c0_i32_148 : i32 to index
    %c0_149 = arith.constant 0 : index
    %c0_150 = arith.constant 0 : index
    %440 = vector.load %arg16[%439, %c0_149, %c0_150] : memref<8x8x512xf32, #tpu.memory_space<vmem>>, vector<1x8x512xf32>
    %441 = vector.shape_cast %440 : vector<1x8x512xf32> to vector<8x512xf32>
    %cst_151 = arith.constant dense<0.000000e+00> : vector<8x512xf32>
    %442 = tpu.matmul %437, %436, %cst_151 {dimension_numbers = #tpu.dot_dimension_numbers<[1], [0], [0], [1], [0, 0, 1, 1], [], []>} : vector<8x128xf32>, vector<128x512xf32>, vector<8x512xf32> -> vector<8x512xf32>
    %443 = arith.addf %441, %442 : vector<8x512xf32>
    %444 = vector.extract_strided_slice %443 {offsets = [0, 0], sizes = [8, 384], strides = [1, 1]} : vector<8x512xf32> to vector<8x384xf32>
    %445 = arith.negf %444 : vector<8x384xf32>
    %446 = math.exp %445 : vector<8x384xf32>
    %cst_152 = arith.constant 1.000000e+00 : f32
    %447 = vector.broadcast %cst_152 : f32 to vector<8x384xf32>
    %448 = arith.addf %447, %446 : vector<8x384xf32>
    %449 = arith.divf %447, %448 : vector<8x384xf32>
    %450 = vector.extract_strided_slice %449 {offsets = [0, 0], sizes = [8, 128], strides = [1, 1]} : vector<8x384xf32> to vector<8x128xf32>
    %451 = vector.extract_strided_slice %449 {offsets = [0, 128], sizes = [8, 128], strides = [1, 1]} : vector<8x384xf32> to vector<8x128xf32>
    %452 = vector.extract_strided_slice %449 {offsets = [0, 256], sizes = [8, 128], strides = [1, 1]} : vector<8x384xf32> to vector<8x128xf32>
    %453 = vector.extract_strided_slice %443 {offsets = [0, 384], sizes = [8, 128], strides = [1, 1]} : vector<8x512xf32> to vector<8x128xf32>
    %454 = math.tanh %453 : vector<8x128xf32>
    %455 = arith.mulf %451, %438 : vector<8x128xf32>
    %456 = arith.mulf %450, %454 : vector<8x128xf32>
    %457 = arith.addf %455, %456 : vector<8x128xf32>
    %458 = math.tanh %457 : vector<8x128xf32>
    %459 = arith.mulf %452, %458 : vector<8x128xf32>
    %460 = arith.index_cast %c0_i32_148 : i32 to index
    %c0_153 = arith.constant 0 : index
    %c0_154 = arith.constant 0 : index
    %461 = vector.load %arg20[%460, %c0_153, %c0_154] : memref<8x8x128xf32, #tpu.memory_space<vmem>>, vector<1x8x128xf32>
    %462 = vector.shape_cast %461 : vector<1x8x128xf32> to vector<8x128xf32>
    %463 = vector.shape_cast %459 : vector<8x128xf32> to vector<1x8x128xf32>
    tpu.vector_store %arg20[%460, %c0_153, %c0_154], %463 {strides = array<i32>} : memref<8x8x128xf32, #tpu.memory_space<vmem>>, vector<1x8x128xf32>,
    %c1_i32_155 = arith.constant 1 : i32
    %464 = arith.index_cast %c1_i32_155 : i32 to index
    %c0_156 = arith.constant 0 : index
    %c0_157 = arith.constant 0 : index
    %465 = vector.load %arg16[%464, %c0_156, %c0_157] : memref<8x8x512xf32, #tpu.memory_space<vmem>>, vector<1x8x512xf32>
    %466 = vector.shape_cast %465 : vector<1x8x512xf32> to vector<8x512xf32>
    %cst_158 = arith.constant dense<0.000000e+00> : vector<8x512xf32>
    %467 = tpu.matmul %459, %436, %cst_158 {dimension_numbers = #tpu.dot_dimension_numbers<[1], [0], [0], [1], [0, 0, 1, 1], [], []>} : vector<8x128xf32>, vector<128x512xf32>, vector<8x512xf32> -> vector<8x512xf32>
    %468 = arith.addf %466, %467 : vector<8x512xf32>
    %469 = vector.extract_strided_slice %468 {offsets = [0, 0], sizes = [8, 384], strides = [1, 1]} : vector<8x512xf32> to vector<8x384xf32>
    %470 = arith.negf %469 : vector<8x384xf32>
    %471 = math.exp %470 : vector<8x384xf32>
    %cst_159 = arith.constant 1.000000e+00 : f32
    %472 = vector.broadcast %cst_159 : f32 to vector<8x384xf32>
    %473 = arith.addf %472, %471 : vector<8x384xf32>
    %474 = arith.divf %472, %473 : vector<8x384xf32>
    %475 = vector.extract_strided_slice %474 {offsets = [0, 0], sizes = [8, 128], strides = [1, 1]} : vector<8x384xf32> to vector<8x128xf32>
    %476 = vector.extract_strided_slice %474 {offsets = [0, 128], sizes = [8, 128], strides = [1, 1]} : vector<8x384xf32> to vector<8x128xf32>
    %477 = vector.extract_strided_slice %474 {offsets = [0, 256], sizes = [8, 128], strides = [1, 1]} : vector<8x384xf32> to vector<8x128xf32>
    %478 = vector.extract_strided_slice %468 {offsets = [0, 384], sizes = [8, 128], strides = [1, 1]} : vector<8x512xf32> to vector<8x128xf32>
    %479 = math.tanh %478 : vector<8x128xf32>
    %480 = arith.mulf %476, %457 : vector<8x128xf32>
    %481 = arith.mulf %475, %479 : vector<8x128xf32>
    %482 = arith.addf %480, %481 : vector<8x128xf32>
    %483 = math.tanh %482 : vector<8x128xf32>
    %484 = arith.mulf %477, %483 : vector<8x128xf32>
    %485 = arith.index_cast %c1_i32_155 : i32 to index
    %c0_160 = arith.constant 0 : index
    %c0_161 = arith.constant 0 : index
    %486 = vector.load %arg20[%485, %c0_160, %c0_161] : memref<8x8x128xf32, #tpu.memory_space<vmem>>, vector<1x8x128xf32>
    %487 = vector.shape_cast %486 : vector<1x8x128xf32> to vector<8x128xf32>
    %488 = vector.shape_cast %484 : vector<8x128xf32> to vector<1x8x128xf32>
    tpu.vector_store %arg20[%485, %c0_160, %c0_161], %488 {strides = array<i32>} : memref<8x8x128xf32, #tpu.memory_space<vmem>>, vector<1x8x128xf32>,
    %c2_i32_162 = arith.constant 2 : i32
    %489 = arith.index_cast %c2_i32_162 : i32 to index
    %c0_163 = arith.constant 0 : index
    %c0_164 = arith.constant 0 : index
    %490 = vector.load %arg16[%489, %c0_163, %c0_164] : memref<8x8x512xf32, #tpu.memory_space<vmem>>, vector<1x8x512xf32>
    %491 = vector.shape_cast %490 : vector<1x8x512xf32> to vector<8x512xf32>
    %cst_165 = arith.constant dense<0.000000e+00> : vector<8x512xf32>
    %492 = tpu.matmul %484, %436, %cst_165 {dimension_numbers = #tpu.dot_dimension_numbers<[1], [0], [0], [1], [0, 0, 1, 1], [], []>} : vector<8x128xf32>, vector<128x512xf32>, vector<8x512xf32> -> vector<8x512xf32>
    %493 = arith.addf %491, %492 : vector<8x512xf32>
    %494 = vector.extract_strided_slice %493 {offsets = [0, 0], sizes = [8, 384], strides = [1, 1]} : vector<8x512xf32> to vector<8x384xf32>
    %495 = arith.negf %494 : vector<8x384xf32>
    %496 = math.exp %495 : vector<8x384xf32>
    %cst_166 = arith.constant 1.000000e+00 : f32
    %497 = vector.broadcast %cst_166 : f32 to vector<8x384xf32>
    %498 = arith.addf %497, %496 : vector<8x384xf32>
    %499 = arith.divf %497, %498 : vector<8x384xf32>
    %500 = vector.extract_strided_slice %499 {offsets = [0, 0], sizes = [8, 128], strides = [1, 1]} : vector<8x384xf32> to vector<8x128xf32>
    %501 = vector.extract_strided_slice %499 {offsets = [0, 128], sizes = [8, 128], strides = [1, 1]} : vector<8x384xf32> to vector<8x128xf32>
    %502 = vector.extract_strided_slice %499 {offsets = [0, 256], sizes = [8, 128], strides = [1, 1]} : vector<8x384xf32> to vector<8x128xf32>
    %503 = vector.extract_strided_slice %493 {offsets = [0, 384], sizes = [8, 128], strides = [1, 1]} : vector<8x512xf32> to vector<8x128xf32>
    %504 = math.tanh %503 : vector<8x128xf32>
    %505 = arith.mulf %501, %482 : vector<8x128xf32>
    %506 = arith.mulf %500, %504 : vector<8x128xf32>
    %507 = arith.addf %505, %506 : vector<8x128xf32>
    %508 = math.tanh %507 : vector<8x128xf32>
    %509 = arith.mulf %502, %508 : vector<8x128xf32>
    %510 = arith.index_cast %c2_i32_162 : i32 to index
    %c0_167 = arith.constant 0 : index
    %c0_168 = arith.constant 0 : index
    %511 = vector.load %arg20[%510, %c0_167, %c0_168] : memref<8x8x128xf32, #tpu.memory_space<vmem>>, vector<1x8x128xf32>
    %512 = vector.shape_cast %511 : vector<1x8x128xf32> to vector<8x128xf32>
    %513 = vector.shape_cast %509 : vector<8x128xf32> to vector<1x8x128xf32>
    tpu.vector_store %arg20[%510, %c0_167, %c0_168], %513 {strides = array<i32>} : memref<8x8x128xf32, #tpu.memory_space<vmem>>, vector<1x8x128xf32>,
    %c3_i32_169 = arith.constant 3 : i32
    %514 = arith.index_cast %c3_i32_169 : i32 to index
    %c0_170 = arith.constant 0 : index
    %c0_171 = arith.constant 0 : index
    %515 = vector.load %arg16[%514, %c0_170, %c0_171] : memref<8x8x512xf32, #tpu.memory_space<vmem>>, vector<1x8x512xf32>
    %516 = vector.shape_cast %515 : vector<1x8x512xf32> to vector<8x512xf32>
    %cst_172 = arith.constant dense<0.000000e+00> : vector<8x512xf32>
    %517 = tpu.matmul %509, %436, %cst_172 {dimension_numbers = #tpu.dot_dimension_numbers<[1], [0], [0], [1], [0, 0, 1, 1], [], []>} : vector<8x128xf32>, vector<128x512xf32>, vector<8x512xf32> -> vector<8x512xf32>
    %518 = arith.addf %516, %517 : vector<8x512xf32>
    %519 = vector.extract_strided_slice %518 {offsets = [0, 0], sizes = [8, 384], strides = [1, 1]} : vector<8x512xf32> to vector<8x384xf32>
    %520 = arith.negf %519 : vector<8x384xf32>
    %521 = math.exp %520 : vector<8x384xf32>
    %cst_173 = arith.constant 1.000000e+00 : f32
    %522 = vector.broadcast %cst_173 : f32 to vector<8x384xf32>
    %523 = arith.addf %522, %521 : vector<8x384xf32>
    %524 = arith.divf %522, %523 : vector<8x384xf32>
    %525 = vector.extract_strided_slice %524 {offsets = [0, 0], sizes = [8, 128], strides = [1, 1]} : vector<8x384xf32> to vector<8x128xf32>
    %526 = vector.extract_strided_slice %524 {offsets = [0, 128], sizes = [8, 128], strides = [1, 1]} : vector<8x384xf32> to vector<8x128xf32>
    %527 = vector.extract_strided_slice %524 {offsets = [0, 256], sizes = [8, 128], strides = [1, 1]} : vector<8x384xf32> to vector<8x128xf32>
    %528 = vector.extract_strided_slice %518 {offsets = [0, 384], sizes = [8, 128], strides = [1, 1]} : vector<8x512xf32> to vector<8x128xf32>
    %529 = math.tanh %528 : vector<8x128xf32>
    %530 = arith.mulf %526, %507 : vector<8x128xf32>
    %531 = arith.mulf %525, %529 : vector<8x128xf32>
    %532 = arith.addf %530, %531 : vector<8x128xf32>
    %533 = math.tanh %532 : vector<8x128xf32>
    %534 = arith.mulf %527, %533 : vector<8x128xf32>
    %535 = arith.index_cast %c3_i32_169 : i32 to index
    %c0_174 = arith.constant 0 : index
    %c0_175 = arith.constant 0 : index
    %536 = vector.load %arg20[%535, %c0_174, %c0_175] : memref<8x8x128xf32, #tpu.memory_space<vmem>>, vector<1x8x128xf32>
    %537 = vector.shape_cast %536 : vector<1x8x128xf32> to vector<8x128xf32>
    %538 = vector.shape_cast %534 : vector<8x128xf32> to vector<1x8x128xf32>
    tpu.vector_store %arg20[%535, %c0_174, %c0_175], %538 {strides = array<i32>} : memref<8x8x128xf32, #tpu.memory_space<vmem>>, vector<1x8x128xf32>,
    %c4_i32_176 = arith.constant 4 : i32
    %539 = arith.index_cast %c4_i32_176 : i32 to index
    %c0_177 = arith.constant 0 : index
    %c0_178 = arith.constant 0 : index
    %540 = vector.load %arg16[%539, %c0_177, %c0_178] : memref<8x8x512xf32, #tpu.memory_space<vmem>>, vector<1x8x512xf32>
    %541 = vector.shape_cast %540 : vector<1x8x512xf32> to vector<8x512xf32>
    %cst_179 = arith.constant dense<0.000000e+00> : vector<8x512xf32>
    %542 = tpu.matmul %534, %436, %cst_179 {dimension_numbers = #tpu.dot_dimension_numbers<[1], [0], [0], [1], [0, 0, 1, 1], [], []>} : vector<8x128xf32>, vector<128x512xf32>, vector<8x512xf32> -> vector<8x512xf32>
    %543 = arith.addf %541, %542 : vector<8x512xf32>
    %544 = vector.extract_strided_slice %543 {offsets = [0, 0], sizes = [8, 384], strides = [1, 1]} : vector<8x512xf32> to vector<8x384xf32>
    %545 = arith.negf %544 : vector<8x384xf32>
    %546 = math.exp %545 : vector<8x384xf32>
    %cst_180 = arith.constant 1.000000e+00 : f32
    %547 = vector.broadcast %cst_180 : f32 to vector<8x384xf32>
    %548 = arith.addf %547, %546 : vector<8x384xf32>
    %549 = arith.divf %547, %548 : vector<8x384xf32>
    %550 = vector.extract_strided_slice %549 {offsets = [0, 0], sizes = [8, 128], strides = [1, 1]} : vector<8x384xf32> to vector<8x128xf32>
    %551 = vector.extract_strided_slice %549 {offsets = [0, 128], sizes = [8, 128], strides = [1, 1]} : vector<8x384xf32> to vector<8x128xf32>
    %552 = vector.extract_strided_slice %549 {offsets = [0, 256], sizes = [8, 128], strides = [1, 1]} : vector<8x384xf32> to vector<8x128xf32>
    %553 = vector.extract_strided_slice %543 {offsets = [0, 384], sizes = [8, 128], strides = [1, 1]} : vector<8x512xf32> to vector<8x128xf32>
    %554 = math.tanh %553 : vector<8x128xf32>
    %555 = arith.mulf %551, %532 : vector<8x128xf32>
    %556 = arith.mulf %550, %554 : vector<8x128xf32>
    %557 = arith.addf %555, %556 : vector<8x128xf32>
    %558 = math.tanh %557 : vector<8x128xf32>
    %559 = arith.mulf %552, %558 : vector<8x128xf32>
    %560 = arith.index_cast %c4_i32_176 : i32 to index
    %c0_181 = arith.constant 0 : index
    %c0_182 = arith.constant 0 : index
    %561 = vector.load %arg20[%560, %c0_181, %c0_182] : memref<8x8x128xf32, #tpu.memory_space<vmem>>, vector<1x8x128xf32>
    %562 = vector.shape_cast %561 : vector<1x8x128xf32> to vector<8x128xf32>
    %563 = vector.shape_cast %559 : vector<8x128xf32> to vector<1x8x128xf32>
    tpu.vector_store %arg20[%560, %c0_181, %c0_182], %563 {strides = array<i32>} : memref<8x8x128xf32, #tpu.memory_space<vmem>>, vector<1x8x128xf32>,
    %c5_i32_183 = arith.constant 5 : i32
    %564 = arith.index_cast %c5_i32_183 : i32 to index
    %c0_184 = arith.constant 0 : index
    %c0_185 = arith.constant 0 : index
    %565 = vector.load %arg16[%564, %c0_184, %c0_185] : memref<8x8x512xf32, #tpu.memory_space<vmem>>, vector<1x8x512xf32>
    %566 = vector.shape_cast %565 : vector<1x8x512xf32> to vector<8x512xf32>
    %cst_186 = arith.constant dense<0.000000e+00> : vector<8x512xf32>
    %567 = tpu.matmul %559, %436, %cst_186 {dimension_numbers = #tpu.dot_dimension_numbers<[1], [0], [0], [1], [0, 0, 1, 1], [], []>} : vector<8x128xf32>, vector<128x512xf32>, vector<8x512xf32> -> vector<8x512xf32>
    %568 = arith.addf %566, %567 : vector<8x512xf32>
    %569 = vector.extract_strided_slice %568 {offsets = [0, 0], sizes = [8, 384], strides = [1, 1]} : vector<8x512xf32> to vector<8x384xf32>
    %570 = arith.negf %569 : vector<8x384xf32>
    %571 = math.exp %570 : vector<8x384xf32>
    %cst_187 = arith.constant 1.000000e+00 : f32
    %572 = vector.broadcast %cst_187 : f32 to vector<8x384xf32>
    %573 = arith.addf %572, %571 : vector<8x384xf32>
    %574 = arith.divf %572, %573 : vector<8x384xf32>
    %575 = vector.extract_strided_slice %574 {offsets = [0, 0], sizes = [8, 128], strides = [1, 1]} : vector<8x384xf32> to vector<8x128xf32>
    %576 = vector.extract_strided_slice %574 {offsets = [0, 128], sizes = [8, 128], strides = [1, 1]} : vector<8x384xf32> to vector<8x128xf32>
    %577 = vector.extract_strided_slice %574 {offsets = [0, 256], sizes = [8, 128], strides = [1, 1]} : vector<8x384xf32> to vector<8x128xf32>
    %578 = vector.extract_strided_slice %568 {offsets = [0, 384], sizes = [8, 128], strides = [1, 1]} : vector<8x512xf32> to vector<8x128xf32>
    %579 = math.tanh %578 : vector<8x128xf32>
    %580 = arith.mulf %576, %557 : vector<8x128xf32>
    %581 = arith.mulf %575, %579 : vector<8x128xf32>
    %582 = arith.addf %580, %581 : vector<8x128xf32>
    %583 = math.tanh %582 : vector<8x128xf32>
    %584 = arith.mulf %577, %583 : vector<8x128xf32>
    %585 = arith.index_cast %c5_i32_183 : i32 to index
    %c0_188 = arith.constant 0 : index
    %c0_189 = arith.constant 0 : index
    %586 = vector.load %arg20[%585, %c0_188, %c0_189] : memref<8x8x128xf32, #tpu.memory_space<vmem>>, vector<1x8x128xf32>
    %587 = vector.shape_cast %586 : vector<1x8x128xf32> to vector<8x128xf32>
    %588 = vector.shape_cast %584 : vector<8x128xf32> to vector<1x8x128xf32>
    tpu.vector_store %arg20[%585, %c0_188, %c0_189], %588 {strides = array<i32>} : memref<8x8x128xf32, #tpu.memory_space<vmem>>, vector<1x8x128xf32>,
    %c6_i32_190 = arith.constant 6 : i32
    %589 = arith.index_cast %c6_i32_190 : i32 to index
    %c0_191 = arith.constant 0 : index
    %c0_192 = arith.constant 0 : index
    %590 = vector.load %arg16[%589, %c0_191, %c0_192] : memref<8x8x512xf32, #tpu.memory_space<vmem>>, vector<1x8x512xf32>
    %591 = vector.shape_cast %590 : vector<1x8x512xf32> to vector<8x512xf32>
    %cst_193 = arith.constant dense<0.000000e+00> : vector<8x512xf32>
    %592 = tpu.matmul %584, %436, %cst_193 {dimension_numbers = #tpu.dot_dimension_numbers<[1], [0], [0], [1], [0, 0, 1, 1], [], []>} : vector<8x128xf32>, vector<128x512xf32>, vector<8x512xf32> -> vector<8x512xf32>
    %593 = arith.addf %591, %592 : vector<8x512xf32>
    %594 = vector.extract_strided_slice %593 {offsets = [0, 0], sizes = [8, 384], strides = [1, 1]} : vector<8x512xf32> to vector<8x384xf32>
    %595 = arith.negf %594 : vector<8x384xf32>
    %596 = math.exp %595 : vector<8x384xf32>
    %cst_194 = arith.constant 1.000000e+00 : f32
    %597 = vector.broadcast %cst_194 : f32 to vector<8x384xf32>
    %598 = arith.addf %597, %596 : vector<8x384xf32>
    %599 = arith.divf %597, %598 : vector<8x384xf32>
    %600 = vector.extract_strided_slice %599 {offsets = [0, 0], sizes = [8, 128], strides = [1, 1]} : vector<8x384xf32> to vector<8x128xf32>
    %601 = vector.extract_strided_slice %599 {offsets = [0, 128], sizes = [8, 128], strides = [1, 1]} : vector<8x384xf32> to vector<8x128xf32>
    %602 = vector.extract_strided_slice %599 {offsets = [0, 256], sizes = [8, 128], strides = [1, 1]} : vector<8x384xf32> to vector<8x128xf32>
    %603 = vector.extract_strided_slice %593 {offsets = [0, 384], sizes = [8, 128], strides = [1, 1]} : vector<8x512xf32> to vector<8x128xf32>
    %604 = math.tanh %603 : vector<8x128xf32>
    %605 = arith.mulf %601, %582 : vector<8x128xf32>
    %606 = arith.mulf %600, %604 : vector<8x128xf32>
    %607 = arith.addf %605, %606 : vector<8x128xf32>
    %608 = math.tanh %607 : vector<8x128xf32>
    %609 = arith.mulf %602, %608 : vector<8x128xf32>
    %610 = arith.index_cast %c6_i32_190 : i32 to index
    %c0_195 = arith.constant 0 : index
    %c0_196 = arith.constant 0 : index
    %611 = vector.load %arg20[%610, %c0_195, %c0_196] : memref<8x8x128xf32, #tpu.memory_space<vmem>>, vector<1x8x128xf32>
    %612 = vector.shape_cast %611 : vector<1x8x128xf32> to vector<8x128xf32>
    %613 = vector.shape_cast %609 : vector<8x128xf32> to vector<1x8x128xf32>
    tpu.vector_store %arg20[%610, %c0_195, %c0_196], %613 {strides = array<i32>} : memref<8x8x128xf32, #tpu.memory_space<vmem>>, vector<1x8x128xf32>,
    %c7_i32_197 = arith.constant 7 : i32
    %614 = arith.index_cast %c7_i32_197 : i32 to index
    %c0_198 = arith.constant 0 : index
    %c0_199 = arith.constant 0 : index
    %615 = vector.load %arg16[%614, %c0_198, %c0_199] : memref<8x8x512xf32, #tpu.memory_space<vmem>>, vector<1x8x512xf32>
    %616 = vector.shape_cast %615 : vector<1x8x512xf32> to vector<8x512xf32>
    %cst_200 = arith.constant dense<0.000000e+00> : vector<8x512xf32>
    %617 = tpu.matmul %609, %436, %cst_200 {dimension_numbers = #tpu.dot_dimension_numbers<[1], [0], [0], [1], [0, 0, 1, 1], [], []>} : vector<8x128xf32>, vector<128x512xf32>, vector<8x512xf32> -> vector<8x512xf32>
    %618 = arith.addf %616, %617 : vector<8x512xf32>
    %619 = vector.extract_strided_slice %618 {offsets = [0, 0], sizes = [8, 384], strides = [1, 1]} : vector<8x512xf32> to vector<8x384xf32>
    %620 = arith.negf %619 : vector<8x384xf32>
    %621 = math.exp %620 : vector<8x384xf32>
    %cst_201 = arith.constant 1.000000e+00 : f32
    %622 = vector.broadcast %cst_201 : f32 to vector<8x384xf32>
    %623 = arith.addf %622, %621 : vector<8x384xf32>
    %624 = arith.divf %622, %623 : vector<8x384xf32>
    %625 = vector.extract_strided_slice %624 {offsets = [0, 0], sizes = [8, 128], strides = [1, 1]} : vector<8x384xf32> to vector<8x128xf32>
    %626 = vector.extract_strided_slice %624 {offsets = [0, 128], sizes = [8, 128], strides = [1, 1]} : vector<8x384xf32> to vector<8x128xf32>
    %627 = vector.extract_strided_slice %624 {offsets = [0, 256], sizes = [8, 128], strides = [1, 1]} : vector<8x384xf32> to vector<8x128xf32>
    %628 = vector.extract_strided_slice %618 {offsets = [0, 384], sizes = [8, 128], strides = [1, 1]} : vector<8x512xf32> to vector<8x128xf32>
    %629 = math.tanh %628 : vector<8x128xf32>
    %630 = arith.mulf %626, %607 : vector<8x128xf32>
    %631 = arith.mulf %625, %629 : vector<8x128xf32>
    %632 = arith.addf %630, %631 : vector<8x128xf32>
    %633 = math.tanh %632 : vector<8x128xf32>
    %634 = arith.mulf %627, %633 : vector<8x128xf32>
    %635 = arith.index_cast %c7_i32_197 : i32 to index
    %c0_202 = arith.constant 0 : index
    %c0_203 = arith.constant 0 : index
    %636 = vector.load %arg20[%635, %c0_202, %c0_203] : memref<8x8x128xf32, #tpu.memory_space<vmem>>, vector<1x8x128xf32>
    %637 = vector.shape_cast %636 : vector<1x8x128xf32> to vector<8x128xf32>
    %638 = vector.shape_cast %634 : vector<8x128xf32> to vector<1x8x128xf32>
    tpu.vector_store %arg20[%635, %c0_202, %c0_203], %638 {strides = array<i32>} : memref<8x8x128xf32, #tpu.memory_space<vmem>>, vector<1x8x128xf32>,
    %c8_i32_204 = arith.constant 8 : i32
    %c0_205 = arith.constant 0 : index
    %c0_206 = arith.constant 0 : index
    %c0_207 = arith.constant 0 : index
    %639 = vector.load %arg20[%c0_205, %c0_206, %c0_207] : memref<8x8x128xf32, #tpu.memory_space<vmem>>, vector<8x8x128xf32>
    %640 = vector.shape_cast %639 : vector<8x8x128xf32> to vector<64x128xf32>
    %641 = arith.truncf %640 : vector<64x128xf32> to vector<64x128xbf16>
    %c0_208 = arith.constant 0 : index
    %c0_209 = arith.constant 0 : index
    %642 = vector.load %arg10[%c0_208, %c0_209] : memref<128x512xbf16, #tpu.memory_space<vmem>>, vector<128x512xbf16>
    %cst_210 = arith.constant dense<0.000000e+00> : vector<64x512xf32>
    %643 = tpu.matmul %641, %642, %cst_210 {dimension_numbers = #tpu.dot_dimension_numbers<[1], [0], [0], [1], [0, 0, 1, 1], [], []>} : vector<64x128xbf16>, vector<128x512xbf16>, vector<64x512xf32> -> vector<64x512xf32>
    %c0_211 = arith.constant 0 : index
    %c0_212 = arith.constant 0 : index
    %644 = vector.load %arg12[%c0_211, %c0_212] : memref<1x512xf32, #tpu.memory_space<vmem>>, vector<1x512xf32>
    %645 = vector.broadcast %644 : vector<1x512xf32> to vector<64x512xf32>
    %646 = arith.addf %643, %645 : vector<64x512xf32>
    %647 = vector.shape_cast %646 : vector<64x512xf32> to vector<8x8x512xf32>
    %c0_213 = arith.constant 0 : index
    %c0_214 = arith.constant 0 : index
    %c0_215 = arith.constant 0 : index
    %648 = vector.load %arg17[%c0_213, %c0_214, %c0_215] : memref<8x8x512xf32, #tpu.memory_space<vmem>>, vector<8x8x512xf32>
    tpu.vector_store %arg17[%c0_213, %c0_214, %c0_215], %647 {strides = array<i32>} : memref<8x8x512xf32, #tpu.memory_space<vmem>>, vector<8x8x512xf32>,
    %c0_216 = arith.constant 0 : index
    %c0_217 = arith.constant 0 : index
    %649 = vector.load %arg11[%c0_216, %c0_217] : memref<128x512xf32, #tpu.memory_space<vmem>>, vector<128x512xf32>
    %cst_218 = arith.constant 0.000000e+00 : f32
    %650 = vector.broadcast %cst_218 : f32 to vector<8x128xf32>
    %cst_219 = arith.constant 0.000000e+00 : f32
    %651 = vector.broadcast %cst_219 : f32 to vector<8x128xf32>
    %c0_i32_220 = arith.constant 0 : i32
    %652 = arith.index_cast %c0_i32_220 : i32 to index
    %c0_221 = arith.constant 0 : index
    %c0_222 = arith.constant 0 : index
    %653 = vector.load %arg17[%652, %c0_221, %c0_222] : memref<8x8x512xf32, #tpu.memory_space<vmem>>, vector<1x8x512xf32>
    %654 = vector.shape_cast %653 : vector<1x8x512xf32> to vector<8x512xf32>
    %cst_223 = arith.constant dense<0.000000e+00> : vector<8x512xf32>
    %655 = tpu.matmul %650, %649, %cst_223 {dimension_numbers = #tpu.dot_dimension_numbers<[1], [0], [0], [1], [0, 0, 1, 1], [], []>} : vector<8x128xf32>, vector<128x512xf32>, vector<8x512xf32> -> vector<8x512xf32>
    %656 = arith.addf %654, %655 : vector<8x512xf32>
    %657 = vector.extract_strided_slice %656 {offsets = [0, 0], sizes = [8, 384], strides = [1, 1]} : vector<8x512xf32> to vector<8x384xf32>
    %658 = arith.negf %657 : vector<8x384xf32>
    %659 = math.exp %658 : vector<8x384xf32>
    %cst_224 = arith.constant 1.000000e+00 : f32
    %660 = vector.broadcast %cst_224 : f32 to vector<8x384xf32>
    %661 = arith.addf %660, %659 : vector<8x384xf32>
    %662 = arith.divf %660, %661 : vector<8x384xf32>
    %663 = vector.extract_strided_slice %662 {offsets = [0, 0], sizes = [8, 128], strides = [1, 1]} : vector<8x384xf32> to vector<8x128xf32>
    %664 = vector.extract_strided_slice %662 {offsets = [0, 128], sizes = [8, 128], strides = [1, 1]} : vector<8x384xf32> to vector<8x128xf32>
    %665 = vector.extract_strided_slice %662 {offsets = [0, 256], sizes = [8, 128], strides = [1, 1]} : vector<8x384xf32> to vector<8x128xf32>
    %666 = vector.extract_strided_slice %656 {offsets = [0, 384], sizes = [8, 128], strides = [1, 1]} : vector<8x512xf32> to vector<8x128xf32>
    %667 = math.tanh %666 : vector<8x128xf32>
    %668 = arith.mulf %664, %651 : vector<8x128xf32>
    %669 = arith.mulf %663, %667 : vector<8x128xf32>
    %670 = arith.addf %668, %669 : vector<8x128xf32>
    %671 = math.tanh %670 : vector<8x128xf32>
    %672 = arith.mulf %665, %671 : vector<8x128xf32>
    %673 = arith.index_cast %c0_i32_220 : i32 to index
    %c0_225 = arith.constant 0 : index
    %c0_226 = arith.constant 0 : index
    %674 = vector.load %arg13[%673, %c0_225, %c0_226] : memref<8x8x128xf32, #tpu.memory_space<vmem>>, vector<1x8x128xf32>
    %675 = vector.shape_cast %674 : vector<1x8x128xf32> to vector<8x128xf32>
    %676 = vector.shape_cast %672 : vector<8x128xf32> to vector<1x8x128xf32>
    tpu.vector_store %arg13[%673, %c0_225, %c0_226], %676 {strides = array<i32>} : memref<8x8x128xf32, #tpu.memory_space<vmem>>, vector<1x8x128xf32>,
    %c1_i32_227 = arith.constant 1 : i32
    %677 = arith.index_cast %c1_i32_227 : i32 to index
    %c0_228 = arith.constant 0 : index
    %c0_229 = arith.constant 0 : index
    %678 = vector.load %arg17[%677, %c0_228, %c0_229] : memref<8x8x512xf32, #tpu.memory_space<vmem>>, vector<1x8x512xf32>
    %679 = vector.shape_cast %678 : vector<1x8x512xf32> to vector<8x512xf32>
    %cst_230 = arith.constant dense<0.000000e+00> : vector<8x512xf32>
    %680 = tpu.matmul %672, %649, %cst_230 {dimension_numbers = #tpu.dot_dimension_numbers<[1], [0], [0], [1], [0, 0, 1, 1], [], []>} : vector<8x128xf32>, vector<128x512xf32>, vector<8x512xf32> -> vector<8x512xf32>
    %681 = arith.addf %679, %680 : vector<8x512xf32>
    %682 = vector.extract_strided_slice %681 {offsets = [0, 0], sizes = [8, 384], strides = [1, 1]} : vector<8x512xf32> to vector<8x384xf32>
    %683 = arith.negf %682 : vector<8x384xf32>
    %684 = math.exp %683 : vector<8x384xf32>
    %cst_231 = arith.constant 1.000000e+00 : f32
    %685 = vector.broadcast %cst_231 : f32 to vector<8x384xf32>
    %686 = arith.addf %685, %684 : vector<8x384xf32>
    %687 = arith.divf %685, %686 : vector<8x384xf32>
    %688 = vector.extract_strided_slice %687 {offsets = [0, 0], sizes = [8, 128], strides = [1, 1]} : vector<8x384xf32> to vector<8x128xf32>
    %689 = vector.extract_strided_slice %687 {offsets = [0, 128], sizes = [8, 128], strides = [1, 1]} : vector<8x384xf32> to vector<8x128xf32>
    %690 = vector.extract_strided_slice %687 {offsets = [0, 256], sizes = [8, 128], strides = [1, 1]} : vector<8x384xf32> to vector<8x128xf32>
    %691 = vector.extract_strided_slice %681 {offsets = [0, 384], sizes = [8, 128], strides = [1, 1]} : vector<8x512xf32> to vector<8x128xf32>
    %692 = math.tanh %691 : vector<8x128xf32>
    %693 = arith.mulf %689, %670 : vector<8x128xf32>
    %694 = arith.mulf %688, %692 : vector<8x128xf32>
    %695 = arith.addf %693, %694 : vector<8x128xf32>
    %696 = math.tanh %695 : vector<8x128xf32>
    %697 = arith.mulf %690, %696 : vector<8x128xf32>
    %698 = arith.index_cast %c1_i32_227 : i32 to index
    %c0_232 = arith.constant 0 : index
    %c0_233 = arith.constant 0 : index
    %699 = vector.load %arg13[%698, %c0_232, %c0_233] : memref<8x8x128xf32, #tpu.memory_space<vmem>>, vector<1x8x128xf32>
    %700 = vector.shape_cast %699 : vector<1x8x128xf32> to vector<8x128xf32>
    %701 = vector.shape_cast %697 : vector<8x128xf32> to vector<1x8x128xf32>
    tpu.vector_store %arg13[%698, %c0_232, %c0_233], %701 {strides = array<i32>} : memref<8x8x128xf32, #tpu.memory_space<vmem>>, vector<1x8x128xf32>,
    %c2_i32_234 = arith.constant 2 : i32
    %702 = arith.index_cast %c2_i32_234 : i32 to index
    %c0_235 = arith.constant 0 : index
    %c0_236 = arith.constant 0 : index
    %703 = vector.load %arg17[%702, %c0_235, %c0_236] : memref<8x8x512xf32, #tpu.memory_space<vmem>>, vector<1x8x512xf32>
    %704 = vector.shape_cast %703 : vector<1x8x512xf32> to vector<8x512xf32>
    %cst_237 = arith.constant dense<0.000000e+00> : vector<8x512xf32>
    %705 = tpu.matmul %697, %649, %cst_237 {dimension_numbers = #tpu.dot_dimension_numbers<[1], [0], [0], [1], [0, 0, 1, 1], [], []>} : vector<8x128xf32>, vector<128x512xf32>, vector<8x512xf32> -> vector<8x512xf32>
    %706 = arith.addf %704, %705 : vector<8x512xf32>
    %707 = vector.extract_strided_slice %706 {offsets = [0, 0], sizes = [8, 384], strides = [1, 1]} : vector<8x512xf32> to vector<8x384xf32>
    %708 = arith.negf %707 : vector<8x384xf32>
    %709 = math.exp %708 : vector<8x384xf32>
    %cst_238 = arith.constant 1.000000e+00 : f32
    %710 = vector.broadcast %cst_238 : f32 to vector<8x384xf32>
    %711 = arith.addf %710, %709 : vector<8x384xf32>
    %712 = arith.divf %710, %711 : vector<8x384xf32>
    %713 = vector.extract_strided_slice %712 {offsets = [0, 0], sizes = [8, 128], strides = [1, 1]} : vector<8x384xf32> to vector<8x128xf32>
    %714 = vector.extract_strided_slice %712 {offsets = [0, 128], sizes = [8, 128], strides = [1, 1]} : vector<8x384xf32> to vector<8x128xf32>
    %715 = vector.extract_strided_slice %712 {offsets = [0, 256], sizes = [8, 128], strides = [1, 1]} : vector<8x384xf32> to vector<8x128xf32>
    %716 = vector.extract_strided_slice %706 {offsets = [0, 384], sizes = [8, 128], strides = [1, 1]} : vector<8x512xf32> to vector<8x128xf32>
    %717 = math.tanh %716 : vector<8x128xf32>
    %718 = arith.mulf %714, %695 : vector<8x128xf32>
    %719 = arith.mulf %713, %717 : vector<8x128xf32>
    %720 = arith.addf %718, %719 : vector<8x128xf32>
    %721 = math.tanh %720 : vector<8x128xf32>
    %722 = arith.mulf %715, %721 : vector<8x128xf32>
    %723 = arith.index_cast %c2_i32_234 : i32 to index
    %c0_239 = arith.constant 0 : index
    %c0_240 = arith.constant 0 : index
    %724 = vector.load %arg13[%723, %c0_239, %c0_240] : memref<8x8x128xf32, #tpu.memory_space<vmem>>, vector<1x8x128xf32>
    %725 = vector.shape_cast %724 : vector<1x8x128xf32> to vector<8x128xf32>
    %726 = vector.shape_cast %722 : vector<8x128xf32> to vector<1x8x128xf32>
    tpu.vector_store %arg13[%723, %c0_239, %c0_240], %726 {strides = array<i32>} : memref<8x8x128xf32, #tpu.memory_space<vmem>>, vector<1x8x128xf32>,
    %c3_i32_241 = arith.constant 3 : i32
    %727 = arith.index_cast %c3_i32_241 : i32 to index
    %c0_242 = arith.constant 0 : index
    %c0_243 = arith.constant 0 : index
    %728 = vector.load %arg17[%727, %c0_242, %c0_243] : memref<8x8x512xf32, #tpu.memory_space<vmem>>, vector<1x8x512xf32>
    %729 = vector.shape_cast %728 : vector<1x8x512xf32> to vector<8x512xf32>
    %cst_244 = arith.constant dense<0.000000e+00> : vector<8x512xf32>
    %730 = tpu.matmul %722, %649, %cst_244 {dimension_numbers = #tpu.dot_dimension_numbers<[1], [0], [0], [1], [0, 0, 1, 1], [], []>} : vector<8x128xf32>, vector<128x512xf32>, vector<8x512xf32> -> vector<8x512xf32>
    %731 = arith.addf %729, %730 : vector<8x512xf32>
    %732 = vector.extract_strided_slice %731 {offsets = [0, 0], sizes = [8, 384], strides = [1, 1]} : vector<8x512xf32> to vector<8x384xf32>
    %733 = arith.negf %732 : vector<8x384xf32>
    %734 = math.exp %733 : vector<8x384xf32>
    %cst_245 = arith.constant 1.000000e+00 : f32
    %735 = vector.broadcast %cst_245 : f32 to vector<8x384xf32>
    %736 = arith.addf %735, %734 : vector<8x384xf32>
    %737 = arith.divf %735, %736 : vector<8x384xf32>
    %738 = vector.extract_strided_slice %737 {offsets = [0, 0], sizes = [8, 128], strides = [1, 1]} : vector<8x384xf32> to vector<8x128xf32>
    %739 = vector.extract_strided_slice %737 {offsets = [0, 128], sizes = [8, 128], strides = [1, 1]} : vector<8x384xf32> to vector<8x128xf32>
    %740 = vector.extract_strided_slice %737 {offsets = [0, 256], sizes = [8, 128], strides = [1, 1]} : vector<8x384xf32> to vector<8x128xf32>
    %741 = vector.extract_strided_slice %731 {offsets = [0, 384], sizes = [8, 128], strides = [1, 1]} : vector<8x512xf32> to vector<8x128xf32>
    %742 = math.tanh %741 : vector<8x128xf32>
    %743 = arith.mulf %739, %720 : vector<8x128xf32>
    %744 = arith.mulf %738, %742 : vector<8x128xf32>
    %745 = arith.addf %743, %744 : vector<8x128xf32>
    %746 = math.tanh %745 : vector<8x128xf32>
    %747 = arith.mulf %740, %746 : vector<8x128xf32>
    %748 = arith.index_cast %c3_i32_241 : i32 to index
    %c0_246 = arith.constant 0 : index
    %c0_247 = arith.constant 0 : index
    %749 = vector.load %arg13[%748, %c0_246, %c0_247] : memref<8x8x128xf32, #tpu.memory_space<vmem>>, vector<1x8x128xf32>
    %750 = vector.shape_cast %749 : vector<1x8x128xf32> to vector<8x128xf32>
    %751 = vector.shape_cast %747 : vector<8x128xf32> to vector<1x8x128xf32>
    tpu.vector_store %arg13[%748, %c0_246, %c0_247], %751 {strides = array<i32>} : memref<8x8x128xf32, #tpu.memory_space<vmem>>, vector<1x8x128xf32>,
    %c4_i32_248 = arith.constant 4 : i32
    %752 = arith.index_cast %c4_i32_248 : i32 to index
    %c0_249 = arith.constant 0 : index
    %c0_250 = arith.constant 0 : index
    %753 = vector.load %arg17[%752, %c0_249, %c0_250] : memref<8x8x512xf32, #tpu.memory_space<vmem>>, vector<1x8x512xf32>
    %754 = vector.shape_cast %753 : vector<1x8x512xf32> to vector<8x512xf32>
    %cst_251 = arith.constant dense<0.000000e+00> : vector<8x512xf32>
    %755 = tpu.matmul %747, %649, %cst_251 {dimension_numbers = #tpu.dot_dimension_numbers<[1], [0], [0], [1], [0, 0, 1, 1], [], []>} : vector<8x128xf32>, vector<128x512xf32>, vector<8x512xf32> -> vector<8x512xf32>
    %756 = arith.addf %754, %755 : vector<8x512xf32>
    %757 = vector.extract_strided_slice %756 {offsets = [0, 0], sizes = [8, 384], strides = [1, 1]} : vector<8x512xf32> to vector<8x384xf32>
    %758 = arith.negf %757 : vector<8x384xf32>
    %759 = math.exp %758 : vector<8x384xf32>
    %cst_252 = arith.constant 1.000000e+00 : f32
    %760 = vector.broadcast %cst_252 : f32 to vector<8x384xf32>
    %761 = arith.addf %760, %759 : vector<8x384xf32>
    %762 = arith.divf %760, %761 : vector<8x384xf32>
    %763 = vector.extract_strided_slice %762 {offsets = [0, 0], sizes = [8, 128], strides = [1, 1]} : vector<8x384xf32> to vector<8x128xf32>
    %764 = vector.extract_strided_slice %762 {offsets = [0, 128], sizes = [8, 128], strides = [1, 1]} : vector<8x384xf32> to vector<8x128xf32>
    %765 = vector.extract_strided_slice %762 {offsets = [0, 256], sizes = [8, 128], strides = [1, 1]} : vector<8x384xf32> to vector<8x128xf32>
    %766 = vector.extract_strided_slice %756 {offsets = [0, 384], sizes = [8, 128], strides = [1, 1]} : vector<8x512xf32> to vector<8x128xf32>
    %767 = math.tanh %766 : vector<8x128xf32>
    %768 = arith.mulf %764, %745 : vector<8x128xf32>
    %769 = arith.mulf %763, %767 : vector<8x128xf32>
    %770 = arith.addf %768, %769 : vector<8x128xf32>
    %771 = math.tanh %770 : vector<8x128xf32>
    %772 = arith.mulf %765, %771 : vector<8x128xf32>
    %773 = arith.index_cast %c4_i32_248 : i32 to index
    %c0_253 = arith.constant 0 : index
    %c0_254 = arith.constant 0 : index
    %774 = vector.load %arg13[%773, %c0_253, %c0_254] : memref<8x8x128xf32, #tpu.memory_space<vmem>>, vector<1x8x128xf32>
    %775 = vector.shape_cast %774 : vector<1x8x128xf32> to vector<8x128xf32>
    %776 = vector.shape_cast %772 : vector<8x128xf32> to vector<1x8x128xf32>
    tpu.vector_store %arg13[%773, %c0_253, %c0_254], %776 {strides = array<i32>} : memref<8x8x128xf32, #tpu.memory_space<vmem>>, vector<1x8x128xf32>,
    %c5_i32_255 = arith.constant 5 : i32
    %777 = arith.index_cast %c5_i32_255 : i32 to index
    %c0_256 = arith.constant 0 : index
    %c0_257 = arith.constant 0 : index
    %778 = vector.load %arg17[%777, %c0_256, %c0_257] : memref<8x8x512xf32, #tpu.memory_space<vmem>>, vector<1x8x512xf32>
    %779 = vector.shape_cast %778 : vector<1x8x512xf32> to vector<8x512xf32>
    %cst_258 = arith.constant dense<0.000000e+00> : vector<8x512xf32>
    %780 = tpu.matmul %772, %649, %cst_258 {dimension_numbers = #tpu.dot_dimension_numbers<[1], [0], [0], [1], [0, 0, 1, 1], [], []>} : vector<8x128xf32>, vector<128x512xf32>, vector<8x512xf32> -> vector<8x512xf32>
    %781 = arith.addf %779, %780 : vector<8x512xf32>
    %782 = vector.extract_strided_slice %781 {offsets = [0, 0], sizes = [8, 384], strides = [1, 1]} : vector<8x512xf32> to vector<8x384xf32>
    %783 = arith.negf %782 : vector<8x384xf32>
    %784 = math.exp %783 : vector<8x384xf32>
    %cst_259 = arith.constant 1.000000e+00 : f32
    %785 = vector.broadcast %cst_259 : f32 to vector<8x384xf32>
    %786 = arith.addf %785, %784 : vector<8x384xf32>
    %787 = arith.divf %785, %786 : vector<8x384xf32>
    %788 = vector.extract_strided_slice %787 {offsets = [0, 0], sizes = [8, 128], strides = [1, 1]} : vector<8x384xf32> to vector<8x128xf32>
    %789 = vector.extract_strided_slice %787 {offsets = [0, 128], sizes = [8, 128], strides = [1, 1]} : vector<8x384xf32> to vector<8x128xf32>
    %790 = vector.extract_strided_slice %787 {offsets = [0, 256], sizes = [8, 128], strides = [1, 1]} : vector<8x384xf32> to vector<8x128xf32>
    %791 = vector.extract_strided_slice %781 {offsets = [0, 384], sizes = [8, 128], strides = [1, 1]} : vector<8x512xf32> to vector<8x128xf32>
    %792 = math.tanh %791 : vector<8x128xf32>
    %793 = arith.mulf %789, %770 : vector<8x128xf32>
    %794 = arith.mulf %788, %792 : vector<8x128xf32>
    %795 = arith.addf %793, %794 : vector<8x128xf32>
    %796 = math.tanh %795 : vector<8x128xf32>
    %797 = arith.mulf %790, %796 : vector<8x128xf32>
    %798 = arith.index_cast %c5_i32_255 : i32 to index
    %c0_260 = arith.constant 0 : index
    %c0_261 = arith.constant 0 : index
    %799 = vector.load %arg13[%798, %c0_260, %c0_261] : memref<8x8x128xf32, #tpu.memory_space<vmem>>, vector<1x8x128xf32>
    %800 = vector.shape_cast %799 : vector<1x8x128xf32> to vector<8x128xf32>
    %801 = vector.shape_cast %797 : vector<8x128xf32> to vector<1x8x128xf32>
    tpu.vector_store %arg13[%798, %c0_260, %c0_261], %801 {strides = array<i32>} : memref<8x8x128xf32, #tpu.memory_space<vmem>>, vector<1x8x128xf32>,
    %c6_i32_262 = arith.constant 6 : i32
    %802 = arith.index_cast %c6_i32_262 : i32 to index
    %c0_263 = arith.constant 0 : index
    %c0_264 = arith.constant 0 : index
    %803 = vector.load %arg17[%802, %c0_263, %c0_264] : memref<8x8x512xf32, #tpu.memory_space<vmem>>, vector<1x8x512xf32>
    %804 = vector.shape_cast %803 : vector<1x8x512xf32> to vector<8x512xf32>
    %cst_265 = arith.constant dense<0.000000e+00> : vector<8x512xf32>
    %805 = tpu.matmul %797, %649, %cst_265 {dimension_numbers = #tpu.dot_dimension_numbers<[1], [0], [0], [1], [0, 0, 1, 1], [], []>} : vector<8x128xf32>, vector<128x512xf32>, vector<8x512xf32> -> vector<8x512xf32>
    %806 = arith.addf %804, %805 : vector<8x512xf32>
    %807 = vector.extract_strided_slice %806 {offsets = [0, 0], sizes = [8, 384], strides = [1, 1]} : vector<8x512xf32> to vector<8x384xf32>
    %808 = arith.negf %807 : vector<8x384xf32>
    %809 = math.exp %808 : vector<8x384xf32>
    %cst_266 = arith.constant 1.000000e+00 : f32
    %810 = vector.broadcast %cst_266 : f32 to vector<8x384xf32>
    %811 = arith.addf %810, %809 : vector<8x384xf32>
    %812 = arith.divf %810, %811 : vector<8x384xf32>
    %813 = vector.extract_strided_slice %812 {offsets = [0, 0], sizes = [8, 128], strides = [1, 1]} : vector<8x384xf32> to vector<8x128xf32>
    %814 = vector.extract_strided_slice %812 {offsets = [0, 128], sizes = [8, 128], strides = [1, 1]} : vector<8x384xf32> to vector<8x128xf32>
    %815 = vector.extract_strided_slice %812 {offsets = [0, 256], sizes = [8, 128], strides = [1, 1]} : vector<8x384xf32> to vector<8x128xf32>
    %816 = vector.extract_strided_slice %806 {offsets = [0, 384], sizes = [8, 128], strides = [1, 1]} : vector<8x512xf32> to vector<8x128xf32>
    %817 = math.tanh %816 : vector<8x128xf32>
    %818 = arith.mulf %814, %795 : vector<8x128xf32>
    %819 = arith.mulf %813, %817 : vector<8x128xf32>
    %820 = arith.addf %818, %819 : vector<8x128xf32>
    %821 = math.tanh %820 : vector<8x128xf32>
    %822 = arith.mulf %815, %821 : vector<8x128xf32>
    %823 = arith.index_cast %c6_i32_262 : i32 to index
    %c0_267 = arith.constant 0 : index
    %c0_268 = arith.constant 0 : index
    %824 = vector.load %arg13[%823, %c0_267, %c0_268] : memref<8x8x128xf32, #tpu.memory_space<vmem>>, vector<1x8x128xf32>
    %825 = vector.shape_cast %824 : vector<1x8x128xf32> to vector<8x128xf32>
    %826 = vector.shape_cast %822 : vector<8x128xf32> to vector<1x8x128xf32>
    tpu.vector_store %arg13[%823, %c0_267, %c0_268], %826 {strides = array<i32>} : memref<8x8x128xf32, #tpu.memory_space<vmem>>, vector<1x8x128xf32>,
    %c7_i32_269 = arith.constant 7 : i32
    %827 = arith.index_cast %c7_i32_269 : i32 to index
    %c0_270 = arith.constant 0 : index
    %c0_271 = arith.constant 0 : index
    %828 = vector.load %arg17[%827, %c0_270, %c0_271] : memref<8x8x512xf32, #tpu.memory_space<vmem>>, vector<1x8x512xf32>
    %829 = vector.shape_cast %828 : vector<1x8x512xf32> to vector<8x512xf32>
    %cst_272 = arith.constant dense<0.000000e+00> : vector<8x512xf32>
    %830 = tpu.matmul %822, %649, %cst_272 {dimension_numbers = #tpu.dot_dimension_numbers<[1], [0], [0], [1], [0, 0, 1, 1], [], []>} : vector<8x128xf32>, vector<128x512xf32>, vector<8x512xf32> -> vector<8x512xf32>
    %831 = arith.addf %829, %830 : vector<8x512xf32>
    %832 = vector.extract_strided_slice %831 {offsets = [0, 0], sizes = [8, 384], strides = [1, 1]} : vector<8x512xf32> to vector<8x384xf32>
    %833 = arith.negf %832 : vector<8x384xf32>
    %834 = math.exp %833 : vector<8x384xf32>
    %cst_273 = arith.constant 1.000000e+00 : f32
    %835 = vector.broadcast %cst_273 : f32 to vector<8x384xf32>
    %836 = arith.addf %835, %834 : vector<8x384xf32>
    %837 = arith.divf %835, %836 : vector<8x384xf32>
    %838 = vector.extract_strided_slice %837 {offsets = [0, 0], sizes = [8, 128], strides = [1, 1]} : vector<8x384xf32> to vector<8x128xf32>
    %839 = vector.extract_strided_slice %837 {offsets = [0, 128], sizes = [8, 128], strides = [1, 1]} : vector<8x384xf32> to vector<8x128xf32>
    %840 = vector.extract_strided_slice %837 {offsets = [0, 256], sizes = [8, 128], strides = [1, 1]} : vector<8x384xf32> to vector<8x128xf32>
    %841 = vector.extract_strided_slice %831 {offsets = [0, 384], sizes = [8, 128], strides = [1, 1]} : vector<8x512xf32> to vector<8x128xf32>
    %842 = math.tanh %841 : vector<8x128xf32>
    %843 = arith.mulf %839, %820 : vector<8x128xf32>
    %844 = arith.mulf %838, %842 : vector<8x128xf32>
    %845 = arith.addf %843, %844 : vector<8x128xf32>
    %846 = math.tanh %845 : vector<8x128xf32>
    %847 = arith.mulf %840, %846 : vector<8x128xf32>
    %848 = arith.index_cast %c7_i32_269 : i32 to index
    %c0_274 = arith.constant 0 : index
    %c0_275 = arith.constant 0 : index
    %849 = vector.load %arg13[%848, %c0_274, %c0_275] : memref<8x8x128xf32, #tpu.memory_space<vmem>>, vector<1x8x128xf32>
    %850 = vector.shape_cast %849 : vector<1x8x128xf32> to vector<8x128xf32>
    %851 = vector.shape_cast %847 : vector<8x128xf32> to vector<1x8x128xf32>
    tpu.vector_store %arg13[%848, %c0_274, %c0_275], %851 {strides = array<i32>} : memref<8x8x128xf32, #tpu.memory_space<vmem>>, vector<1x8x128xf32>,
    %c8_i32_276 = arith.constant 8 : i32
    return
  }
}

</mosaic_0001>

<bundles_post_ra>
// kernel: tpu_custom_call.1
= control target key start
LH: loop header
LB: loop body
LE: loop exit
PB: predicated region body
PF: predicated region fallthrough
CT: control target
= control target key end

     0   :  { %18 = vsyncpa [#allocation10], 0  ;;  %s13339_s0 = inlined_call_operand.hbm [shape: f32[8,8,128], index: 0, kind: input, shape index: {}]   ;;  %s13340_s1 = inlined_call_operand.hbm [shape: bf16[128,512], index: 1, kind: input, shape index: {}]   ;;  %s13341_s2 = inlined_call_operand.hbm [shape: f32[128,512], index: 2, kind: input, shape index: {}]   ;;  %s13342_s3 = inlined_call_operand.vmem [shape: f32[1,512], index: 3, kind: input, shape index: {}]   ;;  %s13343_s4 = inlined_call_operand.hbm [shape: bf16[128,512], index: 4, kind: input, shape index: {}]   ;;  %s13344_s5 = inlined_call_operand.hbm [shape: f32[128,512], index: 5, kind: input, shape index: {}]   ;;  %s13345_s6 = inlined_call_operand.vmem [shape: f32[1,512], index: 6, kind: input, shape index: {}]   ;;  %s13346_s7 = inlined_call_operand.hbm [shape: bf16[128,512], index: 7, kind: input, shape index: {}]   ;;  %s13347_s8 = inlined_call_operand.hbm [shape: f32[128,512], index: 8, kind: input, shape index: {}]   ;;  %s13348_s9 = inlined_call_operand.vmem [shape: f32[1,512], index: 9, kind: input, shape index: {}]   ;;  %s13349_s10 = inlined_call_operand.hbm [shape: bf16[128,512], index: 10, kind: input, shape index: {}]   ;;  %s13350_s11 = inlined_call_operand.hbm [shape: f32[128,512], index: 11, kind: input, shape index: {}]   ;;  %s13351_s12 = inlined_call_operand.vmem [shape: f32[1,512], index: 12, kind: input, shape index: {}]   ;;  %s13352_s13 = inlined_call_operand.hbm [shape: f32[8,8,128], index: 13, kind: output, shape index: {}]  }
   0x1   :  { %19 = vsyncpa [#allocation13], 0 }
   0x2   :  { %20 = vsyncpa [#allocation16], 0 }
   0x3   :  { %21 = vsyncpa [#allocation19], 0 }
   0x4   :  { %22 = vsyncpa [#allocation22], 0 }
   0x5   :  { %23 = vsyncpa [#allocation11], 0  ;;  %s10943_s25 = smov [#allocation12]   ;;  %s10711_s29 = scalar_lea.hbm %s13340_s1, 4096 }
   0x6   :  { %s41_s26 = sshll.u32 %s10943_s25, 4  ;;  %p10712_p0 = scmp.ne.s32.totalorder %s13340_s1, %s10711_s29  ;;  %s42_s26 = int_to_ptr.vmem [resolvable:$true] %s41_s26 }
   0x7   :  { %p10715_p1 = scmp.lt.u32.totalorder %s10711_s29, %s13340_s1 }
   0x9   :  { %p10717_p2 = pnand %p10715_p1, %p10712_p0 }
   0xb   :  { %10720 = shalt.err (!%p10717_p2)
}
   0xc   :  { %s10721_s17 = scalar_lea.vmem %s42_s26, 4096  ;;  %p10726_p4 = scmp.lt.s32.totalorder %s42_s26, %s42_s26 }
   0xd   :  { %p10722_p3 = scmp.ne.s32.totalorder %s42_s26, %s10721_s17  ;;  %p10727_p5 = scmp.lt.s32.totalorder %s10721_s17, %s10721_s17 }
   0xf   :  { %p10728_p6 = por %p10727_p5, %p10726_p4 }
  0x11   :  { %p10729_p7 = pnand %p10728_p6, %p10722_p3 }
  0x13   :  { %10732 = shalt.err (!%p10729_p7)
}
  0x14   :  { %s10944_s18 = smov 256   ;;  %s10945_s19 = smov 16  }
  0x15   :  { %47 = dma.hbm_to_vmem [thread:$0]  %s13340_s1, 4096, %s42_s26, [#allocation13], %s10944_s18, %s10944_s18, %s10945_s19  }
  0x16   :  { %s10946_s22 = smov [#allocation15]   ;;  %s10947_s24 = smov [#allocation18]  }
  0x17   :  { %s67_s23 = sshll.u32 %s10946_s22, 4  ;;  %s93_s25 = sshll.u32 %s10947_s24, 4  ;;  %s68_s23 = int_to_ptr.vmem [resolvable:$true] %s67_s23  ;;  %s94_s25 = int_to_ptr.vmem [resolvable:$true] %s93_s25 }
  0x18   :  { %s10733_s29 = scalar_lea.hbm %s13343_s4, 4096 }
  0x19   :  { %p10734_p8 = scmp.ne.s32.totalorder %s13343_s4, %s10733_s29  ;;  %p10737_p9 = scmp.lt.u32.totalorder %s10733_s29, %s13343_s4 }
  0x1b   :  { %p10739_p10 = pnand %p10737_p9, %p10734_p8 }
  0x1d   :  { %10742 = shalt.err (!%p10739_p10)
}
  0x1e   :  { %s10743_s1 = scalar_lea.vmem %s68_s23, 4096  ;;  %p10748_p12 = scmp.lt.s32.totalorder %s68_s23, %s68_s23 }
  0x1f   :  { %p10744_p11 = scmp.ne.s32.totalorder %s68_s23, %s10743_s1  ;;  %p10749_p13 = scmp.lt.s32.totalorder %s10743_s1, %s10743_s1 }
  0x21   :  { %p10750_p0 = por %p10749_p13, %p10748_p12 }
  0x23   :  { %p10751_p1 = pnand %p10750_p0, %p10744_p11 }
  0x25   :  { %10754 = shalt.err (!%p10751_p1)
}
  0x26   :  { %73 = dma.hbm_to_vmem [thread:$0]  %s13343_s4, 4096, %s68_s23, [#allocation16], %s10944_s18, %s10944_s18, %s10945_s19  }
  0x27   :  { %s10755_s22 = scalar_lea.hbm %s13346_s7, 4096 }
  0x28   :  { %p10756_p2 = scmp.ne.s32.totalorder %s13346_s7, %s10755_s22  ;;  %p10759_p3 = scmp.lt.u32.totalorder %s10755_s22, %s13346_s7 }
  0x2a   :  { %p10761_p4 = pnand %p10759_p3, %p10756_p2 }
  0x2c   :  { %10764 = shalt.err (!%p10761_p4)
}
  0x2d   :  { %s10765_s30 = scalar_lea.vmem %s94_s25, 4096  ;;  %p10770_p6 = scmp.lt.s32.totalorder %s94_s25, %s94_s25 }
  0x2e   :  { %p10766_p5 = scmp.ne.s32.totalorder %s94_s25, %s10765_s30  ;;  %p10771_p7 = scmp.lt.s32.totalorder %s10765_s30, %s10765_s30 }
  0x30   :  { %p10772_p8 = por %p10771_p7, %p10770_p6 }
  0x32   :  { %p10773_p9 = pnand %p10772_p8, %p10766_p5 }
  0x34   :  { %10776 = shalt.err (!%p10773_p9)
}
  0x35   :  { %99 = dma.hbm_to_vmem [thread:$0]  %s13346_s7, 4096, %s94_s25, [#allocation19], %s10944_s18, %s10944_s18, %s10945_s19  }
  0x36   :  { %s10948_s14 = smov [#allocation21]   ;;  %s10949_s16 = smov [#allocation9]  }
  0x37   :  { %s119_s15 = sshll.u32 %s10948_s14, 4  ;;  %s29_s1 = sshll.u32 %s10949_s16, 4  ;;  %s120_s15 = int_to_ptr.vmem [resolvable:$true] %s119_s15  ;;  %s30_s1 = int_to_ptr.vmem [resolvable:$true] %s29_s1 }
  0x38   :  { %s10777_s20 = scalar_lea.hbm %s13349_s10, 4096 }
  0x39   :  { %p10778_p10 = scmp.ne.s32.totalorder %s13349_s10, %s10777_s20  ;;  %p10781_p11 = scmp.lt.u32.totalorder %s10777_s20, %s13349_s10 }
  0x3b   :  { %p10783_p12 = pnand %p10781_p11, %p10778_p10 }
  0x3d   :  { %10786 = shalt.err (!%p10783_p12)
}
  0x3e   :  { %s10787_s7 = scalar_lea.vmem %s120_s15, 4096  ;;  %p10792_p0 = scmp.lt.s32.totalorder %s120_s15, %s120_s15 }
  0x3f   :  { %p10788_p13 = scmp.ne.s32.totalorder %s120_s15, %s10787_s7  ;;  %p10793_p1 = scmp.lt.s32.totalorder %s10787_s7, %s10787_s7 }
  0x41   :  { %p10794_p2 = por %p10793_p1, %p10792_p0 }
  0x43   :  { %p10795_p3 = pnand %p10794_p2, %p10788_p13 }
  0x45   :  { %10798 = shalt.err (!%p10795_p3)
}
  0x46   :  { %125 = dma.hbm_to_vmem [thread:$0]  %s13349_s10, 4096, %s120_s15, [#allocation22], %s10944_s18, %s10944_s18, %s10945_s19  }
  0x47   :  { %s10799_s4 = scalar_lea.hbm %s13339_s0, 1024 }
  0x48   :  { %p10800_p4 = scmp.ne.s32.totalorder %s13339_s0, %s10799_s4  ;;  %p10803_p5 = scmp.lt.u32.totalorder %s10799_s4, %s13339_s0 }
  0x4a   :  { %p10805_p6 = pnand %p10803_p5, %p10800_p4 }
  0x4c   :  { %10808 = shalt.err (!%p10805_p6)
}
  0x4d   :  { %s10809_s17 = scalar_lea.vmem %s30_s1, 1024  ;;  %p10814_p8 = scmp.lt.s32.totalorder %s30_s1, %s30_s1 }
  0x4e   :  { %p10810_p7 = scmp.ne.s32.totalorder %s30_s1, %s10809_s17  ;;  %p10815_p9 = scmp.lt.s32.totalorder %s10809_s17, %s10809_s17 }
  0x50   :  { %p10816_p10 = por %p10815_p9, %p10814_p8 }
  0x52   :  { %p10817_p11 = pnand %p10816_p10, %p10810_p7 }
  0x54   :  { %10820 = shalt.err (!%p10817_p11)
}
  0x55   :  { %s10950_s10 = smov 128   ;;  %s10951_s18 = smov 8  }
  0x56   :  { %35 = dma.hbm_to_vmem [thread:$0]  %s13339_s0, 1024, %s30_s1, [#allocation10], %s10950_s10, %s10950_s10, %s10951_s18  }
  0x57   :  { %s10952_s20 = smov [#allocation14]   ;;  %s10821_s27 = scalar_lea.hbm %s13341_s2, 8192 }
  0x58   :  { %s53_s21 = sshll.u32 %s10952_s20, 4  ;;  %p10822_p12 = scmp.ne.s32.totalorder %s13341_s2, %s10821_s27  ;;  %s54_s21 = int_to_ptr.vmem [resolvable:$true] %s53_s21 }
  0x59   :  { %p10825_p13 = scmp.lt.u32.totalorder %s10821_s27, %s13341_s2 }
  0x5b   :  { %p10827_p0 = pnand %p10825_p13, %p10822_p12 }
  0x5d   :  { %10830 = shalt.err (!%p10827_p0)
}
  0x5e   :  { %s10831_s30 = scalar_lea.vmem %s54_s21, 8192  ;;  %p10836_p2 = scmp.lt.s32.totalorder %s54_s21, %s54_s21 }
  0x5f   :  { %p10832_p1 = scmp.ne.s32.totalorder %s54_s21, %s10831_s30  ;;  %p10837_p3 = scmp.lt.s32.totalorder %s10831_s30, %s10831_s30 }
  0x61   :  { %p10838_p4 = por %p10837_p3, %p10836_p2 }
  0x63   :  { %p10839_p5 = pnand %p10838_p4, %p10832_p1 }
  0x65   :  { %10842 = shalt.err (!%p10839_p5)
}
  0x66   :  { %s10953_s0 = smov 512   ;;  %s10954_s1 = smov 32  }
  0x67   :  { %59 = dma.hbm_to_vmem [thread:$0]  %s13341_s2, 8192, %s54_s21, [#allocation13], %s10953_s0, %s10953_s0, %s10954_s1  }
  0x68   :  { %s10955_s14 = smov [#allocation17]   ;;  %s10956_s26 = smov [#allocation20]  }
  0x69   :  { %s79_s16 = sshll.u32 %s10955_s14, 4  ;;  %s105_s17 = sshll.u32 %s10956_s26, 4  ;;  %s80_s16 = int_to_ptr.vmem [resolvable:$true] %s79_s16  ;;  %s11121_s17 = int_to_ptr.vmem [resolvable:$true] %s105_s17 }
  0x6a   :  { %s10843_s20 = scalar_lea.hbm %s13344_s5, 8192 }
  0x6b   :  { %p10844_p6 = scmp.ne.s32.totalorder %s13344_s5, %s10843_s20  ;;  %p10847_p7 = scmp.lt.u32.totalorder %s10843_s20, %s13344_s5 }
  0x6d   :  { %p10849_p8 = pnand %p10847_p7, %p10844_p6 }
  0x6f   :  { %10852 = shalt.err (!%p10849_p8)
}
  0x70   :  { %s10853_s2 = scalar_lea.vmem %s80_s16, 8192  ;;  %p10858_p10 = scmp.lt.s32.totalorder %s80_s16, %s80_s16 }
  0x71   :  { %p10854_p9 = scmp.ne.s32.totalorder %s80_s16, %s10853_s2  ;;  %p10859_p11 = scmp.lt.s32.totalorder %s10853_s2, %s10853_s2 }
  0x73   :  { %p10860_p12 = por %p10859_p11, %p10858_p10 }
  0x75   :  { %p10861_p13 = pnand %p10860_p12, %p10854_p9 }
  0x77   :  { %10864 = shalt.err (!%p10861_p13)
}
  0x78   :  { %85 = dma.hbm_to_vmem [thread:$0]  %s13344_s5, 8192, %s80_s16, [#allocation16], %s10953_s0, %s10953_s0, %s10954_s1  }
  0x79   :  { %s10865_s30 = scalar_lea.hbm %s13347_s8, 8192 }
  0x7a   :  { %p10866_p0 = scmp.ne.s32.totalorder %s13347_s8, %s10865_s30  ;;  %p10869_p1 = scmp.lt.u32.totalorder %s10865_s30, %s13347_s8 }
  0x7c   :  { %p10871_p2 = pnand %p10869_p1, %p10866_p0 }
  0x7e   :  { %10874 = shalt.err (!%p10871_p2)
}
  0x7f   :  { %s10875_s19 = scalar_lea.vmem %s11121_s17, 8192  ;;  %p10880_p4 = scmp.lt.s32.totalorder %s11121_s17, %s11121_s17 }
  0x80   :  { %p10876_p3 = scmp.ne.s32.totalorder %s11121_s17, %s10875_s19  ;;  %p10881_p5 = scmp.lt.s32.totalorder %s10875_s19, %s10875_s19 }
  0x82   :  { %p10882_p6 = por %p10881_p5, %p10880_p4 }
  0x84   :  { %p10883_p7 = pnand %p10882_p6, %p10876_p3 }
  0x86   :  { %10886 = shalt.err (!%p10883_p7)
}
  0x87   :  { %111 = dma.hbm_to_vmem [thread:$0]  %s13347_s8, 8192, %s11121_s17, [#allocation19], %s10953_s0, %s10953_s0, %s10954_s1  }
  0x88   :  { %s10957_s15 = smov [#allocation23]   ;;  %s10887_s27 = scalar_lea.hbm %s13350_s11, 8192 }
  0x89   :  { %s131_s20 = sshll.u32 %s10957_s15, 4  ;;  %p10888_p8 = scmp.ne.s32.totalorder %s13350_s11, %s10887_s27  ;;  %s132_s20 = int_to_ptr.vmem [resolvable:$true] %s131_s20 }
  0x8a   :  { %p10891_p9 = scmp.lt.u32.totalorder %s10887_s27, %s13350_s11 }
  0x8c   :  { %p10893_p10 = pnand %p10891_p9, %p10888_p8 }
  0x8e   :  { %10896 = shalt.err (!%p10893_p10)
}
  0x8f   :  { %s10897_s28 = scalar_lea.vmem %s132_s20, 8192  ;;  %p10902_p12 = scmp.lt.s32.totalorder %s132_s20, %s132_s20 }
  0x90   :  { %p10898_p11 = scmp.ne.s32.totalorder %s132_s20, %s10897_s28  ;;  %p10903_p13 = scmp.lt.s32.totalorder %s10897_s28, %s10897_s28 }
  0x92   :  { %p10904_p0 = por %p10903_p13, %p10902_p12 }
  0x94   :  { %p10905_p1 = pnand %p10904_p0, %p10898_p11 }
  0x96   :  { %10908 = shalt.err (!%p10905_p1)
}
  0x97   :  { %137 = dma.hbm_to_vmem [thread:$0]  %s13350_s11, 8192, %s132_s20, [#allocation22], %s10953_s0, %s10953_s0, %s10954_s1  }
  0x98   :  { %10931 = dma.done.wait [#allocation10], 1024  }
  0x99   :  { %10932 = vsyncadd [#allocation10], 4294966272 }
  0x9a   :  { %10933 = dma.done.wait [#allocation13], 12288  }
  0x9b   :  { %10934 = vsyncadd [#allocation13], 4294955008 }
  0x9c   :  { %10935 = dma.done.wait [#allocation16], 12288  }
  0x9d   :  { %10936 = vsyncadd [#allocation16], 4294955008 }
  0x9e   :  { %10937 = dma.done.wait [#allocation19], 12288  }
  0x9f   :  { %10938 = vsyncadd [#allocation19], 4294955008 }
  0xa0   :  { %10939 = dma.done.wait [#allocation22], 12288  }
  0xa1   :  { %10940 = vsyncadd [#allocation22], 4294955008  ;;  %v13353_v0 = vmov 0   ;;  %v10007_v1 = vld [vmem:[#allocation12 + $0x4] ss:$16 sps:$4 sm:$0xff]   ;;  %v573_v31 = vld [vmem:[#allocation14 + $0x8] sm:$0xff] }
  0xa2   :  { %426 = vmatprep.mubr.bf16.mxu0 %v13353_v0  ;;  %499 = vmatprep.mubr.bf16.mxu1 %v13353_v0  ;;  %v10009_v2 = vld [vmem:[#allocation12 + $0xc] ss:$16 sps:$4 sm:$0xff]   ;;  %v10011_v3 = vld [vmem:[#allocation12] ss:$16 sps:$4 sm:$0xff]   ;;  %v10012_v4 = vld [vmem:[#allocation12 + $0x8] ss:$16 sps:$4 sm:$0xff]  }
  0xa3   :  { %394 = vmatprep.subr.bf16.mxu0 %v10007_v1  ;;  %467 = vmatprep.subr.bf16.mxu1 %v10009_v2  ;;  %v10013_v5 = vld [vmem:[#allocation12 + $0x24] ss:$16 sps:$4 sm:$0xff]   ;;  %v10015_v6 = vld [vmem:[#allocation12 + $0x2c] ss:$16 sps:$4 sm:$0xff]   ;;  %v10017_v7 = vld [vmem:[#allocation12 + $0x20] ss:$16 sps:$4 sm:$0xff]  }
  0xa4   :  { %395 = vmatpush1.bf16.msra.mxu0 %v10011_v3  ;;  %468 = vmatpush1.bf16.msra.mxu1 %v10012_v4  ;;  %v10018_v8 = vld [vmem:[#allocation12 + $0x28] ss:$16 sps:$4 sm:$0xff]   ;;  %v10019_v9 = vld [vmem:[#allocation12 + $0x44] ss:$16 sps:$4 sm:$0xff]   ;;  %v10021_v10 = vld [vmem:[#allocation12 + $0x4c] ss:$16 sps:$4 sm:$0xff]  }
  0xa5   :  { %396 = vmatprep.subr.bf16.mxu0 %v10013_v5  ;;  %469 = vmatprep.subr.bf16.mxu1 %v10015_v6  ;;  %v10023_v11 = vld [vmem:[#allocation12 + $0x40] ss:$16 sps:$4 sm:$0xff]   ;;  %v10024_v12 = vld [vmem:[#allocation12 + $0x48] ss:$16 sps:$4 sm:$0xff]   ;;  %v10025_v13 = vld [vmem:[#allocation12 + $0x64] ss:$16 sps:$4 sm:$0xff]  }
  0xa6   :  { %v10027_v14 = vld [vmem:[#allocation12 + $0x6c] ss:$16 sps:$4 sm:$0xff]   ;;  %v10029_v15 = vld [vmem:[#allocation12 + $0x60] ss:$16 sps:$4 sm:$0xff]   ;;  %v10030_v16 = vld [vmem:[#allocation12 + $0x68] ss:$16 sps:$4 sm:$0xff]  }
  0xa7   :  { %v10031_v17 = vld [vmem:[#allocation12 + $0x84] ss:$16 sps:$4 sm:$0xff]   ;;  %v10033_v18 = vld [vmem:[#allocation12 + $0x8c] ss:$16 sps:$4 sm:$0xff]   ;;  %v10035_v19 = vld [vmem:[#allocation12 + $0x80] ss:$16 sps:$4 sm:$0xff]  }
  0xa8   :  { %397 = vmatpush1.bf16.msra.mxu0 %v10017_v7  ;;  %470 = vmatpush1.bf16.msra.mxu1 %v10018_v8  ;;  %v10036_v20 = vld [vmem:[#allocation12 + $0x88] ss:$16 sps:$4 sm:$0xff]   ;;  %v10037_v21 = vld [vmem:[#allocation12 + $0xa4] ss:$16 sps:$4 sm:$0xff]   ;;  %v10039_v22 = vld [vmem:[#allocation12 + $0xac] ss:$16 sps:$4 sm:$0xff]  }
  0xa9   :  { %398 = vmatprep.subr.bf16.mxu0 %v10019_v9  ;;  %471 = vmatprep.subr.bf16.mxu1 %v10021_v10  ;;  %v10041_v23 = vld [vmem:[#allocation12 + $0xa0] ss:$16 sps:$4 sm:$0xff]   ;;  %v10042_v24 = vld [vmem:[#allocation12 + $0xa8] ss:$16 sps:$4 sm:$0xff]   ;;  %v10043_v25 = vld [vmem:[#allocation12 + $0xc4] ss:$16 sps:$4 sm:$0xff]  }
  0xaa   :  { %v10045_v26 = vld [vmem:[#allocation12 + $0xcc] ss:$16 sps:$4 sm:$0xff]   ;;  %v10047_v27 = vld [vmem:[#allocation12 + $0xc0] ss:$16 sps:$4 sm:$0xff]   ;;  %v10048_v28 = vld [vmem:[#allocation12 + $0xc8] ss:$16 sps:$4 sm:$0xff]  }
  0xab   :  { %v10049_v29 = vld [vmem:[#allocation12 + $0xe4] ss:$16 sps:$4 sm:$0xff]   ;;  %v10051_v30 = vld [vmem:[#allocation12 + $0xec] ss:$16 sps:$4 sm:$0xff]   ;;  %v10053_v35 = vld [vmem:[#allocation12 + $0xe0] ss:$16 sps:$4 sm:$0xff]  }
  0xac   :  { %399 = vmatpush1.bf16.msra.mxu0 %v10023_v11  ;;  %472 = vmatpush1.bf16.msra.mxu1 %v10024_v12  ;;  %v577_v32 = vld [vmem:[#allocation14 + $0x28] sm:$0xff]  ;;  %v575_v33 = vld [vmem:[#allocation14 + $0x18] sm:$0xff]  ;;  %v168_v37 = vld [vmem:[#allocation9] sm:$0xff] }
  0xad   :  { %400 = vmatprep.subr.bf16.mxu0 %v10025_v13  ;;  %473 = vmatprep.subr.bf16.mxu1 %v10027_v14  ;;  %v579_v34 = vld [vmem:[#allocation14 + $0x38] sm:$0xff]  ;;  %v169_v38 = vld [vmem:[#allocation9 + $0x8] sm:$0xff]  ;;  %v572_v39 = vld [vmem:[#allocation14] sm:$0xff]  ;;  %v11175_v41 = vpack.c.bf16 %v577_v32, %v573_v31 }
  0xae   :  { %v10054_v36 = vld [vmem:[#allocation12 + $0xe8] ss:$16 sps:$4 sm:$0xff]   ;;  %v576_v40 = vld [vmem:[#allocation14 + $0x20] sm:$0xff]  ;;  %v11177_v42 = vpack.c.bf16 %v579_v34, %v575_v33  ;;  %v574_v43 = vld [vmem:[#allocation14 + $0x10] sm:$0xff]  ;;  %v176_v49 = vpack.c.bf16 %v169_v38, %v168_v37 }
  0xaf   :  { %v578_v44 = vld [vmem:[#allocation14 + $0x30] sm:$0xff]  ;;  %v581_v45 = vld [vmem:[#allocation14 + $0x48] sm:$0xff]  ;;  %v583_v47 = vld [vmem:[#allocation14 + $0x58] sm:$0xff]  ;;  %v11179_v50 = vpack.c.bf16 %v576_v40, %v572_v39 }
  0xb0   :  { %401 = vmatpush1.bf16.msra.mxu0 %v10029_v15  ;;  %474 = vmatpush1.bf16.msra.mxu1 %v10030_v16  ;;  %v585_v46 = vld [vmem:[#allocation14 + $0x68] sm:$0xff]  ;;  %v587_v48 = vld [vmem:[#allocation14 + $0x78] sm:$0xff]  ;;  %v11181_v51 = vpack.c.bf16 %v578_v44, %v574_v43  ;;  %v580_v52 = vld [vmem:[#allocation14 + $0x40] sm:$0xff] }
  0xb1   :  { %402 = vmatprep.subr.bf16.mxu0 %v10031_v17  ;;  %475 = vmatprep.subr.bf16.mxu1 %v10033_v18  ;;  %v584_v53 = vld [vmem:[#allocation14 + $0x60] sm:$0xff]  ;;  %v11185_v54 = vpack.c.bf16 %v585_v46, %v581_v45  ;;  %v11187_v55 = vpack.c.bf16 %v587_v48, %v583_v47  ;;  %v582_v56 = vld [vmem:[#allocation14 + $0x50] sm:$0xff]  ;;  %v589_v58 = vld [vmem:[#allocation14 + $0x88] sm:$0xff] }
  0xb2   :  { %v586_v57 = vld [vmem:[#allocation14 + $0x70] sm:$0xff]  ;;  %v593_v59 = vld [vmem:[#allocation14 + $0xa8] sm:$0xff]  ;;  %v591_v60 = vld [vmem:[#allocation14 + $0x98] sm:$0xff]  ;;  %v11191_v63 = vpack.c.bf16 %v584_v53, %v580_v52 }
  0xb3   :  { %v595_v61 = vld [vmem:[#allocation14 + $0xb8] sm:$0xff]  ;;  %v170_v62 = vld [vmem:[#allocation9 + $0x10] sm:$0xff]  ;;  %v11193_v1 = vpack.c.bf16 %v586_v57, %v582_v56  ;;  %v588_v3 = vld [vmem:[#allocation14 + $0x80] sm:$0xff]  ;;  %v11197_v5 = vpack.c.bf16 %v593_v59, %v589_v58 }
  0xb4   :  { %403 = vmatpush1.bf16.msra.mxu0 %v10035_v19  ;;  %476 = vmatpush1.bf16.msra.mxu1 %v10036_v20  ;;  %v171_v2 = vld [vmem:[#allocation9 + $0x18] sm:$0xff]  ;;  %v592_v4 = vld [vmem:[#allocation14 + $0xa0] sm:$0xff]  ;;  %v11199_v6 = vpack.c.bf16 %v595_v61, %v591_v60  ;;  %v590_v7 = vld [vmem:[#allocation14 + $0x90] sm:$0xff] }
  0xb5   :  { %404 = vmatprep.subr.bf16.mxu0 %v10037_v21  ;;  %477 = vmatprep.subr.bf16.mxu1 %v10039_v22  ;;  %v594_v8 = vld [vmem:[#allocation14 + $0xb0] sm:$0xff]  ;;  %v597_v9 = vld [vmem:[#allocation14 + $0xc8] sm:$0xff]  ;;  %v599_v11 = vld [vmem:[#allocation14 + $0xd8] sm:$0xff]  ;;  %v177_v13 = vpack.c.bf16 %v171_v2, %v170_v62  ;;  %v11205_v14 = vpack.c.bf16 %v592_v4, %v588_v3 }
  0xb6   :  { %v601_v10 = vld [vmem:[#allocation14 + $0xe8] sm:$0xff]  ;;  %v603_v12 = vld [vmem:[#allocation14 + $0xf8] sm:$0xff]  ;;  %v11207_v15 = vpack.c.bf16 %v594_v8, %v590_v7  ;;  %v596_v16 = vld [vmem:[#allocation14 + $0xc0] sm:$0xff] }
  0xb7   :  { %v600_v17 = vld [vmem:[#allocation14 + $0xe0] sm:$0xff]  ;;  %v11211_v18 = vpack.c.bf16 %v601_v10, %v597_v9  ;;  %v11213_v19 = vpack.c.bf16 %v603_v12, %v599_v11  ;;  %v598_v20 = vld [vmem:[#allocation14 + $0xd0] sm:$0xff]  ;;  %v605_v22 = vld [vmem:[#allocation14 + $0x108] sm:$0xff] }
  0xb8   :  { %405 = vmatpush1.bf16.msra.mxu0 %v10041_v23  ;;  %478 = vmatpush1.bf16.msra.mxu1 %v10042_v24  ;;  %v602_v21 = vld [vmem:[#allocation14 + $0xf0] sm:$0xff]  ;;  %v172_v23 = vld [vmem:[#allocation9 + $0x20] sm:$0xff]  ;;  %v173_v24 = vld [vmem:[#allocation9 + $0x28] sm:$0xff]  ;;  %v11217_v31 = vpack.c.bf16 %v600_v17, %v596_v16 }
  0xb9   :  { %406 = vmatprep.subr.bf16.mxu0 %v10043_v25  ;;  %479 = vmatprep.subr.bf16.mxu1 %v10045_v26  ;;  %v609_v25 = vld [vmem:[#allocation14 + $0x128] sm:$0xff]  ;;  %v607_v26 = vld [vmem:[#allocation14 + $0x118] sm:$0xff]  ;;  %v11219_v32 = vpack.c.bf16 %v602_v21, %v598_v20  ;;  %v610_v33 = vld [vmem:[#allocation14 + $0x130] sm:$0xff]  ;;  %v178_v40 = vpack.c.bf16 %v173_v24, %v172_v23 }
  0xba   :  { %v613_v34 = vld [vmem:[#allocation14 + $0x148] sm:$0xff]  ;;  %v615_v38 = vld [vmem:[#allocation14 + $0x158] sm:$0xff]  ;;  %v612_v43 = vld [vmem:[#allocation14 + $0x140] sm:$0xff] }
  0xbb   :  { %v619_v39 = vld [vmem:[#allocation14 + $0x178] sm:$0xff]  ;;  %v616_v44 = vld [vmem:[#allocation14 + $0x160] sm:$0xff]  ;;  %v614_v45 = vld [vmem:[#allocation14 + $0x150] sm:$0xff] }
  0xbc   :  { %407 = vmatpush1.bf16.msra.mxu0 %v10047_v27  ;;  %480 = vmatpush1.bf16.msra.mxu1 %v10048_v28  ;;  %v611_v27 = vld [vmem:[#allocation14 + $0x138] sm:$0xff]  ;;  %v604_v28 = vld [vmem:[#allocation14 + $0x100] sm:$0xff]  ;;  %v618_v46 = vld [vmem:[#allocation14 + $0x170] sm:$0xff]  ;;  %v11239_v58 = vpack.c.bf16 %v619_v39, %v615_v38  ;;  %v11243_v4 = vpack.c.bf16 %v616_v44, %v612_v43 }
  0xbd   :  { %408 = vmatprep.subr.bf16.mxu0 %v10049_v29  ;;  %481 = vmatprep.subr.bf16.mxu1 %v10051_v30  ;;  %v608_v29 = vld [vmem:[#allocation14 + $0x120] sm:$0xff]  ;;  %v606_v30 = vld [vmem:[#allocation14 + $0x110] sm:$0xff]  ;;  %v11225_v37 = vpack.c.bf16 %v611_v27, %v607_v26  ;;  %v625_v52 = vld [vmem:[#allocation14 + $0x1a8] sm:$0xff]  ;;  %v11245_v7 = vpack.c.bf16 %v618_v46, %v614_v45 }
  0xbe   :  { %v11231_v47 = vpack.c.bf16 %v608_v29, %v604_v28  ;;  %v11233_v48 = vpack.c.bf16 %v610_v33, %v606_v30  ;;  %v623_v53 = vld [vmem:[#allocation14 + $0x198] sm:$0xff]  ;;  %v174_v59 = vld [vmem:[#allocation9 + $0x30] sm:$0xff]  ;;  %v620_v61 = vld [vmem:[#allocation14 + $0x180] sm:$0xff]  ;;  %v13355_v29 = vmov 0.0   ;;  %v214_v30 = vlaneseq }
  0xbf   :  { %v627_v56 = vld [vmem:[#allocation14 + $0x1b8] sm:$0xff]  ;;  %v624_v62 = vld [vmem:[#allocation14 + $0x1a0] sm:$0xff]  ;;  %v622_v2 = vld [vmem:[#allocation14 + $0x190] sm:$0xff] }
  0xc0   :  { %409 = vmatpush1.bf16.msra.mxu0 %v10053_v35  ;;  %482 = vmatpush1.bf16.msra.mxu1 %v10054_v36  ;;  %v617_v35 = vld [vmem:[#allocation14 + $0x168] sm:$0xff]  ;;  %v11223_v36 = vpack.c.bf16 %v609_v25, %v605_v22  ;;  %v175_v60 = vld [vmem:[#allocation9 + $0x38] sm:$0xff]  ;;  %v626_v3 = vld [vmem:[#allocation14 + $0x1b0] sm:$0xff]  ;;  %v11257_v23 = vpack.c.bf16 %v624_v62, %v620_v61  ;;  %v215_v33 = vshrl.u32 %v214_v30, 7 }
  0xc1   :  { %7942 = vmatprep.subr.bf16.mxu0 %v11175_v41  ;;  %7974 = vmatprep.subr.bf16.mxu1 %v11177_v42  ;;  %v11237_v57 = vpack.c.bf16 %v617_v35, %v613_v34  ;;  %v629_v8 = vld [vmem:[#allocation14 + $0x1c8] sm:$0xff]  ;;  %v631_v10 = vld [vmem:[#allocation14 + $0x1d8] sm:$0xff]  ;;  %v179_v16 = vpack.c.bf16 %v175_v60, %v174_v59  ;;  %v628_v17 = vld [vmem:[#allocation14 + $0x1c0] sm:$0xff]  ;;  %v11259_v24 = vpack.c.bf16 %v626_v3, %v622_v2 }
  0xc2   :  { %v633_v9 = vld [vmem:[#allocation14 + $0x1e8] sm:$0xff]  ;;  %v635_v11 = vld [vmem:[#allocation14 + $0x1f8] sm:$0xff]  ;;  %v632_v20 = vld [vmem:[#allocation14 + $0x1e0] sm:$0xff]  ;;  %v11317_v34 = vsub.s32 2, %v215_v33  ;;  %v11319_v35 = vsub.s32 3, %v215_v33  ;;  %v11321_v38 = vsub.s32 0, %v215_v33 }
  0xc3   :  { %427 = vmatmul.mubr.bf16.vlgmr.msra.gmra.mrb[0].mxu0 %v176_v49  ;;  %500 = vmatmul.mubr.bf16.vlgmr.msra.gmra.mrb[0].mxu1 %v176_v49  ;;  %v621_v49 = vld [vmem:[#allocation14 + $0x188] sm:$0xff]  ;;  %v630_v21 = vld [vmem:[#allocation14 + $0x1d0] sm:$0xff]  ;;  %v11263_v25 = vpack.c.bf16 %v633_v9, %v629_v8  ;;  %v11265_v26 = vpack.c.bf16 %v635_v11, %v631_v10  ;;  %v11269_v27 = vpack.c.bf16 %v632_v20, %v628_v17  ;;  %v212_v39 = vld [vmem:[%s13342_s3] sm:$0xf] }
  0xc4   :  { %7944 = vmatpush1.bf16.msra.mxu0 %v11179_v50  ;;  %7976 = vmatpush1.bf16.msra.mxu1 %v11181_v51  ;;  %v11249_v12 = vpack.c.bf16 %v625_v52, %v621_v49  ;;  %v634_v22 = vld [vmem:[#allocation14 + $0x1f0] sm:$0xff]  ;;  %13367 = vst [vmem:[#allocation31_spill] sm:$0xff] %v11317_v34  ;;  %13368 = vst [vmem:[#allocation32_spill] sm:$0xff] %v11319_v35  ;;  %v11329_v43 = vrot.slane %v212_v39, %v11317_v34 }
  0xc5   :  { %7946 = vmatprep.subr.bf16.mxu0 %v11185_v54  ;;  %7978 = vmatprep.subr.bf16.mxu1 %v11187_v55  ;;  %v11271_v28 = vpack.c.bf16 %v634_v22, %v630_v21  ;;  %13369 = vst [vmem:[#allocation33_spill] sm:$0xff] %v11321_v38  ;;  %v11336_v46 = vrot.slane %v212_v39, %v11319_v35 }
  0xc6   :  { %436 = vmatprep.mubr.bf16.mxu0 %v13353_v0  ;;  %509 = vmatprep.mubr.bf16.mxu1 %v13353_v0  ;;  %v217_v49 = vrot.slane %v212_v39, %v11321_v38 }
  0xc8   :  { %7948 = vmatpush1.bf16.msra.mxu0 %v11191_v63  ;;  %7980 = vmatpush1.bf16.msra.mxu1 %v11193_v1 }
  0xc9   :  { %7950 = vmatprep.subr.bf16.mxu0 %v11197_v5  ;;  %7982 = vmatprep.subr.bf16.mxu1 %v11199_v6 }
  0xcb   :  { %437 = vmatmul.mubr.bf16.gmra.mrb[4].mxu0 %v177_v13  ;;  %510 = vmatmul.mubr.bf16.gmra.mrb[4].mxu1 %v177_v13  ;;  %v11251_v13 = vpack.c.bf16 %v627_v56, %v623_v53 }
  0xcc   :  { %7952 = vmatpush1.bf16.msra.mxu0 %v11205_v14  ;;  %7984 = vmatpush1.bf16.msra.mxu1 %v11207_v15 }
  0xcd   :  { %7954 = vmatprep.subr.bf16.mxu0 %v11211_v18  ;;  %7986 = vmatprep.subr.bf16.mxu1 %v11213_v19 }
  0xce   :  { %446 = vmatprep.mubr.bf16.mxu0 %v13353_v0  ;;  %519 = vmatprep.mubr.bf16.mxu1 %v13353_v0 }
  0xd0   :  { %7956 = vmatpush1.bf16.msra.mxu0 %v11217_v31  ;;  %7988 = vmatpush1.bf16.msra.mxu1 %v11219_v32 }
  0xd1   :  { %7958 = vmatprep.subr.bf16.mxu0 %v11223_v36  ;;  %7990 = vmatprep.subr.bf16.mxu1 %v11225_v37 }
  0xd3   :  { %447 = vmatmul.mubr.bf16.gmra.mrb[8].mxu0 %v178_v40  ;;  %520 = vmatmul.mubr.bf16.gmra.mrb[8].mxu1 %v178_v40  ;;  %v11326_v40 = vsub.s32 1, %v215_v33 }
  0xd4   :  { %7960 = vmatpush1.bf16.msra.mxu0 %v11231_v47  ;;  %7992 = vmatpush1.bf16.msra.mxu1 %v11233_v48 }
  0xd5   :  { %7962 = vmatprep.subr.bf16.mxu0 %v11237_v57  ;;  %7994 = vmatprep.subr.bf16.mxu1 %v11239_v58  ;;  %13370 = vst [vmem:[#allocation34_spill] sm:$0xff] %v11326_v40  ;;  %v221_v56 = vrot.slane %v212_v39, %v11326_v40 }
  0xd6   :  { %456 = vmatprep.mubr.bf16.mxu0 %v13353_v0  ;;  %529 = vmatprep.mubr.bf16.mxu1 %v13353_v0 }
  0xd8   :  { %7964 = vmatpush1.bf16.msra.mxu0 %v11243_v4  ;;  %7996 = vmatpush1.bf16.msra.mxu1 %v11245_v7 }
  0xd9   :  { %7966 = vmatprep.subr.bf16.mxu0 %v11249_v12  ;;  %7998 = vmatprep.subr.bf16.mxu1 %v11251_v13 }
  0xdb   :  { %457 = vmatmul.mubr.bf16.gmra.mrb[12].mxu0 %v179_v16  ;;  %530 = vmatmul.mubr.bf16.gmra.mrb[12].mxu1 %v179_v16 }
  0xdc   :  { %7968 = vmatpush1.bf16.msra.mxu0 %v11257_v23  ;;  %8000 = vmatpush1.bf16.msra.mxu1 %v11259_v24 }
  0xdd   :  { %7970 = vmatprep.subr.bf16.mxu0 %v11263_v25  ;;  %8002 = vmatprep.subr.bf16.mxu1 %v11265_v26 }
  0xde   :  { %704 = vmatprep.mubr.f32.mxu0 %v13355_v29  ;;  %775 = vmatprep.mubr.f32.mxu1 %v13355_v29 }
  0xe0   :  { %7972 = vmatpush1.bf16.msra.mxu0 %v11269_v27  ;;  %8004 = vmatpush1.bf16.msra.mxu1 %v11271_v28 }
  0xe1   :  { %8006 = vmatprep.subr.bf16.mxu0 %v11175_v41  ;;  %8038 = vmatprep.subr.bf16.mxu1 %v11177_v42 }
  0xe3   :  { %705 = vmatmul.mubr.f32.vlgmr.msra.gmra.mrb[16].mxu0 %v13355_v29  ;;  %776 = vmatmul.mubr.f32.vlgmr.msra.gmra.mrb[16].mxu1 %v13355_v29 }
  0xe4   :  { %8008 = vmatpush1.bf16.msra.mxu0 %v11179_v50  ;;  %8040 = vmatpush1.bf16.msra.mxu1 %v11181_v51 }
  0xe5   :  { %8010 = vmatprep.subr.bf16.mxu0 %v11185_v54  ;;  %8042 = vmatprep.subr.bf16.mxu1 %v11187_v55 }
  0xe6   :  { %880 = vmatprep.mubr.f32.mxu0 %v13355_v29  ;;  %951 = vmatprep.mubr.f32.mxu1 %v13355_v29 }
  0xe8   :  { %8012 = vmatpush1.bf16.msra.mxu0 %v11191_v63  ;;  %8044 = vmatpush1.bf16.msra.mxu1 %v11193_v1 }
  0xe9   :  { %8014 = vmatprep.subr.bf16.mxu0 %v11197_v5  ;;  %8046 = vmatprep.subr.bf16.mxu1 %v11199_v6 }
  0xec   :  { %8016 = vmatpush1.bf16.msra.mxu0 %v11205_v14  ;;  %8048 = vmatpush1.bf16.msra.mxu1 %v11207_v15 }
  0xed   :  { %8018 = vmatprep.subr.bf16.mxu0 %v11211_v18  ;;  %8050 = vmatprep.subr.bf16.mxu1 %v11213_v19 }
  0xf0   :  { %8020 = vmatpush1.bf16.msra.mxu0 %v11217_v31  ;;  %8052 = vmatpush1.bf16.msra.mxu1 %v11219_v32 }
  0xf1   :  { %8022 = vmatprep.subr.bf16.mxu0 %v11223_v36  ;;  %8054 = vmatprep.subr.bf16.mxu1 %v11225_v37 }
  0xf4   :  { %8024 = vmatpush1.bf16.msra.mxu0 %v11231_v47  ;;  %8056 = vmatpush1.bf16.msra.mxu1 %v11233_v48 }
  0xf5   :  { %8026 = vmatprep.subr.bf16.mxu0 %v11237_v57  ;;  %8058 = vmatprep.subr.bf16.mxu1 %v11239_v58 }
  0xf8   :  { %8028 = vmatpush1.bf16.msra.mxu0 %v11243_v4  ;;  %8060 = vmatpush1.bf16.msra.mxu1 %v11245_v7 }
  0xf9   :  { %8030 = vmatprep.subr.bf16.mxu0 %v11249_v12  ;;  %8062 = vmatprep.subr.bf16.mxu1 %v11251_v13 }
  0xfc   :  { %8032 = vmatpush1.bf16.msra.mxu0 %v11257_v23  ;;  %8064 = vmatpush1.bf16.msra.mxu1 %v11259_v24 }
  0xfd   :  { %8034 = vmatprep.subr.bf16.mxu0 %v11263_v25  ;;  %8066 = vmatprep.subr.bf16.mxu1 %v11265_v26 }
 0x100   :  { %8036 = vmatpush1.bf16.msra.mxu0 %v11269_v27  ;;  %8068 = vmatpush1.bf16.msra.mxu1 %v11271_v28 }
 0x101   :  { %8070 = vmatprep.subr.bf16.mxu0 %v11175_v41  ;;  %8102 = vmatprep.subr.bf16.mxu1 %v11177_v42 }
 0x196   :  { %v11331_v44 = vpop.f32.mrb[0].mxu0  ;;  %v11333_v45 = vpop.f32.mrb[0].mxu1 }
 0x197   :  { %v430_v52 = vpop.f32.mrb[1].mxu0  ;;  %v503_v53 = vpop.f32.mrb[1].mxu1 }
 0x198   :  { %v432_v59 = vpop.f32.mrb[2].mxu0  ;;  %v505_v60 = vpop.f32.mrb[2].mxu1 }
 0x199   :  { %v11340_v61 = vadd.f32 %v432_v59, %v217_v49  ;;  %v434_v62 = vpop.f32.mrb[3].mxu0  ;;  %v11343_v2 = vadd.f32 %v505_v60, %v11329_v43  ;;  %v507_v3 = vpop.f32.mrb[3].mxu1 }
 0x19a   :  { %v11345_v8 = vadd.f32 %v434_v62, %v221_v56  ;;  %v11348_v9 = vadd.f32 %v507_v3, %v11336_v46 }
 0x19e   :  { %v438_v10 = vpop.f32.mrb[4].mxu0  ;;  %v511_v11 = vpop.f32.mrb[4].mxu1 }
 0x19f   :  { %v11350_v16 = vadd.f32 %v438_v10, %v217_v49  ;;  %v440_v17 = vpop.f32.mrb[5].mxu0  ;;  %v11353_v20 = vadd.f32 %v511_v11, %v11329_v43  ;;  %v513_v21 = vpop.f32.mrb[5].mxu1 }
 0x1a0   :  { %v11355_v22 = vadd.f32 %v440_v17, %v221_v56  ;;  %v442_v30 = vpop.f32.mrb[6].mxu0  ;;  %v11358_v33 = vadd.f32 %v513_v21, %v11336_v46  ;;  %v515_v39 = vpop.f32.mrb[6].mxu1 }
 0x1a1   :  { %v11360_v59 = vadd.f32 %v442_v30, %v217_v49  ;;  %v444_v60 = vpop.f32.mrb[7].mxu0  ;;  %v11363_v62 = vadd.f32 %v515_v39, %v11329_v43  ;;  %v517_v3 = vpop.f32.mrb[7].mxu1 }
 0x1a2   :  { %v11365_v10 = vadd.f32 %v444_v60, %v221_v56  ;;  %v11368_v11 = vadd.f32 %v517_v3, %v11336_v46 }
 0x1a3   :  { %13371 = vst [vmem:[#allocation35_spill] sm:$0xff] %v11360_v59  ;;  %13372 = vst [vmem:[#allocation36_spill] sm:$0xff] %v11363_v62 }
 0x1a4   :  { %13373 = vst [vmem:[#allocation37_spill] sm:$0xff] %v11365_v10  ;;  %13374 = vst [vmem:[#allocation38_spill] sm:$0xff] %v11368_v11 }
 0x1a6   :  { %v448_v0 = vpop.f32.mrb[8].mxu0  ;;  %v521_v17 = vpop.f32.mrb[8].mxu1 }
 0x1a7   :  { %v11370_v29 = vadd.f32 %v448_v0, %v217_v49  ;;  %v450_v35 = vpop.f32.mrb[9].mxu0  ;;  %v11373_v21 = vadd.f32 %v521_v17, %v11329_v43  ;;  %v523_v30 = vpop.f32.mrb[9].mxu1 }
 0x1a8   :  { %v11375_v40 = vadd.f32 %v450_v35, %v221_v56  ;;  %v452_v34 = vpop.f32.mrb[10].mxu0  ;;  %v11378_v39 = vadd.f32 %v523_v30, %v11336_v46  ;;  %v525_v60 = vpop.f32.mrb[10].mxu1 }
 0x1a9   :  { %13375 = vst [vmem:[#allocation39_spill] sm:$0xff] %v11370_v29  ;;  %13376 = vst [vmem:[#allocation40_spill] sm:$0xff] %v11373_v21  ;;  %v11380_v38 = vadd.f32 %v452_v34, %v217_v49  ;;  %v454_v3 = vpop.f32.mrb[11].mxu0  ;;  %v11383_v11 = vadd.f32 %v525_v60, %v11329_v43  ;;  %v527_v0 = vpop.f32.mrb[11].mxu1 }
 0x1aa   :  { %13377 = vst [vmem:[#allocation41_spill] sm:$0xff] %v11375_v40  ;;  %13378 = vst [vmem:[#allocation42_spill] sm:$0xff] %v11378_v39  ;;  %v11385_v29 = vadd.f32 %v454_v3, %v221_v56  ;;  %v11388_v17 = vadd.f32 %v527_v0, %v11336_v46 }
 0x1ab   :  { %13379 = vst [vmem:[#allocation43_spill] sm:$0xff] %v11380_v38  ;;  %13380 = vst [vmem:[#allocation44_spill] sm:$0xff] %v11383_v11 }
 0x1ac   :  { %13381 = vst [vmem:[#allocation45_spill] sm:$0xff] %v11385_v29  ;;  %13382 = vst [vmem:[#allocation46_spill] sm:$0xff] %v11388_v17 }
 0x1ae   :  { %v458_v21 = vpop.f32.mrb[12].mxu0  ;;  %v531_v35 = vpop.f32.mrb[12].mxu1 }
 0x1af   :  { %v11390_v40 = vadd.f32 %v458_v21, %v217_v49  ;;  %v460_v10 = vpop.f32.mrb[13].mxu0  ;;  %v11393_v30 = vadd.f32 %v531_v35, %v11329_v43  ;;  %v533_v34 = vpop.f32.mrb[13].mxu1 }
 0x1b0   :  { %v11395_v38 = vadd.f32 %v460_v10, %v221_v56  ;;  %v462_v39 = vpop.f32.mrb[14].mxu0  ;;  %v11398_v60 = vadd.f32 %v533_v34, %v11336_v46  ;;  %v535_v3 = vpop.f32.mrb[14].mxu1  ;;  %v429_v10 = vadd.f32 %v11331_v44, %v217_v49  ;;  %v431_v34 = vadd.f32 %v430_v52, %v221_v56 }
 0x1b1   :  { %13383 = vst [vmem:[#allocation47_spill] sm:$0xff] %v11390_v40  ;;  %13384 = vst [vmem:[#allocation48_spill] sm:$0xff] %v11393_v30  ;;  %v11400_v29 = vadd.f32 %v462_v39, %v217_v49  ;;  %v464_v0 = vpop.f32.mrb[15].mxu0  ;;  %v11403_v17 = vadd.f32 %v535_v3, %v11329_v43  ;;  %v537_v21 = vpop.f32.mrb[15].mxu1 }
 0x1b2   :  { %13385 = vst [vmem:[#allocation49_spill] sm:$0xff] %v11395_v38  ;;  %13386 = vst [vmem:[#allocation50_spill] sm:$0xff] %v11398_v60  ;;  %v11405_v40 = vadd.f32 %v464_v0, %v221_v56  ;;  %v11408_v35 = vadd.f32 %v537_v21, %v11336_v46  ;;  %v502_v38 = vadd.f32 %v11333_v45, %v11329_v43 }
 0x1b3   :  { %13387 = vst [vmem:[#allocation51_spill] sm:$0xff] %v11400_v29  ;;  %13388 = vst [vmem:[#allocation52_spill] sm:$0xff] %v11403_v17  ;;  %v504_v60 = vadd.f32 %v503_v53, %v11336_v46 }
 0x1b4   :  { %13389 = vst [vmem:[#allocation53_spill] sm:$0xff] %v11405_v40 }
 0x1b6   :  { %v706_v39 = vpop.f32.mrb[16].mxu0  ;;  %v777_v29 = vpop.f32.mrb[16].mxu1 }
 0x1b7   :  { %v782_v30 = vadd.f32 %v706_v39, %v429_v10  ;;  %v784_v11 = vadd.f32 %v777_v29, %v502_v38  ;;  %v708_v3 = vpop.f32.mrb[17].mxu0  ;;  %v779_v17 = vpop.f32.mrb[17].mxu1 }
 0x1b8   :  { %v783_v62 = vadd.f32 %v708_v3, %v431_v34  ;;  %v785_v0 = vadd.f32 %v779_v17, %v504_v60 }
 0x1b9   :  { %v7749_v40 = vmul.f32 -1.442695, %v782_v30  ;;  %v7751_v21 = vmul.f32 -1.442695, %v784_v11  ;;  %v13390_v11 = vmov 0.0  }
 0x1ba   :  { %v7750_v59 = vmul.f32 -1.442695, %v783_v62 }
 0x1bb   :  { %10199 = vpow2.f32 %v7749_v40 }
 0x1bc   :  { %10201 = vpow2.f32 %v7750_v59 }
 0x1bd   :  { %10203 = vtanh.f32 %v785_v0 }
 0x1be   :  { %10205 = vpow2.f32 %v7751_v21 }
 0x1c5   :  { %v10200_v44 = vpop.eup %10199 }
 0x1c6   :  { %v795_v49 = vadd.f32 1.0, %v10200_v44  ;;  %v10202_v43 = vpop.eup %10201 }
 0x1c7   :  { %v796_v45 = vadd.f32 1.0, %v10202_v43  ;;  %v10204_v46 = vpop.eup %10203 }
 0x1c8   :  { %10207 = vrcp.f32 %v795_v49  ;;  %v10206_v52 = vpop.eup %10205 }
 0x1c9   :  { %10209 = vrcp.f32 %v796_v45  ;;  %v797_v56 = vadd.f32 1.0, %v10206_v52 }
 0x1cb   :  { %10211 = vrcp.f32 %v797_v56 }
 0x1d2   :  { %v10208_v29 = vpop.eup %10207 }
 0x1d3   :  { %v806_v38 = vmul.f32 %v10208_v29, %v10204_v46  ;;  %v10210_v53 = vpop.eup %10209 }
 0x1d4   :  { %v805_v17 = vmul.f32 0.0, %v10210_v53 }
 0x1d5   :  { %v10212_v40 = vpop.eup %10211 }
 0x1d6   :  { %v11414_v30 = vadd.f32 %v806_v38, %v805_v17 }
 0x1d8   :  { %10213 = vtanh.f32 %v11414_v30 }
 0x1e2   :  { %v10214_v59 = vpop.eup %10213 }
 0x1e3   :  { %v11417_v62 = vmul.f32 %v10214_v59, %v10212_v40 }
 0x1e5   :  { %881 = vmatmul.mubr.f32.vlgmr.msra.gmra.mrb[18].mxu0 %v11417_v62  ;;  %952 = vmatmul.mubr.f32.vlgmr.msra.gmra.mrb[18].mxu1 %v11417_v62 }
 0x1e6   :  { %8072 = vmatpush1.bf16.msra.mxu0 %v11179_v50  ;;  %8104 = vmatpush1.bf16.msra.mxu1 %v11181_v51 }
 0x1e7   :  { %8074 = vmatprep.subr.bf16.mxu0 %v11185_v54  ;;  %8106 = vmatprep.subr.bf16.mxu1 %v11187_v55 }
 0x1e8   :  { %1057 = vmatprep.mubr.f32.mxu0 %v13390_v11  ;;  %1128 = vmatprep.mubr.f32.mxu1 %v13390_v11 }
 0x1ea   :  { %8076 = vmatpush1.bf16.msra.mxu0 %v11191_v63  ;;  %8108 = vmatpush1.bf16.msra.mxu1 %v11193_v1 }
 0x1eb   :  { %8078 = vmatprep.subr.bf16.mxu0 %v11197_v5  ;;  %8110 = vmatprep.subr.bf16.mxu1 %v11199_v6 }
 0x1ee   :  { %8080 = vmatpush1.bf16.msra.mxu0 %v11205_v14  ;;  %8112 = vmatpush1.bf16.msra.mxu1 %v11207_v15 }
 0x1ef   :  { %8082 = vmatprep.subr.bf16.mxu0 %v11211_v18  ;;  %8114 = vmatprep.subr.bf16.mxu1 %v11213_v19 }
 0x1f2   :  { %8084 = vmatpush1.bf16.msra.mxu0 %v11217_v31  ;;  %8116 = vmatpush1.bf16.msra.mxu1 %v11219_v32 }
 0x1f3   :  { %8086 = vmatprep.subr.bf16.mxu0 %v11223_v36  ;;  %8118 = vmatprep.subr.bf16.mxu1 %v11225_v37 }
 0x1f6   :  { %8088 = vmatpush1.bf16.msra.mxu0 %v11231_v47  ;;  %8120 = vmatpush1.bf16.msra.mxu1 %v11233_v48 }
 0x1f7   :  { %8090 = vmatprep.subr.bf16.mxu0 %v11237_v57  ;;  %8122 = vmatprep.subr.bf16.mxu1 %v11239_v58 }
 0x1fa   :  { %8092 = vmatpush1.bf16.msra.mxu0 %v11243_v4  ;;  %8124 = vmatpush1.bf16.msra.mxu1 %v11245_v7 }
 0x1fb   :  { %8094 = vmatprep.subr.bf16.mxu0 %v11249_v12  ;;  %8126 = vmatprep.subr.bf16.mxu1 %v11251_v13 }
 0x1fe   :  { %8096 = vmatpush1.bf16.msra.mxu0 %v11257_v23  ;;  %8128 = vmatpush1.bf16.msra.mxu1 %v11259_v24 }
 0x1ff   :  { %8098 = vmatprep.subr.bf16.mxu0 %v11263_v25  ;;  %8130 = vmatprep.subr.bf16.mxu1 %v11265_v26 }
 0x202   :  { %8100 = vmatpush1.bf16.msra.mxu0 %v11269_v27  ;;  %8132 = vmatpush1.bf16.msra.mxu1 %v11271_v28 }
 0x203   :  { %8134 = vmatprep.subr.bf16.mxu0 %v11175_v41  ;;  %8166 = vmatprep.subr.bf16.mxu1 %v11177_v42 }
 0x2b8   :  { %v882_v60 = vpop.f32.mrb[18].mxu0  ;;  %v953_v10 = vpop.f32.mrb[18].mxu1 }
 0x2b9   :  { %v958_v34 = vadd.f32 %v882_v60, %v11340_v61  ;;  %v960_v39 = vadd.f32 %v953_v10, %v11343_v2  ;;  %v884_v3 = vpop.f32.mrb[19].mxu0  ;;  %v955_v0 = vpop.f32.mrb[19].mxu1 }
 0x2ba   :  { %v959_v21 = vadd.f32 %v884_v3, %v11345_v8  ;;  %v961_v44 = vadd.f32 %v955_v0, %v11348_v9 }
 0x2bb   :  { %v7752_v49 = vmul.f32 -1.442695, %v958_v34  ;;  %v7754_v45 = vmul.f32 -1.442695, %v960_v39 }
 0x2bc   :  { %v7753_v43 = vmul.f32 -1.442695, %v959_v21 }
 0x2bd   :  { %10215 = vpow2.f32 %v7752_v49 }
 0x2be   :  { %10217 = vpow2.f32 %v7753_v43 }
 0x2bf   :  { %10219 = vtanh.f32 %v961_v44 }
 0x2c0   :  { %10221 = vpow2.f32 %v7754_v45 }
 0x2c7   :  { %v10216_v46 = vpop.eup %10215 }
 0x2c8   :  { %v971_v52 = vadd.f32 1.0, %v10216_v46  ;;  %v10218_v29 = vpop.eup %10217 }
 0x2c9   :  { %v972_v61 = vadd.f32 1.0, %v10218_v29  ;;  %v10220_v2 = vpop.eup %10219 }
 0x2ca   :  { %10223 = vrcp.f32 %v971_v52  ;;  %v10222_v38 = vpop.eup %10221 }
 0x2cb   :  { %10225 = vrcp.f32 %v972_v61  ;;  %v973_v17 = vadd.f32 1.0, %v10222_v38 }
 0x2cd   :  { %10227 = vrcp.f32 %v973_v17 }
 0x2d4   :  { %v10224_v53 = vpop.eup %10223 }
 0x2d5   :  { %v982_v56 = vmul.f32 %v10224_v53, %v10220_v2  ;;  %v10226_v8 = vpop.eup %10225 }
 0x2d6   :  { %v981_v9 = vmul.f32 %v10226_v8, %v11414_v30 }
 0x2d7   :  { %v10228_v59 = vpop.eup %10227 }
 0x2d8   :  { %v11460_v40 = vadd.f32 %v982_v56, %v981_v9 }
 0x2da   :  { %10229 = vtanh.f32 %v11460_v40 }
 0x2e4   :  { %v10230_v60 = vpop.eup %10229 }
 0x2e5   :  { %v11463_v10 = vmul.f32 %v10230_v60, %v10228_v59 }
 0x2e7   :  { %1058 = vmatmul.mubr.f32.vlgmr.msra.gmra.mrb[20].mxu0 %v11463_v10  ;;  %1129 = vmatmul.mubr.f32.vlgmr.msra.gmra.mrb[20].mxu1 %v11463_v10 }
 0x2e8   :  { %8136 = vmatpush1.bf16.msra.mxu0 %v11179_v50  ;;  %8168 = vmatpush1.bf16.msra.mxu1 %v11181_v51 }
 0x2e9   :  { %8138 = vmatprep.subr.bf16.mxu0 %v11185_v54  ;;  %8170 = vmatprep.subr.bf16.mxu1 %v11187_v55 }
 0x2ea   :  { %1234 = vmatprep.mubr.f32.mxu0 %v13390_v11  ;;  %1305 = vmatprep.mubr.f32.mxu1 %v13390_v11 }
 0x2ec   :  { %8140 = vmatpush1.bf16.msra.mxu0 %v11191_v63  ;;  %8172 = vmatpush1.bf16.msra.mxu1 %v11193_v1 }
 0x2ed   :  { %8142 = vmatprep.subr.bf16.mxu0 %v11197_v5  ;;  %8174 = vmatprep.subr.bf16.mxu1 %v11199_v6 }
 0x2f0   :  { %8144 = vmatpush1.bf16.msra.mxu0 %v11205_v14  ;;  %8176 = vmatpush1.bf16.msra.mxu1 %v11207_v15 }
 0x2f1   :  { %8146 = vmatprep.subr.bf16.mxu0 %v11211_v18  ;;  %8178 = vmatprep.subr.bf16.mxu1 %v11213_v19 }
 0x2f4   :  { %8148 = vmatpush1.bf16.msra.mxu0 %v11217_v31  ;;  %8180 = vmatpush1.bf16.msra.mxu1 %v11219_v32 }
 0x2f5   :  { %8150 = vmatprep.subr.bf16.mxu0 %v11223_v36  ;;  %8182 = vmatprep.subr.bf16.mxu1 %v11225_v37 }
 0x2f8   :  { %8152 = vmatpush1.bf16.msra.mxu0 %v11231_v47  ;;  %8184 = vmatpush1.bf16.msra.mxu1 %v11233_v48 }
 0x2f9   :  { %8154 = vmatprep.subr.bf16.mxu0 %v11237_v57  ;;  %8186 = vmatprep.subr.bf16.mxu1 %v11239_v58 }
 0x2fc   :  { %8156 = vmatpush1.bf16.msra.mxu0 %v11243_v4  ;;  %8188 = vmatpush1.bf16.msra.mxu1 %v11245_v7 }
 0x2fd   :  { %8158 = vmatprep.subr.bf16.mxu0 %v11249_v12  ;;  %8190 = vmatprep.subr.bf16.mxu1 %v11251_v13 }
 0x300   :  { %8160 = vmatpush1.bf16.msra.mxu0 %v11257_v23  ;;  %8192 = vmatpush1.bf16.msra.mxu1 %v11259_v24 }
 0x301   :  { %8162 = vmatprep.subr.bf16.mxu0 %v11263_v25  ;;  %8194 = vmatprep.subr.bf16.mxu1 %v11265_v26 }
 0x304   :  { %8164 = vmatpush1.bf16.msra.mxu0 %v11269_v27  ;;  %8196 = vmatpush1.bf16.msra.mxu1 %v11271_v28 }
 0x305   :  { %8198 = vmatprep.subr.bf16.mxu0 %v11175_v41  ;;  %8230 = vmatprep.subr.bf16.mxu1 %v11177_v42 }
 0x3ba   :  { %v1059_v30 = vpop.f32.mrb[20].mxu0  ;;  %v1130_v34 = vpop.f32.mrb[20].mxu1 }
 0x3bb   :  { %v1135_v39 = vadd.f32 %v1059_v30, %v11350_v16  ;;  %v1137_v3 = vadd.f32 %v1130_v34, %v11353_v20  ;;  %v1061_v0 = vpop.f32.mrb[21].mxu0  ;;  %v1132_v21 = vpop.f32.mrb[21].mxu1  ;;  %v13391_v30 = vld [vmem:[#allocation35_spill] sm:$0xff] }
 0x3bc   :  { %v1136_v44 = vadd.f32 %v1061_v0, %v11355_v22  ;;  %v1138_v49 = vadd.f32 %v1132_v21, %v11358_v33 }
 0x3bd   :  { %v7755_v43 = vmul.f32 -1.442695, %v1135_v39  ;;  %v7757_v46 = vmul.f32 -1.442695, %v1137_v3  ;;  %v13392_v39 = vld [vmem:[#allocation36_spill] sm:$0xff] }
 0x3be   :  { %v7756_v45 = vmul.f32 -1.442695, %v1136_v44  ;;  %v13393_v44 = vld [vmem:[#allocation37_spill] sm:$0xff] }
 0x3bf   :  { %10231 = vpow2.f32 %v7755_v43  ;;  %v13394_v43 = vld [vmem:[#allocation38_spill] sm:$0xff] }
 0x3c0   :  { %10233 = vpow2.f32 %v7756_v45 }
 0x3c1   :  { %10235 = vtanh.f32 %v1138_v49 }
 0x3c2   :  { %10237 = vpow2.f32 %v7757_v46 }
 0x3c9   :  { %v10232_v52 = vpop.eup %10231 }
 0x3ca   :  { %v1148_v29 = vadd.f32 1.0, %v10232_v52  ;;  %v10234_v61 = vpop.eup %10233 }
 0x3cb   :  { %v1149_v16 = vadd.f32 1.0, %v10234_v61  ;;  %v10236_v20 = vpop.eup %10235 }
 0x3cc   :  { %10239 = vrcp.f32 %v1148_v29  ;;  %v10238_v2 = vpop.eup %10237 }
 0x3cd   :  { %10241 = vrcp.f32 %v1149_v16  ;;  %v1150_v56 = vadd.f32 1.0, %v10238_v2 }
 0x3cf   :  { %10243 = vrcp.f32 %v1150_v56 }
 0x3d6   :  { %v10240_v38 = vpop.eup %10239 }
 0x3d7   :  { %v1159_v53 = vmul.f32 %v10240_v38, %v10236_v20  ;;  %v10242_v22 = vpop.eup %10241 }
 0x3d8   :  { %v1158_v33 = vmul.f32 %v10242_v22, %v11460_v40 }
 0x3d9   :  { %v10244_v17 = vpop.eup %10243 }
 0x3da   :  { %v11506_v8 = vadd.f32 %v1159_v53, %v1158_v33 }
 0x3dc   :  { %10245 = vtanh.f32 %v11506_v8 }
 0x3e6   :  { %v10246_v9 = vpop.eup %10245 }
 0x3e7   :  { %v11509_v59 = vmul.f32 %v10246_v9, %v10244_v17 }
 0x3e9   :  { %1235 = vmatmul.mubr.f32.vlgmr.msra.gmra.mrb[22].mxu0 %v11509_v59  ;;  %1306 = vmatmul.mubr.f32.vlgmr.msra.gmra.mrb[22].mxu1 %v11509_v59 }
 0x3ea   :  { %8200 = vmatpush1.bf16.msra.mxu0 %v11179_v50  ;;  %8232 = vmatpush1.bf16.msra.mxu1 %v11181_v51 }
 0x3eb   :  { %8202 = vmatprep.subr.bf16.mxu0 %v11185_v54  ;;  %8234 = vmatprep.subr.bf16.mxu1 %v11187_v55 }
 0x3ec   :  { %1411 = vmatprep.mubr.f32.mxu0 %v13390_v11  ;;  %1482 = vmatprep.mubr.f32.mxu1 %v13390_v11 }
 0x3ee   :  { %8204 = vmatpush1.bf16.msra.mxu0 %v11191_v63  ;;  %8236 = vmatpush1.bf16.msra.mxu1 %v11193_v1 }
 0x3ef   :  { %8206 = vmatprep.subr.bf16.mxu0 %v11197_v5  ;;  %8238 = vmatprep.subr.bf16.mxu1 %v11199_v6 }
 0x3f2   :  { %8208 = vmatpush1.bf16.msra.mxu0 %v11205_v14  ;;  %8240 = vmatpush1.bf16.msra.mxu1 %v11207_v15 }
 0x3f3   :  { %8210 = vmatprep.subr.bf16.mxu0 %v11211_v18  ;;  %8242 = vmatprep.subr.bf16.mxu1 %v11213_v19 }
 0x3f6   :  { %8212 = vmatpush1.bf16.msra.mxu0 %v11217_v31  ;;  %8244 = vmatpush1.bf16.msra.mxu1 %v11219_v32 }
 0x3f7   :  { %8214 = vmatprep.subr.bf16.mxu0 %v11223_v36  ;;  %8246 = vmatprep.subr.bf16.mxu1 %v11225_v37 }
 0x3fa   :  { %8216 = vmatpush1.bf16.msra.mxu0 %v11231_v47  ;;  %8248 = vmatpush1.bf16.msra.mxu1 %v11233_v48 }
 0x3fb   :  { %8218 = vmatprep.subr.bf16.mxu0 %v11237_v57  ;;  %8250 = vmatprep.subr.bf16.mxu1 %v11239_v58 }
 0x3fe   :  { %8220 = vmatpush1.bf16.msra.mxu0 %v11243_v4  ;;  %8252 = vmatpush1.bf16.msra.mxu1 %v11245_v7 }
 0x3ff   :  { %8222 = vmatprep.subr.bf16.mxu0 %v11249_v12  ;;  %8254 = vmatprep.subr.bf16.mxu1 %v11251_v13 }
 0x402   :  { %8224 = vmatpush1.bf16.msra.mxu0 %v11257_v23  ;;  %8256 = vmatpush1.bf16.msra.mxu1 %v11259_v24 }
 0x403   :  { %8226 = vmatprep.subr.bf16.mxu0 %v11263_v25  ;;  %8258 = vmatprep.subr.bf16.mxu1 %v11265_v26 }
 0x406   :  { %8228 = vmatpush1.bf16.msra.mxu0 %v11269_v27  ;;  %8260 = vmatpush1.bf16.msra.mxu1 %v11271_v28 }
 0x407   :  { %8262 = vmatprep.subr.bf16.mxu0 %v11175_v41  ;;  %8294 = vmatprep.subr.bf16.mxu1 %v11177_v42 }
 0x4bc   :  { %v1236_v40 = vpop.f32.mrb[22].mxu0  ;;  %v1307_v60 = vpop.f32.mrb[22].mxu1 }
 0x4bd   :  { %v1312_v34 = vadd.f32 %v1236_v40, %v13391_v30  ;;  %v1314_v3 = vadd.f32 %v1307_v60, %v13392_v39  ;;  %v1238_v0 = vpop.f32.mrb[23].mxu0  ;;  %v1309_v21 = vpop.f32.mrb[23].mxu1 }
 0x4be   :  { %v1313_v49 = vadd.f32 %v1238_v0, %v13393_v44  ;;  %v1315_v45 = vadd.f32 %v1309_v21, %v13394_v43  ;;  %v13396_v21 = vld [vmem:[#allocation40_spill] sm:$0xff] }
 0x4bf   :  { %v7758_v46 = vmul.f32 -1.442695, %v1312_v34  ;;  %v7760_v29 = vmul.f32 -1.442695, %v1314_v3  ;;  %v13395_v3 = vld [vmem:[#allocation39_spill] sm:$0xff] }
 0x4c0   :  { %v7759_v52 = vmul.f32 -1.442695, %v1313_v49 }
 0x4c1   :  { %10247 = vpow2.f32 %v7758_v46 }
 0x4c2   :  { %10249 = vpow2.f32 %v7759_v52  ;;  %v13398_v52 = vld [vmem:[#allocation42_spill] sm:$0xff] }
 0x4c3   :  { %10251 = vtanh.f32 %v1315_v45  ;;  %v13397_v45 = vld [vmem:[#allocation41_spill] sm:$0xff] }
 0x4c4   :  { %10253 = vpow2.f32 %v7760_v29 }
 0x4cb   :  { %v10248_v61 = vpop.eup %10247 }
 0x4cc   :  { %v1325_v16 = vadd.f32 1.0, %v10248_v61  ;;  %v10250_v20 = vpop.eup %10249 }
 0x4cd   :  { %v1326_v2 = vadd.f32 1.0, %v10250_v20  ;;  %v10252_v38 = vpop.eup %10251 }
 0x4ce   :  { %10255 = vrcp.f32 %v1325_v16  ;;  %v10254_v53 = vpop.eup %10253 }
 0x4cf   :  { %10257 = vrcp.f32 %v1326_v2  ;;  %v1327_v17 = vadd.f32 1.0, %v10254_v53 }
 0x4d1   :  { %10259 = vrcp.f32 %v1327_v17 }
 0x4d8   :  { %v10256_v22 = vpop.eup %10255 }
 0x4d9   :  { %v1336_v56 = vmul.f32 %v10256_v22, %v10252_v38  ;;  %v10258_v33 = vpop.eup %10257 }
 0x4da   :  { %v1335_v9 = vmul.f32 %v10258_v33, %v11506_v8 }
 0x4db   :  { %v10260_v60 = vpop.eup %10259 }
 0x4dc   :  { %v11552_v40 = vadd.f32 %v1336_v56, %v1335_v9 }
 0x4de   :  { %10261 = vtanh.f32 %v11552_v40 }
 0x4e8   :  { %v10262_v30 = vpop.eup %10261 }
 0x4e9   :  { %v11555_v34 = vmul.f32 %v10262_v30, %v10260_v60 }
 0x4eb   :  { %1412 = vmatmul.mubr.f32.vlgmr.msra.gmra.mrb[24].mxu0 %v11555_v34  ;;  %1483 = vmatmul.mubr.f32.vlgmr.msra.gmra.mrb[24].mxu1 %v11555_v34 }
 0x4ec   :  { %8264 = vmatpush1.bf16.msra.mxu0 %v11179_v50  ;;  %8296 = vmatpush1.bf16.msra.mxu1 %v11181_v51 }
 0x4ed   :  { %8266 = vmatprep.subr.bf16.mxu0 %v11185_v54  ;;  %8298 = vmatprep.subr.bf16.mxu1 %v11187_v55 }
 0x4ee   :  { %1588 = vmatprep.mubr.f32.mxu0 %v13390_v11  ;;  %1659 = vmatprep.mubr.f32.mxu1 %v13390_v11 }
 0x4f0   :  { %8268 = vmatpush1.bf16.msra.mxu0 %v11191_v63  ;;  %8300 = vmatpush1.bf16.msra.mxu1 %v11193_v1 }
 0x4f1   :  { %8270 = vmatprep.subr.bf16.mxu0 %v11197_v5  ;;  %8302 = vmatprep.subr.bf16.mxu1 %v11199_v6 }
 0x4f4   :  { %8272 = vmatpush1.bf16.msra.mxu0 %v11205_v14  ;;  %8304 = vmatpush1.bf16.msra.mxu1 %v11207_v15 }
 0x4f5   :  { %8274 = vmatprep.subr.bf16.mxu0 %v11211_v18  ;;  %8306 = vmatprep.subr.bf16.mxu1 %v11213_v19 }
 0x4f8   :  { %8276 = vmatpush1.bf16.msra.mxu0 %v11217_v31  ;;  %8308 = vmatpush1.bf16.msra.mxu1 %v11219_v32 }
 0x4f9   :  { %8278 = vmatprep.subr.bf16.mxu0 %v11223_v36  ;;  %8310 = vmatprep.subr.bf16.mxu1 %v11225_v37 }
 0x4fc   :  { %8280 = vmatpush1.bf16.msra.mxu0 %v11231_v47  ;;  %8312 = vmatpush1.bf16.msra.mxu1 %v11233_v48 }
 0x4fd   :  { %8282 = vmatprep.subr.bf16.mxu0 %v11237_v57  ;;  %8314 = vmatprep.subr.bf16.mxu1 %v11239_v58 }
 0x500   :  { %8284 = vmatpush1.bf16.msra.mxu0 %v11243_v4  ;;  %8316 = vmatpush1.bf16.msra.mxu1 %v11245_v7 }
 0x501   :  { %8286 = vmatprep.subr.bf16.mxu0 %v11249_v12  ;;  %8318 = vmatprep.subr.bf16.mxu1 %v11251_v13 }
 0x504   :  { %8288 = vmatpush1.bf16.msra.mxu0 %v11257_v23  ;;  %8320 = vmatpush1.bf16.msra.mxu1 %v11259_v24 }
 0x505   :  { %8290 = vmatprep.subr.bf16.mxu0 %v11263_v25  ;;  %8322 = vmatprep.subr.bf16.mxu1 %v11265_v26 }
 0x508   :  { %8292 = vmatpush1.bf16.msra.mxu0 %v11269_v27  ;;  %8324 = vmatpush1.bf16.msra.mxu1 %v11271_v28 }
 0x509   :  { %8326 = vmatprep.subr.bf16.mxu0 %v11175_v41  ;;  %8358 = vmatprep.subr.bf16.mxu1 %v11177_v42 }
 0x5be   :  { %v1413_v8 = vpop.f32.mrb[24].mxu0  ;;  %v1484_v39 = vpop.f32.mrb[24].mxu1 }
 0x5bf   :  { %v1489_v0 = vadd.f32 %v1413_v8, %v13395_v3  ;;  %v1491_v44 = vadd.f32 %v1484_v39, %v13396_v21  ;;  %v1415_v49 = vpop.f32.mrb[25].mxu0  ;;  %v1486_v43 = vpop.f32.mrb[25].mxu1 }
 0x5c0   :  { %v1490_v46 = vadd.f32 %v1415_v49, %v13397_v45  ;;  %v1492_v29 = vadd.f32 %v1486_v43, %v13398_v52  ;;  %v13399_v49 = vld [vmem:[#allocation43_spill] sm:$0xff]  ;;  %v13400_v45 = vld [vmem:[#allocation44_spill] sm:$0xff] }
 0x5c1   :  { %v7761_v61 = vmul.f32 -1.442695, %v1489_v0  ;;  %v7763_v20 = vmul.f32 -1.442695, %v1491_v44 }
 0x5c2   :  { %v7762_v16 = vmul.f32 -1.442695, %v1490_v46 }
 0x5c3   :  { %10263 = vpow2.f32 %v7761_v61  ;;  %v13401_v61 = vld [vmem:[#allocation45_spill] sm:$0xff] }
 0x5c4   :  { %10265 = vpow2.f32 %v7762_v16 }
 0x5c5   :  { %10267 = vtanh.f32 %v1492_v29 }
 0x5c6   :  { %10269 = vpow2.f32 %v7763_v20  ;;  %v13402_v20 = vld [vmem:[#allocation46_spill] sm:$0xff] }
 0x5cd   :  { %v10264_v2 = vpop.eup %10263 }
 0x5ce   :  { %v1502_v38 = vadd.f32 1.0, %v10264_v2  ;;  %v10266_v53 = vpop.eup %10265 }
 0x5cf   :  { %v1503_v22 = vadd.f32 1.0, %v10266_v53  ;;  %v10268_v56 = vpop.eup %10267 }
 0x5d0   :  { %10271 = vrcp.f32 %v1502_v38  ;;  %v10270_v33 = vpop.eup %10269 }
 0x5d1   :  { %10273 = vrcp.f32 %v1503_v22  ;;  %v1504_v30 = vadd.f32 1.0, %v10270_v33 }
 0x5d3   :  { %10275 = vrcp.f32 %v1504_v30 }
 0x5da   :  { %v10272_v17 = vpop.eup %10271 }
 0x5db   :  { %v1513_v9 = vmul.f32 %v10272_v17, %v10268_v56  ;;  %v10274_v60 = vpop.eup %10273 }
 0x5dc   :  { %v1512_v8 = vmul.f32 %v10274_v60, %v11552_v40 }
 0x5dd   :  { %v10276_v3 = vpop.eup %10275 }
 0x5de   :  { %v11598_v39 = vadd.f32 %v1513_v9, %v1512_v8 }
 0x5e0   :  { %10277 = vtanh.f32 %v11598_v39 }
 0x5ea   :  { %v10278_v0 = vpop.eup %10277 }
 0x5eb   :  { %v11601_v21 = vmul.f32 %v10278_v0, %v10276_v3 }
 0x5ed   :  { %1589 = vmatmul.mubr.f32.vlgmr.msra.gmra.mrb[26].mxu0 %v11601_v21  ;;  %1660 = vmatmul.mubr.f32.vlgmr.msra.gmra.mrb[26].mxu1 %v11601_v21 }
 0x5ee   :  { %8328 = vmatpush1.bf16.msra.mxu0 %v11179_v50  ;;  %8360 = vmatpush1.bf16.msra.mxu1 %v11181_v51 }
 0x5ef   :  { %8330 = vmatprep.subr.bf16.mxu0 %v11185_v54  ;;  %8362 = vmatprep.subr.bf16.mxu1 %v11187_v55 }
 0x5f0   :  { %1765 = vmatprep.mubr.f32.mxu0 %v13390_v11  ;;  %1836 = vmatprep.mubr.f32.mxu1 %v13390_v11 }
 0x5f2   :  { %8332 = vmatpush1.bf16.msra.mxu0 %v11191_v63  ;;  %8364 = vmatpush1.bf16.msra.mxu1 %v11193_v1 }
 0x5f3   :  { %8334 = vmatprep.subr.bf16.mxu0 %v11197_v5  ;;  %8366 = vmatprep.subr.bf16.mxu1 %v11199_v6 }
 0x5f6   :  { %8336 = vmatpush1.bf16.msra.mxu0 %v11205_v14  ;;  %8368 = vmatpush1.bf16.msra.mxu1 %v11207_v15 }
 0x5f7   :  { %8338 = vmatprep.subr.bf16.mxu0 %v11211_v18  ;;  %8370 = vmatprep.subr.bf16.mxu1 %v11213_v19 }
 0x5fa   :  { %8340 = vmatpush1.bf16.msra.mxu0 %v11217_v31  ;;  %8372 = vmatpush1.bf16.msra.mxu1 %v11219_v32 }
 0x5fb   :  { %8342 = vmatprep.subr.bf16.mxu0 %v11223_v36  ;;  %8374 = vmatprep.subr.bf16.mxu1 %v11225_v37 }
 0x5fe   :  { %8344 = vmatpush1.bf16.msra.mxu0 %v11231_v47  ;;  %8376 = vmatpush1.bf16.msra.mxu1 %v11233_v48 }
 0x5ff   :  { %8346 = vmatprep.subr.bf16.mxu0 %v11237_v57  ;;  %8378 = vmatprep.subr.bf16.mxu1 %v11239_v58 }
 0x602   :  { %8348 = vmatpush1.bf16.msra.mxu0 %v11243_v4  ;;  %8380 = vmatpush1.bf16.msra.mxu1 %v11245_v7 }
 0x603   :  { %8350 = vmatprep.subr.bf16.mxu0 %v11249_v12  ;;  %8382 = vmatprep.subr.bf16.mxu1 %v11251_v13 }
 0x606   :  { %8352 = vmatpush1.bf16.msra.mxu0 %v11257_v23  ;;  %8384 = vmatpush1.bf16.msra.mxu1 %v11259_v24 }
 0x607   :  { %8354 = vmatprep.subr.bf16.mxu0 %v11263_v25  ;;  %8386 = vmatprep.subr.bf16.mxu1 %v11265_v26 }
 0x60a   :  { %8356 = vmatpush1.bf16.msra.mxu0 %v11269_v27  ;;  %8388 = vmatpush1.bf16.msra.mxu1 %v11271_v28 }
 0x60b   :  { %8390 = vmatprep.subr.bf16.mxu0 %v11175_v41  ;;  %8422 = vmatprep.subr.bf16.mxu1 %v11177_v42 }
 0x6c0   :  { %v1590_v40 = vpop.f32.mrb[26].mxu0  ;;  %v1661_v44 = vpop.f32.mrb[26].mxu1 }
 0x6c1   :  { %v1666_v43 = vadd.f32 %v1590_v40, %v13399_v49  ;;  %v1668_v46 = vadd.f32 %v1661_v44, %v13400_v45  ;;  %v1592_v52 = vpop.f32.mrb[27].mxu0  ;;  %v1663_v29 = vpop.f32.mrb[27].mxu1  ;;  %v10055_v45 = vld [vmem:[#allocation15] ss:$16 sps:$4 sm:$0xff]  }
 0x6c2   :  { %v1667_v16 = vadd.f32 %v1592_v52, %v13401_v61  ;;  %v1669_v2 = vadd.f32 %v1663_v29, %v13402_v20  ;;  %v10063_v29 = vld [vmem:[#allocation15 + $0x24] ss:$16 sps:$4 sm:$0xff]   ;;  %v10066_v61 = vld [vmem:[#allocation15 + $0x2c] ss:$16 sps:$4 sm:$0xff]   ;;  %v10064_v20 = vld [vmem:[#allocation15 + $0x28] ss:$16 sps:$4 sm:$0xff]  }
 0x6c3   :  { %v7764_v38 = vmul.f32 -1.442695, %v1666_v43  ;;  %v7766_v22 = vmul.f32 -1.442695, %v1668_v46  ;;  %v10058_v46 = vld [vmem:[#allocation15 + $0x8] ss:$16 sps:$4 sm:$0xff]  }
 0x6c4   :  { %v7765_v53 = vmul.f32 -1.442695, %v1667_v16  ;;  %v10061_v16 = vld [vmem:[#allocation15 + $0x20] ss:$16 sps:$4 sm:$0xff]  }
 0x6c5   :  { %10279 = vpow2.f32 %v7764_v38  ;;  %v10072_v38 = vld [vmem:[#allocation15 + $0x4c] ss:$16 sps:$4 sm:$0xff]  }
 0x6c6   :  { %10281 = vpow2.f32 %v7765_v53  ;;  %v13407_v53 = vmov 0  }
 0x6c7   :  { %10283 = vtanh.f32 %v1669_v2  ;;  %v10069_v2 = vld [vmem:[#allocation15 + $0x44] ss:$16 sps:$4 sm:$0xff]  }
 0x6c8   :  { %10285 = vpow2.f32 %v7766_v22  ;;  %v10067_v22 = vld [vmem:[#allocation15 + $0x40] ss:$16 sps:$4 sm:$0xff]  }
 0x6cf   :  { %v10280_v41 = vpop.eup %10279 }
 0x6d0   :  { %v1679_v56 = vadd.f32 1.0, %v10280_v41  ;;  %v10282_v42 = vpop.eup %10281  ;;  %v10070_v41 = vld [vmem:[#allocation15 + $0x48] ss:$16 sps:$4 sm:$0xff]  }
 0x6d1   :  { %v1680_v33 = vadd.f32 1.0, %v10282_v42  ;;  %v10284_v17 = vpop.eup %10283  ;;  %v10078_v42 = vld [vmem:[#allocation15 + $0x6c] ss:$16 sps:$4 sm:$0xff]  }
 0x6d2   :  { %10287 = vrcp.f32 %v1679_v56  ;;  %v10286_v9 = vpop.eup %10285  ;;  %v10075_v56 = vld [vmem:[#allocation15 + $0x64] ss:$16 sps:$4 sm:$0xff]  }
 0x6d3   :  { %10289 = vrcp.f32 %v1680_v33  ;;  %v1681_v3 = vadd.f32 1.0, %v10286_v9  ;;  %v10073_v33 = vld [vmem:[#allocation15 + $0x60] ss:$16 sps:$4 sm:$0xff]   ;;  %v10081_v9 = vld [vmem:[#allocation15 + $0x84] ss:$16 sps:$4 sm:$0xff]  }
 0x6d5   :  { %10291 = vrcp.f32 %v1681_v3  ;;  %v10087_v3 = vld [vmem:[#allocation15 + $0xa4] ss:$16 sps:$4 sm:$0xff]  }
 0x6dc   :  { %v10288_v60 = vpop.eup %10287 }
 0x6dd   :  { %v1690_v30 = vmul.f32 %v10288_v60, %v10284_v17  ;;  %v10290_v8 = vpop.eup %10289  ;;  %v10076_v17 = vld [vmem:[#allocation15 + $0x68] ss:$16 sps:$4 sm:$0xff]   ;;  %v10084_v60 = vld [vmem:[#allocation15 + $0x8c] ss:$16 sps:$4 sm:$0xff]  }
 0x6de   :  { %v1689_v0 = vmul.f32 %v10290_v8, %v11598_v39  ;;  %v10082_v8 = vld [vmem:[#allocation15 + $0x88] ss:$16 sps:$4 sm:$0xff]  }
 0x6df   :  { %v10292_v44 = vpop.eup %10291 }
 0x6e0   :  { %v11644_v40 = vadd.f32 %v1690_v30, %v1689_v0  ;;  %v10079_v30 = vld [vmem:[#allocation15 + $0x80] ss:$16 sps:$4 sm:$0xff]   ;;  %v10090_v0 = vld [vmem:[#allocation15 + $0xac] ss:$16 sps:$4 sm:$0xff]  }
 0x6e2   :  { %10293 = vtanh.f32 %v11644_v40 }
 0x6ec   :  { %v10294_v49 = vpop.eup %10293 }
 0x6ed   :  { %v11647_v43 = vmul.f32 %v10294_v49, %v10292_v44  ;;  %v10088_v44 = vld [vmem:[#allocation15 + $0xa8] ss:$16 sps:$4 sm:$0xff]   ;;  %v10093_v49 = vld [vmem:[#allocation15 + $0xc4] ss:$16 sps:$4 sm:$0xff]  }
 0x6ef   :  { %1766 = vmatmul.mubr.f32.vlgmr.msra.gmra.mrb[28].mxu0 %v11647_v43  ;;  %1837 = vmatmul.mubr.f32.vlgmr.msra.gmra.mrb[28].mxu1 %v11647_v43 }
 0x6f0   :  { %8392 = vmatpush1.bf16.msra.mxu0 %v11179_v50  ;;  %8424 = vmatpush1.bf16.msra.mxu1 %v11181_v51  ;;  %v10057_v50 = vld [vmem:[#allocation15 + $0x4] ss:$16 sps:$4 sm:$0xff]   ;;  %v10060_v51 = vld [vmem:[#allocation15 + $0xc] ss:$16 sps:$4 sm:$0xff]  }
 0x6f1   :  { %8394 = vmatprep.subr.bf16.mxu0 %v11185_v54  ;;  %8426 = vmatprep.subr.bf16.mxu1 %v11187_v55 }
 0x6f2   :  { %1942 = vmatprep.mubr.f32.mxu0 %v13390_v11  ;;  %2013 = vmatprep.mubr.f32.mxu1 %v13390_v11 }
 0x6f4   :  { %8396 = vmatpush1.bf16.msra.mxu0 %v11191_v63  ;;  %8428 = vmatpush1.bf16.msra.mxu1 %v11193_v1  ;;  %v13403_v63 = vld [vmem:[#allocation47_spill] sm:$0xff] }
 0x6f5   :  { %8398 = vmatprep.subr.bf16.mxu0 %v11197_v5  ;;  %8430 = vmatprep.subr.bf16.mxu1 %v11199_v6  ;;  %v13404_v5 = vld [vmem:[#allocation48_spill] sm:$0xff] }
 0x6f8   :  { %8400 = vmatpush1.bf16.msra.mxu0 %v11205_v14  ;;  %8432 = vmatpush1.bf16.msra.mxu1 %v11207_v15 }
 0x6f9   :  { %8402 = vmatprep.subr.bf16.mxu0 %v11211_v18  ;;  %8434 = vmatprep.subr.bf16.mxu1 %v11213_v19  ;;  %v13405_v18 = vld [vmem:[#allocation49_spill] sm:$0xff] }
 0x6fc   :  { %8404 = vmatpush1.bf16.msra.mxu0 %v11217_v31  ;;  %8436 = vmatpush1.bf16.msra.mxu1 %v11219_v32  ;;  %v13406_v31 = vld [vmem:[#allocation50_spill] sm:$0xff] }
 0x6fd   :  { %8406 = vmatprep.subr.bf16.mxu0 %v11223_v36  ;;  %8438 = vmatprep.subr.bf16.mxu1 %v11225_v37 }
 0x700   :  { %8408 = vmatpush1.bf16.msra.mxu0 %v11231_v47  ;;  %8440 = vmatpush1.bf16.msra.mxu1 %v11233_v48 }
 0x701   :  { %8410 = vmatprep.subr.bf16.mxu0 %v11237_v57  ;;  %8442 = vmatprep.subr.bf16.mxu1 %v11239_v58 }
 0x704   :  { %8412 = vmatpush1.bf16.msra.mxu0 %v11243_v4  ;;  %8444 = vmatpush1.bf16.msra.mxu1 %v11245_v7 }
 0x705   :  { %8414 = vmatprep.subr.bf16.mxu0 %v11249_v12  ;;  %8446 = vmatprep.subr.bf16.mxu1 %v11251_v13 }
 0x708   :  { %8416 = vmatpush1.bf16.msra.mxu0 %v11257_v23  ;;  %8448 = vmatpush1.bf16.msra.mxu1 %v11259_v24 }
 0x709   :  { %8418 = vmatprep.subr.bf16.mxu0 %v11263_v25  ;;  %8450 = vmatprep.subr.bf16.mxu1 %v11265_v26 }
 0x70c   :  { %8420 = vmatpush1.bf16.msra.mxu0 %v11269_v27  ;;  %8452 = vmatpush1.bf16.msra.mxu1 %v11271_v28 }
 0x70d   :  { %2276 = vmatprep.subr.bf16.mxu0 %v10057_v50  ;;  %2349 = vmatprep.subr.bf16.mxu1 %v10060_v51  ;;  %v10096_v50 = vld [vmem:[#allocation15 + $0xcc] ss:$16 sps:$4 sm:$0xff]   ;;  %v10091_v51 = vld [vmem:[#allocation15 + $0xc0] ss:$16 sps:$4 sm:$0xff]  }
 0x7c2   :  { %v1767_v54 = vpop.f32.mrb[28].mxu0  ;;  %v1838_v55 = vpop.f32.mrb[28].mxu1 }
 0x7c3   :  { %v1843_v1 = vadd.f32 %v1767_v54, %v13403_v63  ;;  %v1845_v6 = vadd.f32 %v1838_v55, %v13404_v5  ;;  %v1769_v14 = vpop.f32.mrb[29].mxu0  ;;  %v1840_v15 = vpop.f32.mrb[29].mxu1  ;;  %v10094_v54 = vld [vmem:[#allocation15 + $0xc8] ss:$16 sps:$4 sm:$0xff]   ;;  %v10099_v55 = vld [vmem:[#allocation15 + $0xe4] ss:$16 sps:$4 sm:$0xff]  }
 0x7c4   :  { %v1844_v19 = vadd.f32 %v1769_v14, %v13405_v18  ;;  %v1846_v32 = vadd.f32 %v1840_v15, %v13406_v31  ;;  %v10102_v63 = vld [vmem:[#allocation15 + $0xec] ss:$16 sps:$4 sm:$0xff]   ;;  %v10100_v5 = vld [vmem:[#allocation15 + $0xe8] ss:$16 sps:$4 sm:$0xff]   ;;  %v2059_v14 = vpack.c.bf16 %v11555_v34, %v11509_v59  ;;  %v2060_v15 = vpack.c.bf16 %v11647_v43, %v11601_v21  ;;  %v2454_v34 = vld [vmem:[#allocation17] sm:$0xff] }
 0x7c5   :  { %v7767_v36 = vmul.f32 -1.442695, %v1843_v1  ;;  %v7769_v47 = vmul.f32 -1.442695, %v1845_v6  ;;  %v10097_v1 = vld [vmem:[#allocation15 + $0xe0] ss:$16 sps:$4 sm:$0xff]   ;;  %v2058_v6 = vpack.c.bf16 %v11463_v10, %v11417_v62 }
 0x7c6   :  { %v7768_v37 = vmul.f32 -1.442695, %v1844_v19  ;;  %v2455_v62 = vld [vmem:[#allocation17 + $0x8] sm:$0xff]  ;;  %v2457_v18 = vld [vmem:[#allocation17 + $0x18] sm:$0xff]  ;;  %v2458_v31 = vld [vmem:[#allocation17 + $0x20] sm:$0xff] }
 0x7c7   :  { %10295 = vpow2.f32 %v7767_v36  ;;  %v2459_v10 = vld [vmem:[#allocation17 + $0x28] sm:$0xff]  ;;  %v2461_v59 = vld [vmem:[#allocation17 + $0x38] sm:$0xff]  ;;  %v11713_v36 = vpack.c.bf16 %v2458_v31, %v2454_v34  ;;  %v2460_v21 = vld [vmem:[#allocation17 + $0x30] sm:$0xff] }
 0x7c8   :  { %10297 = vpow2.f32 %v7768_v37  ;;  %v11709_v19 = vpack.c.bf16 %v2459_v10, %v2455_v62  ;;  %v2456_v37 = vld [vmem:[#allocation17 + $0x10] sm:$0xff]  ;;  %v2495_v10 = vld [vmem:[#allocation17 + $0x148] sm:$0xff]  ;;  %v2501_v31 = vld [vmem:[#allocation17 + $0x178] sm:$0xff] }
 0x7c9   :  { %10299 = vtanh.f32 %v1846_v32  ;;  %v11711_v32 = vpack.c.bf16 %v2461_v59, %v2457_v18  ;;  %v11716_v43 = vpack.c.bf16 %v2460_v21, %v2456_v37  ;;  %v2499_v18 = vld [vmem:[#allocation17 + $0x168] sm:$0xff]  ;;  %v2497_v59 = vld [vmem:[#allocation17 + $0x158] sm:$0xff]  ;;  %v2494_v37 = vld [vmem:[#allocation17 + $0x140] sm:$0xff] }
 0x7ca   :  { %10301 = vpow2.f32 %v7769_v47  ;;  %v2463_v47 = vld [vmem:[#allocation17 + $0x48] sm:$0xff]  ;;  %v11769_v34 = vpack.c.bf16 %v2499_v18, %v2495_v10  ;;  %v2498_v21 = vld [vmem:[#allocation17 + $0x160] sm:$0xff] }
 0x7cb   :  { %v13409_v18 = vld [vmem:[#allocation52_spill] sm:$0xff] }
 0x7d1   :  { %v10296_v48 = vpop.eup %10295 }
 0x7d2   :  { %v1856_v57 = vadd.f32 1.0, %v10296_v48  ;;  %v10298_v58 = vpop.eup %10297  ;;  %v2467_v48 = vld [vmem:[#allocation17 + $0x68] sm:$0xff] }
 0x7d3   :  { %v1857_v4 = vadd.f32 1.0, %v10298_v58  ;;  %v10300_v7 = vpop.eup %10299  ;;  %v11721_v58 = vpack.c.bf16 %v2467_v48, %v2463_v47  ;;  %v11771_v47 = vpack.c.bf16 %v2501_v31, %v2497_v59  ;;  %v11773_v48 = vpack.c.bf16 %v2498_v21, %v2494_v37  ;;  %v13410_v21 = vld [vmem:[#allocation53_spill] sm:$0xff] }
 0x7d4   :  { %10303 = vrcp.f32 %v1856_v57  ;;  %v10302_v12 = vpop.eup %10301  ;;  %v2465_v57 = vld [vmem:[#allocation17 + $0x58] sm:$0xff] }
 0x7d5   :  { %10305 = vrcp.f32 %v1857_v4  ;;  %v1858_v25 = vadd.f32 1.0, %v10302_v12  ;;  %v2469_v4 = vld [vmem:[#allocation17 + $0x78] sm:$0xff]  ;;  %v2466_v12 = vld [vmem:[#allocation17 + $0x60] sm:$0xff] }
 0x7d7   :  { %10307 = vrcp.f32 %v1858_v25  ;;  %v2468_v25 = vld [vmem:[#allocation17 + $0x70] sm:$0xff] }
 0x7de   :  { %v10304_v13 = vpop.eup %10303 }
 0x7df   :  { %v1867_v23 = vmul.f32 %v10304_v13, %v10300_v7  ;;  %v10306_v24 = vpop.eup %10305  ;;  %v2462_v7 = vld [vmem:[#allocation17 + $0x40] sm:$0xff]  ;;  %v11723_v13 = vpack.c.bf16 %v2469_v4, %v2465_v57  ;;  %v2496_v57 = vld [vmem:[#allocation17 + $0x150] sm:$0xff] }
 0x7e0   :  { %v1866_v26 = vmul.f32 %v10306_v24, %v11644_v40  ;;  %v10085_v40 = vld [vmem:[#allocation15 + $0xa0] ss:$16 sps:$4 sm:$0xff]  }
 0x7e1   :  { %v10308_v28 = vpop.eup %10307  ;;  %v2464_v24 = vld [vmem:[#allocation17 + $0x50] sm:$0xff] }
 0x7e2   :  { %v11688_v27 = vadd.f32 %v1867_v23, %v1866_v26  ;;  %v11725_v23 = vpack.c.bf16 %v2466_v12, %v2462_v7  ;;  %v11728_v26 = vpack.c.bf16 %v2468_v25, %v2464_v24  ;;  %v2500_v4 = vld [vmem:[#allocation17 + $0x170] sm:$0xff]  ;;  %v2503_v12 = vld [vmem:[#allocation17 + $0x188] sm:$0xff]  ;;  %v2505_v25 = vld [vmem:[#allocation17 + $0x198] sm:$0xff] }
 0x7e3   :  { %v11776_v7 = vpack.c.bf16 %v2500_v4, %v2496_v57  ;;  %v2507_v24 = vld [vmem:[#allocation17 + $0x1a8] sm:$0xff] }
 0x7e4   :  { %10309 = vtanh.f32 %v11688_v27 }
 0x7ee   :  { %v10310_v39 = vpop.eup %10309 }
 0x7ef   :  { %v11691_v52 = vmul.f32 %v10310_v39, %v10308_v28  ;;  %v2471_v28 = vld [vmem:[#allocation17 + $0x88] sm:$0xff] }
 0x7f0   :  { %v2475_v39 = vld [vmem:[#allocation17 + $0xa8] sm:$0xff] }
 0x7f1   :  { %1943 = vmatmul.mubr.f32.vlgmr.msra.gmra.mrb[30].mxu0 %v11691_v52  ;;  %2014 = vmatmul.mubr.f32.vlgmr.msra.gmra.mrb[30].mxu1 %v11691_v52 }
 0x7f2   :  { %2277 = vmatpush1.bf16.msra.mxu0 %v10055_v45  ;;  %2350 = vmatpush1.bf16.msra.mxu1 %v10058_v46  ;;  %v2473_v45 = vld [vmem:[#allocation17 + $0x98] sm:$0xff]  ;;  %v11733_v46 = vpack.c.bf16 %v2475_v39, %v2471_v28  ;;  %v11781_v28 = vpack.c.bf16 %v2507_v24, %v2503_v12 }
 0x7f3   :  { %2278 = vmatprep.subr.bf16.mxu0 %v10063_v29  ;;  %2351 = vmatprep.subr.bf16.mxu1 %v10066_v61  ;;  %v2477_v29 = vld [vmem:[#allocation17 + $0xb8] sm:$0xff]  ;;  %v2470_v61 = vld [vmem:[#allocation17 + $0x80] sm:$0xff] }
 0x7f4   :  { %2308 = vmatprep.mubr.bf16.mxu0 %v13407_v53  ;;  %2381 = vmatprep.mubr.bf16.mxu1 %v13407_v53  ;;  %v2509_v39 = vld [vmem:[#allocation17 + $0x1b8] sm:$0xff] }
 0x7f6   :  { %2279 = vmatpush1.bf16.msra.mxu0 %v10061_v16  ;;  %2352 = vmatpush1.bf16.msra.mxu1 %v10064_v20  ;;  %v2474_v16 = vld [vmem:[#allocation17 + $0xa0] sm:$0xff]  ;;  %v11735_v20 = vpack.c.bf16 %v2477_v29, %v2473_v45 }
 0x7f7   :  { %2280 = vmatprep.subr.bf16.mxu0 %v10069_v2  ;;  %2353 = vmatprep.subr.bf16.mxu1 %v10072_v38  ;;  %v11737_v2 = vpack.c.bf16 %v2474_v16, %v2470_v61  ;;  %v2472_v38 = vld [vmem:[#allocation17 + $0x90] sm:$0xff]  ;;  %v2502_v45 = vld [vmem:[#allocation17 + $0x180] sm:$0xff]  ;;  %v11783_v61 = vpack.c.bf16 %v2509_v39, %v2505_v25 }
 0x7f8   :  { %v2506_v29 = vld [vmem:[#allocation17 + $0x1a0] sm:$0xff] }
 0x7f9   :  { %v11785_v16 = vpack.c.bf16 %v2506_v29, %v2502_v45 }
 0x7fa   :  { %2281 = vmatpush1.bf16.msra.mxu0 %v10067_v22  ;;  %2354 = vmatpush1.bf16.msra.mxu1 %v10070_v41  ;;  %v2476_v22 = vld [vmem:[#allocation17 + $0xb0] sm:$0xff] }
 0x7fb   :  { %2282 = vmatprep.subr.bf16.mxu0 %v10075_v56  ;;  %2355 = vmatprep.subr.bf16.mxu1 %v10078_v42  ;;  %v11740_v41 = vpack.c.bf16 %v2476_v22, %v2472_v38  ;;  %v2479_v56 = vld [vmem:[#allocation17 + $0xc8] sm:$0xff]  ;;  %v2504_v38 = vld [vmem:[#allocation17 + $0x190] sm:$0xff] }
 0x7fc   :  { %v2483_v42 = vld [vmem:[#allocation17 + $0xe8] sm:$0xff]  ;;  %v2508_v22 = vld [vmem:[#allocation17 + $0x1b0] sm:$0xff] }
 0x7fe   :  { %2283 = vmatpush1.bf16.msra.mxu0 %v10073_v33  ;;  %2356 = vmatpush1.bf16.msra.mxu1 %v10076_v17  ;;  %v2481_v33 = vld [vmem:[#allocation17 + $0xd8] sm:$0xff]  ;;  %v11745_v17 = vpack.c.bf16 %v2483_v42, %v2479_v56  ;;  %v11788_v56 = vpack.c.bf16 %v2508_v22, %v2504_v38  ;;  %v2511_v42 = vld [vmem:[#allocation17 + $0x1c8] sm:$0xff] }
 0x7ff   :  { %2284 = vmatprep.subr.bf16.mxu0 %v10081_v9  ;;  %2357 = vmatprep.subr.bf16.mxu1 %v10084_v60  ;;  %v2485_v9 = vld [vmem:[#allocation17 + $0xf8] sm:$0xff]  ;;  %v2478_v60 = vld [vmem:[#allocation17 + $0xc0] sm:$0xff] }
 0x802   :  { %2285 = vmatpush1.bf16.msra.mxu0 %v10079_v30  ;;  %2358 = vmatpush1.bf16.msra.mxu1 %v10082_v8  ;;  %v2482_v30 = vld [vmem:[#allocation17 + $0xe0] sm:$0xff]  ;;  %v11747_v8 = vpack.c.bf16 %v2485_v9, %v2481_v33  ;;  %v2515_v33 = vld [vmem:[#allocation17 + $0x1e8] sm:$0xff]  ;;  %v2513_v9 = vld [vmem:[#allocation17 + $0x1d8] sm:$0xff] }
 0x803   :  { %2286 = vmatprep.subr.bf16.mxu0 %v10087_v3  ;;  %2359 = vmatprep.subr.bf16.mxu1 %v10090_v0  ;;  %v11749_v3 = vpack.c.bf16 %v2482_v30, %v2478_v60  ;;  %v2480_v0 = vld [vmem:[#allocation17 + $0xd0] sm:$0xff]  ;;  %v11793_v60 = vpack.c.bf16 %v2515_v33, %v2511_v42  ;;  %v2517_v30 = vld [vmem:[#allocation17 + $0x1f8] sm:$0xff] }
 0x806   :  { %2287 = vmatpush1.bf16.msra.mxu0 %v10085_v40  ;;  %2360 = vmatpush1.bf16.msra.mxu1 %v10088_v44  ;;  %v2484_v40 = vld [vmem:[#allocation17 + $0xf0] sm:$0xff] }
 0x807   :  { %2288 = vmatprep.subr.bf16.mxu0 %v10093_v49  ;;  %2361 = vmatprep.subr.bf16.mxu1 %v10096_v50  ;;  %v11752_v44 = vpack.c.bf16 %v2484_v40, %v2480_v0  ;;  %v2487_v49 = vld [vmem:[#allocation17 + $0x108] sm:$0xff]  ;;  %v2510_v0 = vld [vmem:[#allocation17 + $0x1c0] sm:$0xff] }
 0x808   :  { %v2491_v50 = vld [vmem:[#allocation17 + $0x128] sm:$0xff]  ;;  %v2514_v40 = vld [vmem:[#allocation17 + $0x1e0] sm:$0xff] }
 0x80a   :  { %2289 = vmatpush1.bf16.msra.mxu0 %v10091_v51  ;;  %2362 = vmatpush1.bf16.msra.mxu1 %v10094_v54  ;;  %v2489_v51 = vld [vmem:[#allocation17 + $0x118] sm:$0xff]  ;;  %v11757_v54 = vpack.c.bf16 %v2491_v50, %v2487_v49  ;;  %v11795_v49 = vpack.c.bf16 %v2517_v30, %v2513_v9  ;;  %v11797_v50 = vpack.c.bf16 %v2514_v40, %v2510_v0 }
 0x80b   :  { %2290 = vmatprep.subr.bf16.mxu0 %v10099_v55  ;;  %2363 = vmatprep.subr.bf16.mxu1 %v10102_v63  ;;  %v2493_v55 = vld [vmem:[#allocation17 + $0x138] sm:$0xff]  ;;  %v2486_v63 = vld [vmem:[#allocation17 + $0x100] sm:$0xff] }
 0x80e   :  { %2291 = vmatpush1.bf16.msra.mxu0 %v10097_v1  ;;  %2364 = vmatpush1.bf16.msra.mxu1 %v10100_v5  ;;  %v2490_v1 = vld [vmem:[#allocation17 + $0x120] sm:$0xff]  ;;  %v11759_v5 = vpack.c.bf16 %v2493_v55, %v2489_v51  ;;  %v2512_v51 = vld [vmem:[#allocation17 + $0x1d0] sm:$0xff] }
 0x80f   :  { %8454 = vmatprep.subr.bf16.mxu0 %v11709_v19  ;;  %8486 = vmatprep.subr.bf16.mxu1 %v11711_v32  ;;  %v2516_v55 = vld [vmem:[#allocation17 + $0x1f0] sm:$0xff] }
 0x811   :  { %2309 = vmatmul.mubr.bf16.vlgmr.msra.gmra.mrb[32].mxu0 %v2058_v6  ;;  %2382 = vmatmul.mubr.bf16.vlgmr.msra.gmra.mrb[32].mxu1 %v2058_v6  ;;  %v11761_v6 = vpack.c.bf16 %v2490_v1, %v2486_v63  ;;  %v11800_v63 = vpack.c.bf16 %v2516_v55, %v2512_v51 }
 0x812   :  { %2318 = vmatprep.mubr.bf16.mxu0 %v13407_v53  ;;  %2391 = vmatprep.mubr.bf16.mxu1 %v13407_v53 }
 0x813   :  { %8456 = vmatpush1.bf16.msra.mxu0 %v11713_v36  ;;  %8488 = vmatpush1.bf16.msra.mxu1 %v11716_v43 }
 0x814   :  { %8458 = vmatprep.subr.bf16.mxu0 %v11721_v58  ;;  %8490 = vmatprep.subr.bf16.mxu1 %v11723_v13 }
 0x817   :  { %8460 = vmatpush1.bf16.msra.mxu0 %v11725_v23  ;;  %8492 = vmatpush1.bf16.msra.mxu1 %v11728_v26 }
 0x818   :  { %8462 = vmatprep.subr.bf16.mxu0 %v11733_v46  ;;  %8494 = vmatprep.subr.bf16.mxu1 %v11735_v20 }
 0x819   :  { %2319 = vmatmul.mubr.bf16.gmra.mrb[36].mxu0 %v2059_v14  ;;  %2392 = vmatmul.mubr.bf16.gmra.mrb[36].mxu1 %v2059_v14  ;;  %v2488_v14 = vld [vmem:[#allocation17 + $0x110] sm:$0xff] }
 0x81a   :  { %2328 = vmatprep.mubr.bf16.mxu0 %v13407_v53  ;;  %2401 = vmatprep.mubr.bf16.mxu1 %v13407_v53 }
 0x81b   :  { %8464 = vmatpush1.bf16.msra.mxu0 %v11737_v2  ;;  %8496 = vmatpush1.bf16.msra.mxu1 %v11740_v41 }
 0x81c   :  { %8466 = vmatprep.subr.bf16.mxu0 %v11745_v17  ;;  %8498 = vmatprep.subr.bf16.mxu1 %v11747_v8 }
 0x81f   :  { %8468 = vmatpush1.bf16.msra.mxu0 %v11749_v3  ;;  %8500 = vmatpush1.bf16.msra.mxu1 %v11752_v44 }
 0x820   :  { %8470 = vmatprep.subr.bf16.mxu0 %v11757_v54  ;;  %8502 = vmatprep.subr.bf16.mxu1 %v11759_v5 }
 0x821   :  { %2329 = vmatmul.mubr.bf16.gmra.mrb[40].mxu0 %v2060_v15  ;;  %2402 = vmatmul.mubr.bf16.gmra.mrb[40].mxu1 %v2060_v15  ;;  %v2492_v15 = vld [vmem:[#allocation17 + $0x130] sm:$0xff] }
 0x822   :  { %2338 = vmatprep.mubr.bf16.mxu0 %v13407_v53  ;;  %2411 = vmatprep.mubr.bf16.mxu1 %v13407_v53  ;;  %v11764_v62 = vpack.c.bf16 %v2492_v15, %v2488_v14  ;;  %v13408_v15 = vld [vmem:[#allocation51_spill] sm:$0xff] }
 0x823   :  { %8472 = vmatpush1.bf16.msra.mxu0 %v11761_v6 }
 0x824   :  { %8504 = vmatpush1.bf16.msra.mxu1 %v11764_v62  ;;  %8474 = vmatprep.subr.bf16.mxu0 %v11769_v34 }
 0x825   :  { %8506 = vmatprep.subr.bf16.mxu1 %v11771_v47 }
 0x827   :  { %8476 = vmatpush1.bf16.msra.mxu0 %v11773_v48 }
 0x828   :  { %8508 = vmatpush1.bf16.msra.mxu1 %v11776_v7  ;;  %8478 = vmatprep.subr.bf16.mxu0 %v11781_v28 }
 0x829   :  { %8510 = vmatprep.subr.bf16.mxu1 %v11783_v61 }
 0x82b   :  { %8480 = vmatpush1.bf16.msra.mxu0 %v11785_v16 }
 0x82c   :  { %8512 = vmatpush1.bf16.msra.mxu1 %v11788_v56  ;;  %8482 = vmatprep.subr.bf16.mxu0 %v11793_v60 }
 0x82d   :  { %8514 = vmatprep.subr.bf16.mxu1 %v11795_v49 }
 0x82f   :  { %8484 = vmatpush1.bf16.msra.mxu0 %v11797_v50 }
 0x830   :  { %8516 = vmatpush1.bf16.msra.mxu1 %v11800_v63  ;;  %8518 = vmatprep.subr.bf16.mxu0 %v11709_v19 }
 0x831   :  { %8550 = vmatprep.subr.bf16.mxu1 %v11711_v32 }
 0x8c4   :  { %v1944_v1 = vpop.f32.mrb[30].mxu0  ;;  %v2015_v14 = vpop.f32.mrb[30].mxu1 }
 0x8c5   :  { %v2020_v10 = vadd.f32 %v1944_v1, %v13408_v15  ;;  %v2022_v59 = vadd.f32 %v2015_v14, %v13409_v18  ;;  %v1946_v31 = vpop.f32.mrb[31].mxu0  ;;  %v2017_v37 = vpop.f32.mrb[31].mxu1 }
 0x8c6   :  { %v2021_v57 = vadd.f32 %v1946_v31, %v13410_v21  ;;  %v2023_v4 = vadd.f32 %v2017_v37, %v11408_v35 }
 0x8c7   :  { %v7770_v12 = vmul.f32 -1.442695, %v2020_v10  ;;  %v7772_v25 = vmul.f32 -1.442695, %v2022_v59 }
 0x8c8   :  { %v7771_v24 = vmul.f32 -1.442695, %v2021_v57 }
 0x8c9   :  { %10311 = vpow2.f32 %v7770_v12 }
 0x8ca   :  { %10313 = vpow2.f32 %v7771_v24 }
 0x8cb   :  { %10315 = vtanh.f32 %v2023_v4 }
 0x8cc   :  { %10317 = vpow2.f32 %v7772_v25 }
 0x8d3   :  { %v10312_v39 = vpop.eup %10311 }
 0x8d4   :  { %v2033_v45 = vadd.f32 1.0, %v10312_v39  ;;  %v10314_v29 = vpop.eup %10313 }
 0x8d5   :  { %v2034_v38 = vadd.f32 1.0, %v10314_v29  ;;  %v10316_v22 = vpop.eup %10315 }
 0x8d6   :  { %10319 = vrcp.f32 %v2033_v45  ;;  %v10318_v42 = vpop.eup %10317 }
 0x8d7   :  { %10321 = vrcp.f32 %v2034_v38  ;;  %v2035_v0 = vadd.f32 1.0, %v10318_v42 }
 0x8d9   :  { %10323 = vrcp.f32 %v2035_v0 }
 0x8e0   :  { %v10320_v33 = vpop.eup %10319 }
 0x8e1   :  { %v2044_v9 = vmul.f32 %v10320_v33, %v10316_v22  ;;  %v10322_v30 = vpop.eup %10321 }
 0x8e2   :  { %v2043_v35 = vmul.f32 %v10322_v30, %v11688_v27 }
 0x8e3   :  { %v10324_v25 = vpop.eup %10323 }
 0x8e4   :  { %v11812_v40 = vpop.f32.mrb[32].mxu0  ;;  %v11814_v51 = vpop.f32.mrb[32].mxu1  ;;  %v2045_v55 = vadd.f32 %v2044_v9, %v2043_v35 }
 0x8e5   :  { %v11816_v1 = vpop.f32.mrb[33].mxu0  ;;  %v11818_v14 = vpop.f32.mrb[33].mxu1 }
 0x8e6   :  { %v11820_v15 = vpop.f32.mrb[34].mxu0  ;;  %v11822_v10 = vpop.f32.mrb[34].mxu1  ;;  %10325 = vtanh.f32 %v2045_v55 }
 0x8e7   :  { %v11824_v18 = vpop.f32.mrb[35].mxu0  ;;  %v11826_v59 = vpop.f32.mrb[35].mxu1 }
 0x8ec   :  { %v11828_v27 = vpop.f32.mrb[36].mxu0  ;;  %v11830_v31 = vpop.f32.mrb[36].mxu1 }
 0x8ed   :  { %v11832_v37 = vpop.f32.mrb[37].mxu0  ;;  %v11834_v21 = vpop.f32.mrb[37].mxu1 }
 0x8ee   :  { %13411 = vst [vmem:[#allocation35_spill] sm:$0xff] %v11834_v21  ;;  %v11836_v57 = vpop.f32.mrb[38].mxu0  ;;  %v11838_v4 = vpop.f32.mrb[38].mxu1 }
 0x8ef   :  { %13412 = vst [vmem:[#allocation36_spill] sm:$0xff] %v11836_v57  ;;  %13413 = vst [vmem:[#allocation37_spill] sm:$0xff] %v11838_v4  ;;  %v11840_v12 = vpop.f32.mrb[39].mxu0  ;;  %v11842_v24 = vpop.f32.mrb[39].mxu1 }
 0x8f0   :  { %13414 = vst [vmem:[#allocation38_spill] sm:$0xff] %v11840_v12  ;;  %13415 = vst [vmem:[#allocation39_spill] sm:$0xff] %v11842_v24  ;;  %v10326_v39 = vpop.eup %10325 }
 0x8f1   :  { %v2047_v45 = vmul.f32 %v10326_v39, %v10324_v25 }
 0x8f3   :  { %v2061_v22 = vpack.c.bf16 %v2047_v45, %v11691_v52  ;;  %v2094_v52 = vld [vmem:[%s13345_s6] sm:$0xf] }
 0x8f4   :  { %v11844_v29 = vpop.f32.mrb[40].mxu0  ;;  %v11846_v38 = vpop.f32.mrb[40].mxu1 }
 0x8f5   :  { %13416 = vst [vmem:[#allocation40_spill] sm:$0xff] %v11844_v29  ;;  %13417 = vst [vmem:[#allocation41_spill] sm:$0xff] %v11846_v38  ;;  %v11849_v42 = vpop.f32.mrb[41].mxu0  ;;  %v11851_v33 = vpop.f32.mrb[41].mxu1  ;;  %2339 = vmatmul.mubr.bf16.gmra.mrb[44].mxu0 %v2061_v22  ;;  %2412 = vmatmul.mubr.bf16.gmra.mrb[44].mxu1 %v2061_v22 }
 0x8f6   :  { %13418 = vst [vmem:[#allocation42_spill] sm:$0xff] %v11849_v42  ;;  %13419 = vst [vmem:[#allocation43_spill] sm:$0xff] %v11851_v33  ;;  %v11853_v9 = vpop.f32.mrb[42].mxu0  ;;  %v11855_v30 = vpop.f32.mrb[42].mxu1  ;;  %2586 = vmatprep.mubr.f32.mxu0 %v13390_v11  ;;  %2657 = vmatprep.mubr.f32.mxu1 %v13390_v11 }
 0x8f7   :  { %13420 = vst [vmem:[#allocation44_spill] sm:$0xff] %v11853_v9  ;;  %13421 = vst [vmem:[#allocation45_spill] sm:$0xff] %v11855_v30  ;;  %v11857_v0 = vpop.f32.mrb[43].mxu0  ;;  %v11859_v35 = vpop.f32.mrb[43].mxu1  ;;  %v13431_v30 = vld [vmem:[#allocation31_spill] sm:$0xff] }
 0x8f8   :  { %13422 = vst [vmem:[#allocation46_spill] sm:$0xff] %v11857_v0  ;;  %13423 = vst [vmem:[#allocation47_spill] sm:$0xff] %v11859_v35  ;;  %v13430_v35 = vld [vmem:[#allocation33_spill] sm:$0xff]  ;;  %v11918_v9 = vrot.slane %v2094_v52, %v13431_v30 }
 0x8f9   :  { %v11915_v0 = vrot.slane %v2094_v52, %v13430_v35 }
 0x8fa   :  { %v2384_v35 = vadd.f32 %v11814_v51, %v11918_v9 }
 0x8fd   :  { %2587 = vmatmul.mubr.f32.vlgmr.msra.gmra.mrb[48].mxu0 %v13390_v11  ;;  %2658 = vmatmul.mubr.f32.vlgmr.msra.gmra.mrb[48].mxu1 %v13390_v11 }
 0x8fe   :  { %8520 = vmatpush1.bf16.msra.mxu0 %v11713_v36  ;;  %8552 = vmatpush1.bf16.msra.mxu1 %v11716_v43 }
 0x8ff   :  { %8522 = vmatprep.subr.bf16.mxu0 %v11721_v58  ;;  %8554 = vmatprep.subr.bf16.mxu1 %v11723_v13 }
 0x900   :  { %2762 = vmatprep.mubr.f32.mxu0 %v13390_v11  ;;  %2833 = vmatprep.mubr.f32.mxu1 %v13390_v11 }
 0x902   :  { %8524 = vmatpush1.bf16.msra.mxu0 %v11725_v23  ;;  %8556 = vmatpush1.bf16.msra.mxu1 %v11728_v26 }
 0x903   :  { %8526 = vmatprep.subr.bf16.mxu0 %v11733_v46  ;;  %8558 = vmatprep.subr.bf16.mxu1 %v11735_v20 }
 0x906   :  { %8528 = vmatpush1.bf16.msra.mxu0 %v11737_v2  ;;  %8560 = vmatpush1.bf16.msra.mxu1 %v11740_v41 }
 0x907   :  { %8530 = vmatprep.subr.bf16.mxu0 %v11745_v17  ;;  %8562 = vmatprep.subr.bf16.mxu1 %v11747_v8 }
 0x90a   :  { %8532 = vmatpush1.bf16.msra.mxu0 %v11749_v3  ;;  %8564 = vmatpush1.bf16.msra.mxu1 %v11752_v44 }
 0x90b   :  { %8534 = vmatprep.subr.bf16.mxu0 %v11757_v54  ;;  %8566 = vmatprep.subr.bf16.mxu1 %v11759_v5 }
 0x90e   :  { %8536 = vmatpush1.bf16.msra.mxu0 %v11761_v6  ;;  %8568 = vmatpush1.bf16.msra.mxu1 %v11764_v62 }
 0x90f   :  { %8538 = vmatprep.subr.bf16.mxu0 %v11769_v34  ;;  %8570 = vmatprep.subr.bf16.mxu1 %v11771_v47 }
 0x912   :  { %8540 = vmatpush1.bf16.msra.mxu0 %v11773_v48  ;;  %8572 = vmatpush1.bf16.msra.mxu1 %v11776_v7 }
 0x913   :  { %8542 = vmatprep.subr.bf16.mxu0 %v11781_v28  ;;  %8574 = vmatprep.subr.bf16.mxu1 %v11783_v61 }
 0x916   :  { %8544 = vmatpush1.bf16.msra.mxu0 %v11785_v16  ;;  %8576 = vmatpush1.bf16.msra.mxu1 %v11788_v56 }
 0x917   :  { %8546 = vmatprep.subr.bf16.mxu0 %v11793_v60  ;;  %8578 = vmatprep.subr.bf16.mxu1 %v11795_v49 }
 0x91a   :  { %8548 = vmatpush1.bf16.msra.mxu0 %v11797_v50  ;;  %8580 = vmatpush1.bf16.msra.mxu1 %v11800_v63 }
 0x91b   :  { %8582 = vmatprep.subr.bf16.mxu0 %v11709_v19  ;;  %8614 = vmatprep.subr.bf16.mxu1 %v11711_v32 }
 0x9c8   :  { %v11902_v55 = vpop.f32.mrb[44].mxu0  ;;  %v11904_v25 = vpop.f32.mrb[44].mxu1 }
 0x9c9   :  { %13424 = vst [vmem:[#allocation48_spill] sm:$0xff] %v11902_v55  ;;  %13425 = vst [vmem:[#allocation49_spill] sm:$0xff] %v11904_v25  ;;  %v11906_v39 = vpop.f32.mrb[45].mxu0  ;;  %v11908_v45 = vpop.f32.mrb[45].mxu1  ;;  %v13434_v55 = vld [vmem:[#allocation34_spill] sm:$0xff] }
 0x9ca   :  { %13426 = vst [vmem:[#allocation50_spill] sm:$0xff] %v11906_v39  ;;  %13427 = vst [vmem:[#allocation51_spill] sm:$0xff] %v11908_v45  ;;  %v11910_v22 = vpop.f32.mrb[46].mxu0  ;;  %v11912_v53 = vpop.f32.mrb[46].mxu1  ;;  %v11925_v25 = vrot.slane %v2094_v52, %v13434_v55  ;;  %v13435_v39 = vld [vmem:[#allocation32_spill] sm:$0xff] }
 0x9cb   :  { %13428 = vst [vmem:[#allocation52_spill] sm:$0xff] %v11910_v22  ;;  %13429 = vst [vmem:[#allocation53_spill] sm:$0xff] %v11912_v53  ;;  %v11920_v33 = vpop.f32.mrb[47].mxu0  ;;  %v11922_v42 = vpop.f32.mrb[47].mxu1  ;;  %v11928_v38 = vrot.slane %v2094_v52, %v13435_v39  ;;  %v2311_v22 = vadd.f32 %v11812_v40, %v11915_v0 }
 0x9cc   :  { %13432 = vst [vmem:[#allocation54_spill] sm:$0xff] %v11920_v33  ;;  %13433 = vst [vmem:[#allocation55_spill] sm:$0xff] %v11922_v42  ;;  %v2313_v30 = vadd.f32 %v11816_v1, %v11925_v25 }
 0x9cd   :  { %v2386_v33 = vadd.f32 %v11818_v14, %v11928_v38 }
 0x9d0   :  { %v2588_v53 = vpop.f32.mrb[48].mxu0  ;;  %v2659_v42 = vpop.f32.mrb[48].mxu1 }
 0x9d1   :  { %v2664_v45 = vadd.f32 %v2588_v53, %v2311_v22  ;;  %v2666_v55 = vadd.f32 %v2659_v42, %v2384_v35  ;;  %v2590_v29 = vpop.f32.mrb[49].mxu0  ;;  %v2661_v24 = vpop.f32.mrb[49].mxu1 }
 0x9d2   :  { %v2665_v52 = vadd.f32 %v2590_v29, %v2313_v30  ;;  %v2667_v39 = vadd.f32 %v2661_v24, %v2386_v33 }
 0x9d3   :  { %v7805_v12 = vmul.f32 -1.442695, %v2664_v45  ;;  %v7807_v40 = vmul.f32 -1.442695, %v2666_v55  ;;  %v2317_v55 = vadd.f32 %v11824_v18, %v11925_v25 }
 0x9d4   :  { %v7806_v4 = vmul.f32 -1.442695, %v2665_v52 }
 0x9d5   :  { %10327 = vpow2.f32 %v7805_v12 }
 0x9d6   :  { %10329 = vpow2.f32 %v7806_v4 }
 0x9d7   :  { %10331 = vtanh.f32 %v2667_v39  ;;  %v2390_v39 = vadd.f32 %v11826_v59, %v11928_v38 }
 0x9d8   :  { %10333 = vpow2.f32 %v7807_v40 }
 0x9df   :  { %v10328_v51 = vpop.eup %10327 }
 0x9e0   :  { %v2677_v57 = vadd.f32 1.0, %v10328_v51  ;;  %v10330_v1 = vpop.eup %10329 }
 0x9e1   :  { %v2678_v14 = vadd.f32 1.0, %v10330_v1  ;;  %v10332_v21 = vpop.eup %10331 }
 0x9e2   :  { %10335 = vrcp.f32 %v2677_v57  ;;  %v10334_v53 = vpop.eup %10333  ;;  %v2388_v57 = vadd.f32 %v11822_v10, %v11918_v9 }
 0x9e3   :  { %10337 = vrcp.f32 %v2678_v14  ;;  %v2679_v29 = vadd.f32 1.0, %v10334_v53 }
 0x9e5   :  { %10339 = vrcp.f32 %v2679_v29 }
 0x9ec   :  { %v10336_v42 = vpop.eup %10335 }
 0x9ed   :  { %v2688_v35 = vmul.f32 %v10336_v42, %v10332_v21  ;;  %v10338_v22 = vpop.eup %10337  ;;  %v2315_v21 = vadd.f32 %v11820_v15, %v11915_v0 }
 0x9ee   :  { %v2687_v24 = vmul.f32 0.0, %v10338_v22 }
 0x9ef   :  { %v10340_v4 = vpop.eup %10339 }
 0x9f0   :  { %v11938_v33 = vadd.f32 %v2688_v35, %v2687_v24 }
 0x9f2   :  { %10341 = vtanh.f32 %v11938_v33 }
 0x9fc   :  { %v10342_v12 = vpop.eup %10341 }
 0x9fd   :  { %v11941_v30 = vmul.f32 %v10342_v12, %v10340_v4 }
 0x9ff   :  { %2763 = vmatmul.mubr.f32.vlgmr.msra.gmra.mrb[50].mxu0 %v11941_v30  ;;  %2834 = vmatmul.mubr.f32.vlgmr.msra.gmra.mrb[50].mxu1 %v11941_v30 }
 0xa00   :  { %8584 = vmatpush1.bf16.msra.mxu0 %v11713_v36  ;;  %8616 = vmatpush1.bf16.msra.mxu1 %v11716_v43 }
 0xa01   :  { %8586 = vmatprep.subr.bf16.mxu0 %v11721_v58  ;;  %8618 = vmatprep.subr.bf16.mxu1 %v11723_v13 }
 0xa02   :  { %2939 = vmatprep.mubr.f32.mxu0 %v13390_v11  ;;  %3010 = vmatprep.mubr.f32.mxu1 %v13390_v11 }
 0xa04   :  { %8588 = vmatpush1.bf16.msra.mxu0 %v11725_v23  ;;  %8620 = vmatpush1.bf16.msra.mxu1 %v11728_v26 }
 0xa05   :  { %8590 = vmatprep.subr.bf16.mxu0 %v11733_v46  ;;  %8622 = vmatprep.subr.bf16.mxu1 %v11735_v20 }
 0xa08   :  { %8592 = vmatpush1.bf16.msra.mxu0 %v11737_v2  ;;  %8624 = vmatpush1.bf16.msra.mxu1 %v11740_v41 }
 0xa09   :  { %8594 = vmatprep.subr.bf16.mxu0 %v11745_v17  ;;  %8626 = vmatprep.subr.bf16.mxu1 %v11747_v8 }
 0xa0c   :  { %8596 = vmatpush1.bf16.msra.mxu0 %v11749_v3  ;;  %8628 = vmatpush1.bf16.msra.mxu1 %v11752_v44 }
 0xa0d   :  { %8598 = vmatprep.subr.bf16.mxu0 %v11757_v54  ;;  %8630 = vmatprep.subr.bf16.mxu1 %v11759_v5 }
 0xa10   :  { %8600 = vmatpush1.bf16.msra.mxu0 %v11761_v6  ;;  %8632 = vmatpush1.bf16.msra.mxu1 %v11764_v62 }
 0xa11   :  { %8602 = vmatprep.subr.bf16.mxu0 %v11769_v34  ;;  %8634 = vmatprep.subr.bf16.mxu1 %v11771_v47 }
 0xa14   :  { %8604 = vmatpush1.bf16.msra.mxu0 %v11773_v48  ;;  %8636 = vmatpush1.bf16.msra.mxu1 %v11776_v7 }
 0xa15   :  { %8606 = vmatprep.subr.bf16.mxu0 %v11781_v28  ;;  %8638 = vmatprep.subr.bf16.mxu1 %v11783_v61 }
 0xa18   :  { %8608 = vmatpush1.bf16.msra.mxu0 %v11785_v16  ;;  %8640 = vmatpush1.bf16.msra.mxu1 %v11788_v56 }
 0xa19   :  { %8610 = vmatprep.subr.bf16.mxu0 %v11793_v60  ;;  %8642 = vmatprep.subr.bf16.mxu1 %v11795_v49 }
 0xa1c   :  { %8612 = vmatpush1.bf16.msra.mxu0 %v11797_v50  ;;  %8644 = vmatpush1.bf16.msra.mxu1 %v11800_v63 }
 0xa1d   :  { %8646 = vmatprep.subr.bf16.mxu0 %v11709_v19  ;;  %8678 = vmatprep.subr.bf16.mxu1 %v11711_v32 }
 0xad2   :  { %v2764_v45 = vpop.f32.mrb[50].mxu0  ;;  %v2835_v52 = vpop.f32.mrb[50].mxu1 }
 0xad3   :  { %v2840_v40 = vadd.f32 %v2764_v45, %v2315_v21  ;;  %v2842_v51 = vadd.f32 %v2835_v52, %v2388_v57  ;;  %v2766_v1 = vpop.f32.mrb[51].mxu0  ;;  %v2837_v14 = vpop.f32.mrb[51].mxu1 }
 0xad4   :  { %v2841_v53 = vadd.f32 %v2766_v1, %v2317_v55  ;;  %v2843_v42 = vadd.f32 %v2837_v14, %v2390_v39  ;;  %v2394_v1 = vadd.f32 %v11830_v31, %v11918_v9  ;;  %v2323_v14 = vadd.f32 %v11832_v37, %v11925_v25 }
 0xad5   :  { %v7808_v35 = vmul.f32 -1.442695, %v2840_v40  ;;  %v7810_v15 = vmul.f32 -1.442695, %v2842_v51 }
 0xad6   :  { %v7809_v22 = vmul.f32 -1.442695, %v2841_v53  ;;  %v13436_v53 = vld [vmem:[#allocation35_spill] sm:$0xff] }
 0xad7   :  { %10343 = vpow2.f32 %v7808_v35 }
 0xad8   :  { %10345 = vpow2.f32 %v7809_v22 }
 0xad9   :  { %10347 = vtanh.f32 %v2843_v42  ;;  %v2396_v42 = vadd.f32 %v13436_v53, %v11928_v38 }
 0xada   :  { %10349 = vpow2.f32 %v7810_v15 }
 0xae1   :  { %v10344_v10 = vpop.eup %10343 }
 0xae2   :  { %v2853_v29 = vadd.f32 1.0, %v10344_v10  ;;  %v10346_v18 = vpop.eup %10345 }
 0xae3   :  { %v2854_v59 = vadd.f32 1.0, %v10346_v18  ;;  %v10348_v24 = vpop.eup %10347 }
 0xae4   :  { %10351 = vrcp.f32 %v2853_v29  ;;  %v10350_v4 = vpop.eup %10349 }
 0xae5   :  { %10353 = vrcp.f32 %v2854_v59  ;;  %v2855_v55 = vadd.f32 1.0, %v10350_v4 }
 0xae7   :  { %10355 = vrcp.f32 %v2855_v55 }
 0xaee   :  { %v10352_v12 = vpop.eup %10351 }
 0xaef   :  { %v2864_v21 = vmul.f32 %v10352_v12, %v10348_v24  ;;  %v10354_v57 = vpop.eup %10353 }
 0xaf0   :  { %v2863_v39 = vmul.f32 %v10354_v57, %v11938_v33  ;;  %v2321_v33 = vadd.f32 %v11828_v27, %v11915_v0 }
 0xaf1   :  { %v10356_v52 = vpop.eup %10355 }
 0xaf2   :  { %v11988_v45 = vadd.f32 %v2864_v21, %v2863_v39 }
 0xaf4   :  { %10357 = vtanh.f32 %v11988_v45 }
 0xafe   :  { %v10358_v40 = vpop.eup %10357 }
 0xaff   :  { %v11991_v51 = vmul.f32 %v10358_v40, %v10356_v52 }
 0xb01   :  { %2940 = vmatmul.mubr.f32.vlgmr.msra.gmra.mrb[52].mxu0 %v11991_v51  ;;  %3011 = vmatmul.mubr.f32.vlgmr.msra.gmra.mrb[52].mxu1 %v11991_v51 }
 0xb02   :  { %8648 = vmatpush1.bf16.msra.mxu0 %v11713_v36  ;;  %8680 = vmatpush1.bf16.msra.mxu1 %v11716_v43 }
 0xb03   :  { %8650 = vmatprep.subr.bf16.mxu0 %v11721_v58  ;;  %8682 = vmatprep.subr.bf16.mxu1 %v11723_v13 }
 0xb04   :  { %3116 = vmatprep.mubr.f32.mxu0 %v13390_v11  ;;  %3187 = vmatprep.mubr.f32.mxu1 %v13390_v11 }
 0xb06   :  { %8652 = vmatpush1.bf16.msra.mxu0 %v11725_v23  ;;  %8684 = vmatpush1.bf16.msra.mxu1 %v11728_v26 }
 0xb07   :  { %8654 = vmatprep.subr.bf16.mxu0 %v11733_v46  ;;  %8686 = vmatprep.subr.bf16.mxu1 %v11735_v20 }
 0xb0a   :  { %8656 = vmatpush1.bf16.msra.mxu0 %v11737_v2  ;;  %8688 = vmatpush1.bf16.msra.mxu1 %v11740_v41 }
 0xb0b   :  { %8658 = vmatprep.subr.bf16.mxu0 %v11745_v17  ;;  %8690 = vmatprep.subr.bf16.mxu1 %v11747_v8 }
 0xb0e   :  { %8660 = vmatpush1.bf16.msra.mxu0 %v11749_v3  ;;  %8692 = vmatpush1.bf16.msra.mxu1 %v11752_v44 }
 0xb0f   :  { %8662 = vmatprep.subr.bf16.mxu0 %v11757_v54  ;;  %8694 = vmatprep.subr.bf16.mxu1 %v11759_v5 }
 0xb12   :  { %8664 = vmatpush1.bf16.msra.mxu0 %v11761_v6  ;;  %8696 = vmatpush1.bf16.msra.mxu1 %v11764_v62 }
 0xb13   :  { %8666 = vmatprep.subr.bf16.mxu0 %v11769_v34  ;;  %8698 = vmatprep.subr.bf16.mxu1 %v11771_v47 }
 0xb16   :  { %8668 = vmatpush1.bf16.msra.mxu0 %v11773_v48  ;;  %8700 = vmatpush1.bf16.msra.mxu1 %v11776_v7 }
 0xb17   :  { %8670 = vmatprep.subr.bf16.mxu0 %v11781_v28  ;;  %8702 = vmatprep.subr.bf16.mxu1 %v11783_v61 }
 0xb1a   :  { %8672 = vmatpush1.bf16.msra.mxu0 %v11785_v16  ;;  %8704 = vmatpush1.bf16.msra.mxu1 %v11788_v56 }
 0xb1b   :  { %8674 = vmatprep.subr.bf16.mxu0 %v11793_v60  ;;  %8706 = vmatprep.subr.bf16.mxu1 %v11795_v49 }
 0xb1e   :  { %8676 = vmatpush1.bf16.msra.mxu0 %v11797_v50  ;;  %8708 = vmatpush1.bf16.msra.mxu1 %v11800_v63 }
 0xb1f   :  { %8710 = vmatprep.subr.bf16.mxu0 %v11709_v19  ;;  %8742 = vmatprep.subr.bf16.mxu1 %v11711_v32 }
 0xbd4   :  { %v2941_v35 = vpop.f32.mrb[52].mxu0  ;;  %v3012_v22 = vpop.f32.mrb[52].mxu1 }
 0xbd5   :  { %v3017_v15 = vadd.f32 %v2941_v35, %v2321_v33  ;;  %v3019_v10 = vadd.f32 %v3012_v22, %v2394_v1  ;;  %v2943_v29 = vpop.f32.mrb[53].mxu0  ;;  %v3014_v18 = vpop.f32.mrb[53].mxu1 }
 0xbd6   :  { %v3018_v59 = vadd.f32 %v2943_v29, %v2323_v14  ;;  %v3020_v24 = vadd.f32 %v3014_v18, %v2396_v42  ;;  %v13439_v18 = vld [vmem:[#allocation38_spill] sm:$0xff] }
 0xbd7   :  { %v7811_v4 = vmul.f32 -1.442695, %v3017_v15  ;;  %v7813_v27 = vmul.f32 -1.442695, %v3019_v10  ;;  %v13438_v10 = vld [vmem:[#allocation37_spill] sm:$0xff] }
 0xbd8   :  { %v7812_v12 = vmul.f32 -1.442695, %v3018_v59  ;;  %v2398_v29 = vadd.f32 %v13438_v10, %v11918_v9  ;;  %v2327_v59 = vadd.f32 %v13439_v18, %v11925_v25 }
 0xbd9   :  { %10359 = vpow2.f32 %v7811_v4 }
 0xbda   :  { %10361 = vpow2.f32 %v7812_v12 }
 0xbdb   :  { %10363 = vtanh.f32 %v3020_v24  ;;  %v13440_v24 = vld [vmem:[#allocation39_spill] sm:$0xff] }
 0xbdc   :  { %10365 = vpow2.f32 %v7813_v27  ;;  %v2400_v4 = vadd.f32 %v13440_v24, %v11928_v38 }
 0xbe3   :  { %v10360_v31 = vpop.eup %10359 }
 0xbe4   :  { %v3030_v21 = vadd.f32 1.0, %v10360_v31  ;;  %v10362_v37 = vpop.eup %10361 }
 0xbe5   :  { %v3031_v57 = vadd.f32 1.0, %v10362_v37  ;;  %v10364_v55 = vpop.eup %10363 }
 0xbe6   :  { %10367 = vrcp.f32 %v3030_v21  ;;  %v10366_v39 = vpop.eup %10365 }
 0xbe7   :  { %10369 = vrcp.f32 %v3031_v57  ;;  %v3032_v1 = vadd.f32 1.0, %v10366_v39 }
 0xbe9   :  { %10371 = vrcp.f32 %v3032_v1 }
 0xbf0   :  { %v10368_v52 = vpop.eup %10367 }
 0xbf1   :  { %v3041_v40 = vmul.f32 %v10368_v52, %v10364_v55  ;;  %v10370_v33 = vpop.eup %10369 }
 0xbf2   :  { %v3040_v14 = vmul.f32 %v10370_v33, %v11988_v45  ;;  %v13437_v45 = vld [vmem:[#allocation36_spill] sm:$0xff] }
 0xbf3   :  { %v10372_v42 = vpop.eup %10371  ;;  %v2325_v15 = vadd.f32 %v13437_v45, %v11915_v0 }
 0xbf4   :  { %v12038_v53 = vadd.f32 %v3041_v40, %v3040_v14 }
 0xbf6   :  { %10373 = vtanh.f32 %v12038_v53 }
 0xc00   :  { %v10374_v35 = vpop.eup %10373 }
 0xc01   :  { %v12041_v22 = vmul.f32 %v10374_v35, %v10372_v42 }
 0xc03   :  { %3117 = vmatmul.mubr.f32.vlgmr.msra.gmra.mrb[54].mxu0 %v12041_v22  ;;  %3188 = vmatmul.mubr.f32.vlgmr.msra.gmra.mrb[54].mxu1 %v12041_v22 }
 0xc04   :  { %8712 = vmatpush1.bf16.msra.mxu0 %v11713_v36  ;;  %8744 = vmatpush1.bf16.msra.mxu1 %v11716_v43 }
 0xc05   :  { %8714 = vmatprep.subr.bf16.mxu0 %v11721_v58  ;;  %8746 = vmatprep.subr.bf16.mxu1 %v11723_v13 }
 0xc06   :  { %3293 = vmatprep.mubr.f32.mxu0 %v13390_v11  ;;  %3364 = vmatprep.mubr.f32.mxu1 %v13390_v11 }
 0xc08   :  { %8716 = vmatpush1.bf16.msra.mxu0 %v11725_v23  ;;  %8748 = vmatpush1.bf16.msra.mxu1 %v11728_v26 }
 0xc09   :  { %8718 = vmatprep.subr.bf16.mxu0 %v11733_v46  ;;  %8750 = vmatprep.subr.bf16.mxu1 %v11735_v20 }
 0xc0c   :  { %8720 = vmatpush1.bf16.msra.mxu0 %v11737_v2  ;;  %8752 = vmatpush1.bf16.msra.mxu1 %v11740_v41 }
 0xc0d   :  { %8722 = vmatprep.subr.bf16.mxu0 %v11745_v17  ;;  %8754 = vmatprep.subr.bf16.mxu1 %v11747_v8 }
 0xc10   :  { %8724 = vmatpush1.bf16.msra.mxu0 %v11749_v3  ;;  %8756 = vmatpush1.bf16.msra.mxu1 %v11752_v44 }
 0xc11   :  { %8726 = vmatprep.subr.bf16.mxu0 %v11757_v54  ;;  %8758 = vmatprep.subr.bf16.mxu1 %v11759_v5 }
 0xc14   :  { %8728 = vmatpush1.bf16.msra.mxu0 %v11761_v6  ;;  %8760 = vmatpush1.bf16.msra.mxu1 %v11764_v62 }
 0xc15   :  { %8730 = vmatprep.subr.bf16.mxu0 %v11769_v34  ;;  %8762 = vmatprep.subr.bf16.mxu1 %v11771_v47 }
 0xc18   :  { %8732 = vmatpush1.bf16.msra.mxu0 %v11773_v48  ;;  %8764 = vmatpush1.bf16.msra.mxu1 %v11776_v7 }
 0xc19   :  { %8734 = vmatprep.subr.bf16.mxu0 %v11781_v28  ;;  %8766 = vmatprep.subr.bf16.mxu1 %v11783_v61 }
 0xc1c   :  { %8736 = vmatpush1.bf16.msra.mxu0 %v11785_v16  ;;  %8768 = vmatpush1.bf16.msra.mxu1 %v11788_v56 }
 0xc1d   :  { %8738 = vmatprep.subr.bf16.mxu0 %v11793_v60  ;;  %8770 = vmatprep.subr.bf16.mxu1 %v11795_v49 }
 0xc20   :  { %8740 = vmatpush1.bf16.msra.mxu0 %v11797_v50  ;;  %8772 = vmatpush1.bf16.msra.mxu1 %v11800_v63 }
 0xc21   :  { %8774 = vmatprep.subr.bf16.mxu0 %v11709_v19  ;;  %8806 = vmatprep.subr.bf16.mxu1 %v11711_v32 }
 0xcd6   :  { %v3118_v12 = vpop.f32.mrb[54].mxu0  ;;  %v3189_v27 = vpop.f32.mrb[54].mxu1 }
 0xcd7   :  { %v3194_v31 = vadd.f32 %v3118_v12, %v2325_v15  ;;  %v3196_v21 = vadd.f32 %v3189_v27, %v2398_v29  ;;  %v3120_v37 = vpop.f32.mrb[55].mxu0  ;;  %v3191_v57 = vpop.f32.mrb[55].mxu1 }
 0xcd8   :  { %v3195_v55 = vadd.f32 %v3120_v37, %v2327_v59  ;;  %v3197_v39 = vadd.f32 %v3191_v57, %v2400_v4  ;;  %v13442_v37 = vld [vmem:[#allocation41_spill] sm:$0xff] }
 0xcd9   :  { %v7814_v52 = vmul.f32 -1.442695, %v3194_v31  ;;  %v7816_v33 = vmul.f32 -1.442695, %v3196_v21  ;;  %v2404_v57 = vadd.f32 %v13442_v37, %v11918_v9 }
 0xcda   :  { %v7815_v40 = vmul.f32 -1.442695, %v3195_v55  ;;  %v13443_v55 = vld [vmem:[#allocation42_spill] sm:$0xff] }
 0xcdb   :  { %10375 = vpow2.f32 %v7814_v52  ;;  %v13444_v52 = vld [vmem:[#allocation43_spill] sm:$0xff] }
 0xcdc   :  { %10377 = vpow2.f32 %v7815_v40  ;;  %v2406_v40 = vadd.f32 %v13444_v52, %v11928_v38 }
 0xcdd   :  { %10379 = vtanh.f32 %v3197_v39  ;;  %v2333_v39 = vadd.f32 %v13443_v55, %v11925_v25 }
 0xcde   :  { %10381 = vpow2.f32 %v7816_v33 }
 0xce5   :  { %v10376_v1 = vpop.eup %10375 }
 0xce6   :  { %v3207_v14 = vadd.f32 1.0, %v10376_v1  ;;  %v10378_v42 = vpop.eup %10377 }
 0xce7   :  { %v3208_v35 = vadd.f32 1.0, %v10378_v42  ;;  %v10380_v45 = vpop.eup %10379 }
 0xce8   :  { %10383 = vrcp.f32 %v3207_v14  ;;  %v10382_v15 = vpop.eup %10381 }
 0xce9   :  { %10385 = vrcp.f32 %v3208_v35  ;;  %v3209_v59 = vadd.f32 1.0, %v10382_v15 }
 0xceb   :  { %10387 = vrcp.f32 %v3209_v59 }
 0xcf2   :  { %v10384_v10 = vpop.eup %10383 }
 0xcf3   :  { %v3218_v29 = vmul.f32 %v10384_v10, %v10380_v45  ;;  %v10386_v18 = vpop.eup %10385 }
 0xcf4   :  { %v3217_v24 = vmul.f32 %v10386_v18, %v12038_v53  ;;  %v13441_v53 = vld [vmem:[#allocation40_spill] sm:$0xff] }
 0xcf5   :  { %v10388_v12 = vpop.eup %10387  ;;  %v2331_v21 = vadd.f32 %v13441_v53, %v11915_v0 }
 0xcf6   :  { %v12088_v4 = vadd.f32 %v3218_v29, %v3217_v24 }
 0xcf8   :  { %10389 = vtanh.f32 %v12088_v4 }
 0xd02   :  { %v10390_v27 = vpop.eup %10389 }
 0xd03   :  { %v12091_v31 = vmul.f32 %v10390_v27, %v10388_v12 }
 0xd05   :  { %3294 = vmatmul.mubr.f32.vlgmr.msra.gmra.mrb[56].mxu0 %v12091_v31  ;;  %3365 = vmatmul.mubr.f32.vlgmr.msra.gmra.mrb[56].mxu1 %v12091_v31 }
 0xd06   :  { %8776 = vmatpush1.bf16.msra.mxu0 %v11713_v36  ;;  %8808 = vmatpush1.bf16.msra.mxu1 %v11716_v43 }
 0xd07   :  { %8778 = vmatprep.subr.bf16.mxu0 %v11721_v58  ;;  %8810 = vmatprep.subr.bf16.mxu1 %v11723_v13 }
 0xd08   :  { %3470 = vmatprep.mubr.f32.mxu0 %v13390_v11  ;;  %3541 = vmatprep.mubr.f32.mxu1 %v13390_v11 }
 0xd0a   :  { %8780 = vmatpush1.bf16.msra.mxu0 %v11725_v23  ;;  %8812 = vmatpush1.bf16.msra.mxu1 %v11728_v26 }
 0xd0b   :  { %8782 = vmatprep.subr.bf16.mxu0 %v11733_v46  ;;  %8814 = vmatprep.subr.bf16.mxu1 %v11735_v20 }
 0xd0e   :  { %8784 = vmatpush1.bf16.msra.mxu0 %v11737_v2  ;;  %8816 = vmatpush1.bf16.msra.mxu1 %v11740_v41 }
 0xd0f   :  { %8786 = vmatprep.subr.bf16.mxu0 %v11745_v17  ;;  %8818 = vmatprep.subr.bf16.mxu1 %v11747_v8 }
 0xd12   :  { %8788 = vmatpush1.bf16.msra.mxu0 %v11749_v3  ;;  %8820 = vmatpush1.bf16.msra.mxu1 %v11752_v44 }
 0xd13   :  { %8790 = vmatprep.subr.bf16.mxu0 %v11757_v54  ;;  %8822 = vmatprep.subr.bf16.mxu1 %v11759_v5 }
 0xd16   :  { %8792 = vmatpush1.bf16.msra.mxu0 %v11761_v6  ;;  %8824 = vmatpush1.bf16.msra.mxu1 %v11764_v62 }
 0xd17   :  { %8794 = vmatprep.subr.bf16.mxu0 %v11769_v34  ;;  %8826 = vmatprep.subr.bf16.mxu1 %v11771_v47 }
 0xd1a   :  { %8796 = vmatpush1.bf16.msra.mxu0 %v11773_v48  ;;  %8828 = vmatpush1.bf16.msra.mxu1 %v11776_v7 }
 0xd1b   :  { %8798 = vmatprep.subr.bf16.mxu0 %v11781_v28  ;;  %8830 = vmatprep.subr.bf16.mxu1 %v11783_v61 }
 0xd1e   :  { %8800 = vmatpush1.bf16.msra.mxu0 %v11785_v16  ;;  %8832 = vmatpush1.bf16.msra.mxu1 %v11788_v56 }
 0xd1f   :  { %8802 = vmatprep.subr.bf16.mxu0 %v11793_v60  ;;  %8834 = vmatprep.subr.bf16.mxu1 %v11795_v49 }
 0xd22   :  { %8804 = vmatpush1.bf16.msra.mxu0 %v11797_v50  ;;  %8836 = vmatpush1.bf16.msra.mxu1 %v11800_v63 }
 0xd23   :  { %8838 = vmatprep.subr.bf16.mxu0 %v11709_v19  ;;  %8870 = vmatprep.subr.bf16.mxu1 %v11711_v32 }
 0xdd8   :  { %v3295_v33 = vpop.f32.mrb[56].mxu0  ;;  %v3366_v1 = vpop.f32.mrb[56].mxu1 }
 0xdd9   :  { %v3371_v14 = vadd.f32 %v3295_v33, %v2331_v21  ;;  %v3373_v42 = vadd.f32 %v3366_v1, %v2404_v57  ;;  %v3297_v35 = vpop.f32.mrb[57].mxu0  ;;  %v3368_v45 = vpop.f32.mrb[57].mxu1 }
 0xdda   :  { %v3372_v15 = vadd.f32 %v3297_v35, %v2333_v39  ;;  %v3374_v10 = vadd.f32 %v3368_v45, %v2406_v40  ;;  %v13446_v45 = vld [vmem:[#allocation45_spill] sm:$0xff] }
 0xddb   :  { %v7817_v29 = vmul.f32 -1.442695, %v3371_v14  ;;  %v7819_v59 = vmul.f32 -1.442695, %v3373_v42 }
 0xddc   :  { %v7818_v18 = vmul.f32 -1.442695, %v3372_v15  ;;  %v2408_v15 = vadd.f32 %v13446_v45, %v11918_v9 }
 0xddd   :  { %10391 = vpow2.f32 %v7817_v29 }
 0xdde   :  { %10393 = vpow2.f32 %v7818_v18  ;;  %v13448_v18 = vld [vmem:[#allocation47_spill] sm:$0xff] }
 0xddf   :  { %10395 = vtanh.f32 %v3374_v10  ;;  %v13447_v10 = vld [vmem:[#allocation46_spill] sm:$0xff] }
 0xde0   :  { %10397 = vpow2.f32 %v7819_v59  ;;  %v2337_v29 = vadd.f32 %v13447_v10, %v11925_v25  ;;  %v2410_v59 = vadd.f32 %v13448_v18, %v11928_v38 }
 0xde7   :  { %v10392_v24 = vpop.eup %10391 }
 0xde8   :  { %v3384_v12 = vadd.f32 1.0, %v10392_v24  ;;  %v10394_v27 = vpop.eup %10393 }
 0xde9   :  { %v3385_v53 = vadd.f32 1.0, %v10394_v27  ;;  %v10396_v37 = vpop.eup %10395 }
 0xdea   :  { %10399 = vrcp.f32 %v3384_v12  ;;  %v10398_v21 = vpop.eup %10397 }
 0xdeb   :  { %10401 = vrcp.f32 %v3385_v53  ;;  %v3386_v39 = vadd.f32 1.0, %v10398_v21 }
 0xded   :  { %10403 = vrcp.f32 %v3386_v39 }
 0xdf4   :  { %v10400_v57 = vpop.eup %10399 }
 0xdf5   :  { %v3395_v55 = vmul.f32 %v10400_v57, %v10396_v37  ;;  %v10402_v52 = vpop.eup %10401 }
 0xdf6   :  { %v3394_v40 = vmul.f32 %v10402_v52, %v12088_v4  ;;  %v13445_v4 = vld [vmem:[#allocation44_spill] sm:$0xff] }
 0xdf7   :  { %v10404_v1 = vpop.eup %10403  ;;  %v2335_v35 = vadd.f32 %v13445_v4, %v11915_v0 }
 0xdf8   :  { %v12138_v33 = vadd.f32 %v3395_v55, %v3394_v40 }
 0xdfa   :  { %10405 = vtanh.f32 %v12138_v33 }
 0xe04   :  { %v10406_v14 = vpop.eup %10405 }
 0xe05   :  { %v12141_v42 = vmul.f32 %v10406_v14, %v10404_v1 }
 0xe07   :  { %3471 = vmatmul.mubr.f32.vlgmr.msra.gmra.mrb[58].mxu0 %v12141_v42  ;;  %3542 = vmatmul.mubr.f32.vlgmr.msra.gmra.mrb[58].mxu1 %v12141_v42 }
 0xe08   :  { %8840 = vmatpush1.bf16.msra.mxu0 %v11713_v36  ;;  %8872 = vmatpush1.bf16.msra.mxu1 %v11716_v43 }
 0xe09   :  { %8842 = vmatprep.subr.bf16.mxu0 %v11721_v58  ;;  %8874 = vmatprep.subr.bf16.mxu1 %v11723_v13 }
 0xe0a   :  { %3647 = vmatprep.mubr.f32.mxu0 %v13390_v11  ;;  %3718 = vmatprep.mubr.f32.mxu1 %v13390_v11 }
 0xe0c   :  { %8844 = vmatpush1.bf16.msra.mxu0 %v11725_v23  ;;  %8876 = vmatpush1.bf16.msra.mxu1 %v11728_v26 }
 0xe0d   :  { %8846 = vmatprep.subr.bf16.mxu0 %v11733_v46  ;;  %8878 = vmatprep.subr.bf16.mxu1 %v11735_v20 }
 0xe10   :  { %8848 = vmatpush1.bf16.msra.mxu0 %v11737_v2  ;;  %8880 = vmatpush1.bf16.msra.mxu1 %v11740_v41 }
 0xe11   :  { %8850 = vmatprep.subr.bf16.mxu0 %v11745_v17  ;;  %8882 = vmatprep.subr.bf16.mxu1 %v11747_v8 }
 0xe14   :  { %8852 = vmatpush1.bf16.msra.mxu0 %v11749_v3  ;;  %8884 = vmatpush1.bf16.msra.mxu1 %v11752_v44 }
 0xe15   :  { %8854 = vmatprep.subr.bf16.mxu0 %v11757_v54  ;;  %8886 = vmatprep.subr.bf16.mxu1 %v11759_v5 }
 0xe18   :  { %8856 = vmatpush1.bf16.msra.mxu0 %v11761_v6  ;;  %8888 = vmatpush1.bf16.msra.mxu1 %v11764_v62 }
 0xe19   :  { %8858 = vmatprep.subr.bf16.mxu0 %v11769_v34  ;;  %8890 = vmatprep.subr.bf16.mxu1 %v11771_v47 }
 0xe1c   :  { %8860 = vmatpush1.bf16.msra.mxu0 %v11773_v48  ;;  %8892 = vmatpush1.bf16.msra.mxu1 %v11776_v7 }
 0xe1d   :  { %8862 = vmatprep.subr.bf16.mxu0 %v11781_v28  ;;  %8894 = vmatprep.subr.bf16.mxu1 %v11783_v61 }
 0xe20   :  { %8864 = vmatpush1.bf16.msra.mxu0 %v11785_v16  ;;  %8896 = vmatpush1.bf16.msra.mxu1 %v11788_v56 }
 0xe21   :  { %8866 = vmatprep.subr.bf16.mxu0 %v11793_v60  ;;  %8898 = vmatprep.subr.bf16.mxu1 %v11795_v49 }
 0xe24   :  { %8868 = vmatpush1.bf16.msra.mxu0 %v11797_v50  ;;  %8900 = vmatpush1.bf16.msra.mxu1 %v11800_v63 }
 0xe25   :  { %8902 = vmatprep.subr.bf16.mxu0 %v11709_v19  ;;  %8934 = vmatprep.subr.bf16.mxu1 %v11711_v32 }
 0xeda   :  { %v3472_v24 = vpop.f32.mrb[58].mxu0  ;;  %v3543_v12 = vpop.f32.mrb[58].mxu1 }
 0xedb   :  { %v3548_v27 = vadd.f32 %v3472_v24, %v2335_v35  ;;  %v3550_v53 = vadd.f32 %v3543_v12, %v2408_v15  ;;  %v3474_v37 = vpop.f32.mrb[59].mxu0  ;;  %v3545_v19 = vpop.f32.mrb[59].mxu1 }
 0xedc   :  { %v3549_v21 = vadd.f32 %v3474_v37, %v2337_v29  ;;  %v3551_v32 = vadd.f32 %v3545_v19, %v2410_v59 }
 0xedd   :  { %v7820_v57 = vmul.f32 -1.442695, %v3548_v27  ;;  %v7822_v52 = vmul.f32 -1.442695, %v3550_v53 }
 0xede   :  { %v7821_v55 = vmul.f32 -1.442695, %v3549_v21 }
 0xedf   :  { %10407 = vpow2.f32 %v7820_v57  ;;  %v10106_v57 = vld [vmem:[#allocation18 + $0x8] ss:$16 sps:$4 sm:$0xff]  }
 0xee0   :  { %10409 = vpow2.f32 %v7821_v55 }
 0xee1   :  { %10411 = vtanh.f32 %v3551_v32  ;;  %v10103_v32 = vld [vmem:[#allocation18] ss:$16 sps:$4 sm:$0xff]  }
 0xee2   :  { %10413 = vpow2.f32 %v7822_v52  ;;  %v10111_v52 = vld [vmem:[#allocation18 + $0x24] ss:$16 sps:$4 sm:$0xff]  }
 0xee9   :  { %v10408_v39 = vpop.eup %10407 }
 0xeea   :  { %v3561_v40 = vadd.f32 1.0, %v10408_v39  ;;  %v10410_v1 = vpop.eup %10409  ;;  %v10114_v39 = vld [vmem:[#allocation18 + $0x2c] ss:$16 sps:$4 sm:$0xff]  }
 0xeeb   :  { %v3562_v14 = vadd.f32 1.0, %v10410_v1  ;;  %v10412_v4 = vpop.eup %10411  ;;  %v10112_v1 = vld [vmem:[#allocation18 + $0x28] ss:$16 sps:$4 sm:$0xff]  }
 0xeec   :  { %10415 = vrcp.f32 %v3561_v40  ;;  %v10414_v35 = vpop.eup %10413  ;;  %v10109_v40 = vld [vmem:[#allocation18 + $0x20] ss:$16 sps:$4 sm:$0xff]  }
 0xeed   :  { %10417 = vrcp.f32 %v3562_v14  ;;  %v3563_v29 = vadd.f32 1.0, %v10414_v35  ;;  %v10117_v14 = vld [vmem:[#allocation18 + $0x44] ss:$16 sps:$4 sm:$0xff]   ;;  %v13453_v35 = vmov 0  }
 0xeef   :  { %10419 = vrcp.f32 %v3563_v29  ;;  %v10126_v29 = vld [vmem:[#allocation18 + $0x6c] ss:$16 sps:$4 sm:$0xff]  }
 0xef6   :  { %v10416_v45 = vpop.eup %10415 }
 0xef7   :  { %v3572_v15 = vmul.f32 %v10416_v45, %v10412_v4  ;;  %v10418_v10 = vpop.eup %10417  ;;  %v10120_v4 = vld [vmem:[#allocation18 + $0x4c] ss:$16 sps:$4 sm:$0xff]   ;;  %v10115_v45 = vld [vmem:[#allocation18 + $0x40] ss:$16 sps:$4 sm:$0xff]  }
 0xef8   :  { %v3571_v18 = vmul.f32 %v10418_v10, %v12138_v33  ;;  %v10123_v10 = vld [vmem:[#allocation18 + $0x64] ss:$16 sps:$4 sm:$0xff]  }
 0xef9   :  { %v10420_v24 = vpop.eup %10419 }
 0xefa   :  { %v12188_v59 = vadd.f32 %v3572_v15, %v3571_v18  ;;  %v10118_v15 = vld [vmem:[#allocation18 + $0x48] ss:$16 sps:$4 sm:$0xff]   ;;  %v10121_v18 = vld [vmem:[#allocation18 + $0x60] ss:$16 sps:$4 sm:$0xff]  }
 0xefc   :  { %10421 = vtanh.f32 %v12188_v59 }
 0xf06   :  { %v10422_v12 = vpop.eup %10421 }
 0xf07   :  { %v12191_v27 = vmul.f32 %v10422_v12, %v10420_v24  ;;  %v10129_v24 = vld [vmem:[#allocation18 + $0x84] ss:$16 sps:$4 sm:$0xff]   ;;  %v10132_v12 = vld [vmem:[#allocation18 + $0x8c] ss:$16 sps:$4 sm:$0xff]  }
 0xf09   :  { %3648 = vmatmul.mubr.f32.vlgmr.msra.gmra.mrb[60].mxu0 %v12191_v27  ;;  %3719 = vmatmul.mubr.f32.vlgmr.msra.gmra.mrb[60].mxu1 %v12191_v27 }
 0xf0a   :  { %8904 = vmatpush1.bf16.msra.mxu0 %v11713_v36  ;;  %8936 = vmatpush1.bf16.msra.mxu1 %v11716_v43  ;;  %v10105_v36 = vld [vmem:[#allocation18 + $0x4] ss:$16 sps:$4 sm:$0xff]   ;;  %v10108_v43 = vld [vmem:[#allocation18 + $0xc] ss:$16 sps:$4 sm:$0xff]  }
 0xf0b   :  { %8906 = vmatprep.subr.bf16.mxu0 %v11721_v58  ;;  %8938 = vmatprep.subr.bf16.mxu1 %v11723_v13  ;;  %v13449_v58 = vld [vmem:[#allocation48_spill] sm:$0xff] }
 0xf0c   :  { %3824 = vmatprep.mubr.f32.mxu0 %v13390_v11  ;;  %3895 = vmatprep.mubr.f32.mxu1 %v13390_v11  ;;  %v2341_v13 = vadd.f32 %v13449_v58, %v11915_v0  ;;  %v10135_v58 = vld [vmem:[#allocation18 + $0xa4] ss:$16 sps:$4 sm:$0xff]  }
 0xf0e   :  { %8908 = vmatpush1.bf16.msra.mxu0 %v11725_v23  ;;  %8940 = vmatpush1.bf16.msra.mxu1 %v11728_v26  ;;  %v13450_v23 = vld [vmem:[#allocation49_spill] sm:$0xff] }
 0xf0f   :  { %8910 = vmatprep.subr.bf16.mxu0 %v11733_v46  ;;  %8942 = vmatprep.subr.bf16.mxu1 %v11735_v20  ;;  %v2414_v26 = vadd.f32 %v13450_v23, %v11918_v9  ;;  %v13451_v46 = vld [vmem:[#allocation50_spill] sm:$0xff]  ;;  %v10133_v23 = vld [vmem:[#allocation18 + $0xa0] ss:$16 sps:$4 sm:$0xff]  }
 0xf10   :  { %v2343_v20 = vadd.f32 %v13451_v46, %v11925_v25  ;;  %v10141_v46 = vld [vmem:[#allocation18 + $0xc4] ss:$16 sps:$4 sm:$0xff]  }
 0xf12   :  { %8912 = vmatpush1.bf16.msra.mxu0 %v11737_v2  ;;  %8944 = vmatpush1.bf16.msra.mxu1 %v11740_v41  ;;  %v13452_v2 = vld [vmem:[#allocation51_spill] sm:$0xff] }
 0xf13   :  { %8914 = vmatprep.subr.bf16.mxu0 %v11745_v17  ;;  %8946 = vmatprep.subr.bf16.mxu1 %v11747_v8  ;;  %v2416_v41 = vadd.f32 %v13452_v2, %v11928_v38  ;;  %v10139_v2 = vld [vmem:[#allocation18 + $0xc0] ss:$16 sps:$4 sm:$0xff]  }
 0xf16   :  { %8916 = vmatpush1.bf16.msra.mxu0 %v11749_v3  ;;  %8948 = vmatpush1.bf16.msra.mxu1 %v11752_v44 }
 0xf17   :  { %8918 = vmatprep.subr.bf16.mxu0 %v11757_v54  ;;  %8950 = vmatprep.subr.bf16.mxu1 %v11759_v5 }
 0xf1a   :  { %8920 = vmatpush1.bf16.msra.mxu0 %v11761_v6  ;;  %8952 = vmatpush1.bf16.msra.mxu1 %v11764_v62 }
 0xf1b   :  { %8922 = vmatprep.subr.bf16.mxu0 %v11769_v34  ;;  %8954 = vmatprep.subr.bf16.mxu1 %v11771_v47 }
 0xf1e   :  { %8924 = vmatpush1.bf16.msra.mxu0 %v11773_v48  ;;  %8956 = vmatpush1.bf16.msra.mxu1 %v11776_v7 }
 0xf1f   :  { %8926 = vmatprep.subr.bf16.mxu0 %v11781_v28  ;;  %8958 = vmatprep.subr.bf16.mxu1 %v11783_v61 }
 0xf22   :  { %8928 = vmatpush1.bf16.msra.mxu0 %v11785_v16  ;;  %8960 = vmatpush1.bf16.msra.mxu1 %v11788_v56 }
 0xf23   :  { %8930 = vmatprep.subr.bf16.mxu0 %v11793_v60  ;;  %8962 = vmatprep.subr.bf16.mxu1 %v11795_v49 }
 0xf26   :  { %8932 = vmatpush1.bf16.msra.mxu0 %v11797_v50  ;;  %8964 = vmatpush1.bf16.msra.mxu1 %v11800_v63 }
 0xf27   :  { %4158 = vmatprep.subr.bf16.mxu0 %v10105_v36  ;;  %4231 = vmatprep.subr.bf16.mxu1 %v10108_v43  ;;  %v10127_v36 = vld [vmem:[#allocation18 + $0x80] ss:$16 sps:$4 sm:$0xff]   ;;  %v10130_v43 = vld [vmem:[#allocation18 + $0x88] ss:$16 sps:$4 sm:$0xff]  }
 0xfdc   :  { %v3649_v17 = vpop.f32.mrb[60].mxu0  ;;  %v3720_v8 = vpop.f32.mrb[60].mxu1 }
 0xfdd   :  { %v3725_v3 = vadd.f32 %v3649_v17, %v2341_v13  ;;  %v3727_v44 = vadd.f32 %v3720_v8, %v2414_v26  ;;  %v3651_v54 = vpop.f32.mrb[61].mxu0  ;;  %v3722_v5 = vpop.f32.mrb[61].mxu1  ;;  %v10138_v13 = vld [vmem:[#allocation18 + $0xac] ss:$16 sps:$4 sm:$0xff]   ;;  %v10136_v26 = vld [vmem:[#allocation18 + $0xa8] ss:$16 sps:$4 sm:$0xff]  }
 0xfde   :  { %v3726_v6 = vadd.f32 %v3651_v54, %v2343_v20  ;;  %v3728_v62 = vadd.f32 %v3722_v5, %v2416_v41  ;;  %v10144_v20 = vld [vmem:[#allocation18 + $0xcc] ss:$16 sps:$4 sm:$0xff]   ;;  %v10142_v41 = vld [vmem:[#allocation18 + $0xc8] ss:$16 sps:$4 sm:$0xff]   ;;  %v10147_v17 = vld [vmem:[#allocation18 + $0xe4] ss:$16 sps:$4 sm:$0xff]   ;;  %v3940_v54 = vpack.c.bf16 %v11991_v51, %v11941_v30  ;;  %v3941_v5 = vpack.c.bf16 %v12091_v31, %v12041_v22 }
 0xfdf   :  { %v7823_v34 = vmul.f32 -1.442695, %v3725_v3  ;;  %v7825_v48 = vmul.f32 -1.442695, %v3727_v44  ;;  %v10150_v8 = vld [vmem:[#allocation18 + $0xec] ss:$16 sps:$4 sm:$0xff]  }
 0xfe0   :  { %v7824_v47 = vmul.f32 -1.442695, %v3726_v6  ;;  %v10145_v3 = vld [vmem:[#allocation18 + $0xe0] ss:$16 sps:$4 sm:$0xff]   ;;  %v10148_v44 = vld [vmem:[#allocation18 + $0xe8] ss:$16 sps:$4 sm:$0xff]   ;;  %v3942_v6 = vpack.c.bf16 %v12191_v27, %v12141_v42 }
 0xfe1   :  { %10423 = vpow2.f32 %v7823_v34  ;;  %v4337_v30 = vld [vmem:[#allocation20 + $0x8] sm:$0xff]  ;;  %v4343_v22 = vld [vmem:[#allocation20 + $0x38] sm:$0xff]  ;;  %v4336_v31 = vld [vmem:[#allocation20] sm:$0xff] }
 0xfe2   :  { %10425 = vpow2.f32 %v7824_v47  ;;  %v4341_v51 = vld [vmem:[#allocation20 + $0x28] sm:$0xff]  ;;  %v4340_v47 = vld [vmem:[#allocation20 + $0x20] sm:$0xff]  ;;  %v4342_v42 = vld [vmem:[#allocation20 + $0x30] sm:$0xff] }
 0xfe3   :  { %10427 = vtanh.f32 %v3728_v62  ;;  %v4339_v62 = vld [vmem:[#allocation20 + $0x18] sm:$0xff]  ;;  %v12257_v34 = vpack.c.bf16 %v4341_v51, %v4337_v30  ;;  %v4370_v51 = vld [vmem:[#allocation20 + $0x110] sm:$0xff] }
 0xfe4   :  { %10429 = vpow2.f32 %v7825_v48  ;;  %v12259_v48 = vpack.c.bf16 %v4343_v22, %v4339_v62  ;;  %v4374_v62 = vld [vmem:[#allocation20 + $0x130] sm:$0xff] }
 0xfe5   :  { %v12312_v22 = vpack.c.bf16 %v4374_v62, %v4370_v51  ;;  %v4398_v51 = vld [vmem:[#allocation20 + $0x1f0] sm:$0xff] }
 0xfeb   :  { %v10424_v7 = vpop.eup %10423 }
 0xfec   :  { %v3738_v28 = vadd.f32 1.0, %v10424_v7  ;;  %v10426_v61 = vpop.eup %10425  ;;  %v12261_v7 = vpack.c.bf16 %v4340_v47, %v4336_v31  ;;  %v4377_v31 = vld [vmem:[#allocation20 + $0x148] sm:$0xff] }
 0xfed   :  { %v3739_v16 = vadd.f32 1.0, %v10426_v61  ;;  %v10428_v56 = vpop.eup %10427  ;;  %v4345_v61 = vld [vmem:[#allocation20 + $0x48] sm:$0xff] }
 0xfee   :  { %10431 = vrcp.f32 %v3738_v28  ;;  %v10430_v60 = vpop.eup %10429  ;;  %v4338_v28 = vld [vmem:[#allocation20 + $0x10] sm:$0xff]  ;;  %v4381_v47 = vld [vmem:[#allocation20 + $0x168] sm:$0xff] }
 0xfef   :  { %10433 = vrcp.f32 %v3739_v16  ;;  %v3740_v33 = vadd.f32 1.0, %v10430_v60  ;;  %v12264_v27 = vpack.c.bf16 %v4342_v42, %v4338_v28  ;;  %v4349_v16 = vld [vmem:[#allocation20 + $0x68] sm:$0xff]  ;;  %v4379_v28 = vld [vmem:[#allocation20 + $0x158] sm:$0xff]  ;;  %v12317_v42 = vpack.c.bf16 %v4381_v47, %v4377_v31 }
 0xff0   :  { %v12269_v60 = vpack.c.bf16 %v4349_v16, %v4345_v61  ;;  %v4383_v61 = vld [vmem:[#allocation20 + $0x178] sm:$0xff]  ;;  %v4376_v16 = vld [vmem:[#allocation20 + $0x140] sm:$0xff]  ;;  %v13454_v31 = vld [vmem:[#allocation52_spill] sm:$0xff] }
 0xff1   :  { %10435 = vrcp.f32 %v3740_v33  ;;  %v2345_v47 = vadd.f32 %v13454_v31, %v11915_v0 }
 0xff8   :  { %v10432_v49 = vpop.eup %10431 }
 0xff9   :  { %v3749_v50 = vmul.f32 %v10432_v49, %v10428_v56  ;;  %v10434_v63 = vpop.eup %10433  ;;  %v4347_v56 = vld [vmem:[#allocation20 + $0x58] sm:$0xff] }
 0xffa   :  { %v3748_v53 = vmul.f32 %v10434_v63, %v12188_v59  ;;  %v10124_v59 = vld [vmem:[#allocation18 + $0x68] ss:$16 sps:$4 sm:$0xff]   ;;  %v4348_v63 = vld [vmem:[#allocation20 + $0x60] sm:$0xff] }
 0xffb   :  { %v10436_v19 = vpop.eup %10435  ;;  %v4351_v49 = vld [vmem:[#allocation20 + $0x78] sm:$0xff] }
 0xffc   :  { %v12236_v37 = vadd.f32 %v3749_v50, %v3748_v53  ;;  %v4344_v50 = vld [vmem:[#allocation20 + $0x40] sm:$0xff]  ;;  %v12271_v33 = vpack.c.bf16 %v4351_v49, %v4347_v56  ;;  %v12319_v49 = vpack.c.bf16 %v4383_v61, %v4379_v28  ;;  %v13455_v28 = vld [vmem:[#allocation53_spill] sm:$0xff] }
 0xffd   :  { %v12273_v53 = vpack.c.bf16 %v4348_v63, %v4344_v50  ;;  %v4380_v56 = vld [vmem:[#allocation20 + $0x160] sm:$0xff]  ;;  %v4378_v63 = vld [vmem:[#allocation20 + $0x150] sm:$0xff]  ;;  %v2418_v61 = vadd.f32 %v13455_v28, %v11918_v9 }
 0xffe   :  { %10437 = vtanh.f32 %v12236_v37  ;;  %v12321_v50 = vpack.c.bf16 %v4380_v56, %v4376_v16  ;;  %v13456_v16 = vld [vmem:[#allocation54_spill] sm:$0xff] }
 0xfff   :  { %v2347_v56 = vadd.f32 %v13456_v16, %v11925_v25 }
0x1008   :  { %v10438_v21 = vpop.eup %10437 }
0x1009   :  { %v12239_v55 = vmul.f32 %v10438_v21, %v10436_v19  ;;  %v4346_v19 = vld [vmem:[#allocation20 + $0x50] sm:$0xff] }
0x100a   :  { %v4350_v21 = vld [vmem:[#allocation20 + $0x70] sm:$0xff] }
0x100b   :  { %3825 = vmatmul.mubr.f32.vlgmr.msra.gmra.mrb[62].mxu0 %v12239_v55  ;;  %3896 = vmatmul.mubr.f32.vlgmr.msra.gmra.mrb[62].mxu1 %v12239_v55 }
0x100c   :  { %4159 = vmatpush1.bf16.msra.mxu0 %v10103_v32  ;;  %4232 = vmatpush1.bf16.msra.mxu1 %v10106_v57  ;;  %v12276_v32 = vpack.c.bf16 %v4350_v21, %v4346_v19  ;;  %v4353_v57 = vld [vmem:[#allocation20 + $0x88] sm:$0xff]  ;;  %v4382_v19 = vld [vmem:[#allocation20 + $0x170] sm:$0xff] }
0x100d   :  { %4160 = vmatprep.subr.bf16.mxu0 %v10111_v52  ;;  %4233 = vmatprep.subr.bf16.mxu1 %v10114_v39  ;;  %v4357_v52 = vld [vmem:[#allocation20 + $0xa8] sm:$0xff]  ;;  %v4355_v39 = vld [vmem:[#allocation20 + $0x98] sm:$0xff]  ;;  %v12324_v21 = vpack.c.bf16 %v4382_v19, %v4378_v63  ;;  %v13457_v63 = vld [vmem:[#allocation55_spill] sm:$0xff] }
0x100e   :  { %4190 = vmatprep.mubr.bf16.mxu0 %v13453_v35  ;;  %4263 = vmatprep.mubr.bf16.mxu1 %v13453_v35  ;;  %v2420_v19 = vadd.f32 %v13457_v63, %v11928_v38 }
0x1010   :  { %4161 = vmatpush1.bf16.msra.mxu0 %v10109_v40  ;;  %4234 = vmatpush1.bf16.msra.mxu1 %v10112_v1  ;;  %v12281_v40 = vpack.c.bf16 %v4357_v52, %v4353_v57  ;;  %v4359_v1 = vld [vmem:[#allocation20 + $0xb8] sm:$0xff]  ;;  %v4385_v57 = vld [vmem:[#allocation20 + $0x188] sm:$0xff] }
0x1011   :  { %4162 = vmatprep.subr.bf16.mxu0 %v10117_v14  ;;  %4235 = vmatprep.subr.bf16.mxu1 %v10120_v4  ;;  %v4352_v14 = vld [vmem:[#allocation20 + $0x80] sm:$0xff]  ;;  %v4389_v52 = vld [vmem:[#allocation20 + $0x1a8] sm:$0xff] }
0x1012   :  { %v4356_v4 = vld [vmem:[#allocation20 + $0xa0] sm:$0xff] }
0x1014   :  { %4163 = vmatpush1.bf16.msra.mxu0 %v10115_v45  ;;  %4236 = vmatpush1.bf16.msra.mxu1 %v10118_v15  ;;  %v12283_v45 = vpack.c.bf16 %v4359_v1, %v4355_v39  ;;  %v12285_v15 = vpack.c.bf16 %v4356_v4, %v4352_v14  ;;  %v4387_v39 = vld [vmem:[#allocation20 + $0x198] sm:$0xff]  ;;  %v12329_v1 = vpack.c.bf16 %v4389_v52, %v4385_v57  ;;  %v4384_v4 = vld [vmem:[#allocation20 + $0x180] sm:$0xff] }
0x1015   :  { %4164 = vmatprep.subr.bf16.mxu0 %v10123_v10  ;;  %4237 = vmatprep.subr.bf16.mxu1 %v10126_v29  ;;  %v4354_v10 = vld [vmem:[#allocation20 + $0x90] sm:$0xff]  ;;  %v4391_v14 = vld [vmem:[#allocation20 + $0x1b8] sm:$0xff] }
0x1016   :  { %v4358_v29 = vld [vmem:[#allocation20 + $0xb0] sm:$0xff] }
0x1018   :  { %4165 = vmatpush1.bf16.msra.mxu0 %v10121_v18  ;;  %4238 = vmatpush1.bf16.msra.mxu1 %v10124_v59  ;;  %v12288_v18 = vpack.c.bf16 %v4358_v29, %v4354_v10  ;;  %v4361_v59 = vld [vmem:[#allocation20 + $0xc8] sm:$0xff]  ;;  %v4388_v10 = vld [vmem:[#allocation20 + $0x1a0] sm:$0xff]  ;;  %v12331_v29 = vpack.c.bf16 %v4391_v14, %v4387_v39 }
0x1019   :  { %4166 = vmatprep.subr.bf16.mxu0 %v10129_v24  ;;  %4239 = vmatprep.subr.bf16.mxu1 %v10132_v12  ;;  %v4365_v24 = vld [vmem:[#allocation20 + $0xe8] sm:$0xff]  ;;  %v4363_v12 = vld [vmem:[#allocation20 + $0xd8] sm:$0xff] }
0x101c   :  { %4167 = vmatpush1.bf16.msra.mxu0 %v10127_v36  ;;  %4240 = vmatpush1.bf16.msra.mxu1 %v10130_v43  ;;  %v12293_v36 = vpack.c.bf16 %v4365_v24, %v4361_v59  ;;  %v4367_v43 = vld [vmem:[#allocation20 + $0xf8] sm:$0xff]  ;;  %v12333_v59 = vpack.c.bf16 %v4388_v10, %v4384_v4  ;;  %v4386_v24 = vld [vmem:[#allocation20 + $0x190] sm:$0xff] }
0x101d   :  { %4168 = vmatprep.subr.bf16.mxu0 %v10135_v58  ;;  %4241 = vmatprep.subr.bf16.mxu1 %v10138_v13  ;;  %v4360_v58 = vld [vmem:[#allocation20 + $0xc0] sm:$0xff] }
0x101e   :  { %v4364_v13 = vld [vmem:[#allocation20 + $0xe0] sm:$0xff] }
0x1020   :  { %4169 = vmatpush1.bf16.msra.mxu0 %v10133_v23  ;;  %4242 = vmatpush1.bf16.msra.mxu1 %v10136_v26  ;;  %v12295_v23 = vpack.c.bf16 %v4367_v43, %v4363_v12  ;;  %v12297_v26 = vpack.c.bf16 %v4364_v13, %v4360_v58  ;;  %v4390_v12 = vld [vmem:[#allocation20 + $0x1b0] sm:$0xff]  ;;  %v4393_v58 = vld [vmem:[#allocation20 + $0x1c8] sm:$0xff] }
0x1021   :  { %4170 = vmatprep.subr.bf16.mxu0 %v10141_v46  ;;  %4243 = vmatprep.subr.bf16.mxu1 %v10144_v20  ;;  %v4362_v46 = vld [vmem:[#allocation20 + $0xd0] sm:$0xff]  ;;  %v12336_v43 = vpack.c.bf16 %v4390_v12, %v4386_v24  ;;  %v4397_v13 = vld [vmem:[#allocation20 + $0x1e8] sm:$0xff] }
0x1022   :  { %v4366_v20 = vld [vmem:[#allocation20 + $0xf0] sm:$0xff] }
0x1024   :  { %4171 = vmatpush1.bf16.msra.mxu0 %v10139_v2  ;;  %4244 = vmatpush1.bf16.msra.mxu1 %v10142_v41  ;;  %v12300_v2 = vpack.c.bf16 %v4366_v20, %v4362_v46  ;;  %v4369_v41 = vld [vmem:[#allocation20 + $0x108] sm:$0xff]  ;;  %v4395_v46 = vld [vmem:[#allocation20 + $0x1d8] sm:$0xff]  ;;  %v12341_v20 = vpack.c.bf16 %v4397_v13, %v4393_v58 }
0x1025   :  { %4172 = vmatprep.subr.bf16.mxu0 %v10147_v17  ;;  %4245 = vmatprep.subr.bf16.mxu1 %v10150_v8  ;;  %v4373_v17 = vld [vmem:[#allocation20 + $0x128] sm:$0xff]  ;;  %v4371_v8 = vld [vmem:[#allocation20 + $0x118] sm:$0xff] }
0x1028   :  { %4173 = vmatpush1.bf16.msra.mxu0 %v10145_v3  ;;  %4246 = vmatpush1.bf16.msra.mxu1 %v10148_v44  ;;  %v12305_v3 = vpack.c.bf16 %v4373_v17, %v4369_v41  ;;  %v4375_v44 = vld [vmem:[#allocation20 + $0x138] sm:$0xff]  ;;  %v4392_v17 = vld [vmem:[#allocation20 + $0x1c0] sm:$0xff] }
0x1029   :  { %8966 = vmatprep.subr.bf16.mxu0 %v12257_v34  ;;  %8998 = vmatprep.subr.bf16.mxu1 %v12259_v48  ;;  %v4399_v41 = vld [vmem:[#allocation20 + $0x1f8] sm:$0xff] }
0x102b   :  { %4191 = vmatmul.mubr.bf16.vlgmr.msra.gmra.mrb[64].mxu0 %v3940_v54  ;;  %4264 = vmatmul.mubr.bf16.vlgmr.msra.gmra.mrb[64].mxu1 %v3940_v54  ;;  %v4368_v54 = vld [vmem:[#allocation20 + $0x100] sm:$0xff] }
0x102c   :  { %4200 = vmatprep.mubr.bf16.mxu0 %v13453_v35  ;;  %4273 = vmatprep.mubr.bf16.mxu1 %v13453_v35 }
0x102d   :  { %8968 = vmatpush1.bf16.msra.mxu0 %v12261_v7  ;;  %9000 = vmatpush1.bf16.msra.mxu1 %v12264_v27 }
0x102e   :  { %8970 = vmatprep.subr.bf16.mxu0 %v12269_v60  ;;  %9002 = vmatprep.subr.bf16.mxu1 %v12271_v33 }
0x1031   :  { %8972 = vmatpush1.bf16.msra.mxu0 %v12273_v53  ;;  %9004 = vmatpush1.bf16.msra.mxu1 %v12276_v32 }
0x1032   :  { %8974 = vmatprep.subr.bf16.mxu0 %v12281_v40  ;;  %9006 = vmatprep.subr.bf16.mxu1 %v12283_v45 }
0x1033   :  { %4201 = vmatmul.mubr.bf16.gmra.mrb[68].mxu0 %v3941_v5  ;;  %4274 = vmatmul.mubr.bf16.gmra.mrb[68].mxu1 %v3941_v5  ;;  %v4372_v5 = vld [vmem:[#allocation20 + $0x120] sm:$0xff] }
0x1034   :  { %4210 = vmatprep.mubr.bf16.mxu0 %v13453_v35  ;;  %4283 = vmatprep.mubr.bf16.mxu1 %v13453_v35  ;;  %v12309_v30 = vpack.c.bf16 %v4372_v5, %v4368_v54  ;;  %v4394_v5 = vld [vmem:[#allocation20 + $0x1d0] sm:$0xff] }
0x1035   :  { %8976 = vmatpush1.bf16.msra.mxu0 %v12285_v15  ;;  %9008 = vmatpush1.bf16.msra.mxu1 %v12288_v18  ;;  %v12348_v62 = vpack.c.bf16 %v4398_v51, %v4394_v5 }
0x1036   :  { %8978 = vmatprep.subr.bf16.mxu0 %v12293_v36  ;;  %9010 = vmatprep.subr.bf16.mxu1 %v12295_v23 }
0x1039   :  { %8980 = vmatpush1.bf16.msra.mxu0 %v12297_v26  ;;  %9012 = vmatpush1.bf16.msra.mxu1 %v12300_v2 }
0x103a   :  { %8982 = vmatprep.subr.bf16.mxu0 %v12305_v3 }
0x103b   :  { %4211 = vmatmul.mubr.bf16.gmra.mrb[72].mxu0 %v3942_v6  ;;  %4284 = vmatmul.mubr.bf16.gmra.mrb[72].mxu1 %v3942_v6  ;;  %v12307_v6 = vpack.c.bf16 %v4375_v44, %v4371_v8  ;;  %v4396_v8 = vld [vmem:[#allocation20 + $0x1e0] sm:$0xff]  ;;  %v12343_v44 = vpack.c.bf16 %v4399_v41, %v4395_v46 }
0x103c   :  { %4220 = vmatprep.mubr.bf16.mxu0 %v13453_v35  ;;  %4293 = vmatprep.mubr.bf16.mxu1 %v13453_v35  ;;  %v12345_v54 = vpack.c.bf16 %v4396_v8, %v4392_v17 }
0x103d   :  { %9014 = vmatprep.subr.bf16.mxu1 %v12307_v6  ;;  %8984 = vmatpush1.bf16.msra.mxu0 %v12309_v30 }
0x103e   :  { %9016 = vmatpush1.bf16.msra.mxu1 %v12312_v22  ;;  %8986 = vmatprep.subr.bf16.mxu0 %v12317_v42 }
0x103f   :  { %9018 = vmatprep.subr.bf16.mxu1 %v12319_v49 }
0x1041   :  { %8988 = vmatpush1.bf16.msra.mxu0 %v12321_v50 }
0x1042   :  { %9020 = vmatpush1.bf16.msra.mxu1 %v12324_v21  ;;  %8990 = vmatprep.subr.bf16.mxu0 %v12329_v1 }
0x1043   :  { %9022 = vmatprep.subr.bf16.mxu1 %v12331_v29 }
0x1045   :  { %8992 = vmatpush1.bf16.msra.mxu0 %v12333_v59 }
0x1046   :  { %9024 = vmatpush1.bf16.msra.mxu1 %v12336_v43  ;;  %8994 = vmatprep.subr.bf16.mxu0 %v12341_v20 }
0x1047   :  { %9026 = vmatprep.subr.bf16.mxu1 %v12343_v44 }
0x1049   :  { %8996 = vmatpush1.bf16.msra.mxu0 %v12345_v54 }
0x104a   :  { %9028 = vmatpush1.bf16.msra.mxu1 %v12348_v62  ;;  %9030 = vmatprep.subr.bf16.mxu0 %v12257_v34 }
0x104b   :  { %9062 = vmatprep.subr.bf16.mxu1 %v12259_v48 }
0x10de   :  { %v3826_v57 = vpop.f32.mrb[62].mxu0  ;;  %v3897_v52 = vpop.f32.mrb[62].mxu1 }
0x10df   :  { %v3902_v39 = vadd.f32 %v3826_v57, %v2345_v47  ;;  %v3904_v14 = vadd.f32 %v3897_v52, %v2418_v61  ;;  %v3828_v4 = vpop.f32.mrb[63].mxu0  ;;  %v3899_v10 = vpop.f32.mrb[63].mxu1 }
0x10e0   :  { %v3903_v24 = vadd.f32 %v3828_v4, %v2347_v56  ;;  %v3905_v12 = vadd.f32 %v3899_v10, %v2420_v19 }
0x10e1   :  { %v7826_v58 = vmul.f32 -1.442695, %v3902_v39  ;;  %v7828_v0 = vmul.f32 -1.442695, %v3904_v14 }
0x10e2   :  { %v7827_v13 = vmul.f32 -1.442695, %v3903_v24 }
0x10e3   :  { %10439 = vpow2.f32 %v7826_v58 }
0x10e4   :  { %10441 = vpow2.f32 %v7827_v13 }
0x10e5   :  { %10443 = vtanh.f32 %v3905_v12 }
0x10e6   :  { %10445 = vpow2.f32 %v7828_v0 }
0x10ed   :  { %v10440_v9 = vpop.eup %10439 }
0x10ee   :  { %v3915_v46 = vadd.f32 1.0, %v10440_v9  ;;  %v10442_v25 = vpop.eup %10441 }
0x10ef   :  { %v3916_v38 = vadd.f32 1.0, %v10442_v25  ;;  %v10444_v41 = vpop.eup %10443 }
0x10f0   :  { %10447 = vrcp.f32 %v3915_v46  ;;  %v10446_v17 = vpop.eup %10445 }
0x10f1   :  { %10449 = vrcp.f32 %v3916_v38  ;;  %v3917_v31 = vadd.f32 1.0, %v10446_v17 }
0x10f3   :  { %10451 = vrcp.f32 %v3917_v31 }
0x10fa   :  { %v10448_v8 = vpop.eup %10447 }
0x10fb   :  { %v3926_v5 = vmul.f32 %v10448_v8, %v10444_v41  ;;  %v10450_v51 = vpop.eup %10449 }
0x10fc   :  { %v3925_v47 = vmul.f32 %v10450_v51, %v12236_v37 }
0x10fd   :  { %v10452_v0 = vpop.eup %10451 }
0x10fe   :  { %v12364_v28 = vpop.f32.mrb[64].mxu0  ;;  %v12366_v61 = vpop.f32.mrb[64].mxu1  ;;  %v3927_v16 = vadd.f32 %v3926_v5, %v3925_v47 }
0x10ff   :  { %v12368_v56 = vpop.f32.mrb[65].mxu0  ;;  %v12370_v63 = vpop.f32.mrb[65].mxu1 }
0x1100   :  { %v12372_v19 = vpop.f32.mrb[66].mxu0  ;;  %v12374_v57 = vpop.f32.mrb[66].mxu1  ;;  %10453 = vtanh.f32 %v3927_v16 }
0x1101   :  { %v12376_v52 = vpop.f32.mrb[67].mxu0  ;;  %v12378_v39 = vpop.f32.mrb[67].mxu1 }
0x1106   :  { %v12380_v37 = vpop.f32.mrb[68].mxu0  ;;  %v12382_v14 = vpop.f32.mrb[68].mxu1 }
0x1107   :  { %v12384_v4 = vpop.f32.mrb[69].mxu0  ;;  %v12386_v10 = vpop.f32.mrb[69].mxu1 }
0x1108   :  { %13458 = vst [vmem:[#allocation35_spill] sm:$0xff] %v12386_v10  ;;  %v12388_v24 = vpop.f32.mrb[70].mxu0  ;;  %v12390_v12 = vpop.f32.mrb[70].mxu1 }
0x1109   :  { %13459 = vst [vmem:[#allocation36_spill] sm:$0xff] %v12388_v24  ;;  %13460 = vst [vmem:[#allocation37_spill] sm:$0xff] %v12390_v12  ;;  %v12392_v58 = vpop.f32.mrb[71].mxu0  ;;  %v12394_v13 = vpop.f32.mrb[71].mxu1 }
0x110a   :  { %13461 = vst [vmem:[#allocation38_spill] sm:$0xff] %v12392_v58  ;;  %13462 = vst [vmem:[#allocation39_spill] sm:$0xff] %v12394_v13  ;;  %v10454_v9 = vpop.eup %10453 }
0x110b   :  { %v3929_v46 = vmul.f32 %v10454_v9, %v10452_v0 }
0x110d   :  { %v3943_v41 = vpack.c.bf16 %v3929_v46, %v12239_v55  ;;  %v3976_v55 = vld [vmem:[%s13348_s9] sm:$0xf] }
0x110e   :  { %v12396_v25 = vpop.f32.mrb[72].mxu0  ;;  %v12398_v38 = vpop.f32.mrb[72].mxu1 }
0x110f   :  { %13463 = vst [vmem:[#allocation40_spill] sm:$0xff] %v12396_v25  ;;  %13464 = vst [vmem:[#allocation41_spill] sm:$0xff] %v12398_v38  ;;  %v12401_v17 = vpop.f32.mrb[73].mxu0  ;;  %v12403_v8 = vpop.f32.mrb[73].mxu1  ;;  %4221 = vmatmul.mubr.bf16.gmra.mrb[76].mxu0 %v3943_v41  ;;  %4294 = vmatmul.mubr.bf16.gmra.mrb[76].mxu1 %v3943_v41 }
0x1110   :  { %13465 = vst [vmem:[#allocation42_spill] sm:$0xff] %v12401_v17  ;;  %13466 = vst [vmem:[#allocation43_spill] sm:$0xff] %v12403_v8  ;;  %v12405_v5 = vpop.f32.mrb[74].mxu0  ;;  %v12407_v51 = vpop.f32.mrb[74].mxu1  ;;  %4468 = vmatprep.mubr.f32.mxu0 %v13390_v11  ;;  %4539 = vmatprep.mubr.f32.mxu1 %v13390_v11 }
0x1111   :  { %13467 = vst [vmem:[#allocation44_spill] sm:$0xff] %v12405_v5  ;;  %13468 = vst [vmem:[#allocation45_spill] sm:$0xff] %v12407_v51  ;;  %v12409_v31 = vpop.f32.mrb[75].mxu0  ;;  %v12411_v47 = vpop.f32.mrb[75].mxu1  ;;  %v13478_v51 = vld [vmem:[#allocation31_spill] sm:$0xff] }
0x1112   :  { %13469 = vst [vmem:[#allocation46_spill] sm:$0xff] %v12409_v31  ;;  %13470 = vst [vmem:[#allocation47_spill] sm:$0xff] %v12411_v47  ;;  %v13477_v47 = vld [vmem:[#allocation33_spill] sm:$0xff]  ;;  %v12470_v5 = vrot.slane %v3976_v55, %v13478_v51 }
0x1113   :  { %v12467_v31 = vrot.slane %v3976_v55, %v13477_v47 }
0x1114   :  { %v4266_v47 = vadd.f32 %v12366_v61, %v12470_v5 }
0x1117   :  { %4469 = vmatmul.mubr.f32.vlgmr.msra.gmra.mrb[80].mxu0 %v13390_v11  ;;  %4540 = vmatmul.mubr.f32.vlgmr.msra.gmra.mrb[80].mxu1 %v13390_v11 }
0x1118   :  { %9032 = vmatpush1.bf16.msra.mxu0 %v12261_v7  ;;  %9064 = vmatpush1.bf16.msra.mxu1 %v12264_v27 }
0x1119   :  { %9034 = vmatprep.subr.bf16.mxu0 %v12269_v60  ;;  %9066 = vmatprep.subr.bf16.mxu1 %v12271_v33 }
0x111a   :  { %4644 = vmatprep.mubr.f32.mxu0 %v13390_v11  ;;  %4715 = vmatprep.mubr.f32.mxu1 %v13390_v11 }
0x111c   :  { %9036 = vmatpush1.bf16.msra.mxu0 %v12273_v53  ;;  %9068 = vmatpush1.bf16.msra.mxu1 %v12276_v32 }
0x111d   :  { %9038 = vmatprep.subr.bf16.mxu0 %v12281_v40  ;;  %9070 = vmatprep.subr.bf16.mxu1 %v12283_v45 }
0x1120   :  { %9040 = vmatpush1.bf16.msra.mxu0 %v12285_v15  ;;  %9072 = vmatpush1.bf16.msra.mxu1 %v12288_v18 }
0x1121   :  { %9042 = vmatprep.subr.bf16.mxu0 %v12293_v36  ;;  %9074 = vmatprep.subr.bf16.mxu1 %v12295_v23 }
0x1124   :  { %9044 = vmatpush1.bf16.msra.mxu0 %v12297_v26  ;;  %9076 = vmatpush1.bf16.msra.mxu1 %v12300_v2 }
0x1125   :  { %9046 = vmatprep.subr.bf16.mxu0 %v12305_v3  ;;  %9078 = vmatprep.subr.bf16.mxu1 %v12307_v6 }
0x1128   :  { %9048 = vmatpush1.bf16.msra.mxu0 %v12309_v30  ;;  %9080 = vmatpush1.bf16.msra.mxu1 %v12312_v22 }
0x1129   :  { %9050 = vmatprep.subr.bf16.mxu0 %v12317_v42  ;;  %9082 = vmatprep.subr.bf16.mxu1 %v12319_v49 }
0x112c   :  { %9052 = vmatpush1.bf16.msra.mxu0 %v12321_v50  ;;  %9084 = vmatpush1.bf16.msra.mxu1 %v12324_v21 }
0x112d   :  { %9054 = vmatprep.subr.bf16.mxu0 %v12329_v1  ;;  %9086 = vmatprep.subr.bf16.mxu1 %v12331_v29 }
0x1130   :  { %9056 = vmatpush1.bf16.msra.mxu0 %v12333_v59  ;;  %9088 = vmatpush1.bf16.msra.mxu1 %v12336_v43 }
0x1131   :  { %9058 = vmatprep.subr.bf16.mxu0 %v12341_v20  ;;  %9090 = vmatprep.subr.bf16.mxu1 %v12343_v44 }
0x1134   :  { %9060 = vmatpush1.bf16.msra.mxu0 %v12345_v54  ;;  %9092 = vmatpush1.bf16.msra.mxu1 %v12348_v62 }
0x1135   :  { %9094 = vmatprep.subr.bf16.mxu0 %v12257_v34  ;;  %9126 = vmatprep.subr.bf16.mxu1 %v12259_v48 }
0x11e2   :  { %v12454_v16 = vpop.f32.mrb[76].mxu0  ;;  %v12456_v0 = vpop.f32.mrb[76].mxu1 }
0x11e3   :  { %13471 = vst [vmem:[#allocation48_spill] sm:$0xff] %v12454_v16  ;;  %13472 = vst [vmem:[#allocation49_spill] sm:$0xff] %v12456_v0  ;;  %v12458_v9 = vpop.f32.mrb[77].mxu0  ;;  %v12460_v46 = vpop.f32.mrb[77].mxu1  ;;  %v13481_v16 = vld [vmem:[#allocation34_spill] sm:$0xff] }
0x11e4   :  { %13473 = vst [vmem:[#allocation50_spill] sm:$0xff] %v12458_v9  ;;  %13474 = vst [vmem:[#allocation51_spill] sm:$0xff] %v12460_v46  ;;  %v12462_v41 = vpop.f32.mrb[78].mxu0  ;;  %v12464_v35 = vpop.f32.mrb[78].mxu1  ;;  %v12477_v0 = vrot.slane %v3976_v55, %v13481_v16  ;;  %v13482_v9 = vld [vmem:[#allocation32_spill] sm:$0xff] }
0x11e5   :  { %13475 = vst [vmem:[#allocation52_spill] sm:$0xff] %v12462_v41  ;;  %13476 = vst [vmem:[#allocation53_spill] sm:$0xff] %v12464_v35  ;;  %v12472_v8 = vpop.f32.mrb[79].mxu0  ;;  %v12474_v17 = vpop.f32.mrb[79].mxu1  ;;  %v12480_v38 = vrot.slane %v3976_v55, %v13482_v9  ;;  %v4193_v41 = vadd.f32 %v12364_v28, %v12467_v31 }
0x11e6   :  { %13479 = vst [vmem:[#allocation54_spill] sm:$0xff] %v12472_v8  ;;  %13480 = vst [vmem:[#allocation55_spill] sm:$0xff] %v12474_v17  ;;  %v4195_v51 = vadd.f32 %v12368_v56, %v12477_v0 }
0x11e7   :  { %v4268_v8 = vadd.f32 %v12370_v63, %v12480_v38 }
0x11ea   :  { %v4470_v35 = vpop.f32.mrb[80].mxu0  ;;  %v4541_v17 = vpop.f32.mrb[80].mxu1 }
0x11eb   :  { %v4546_v46 = vadd.f32 %v4470_v35, %v4193_v41  ;;  %v4548_v16 = vadd.f32 %v4541_v17, %v4266_v47  ;;  %v4472_v25 = vpop.f32.mrb[81].mxu0  ;;  %v4543_v13 = vpop.f32.mrb[81].mxu1 }
0x11ec   :  { %v4547_v55 = vadd.f32 %v4472_v25, %v4195_v51  ;;  %v4549_v9 = vadd.f32 %v4543_v13, %v4268_v8 }
0x11ed   :  { %v7861_v58 = vmul.f32 -1.442695, %v4546_v46  ;;  %v7863_v28 = vmul.f32 -1.442695, %v4548_v16  ;;  %v4199_v16 = vadd.f32 %v12376_v52, %v12477_v0 }
0x11ee   :  { %v7862_v12 = vmul.f32 -1.442695, %v4547_v55 }
0x11ef   :  { %10455 = vpow2.f32 %v7861_v58 }
0x11f0   :  { %10457 = vpow2.f32 %v7862_v12 }
0x11f1   :  { %10459 = vtanh.f32 %v4549_v9  ;;  %v4272_v9 = vadd.f32 %v12378_v39, %v12480_v38 }
0x11f2   :  { %10461 = vpow2.f32 %v7863_v28 }
0x11f9   :  { %v10456_v61 = vpop.eup %10455 }
0x11fa   :  { %v4559_v24 = vadd.f32 1.0, %v10456_v61  ;;  %v10458_v56 = vpop.eup %10457 }
0x11fb   :  { %v4560_v63 = vadd.f32 1.0, %v10458_v56  ;;  %v10460_v10 = vpop.eup %10459 }
0x11fc   :  { %10463 = vrcp.f32 %v4559_v24  ;;  %v10462_v35 = vpop.eup %10461  ;;  %v4270_v24 = vadd.f32 %v12374_v57, %v12470_v5 }
0x11fd   :  { %10465 = vrcp.f32 %v4560_v63  ;;  %v4561_v25 = vadd.f32 1.0, %v10462_v35 }
0x11ff   :  { %10467 = vrcp.f32 %v4561_v25 }
0x1206   :  { %v10464_v17 = vpop.eup %10463 }
0x1207   :  { %v4570_v47 = vmul.f32 %v10464_v17, %v10460_v10  ;;  %v10466_v41 = vpop.eup %10465  ;;  %v4197_v10 = vadd.f32 %v12372_v19, %v12467_v31 }
0x1208   :  { %v4569_v13 = vmul.f32 0.0, %v10466_v41 }
0x1209   :  { %v10468_v12 = vpop.eup %10467 }
0x120a   :  { %v12490_v8 = vadd.f32 %v4570_v47, %v4569_v13 }
0x120c   :  { %10469 = vtanh.f32 %v12490_v8 }
0x1216   :  { %v10470_v58 = vpop.eup %10469 }
0x1217   :  { %v12493_v51 = vmul.f32 %v10470_v58, %v10468_v12 }
0x1219   :  { %4645 = vmatmul.mubr.f32.vlgmr.msra.gmra.mrb[82].mxu0 %v12493_v51  ;;  %4716 = vmatmul.mubr.f32.vlgmr.msra.gmra.mrb[82].mxu1 %v12493_v51 }
0x121a   :  { %9096 = vmatpush1.bf16.msra.mxu0 %v12261_v7  ;;  %9128 = vmatpush1.bf16.msra.mxu1 %v12264_v27 }
0x121b   :  { %9098 = vmatprep.subr.bf16.mxu0 %v12269_v60  ;;  %9130 = vmatprep.subr.bf16.mxu1 %v12271_v33 }
0x121c   :  { %4821 = vmatprep.mubr.f32.mxu0 %v13390_v11  ;;  %4892 = vmatprep.mubr.f32.mxu1 %v13390_v11 }
0x121e   :  { %9100 = vmatpush1.bf16.msra.mxu0 %v12273_v53  ;;  %9132 = vmatpush1.bf16.msra.mxu1 %v12276_v32 }
0x121f   :  { %9102 = vmatprep.subr.bf16.mxu0 %v12281_v40  ;;  %9134 = vmatprep.subr.bf16.mxu1 %v12283_v45 }
0x1222   :  { %9104 = vmatpush1.bf16.msra.mxu0 %v12285_v15  ;;  %9136 = vmatpush1.bf16.msra.mxu1 %v12288_v18 }
0x1223   :  { %9106 = vmatprep.subr.bf16.mxu0 %v12293_v36  ;;  %9138 = vmatprep.subr.bf16.mxu1 %v12295_v23 }
0x1226   :  { %9108 = vmatpush1.bf16.msra.mxu0 %v12297_v26  ;;  %9140 = vmatpush1.bf16.msra.mxu1 %v12300_v2 }
0x1227   :  { %9110 = vmatprep.subr.bf16.mxu0 %v12305_v3  ;;  %9142 = vmatprep.subr.bf16.mxu1 %v12307_v6 }
0x122a   :  { %9112 = vmatpush1.bf16.msra.mxu0 %v12309_v30  ;;  %9144 = vmatpush1.bf16.msra.mxu1 %v12312_v22 }
0x122b   :  { %9114 = vmatprep.subr.bf16.mxu0 %v12317_v42  ;;  %9146 = vmatprep.subr.bf16.mxu1 %v12319_v49 }
0x122e   :  { %9116 = vmatpush1.bf16.msra.mxu0 %v12321_v50  ;;  %9148 = vmatpush1.bf16.msra.mxu1 %v12324_v21 }
0x122f   :  { %9118 = vmatprep.subr.bf16.mxu0 %v12329_v1  ;;  %9150 = vmatprep.subr.bf16.mxu1 %v12331_v29 }
0x1232   :  { %9120 = vmatpush1.bf16.msra.mxu0 %v12333_v59  ;;  %9152 = vmatpush1.bf16.msra.mxu1 %v12336_v43 }
0x1233   :  { %9122 = vmatprep.subr.bf16.mxu0 %v12341_v20  ;;  %9154 = vmatprep.subr.bf16.mxu1 %v12343_v44 }
0x1236   :  { %9124 = vmatpush1.bf16.msra.mxu0 %v12345_v54  ;;  %9156 = vmatpush1.bf16.msra.mxu1 %v12348_v62 }
0x1237   :  { %9158 = vmatprep.subr.bf16.mxu0 %v12257_v34  ;;  %9190 = vmatprep.subr.bf16.mxu1 %v12259_v48 }
0x12ec   :  { %v4646_v46 = vpop.f32.mrb[82].mxu0  ;;  %v4717_v55 = vpop.f32.mrb[82].mxu1 }
0x12ed   :  { %v4722_v28 = vadd.f32 %v4646_v46, %v4197_v10  ;;  %v4724_v61 = vadd.f32 %v4717_v55, %v4270_v24  ;;  %v4648_v56 = vpop.f32.mrb[83].mxu0  ;;  %v4719_v63 = vpop.f32.mrb[83].mxu1 }
0x12ee   :  { %v4723_v35 = vadd.f32 %v4648_v56, %v4199_v16  ;;  %v4725_v17 = vadd.f32 %v4719_v63, %v4272_v9  ;;  %v4276_v56 = vadd.f32 %v12382_v14, %v12470_v5  ;;  %v4205_v63 = vadd.f32 %v12384_v4, %v12477_v0 }
0x12ef   :  { %v7864_v47 = vmul.f32 -1.442695, %v4722_v28  ;;  %v7866_v19 = vmul.f32 -1.442695, %v4724_v61 }
0x12f0   :  { %v7865_v41 = vmul.f32 -1.442695, %v4723_v35  ;;  %v13483_v35 = vld [vmem:[#allocation35_spill] sm:$0xff] }
0x12f1   :  { %10471 = vpow2.f32 %v7864_v47 }
0x12f2   :  { %10473 = vpow2.f32 %v7865_v41 }
0x12f3   :  { %10475 = vtanh.f32 %v4725_v17  ;;  %v4278_v17 = vadd.f32 %v13483_v35, %v12480_v38 }
0x12f4   :  { %10477 = vpow2.f32 %v7866_v19 }
0x12fb   :  { %v10472_v57 = vpop.eup %10471 }
0x12fc   :  { %v4735_v25 = vadd.f32 1.0, %v10472_v57  ;;  %v10474_v52 = vpop.eup %10473 }
0x12fd   :  { %v4736_v39 = vadd.f32 1.0, %v10474_v52  ;;  %v10476_v13 = vpop.eup %10475 }
0x12fe   :  { %10479 = vrcp.f32 %v4735_v25  ;;  %v10478_v12 = vpop.eup %10477 }
0x12ff   :  { %10481 = vrcp.f32 %v4736_v39  ;;  %v4737_v16 = vadd.f32 1.0, %v10478_v12 }
0x1301   :  { %10483 = vrcp.f32 %v4737_v16 }
0x1308   :  { %v10480_v58 = vpop.eup %10479 }
0x1309   :  { %v4746_v10 = vmul.f32 %v10480_v58, %v10476_v13  ;;  %v10482_v24 = vpop.eup %10481 }
0x130a   :  { %v4745_v9 = vmul.f32 %v10482_v24, %v12490_v8  ;;  %v4203_v8 = vadd.f32 %v12380_v37, %v12467_v31 }
0x130b   :  { %v10484_v55 = vpop.eup %10483 }
0x130c   :  { %v12540_v46 = vadd.f32 %v4746_v10, %v4745_v9 }
0x130e   :  { %10485 = vtanh.f32 %v12540_v46 }
0x1318   :  { %v10486_v28 = vpop.eup %10485 }
0x1319   :  { %v12543_v61 = vmul.f32 %v10486_v28, %v10484_v55 }
0x131b   :  { %4822 = vmatmul.mubr.f32.vlgmr.msra.gmra.mrb[84].mxu0 %v12543_v61  ;;  %4893 = vmatmul.mubr.f32.vlgmr.msra.gmra.mrb[84].mxu1 %v12543_v61 }
0x131c   :  { %9160 = vmatpush1.bf16.msra.mxu0 %v12261_v7  ;;  %9192 = vmatpush1.bf16.msra.mxu1 %v12264_v27 }
0x131d   :  { %9162 = vmatprep.subr.bf16.mxu0 %v12269_v60  ;;  %9194 = vmatprep.subr.bf16.mxu1 %v12271_v33 }
0x131e   :  { %4998 = vmatprep.mubr.f32.mxu0 %v13390_v11  ;;  %5069 = vmatprep.mubr.f32.mxu1 %v13390_v11 }
0x1320   :  { %9164 = vmatpush1.bf16.msra.mxu0 %v12273_v53  ;;  %9196 = vmatpush1.bf16.msra.mxu1 %v12276_v32 }
0x1321   :  { %9166 = vmatprep.subr.bf16.mxu0 %v12281_v40  ;;  %9198 = vmatprep.subr.bf16.mxu1 %v12283_v45 }
0x1324   :  { %9168 = vmatpush1.bf16.msra.mxu0 %v12285_v15  ;;  %9200 = vmatpush1.bf16.msra.mxu1 %v12288_v18 }
0x1325   :  { %9170 = vmatprep.subr.bf16.mxu0 %v12293_v36  ;;  %9202 = vmatprep.subr.bf16.mxu1 %v12295_v23 }
0x1328   :  { %9172 = vmatpush1.bf16.msra.mxu0 %v12297_v26  ;;  %9204 = vmatpush1.bf16.msra.mxu1 %v12300_v2 }
0x1329   :  { %9174 = vmatprep.subr.bf16.mxu0 %v12305_v3  ;;  %9206 = vmatprep.subr.bf16.mxu1 %v12307_v6 }
0x132c   :  { %9176 = vmatpush1.bf16.msra.mxu0 %v12309_v30  ;;  %9208 = vmatpush1.bf16.msra.mxu1 %v12312_v22 }
0x132d   :  { %9178 = vmatprep.subr.bf16.mxu0 %v12317_v42  ;;  %9210 = vmatprep.subr.bf16.mxu1 %v12319_v49 }
0x1330   :  { %9180 = vmatpush1.bf16.msra.mxu0 %v12321_v50  ;;  %9212 = vmatpush1.bf16.msra.mxu1 %v12324_v21 }
0x1331   :  { %9182 = vmatprep.subr.bf16.mxu0 %v12329_v1  ;;  %9214 = vmatprep.subr.bf16.mxu1 %v12331_v29 }
0x1334   :  { %9184 = vmatpush1.bf16.msra.mxu0 %v12333_v59  ;;  %9216 = vmatpush1.bf16.msra.mxu1 %v12336_v43 }
0x1335   :  { %9186 = vmatprep.subr.bf16.mxu0 %v12341_v20  ;;  %9218 = vmatprep.subr.bf16.mxu1 %v12343_v44 }
0x1338   :  { %9188 = vmatpush1.bf16.msra.mxu0 %v12345_v54  ;;  %9220 = vmatpush1.bf16.msra.mxu1 %v12348_v62 }
0x1339   :  { %9222 = vmatprep.subr.bf16.mxu0 %v12257_v34  ;;  %9254 = vmatprep.subr.bf16.mxu1 %v12259_v48 }
0x13ee   :  { %v4823_v47 = vpop.f32.mrb[84].mxu0  ;;  %v4894_v41 = vpop.f32.mrb[84].mxu1 }
0x13ef   :  { %v4899_v19 = vadd.f32 %v4823_v47, %v4203_v8  ;;  %v4901_v57 = vadd.f32 %v4894_v41, %v4276_v56  ;;  %v4825_v25 = vpop.f32.mrb[85].mxu0  ;;  %v4896_v52 = vpop.f32.mrb[85].mxu1 }
0x13f0   :  { %v4900_v39 = vadd.f32 %v4825_v25, %v4205_v63  ;;  %v4902_v13 = vadd.f32 %v4896_v52, %v4278_v17  ;;  %v13486_v52 = vld [vmem:[#allocation38_spill] sm:$0xff] }
0x13f1   :  { %v7867_v12 = vmul.f32 -1.442695, %v4899_v19  ;;  %v7869_v37 = vmul.f32 -1.442695, %v4901_v57  ;;  %v13485_v57 = vld [vmem:[#allocation37_spill] sm:$0xff] }
0x13f2   :  { %v7868_v58 = vmul.f32 -1.442695, %v4900_v39  ;;  %v4280_v25 = vadd.f32 %v13485_v57, %v12470_v5  ;;  %v4209_v39 = vadd.f32 %v13486_v52, %v12477_v0 }
0x13f3   :  { %10487 = vpow2.f32 %v7867_v12 }
0x13f4   :  { %10489 = vpow2.f32 %v7868_v58 }
0x13f5   :  { %10491 = vtanh.f32 %v4902_v13  ;;  %v13487_v13 = vld [vmem:[#allocation39_spill] sm:$0xff] }
0x13f6   :  { %10493 = vpow2.f32 %v7869_v37  ;;  %v4282_v12 = vadd.f32 %v13487_v13, %v12480_v38 }
0x13fd   :  { %v10488_v14 = vpop.eup %10487 }
0x13fe   :  { %v4912_v10 = vadd.f32 1.0, %v10488_v14  ;;  %v10490_v4 = vpop.eup %10489 }
0x13ff   :  { %v4913_v24 = vadd.f32 1.0, %v10490_v4  ;;  %v10492_v16 = vpop.eup %10491 }
0x1400   :  { %10495 = vrcp.f32 %v4912_v10  ;;  %v10494_v9 = vpop.eup %10493 }
0x1401   :  { %10497 = vrcp.f32 %v4913_v24  ;;  %v4914_v56 = vadd.f32 1.0, %v10494_v9 }
0x1403   :  { %10499 = vrcp.f32 %v4914_v56 }
0x140a   :  { %v10496_v55 = vpop.eup %10495 }
0x140b   :  { %v4923_v28 = vmul.f32 %v10496_v55, %v10492_v16  ;;  %v10498_v8 = vpop.eup %10497 }
0x140c   :  { %v4922_v63 = vmul.f32 %v10498_v8, %v12540_v46  ;;  %v13484_v46 = vld [vmem:[#allocation36_spill] sm:$0xff] }
0x140d   :  { %v10500_v17 = vpop.eup %10499  ;;  %v4207_v19 = vadd.f32 %v13484_v46, %v12467_v31 }
0x140e   :  { %v12590_v35 = vadd.f32 %v4923_v28, %v4922_v63 }
0x1410   :  { %10501 = vtanh.f32 %v12590_v35 }
0x141a   :  { %v10502_v47 = vpop.eup %10501 }
0x141b   :  { %v12593_v41 = vmul.f32 %v10502_v47, %v10500_v17 }
0x141d   :  { %4999 = vmatmul.mubr.f32.vlgmr.msra.gmra.mrb[86].mxu0 %v12593_v41  ;;  %5070 = vmatmul.mubr.f32.vlgmr.msra.gmra.mrb[86].mxu1 %v12593_v41 }
0x141e   :  { %9224 = vmatpush1.bf16.msra.mxu0 %v12261_v7  ;;  %9256 = vmatpush1.bf16.msra.mxu1 %v12264_v27 }
0x141f   :  { %9226 = vmatprep.subr.bf16.mxu0 %v12269_v60  ;;  %9258 = vmatprep.subr.bf16.mxu1 %v12271_v33 }
0x1420   :  { %5175 = vmatprep.mubr.f32.mxu0 %v13390_v11  ;;  %5246 = vmatprep.mubr.f32.mxu1 %v13390_v11 }
0x1422   :  { %9228 = vmatpush1.bf16.msra.mxu0 %v12273_v53  ;;  %9260 = vmatpush1.bf16.msra.mxu1 %v12276_v32 }
0x1423   :  { %9230 = vmatprep.subr.bf16.mxu0 %v12281_v40  ;;  %9262 = vmatprep.subr.bf16.mxu1 %v12283_v45 }
0x1426   :  { %9232 = vmatpush1.bf16.msra.mxu0 %v12285_v15  ;;  %9264 = vmatpush1.bf16.msra.mxu1 %v12288_v18 }
0x1427   :  { %9234 = vmatprep.subr.bf16.mxu0 %v12293_v36  ;;  %9266 = vmatprep.subr.bf16.mxu1 %v12295_v23 }
0x142a   :  { %9236 = vmatpush1.bf16.msra.mxu0 %v12297_v26  ;;  %9268 = vmatpush1.bf16.msra.mxu1 %v12300_v2 }
0x142b   :  { %9238 = vmatprep.subr.bf16.mxu0 %v12305_v3  ;;  %9270 = vmatprep.subr.bf16.mxu1 %v12307_v6 }
0x142e   :  { %9240 = vmatpush1.bf16.msra.mxu0 %v12309_v30  ;;  %9272 = vmatpush1.bf16.msra.mxu1 %v12312_v22 }
0x142f   :  { %9242 = vmatprep.subr.bf16.mxu0 %v12317_v42  ;;  %9274 = vmatprep.subr.bf16.mxu1 %v12319_v49 }
0x1432   :  { %9244 = vmatpush1.bf16.msra.mxu0 %v12321_v50  ;;  %9276 = vmatpush1.bf16.msra.mxu1 %v12324_v21 }
0x1433   :  { %9246 = vmatprep.subr.bf16.mxu0 %v12329_v1  ;;  %9278 = vmatprep.subr.bf16.mxu1 %v12331_v29 }
0x1436   :  { %9248 = vmatpush1.bf16.msra.mxu0 %v12333_v59  ;;  %9280 = vmatpush1.bf16.msra.mxu1 %v12336_v43 }
0x1437   :  { %9250 = vmatprep.subr.bf16.mxu0 %v12341_v20  ;;  %9282 = vmatprep.subr.bf16.mxu1 %v12343_v44 }
0x143a   :  { %9252 = vmatpush1.bf16.msra.mxu0 %v12345_v54  ;;  %9284 = vmatpush1.bf16.msra.mxu1 %v12348_v62 }
0x143b   :  { %9286 = vmatprep.subr.bf16.mxu0 %v12257_v34  ;;  %9318 = vmatprep.subr.bf16.mxu1 %v12259_v48 }
0x14f0   :  { %v5000_v58 = vpop.f32.mrb[86].mxu0  ;;  %v5071_v37 = vpop.f32.mrb[86].mxu1 }
0x14f1   :  { %v5076_v14 = vadd.f32 %v5000_v58, %v4207_v19  ;;  %v5078_v10 = vadd.f32 %v5071_v37, %v4280_v25  ;;  %v5002_v4 = vpop.f32.mrb[87].mxu0  ;;  %v5073_v24 = vpop.f32.mrb[87].mxu1 }
0x14f2   :  { %v5077_v16 = vadd.f32 %v5002_v4, %v4209_v39  ;;  %v5079_v9 = vadd.f32 %v5073_v24, %v4282_v12  ;;  %v13489_v4 = vld [vmem:[#allocation41_spill] sm:$0xff] }
0x14f3   :  { %v7870_v55 = vmul.f32 -1.442695, %v5076_v14  ;;  %v7872_v8 = vmul.f32 -1.442695, %v5078_v10  ;;  %v4286_v24 = vadd.f32 %v13489_v4, %v12470_v5 }
0x14f4   :  { %v7871_v28 = vmul.f32 -1.442695, %v5077_v16  ;;  %v13490_v16 = vld [vmem:[#allocation42_spill] sm:$0xff] }
0x14f5   :  { %10503 = vpow2.f32 %v7870_v55  ;;  %v13491_v55 = vld [vmem:[#allocation43_spill] sm:$0xff] }
0x14f6   :  { %10505 = vpow2.f32 %v7871_v28  ;;  %v4288_v28 = vadd.f32 %v13491_v55, %v12480_v38 }
0x14f7   :  { %10507 = vtanh.f32 %v5079_v9  ;;  %v4215_v9 = vadd.f32 %v13490_v16, %v12477_v0 }
0x14f8   :  { %10509 = vpow2.f32 %v7872_v8 }
0x14ff   :  { %v10504_v56 = vpop.eup %10503 }
0x1500   :  { %v5089_v63 = vadd.f32 1.0, %v10504_v56  ;;  %v10506_v17 = vpop.eup %10505 }
0x1501   :  { %v5090_v47 = vadd.f32 1.0, %v10506_v17  ;;  %v10508_v46 = vpop.eup %10507 }
0x1502   :  { %10511 = vrcp.f32 %v5089_v63  ;;  %v10510_v19 = vpop.eup %10509 }
0x1503   :  { %10513 = vrcp.f32 %v5090_v47  ;;  %v5091_v39 = vadd.f32 1.0, %v10510_v19 }
0x1505   :  { %10515 = vrcp.f32 %v5091_v39 }
0x150c   :  { %v10512_v57 = vpop.eup %10511 }
0x150d   :  { %v5100_v25 = vmul.f32 %v10512_v57, %v10508_v46  ;;  %v10514_v52 = vpop.eup %10513 }
0x150e   :  { %v5099_v13 = vmul.f32 %v10514_v52, %v12590_v35  ;;  %v13488_v35 = vld [vmem:[#allocation40_spill] sm:$0xff] }
0x150f   :  { %v10516_v58 = vpop.eup %10515  ;;  %v4213_v10 = vadd.f32 %v13488_v35, %v12467_v31 }
0x1510   :  { %v12640_v12 = vadd.f32 %v5100_v25, %v5099_v13 }
0x1512   :  { %10517 = vtanh.f32 %v12640_v12 }
0x151c   :  { %v10518_v37 = vpop.eup %10517 }
0x151d   :  { %v12643_v14 = vmul.f32 %v10518_v37, %v10516_v58 }
0x151f   :  { %5176 = vmatmul.mubr.f32.vlgmr.msra.gmra.mrb[88].mxu0 %v12643_v14  ;;  %5247 = vmatmul.mubr.f32.vlgmr.msra.gmra.mrb[88].mxu1 %v12643_v14 }
0x1520   :  { %9288 = vmatpush1.bf16.msra.mxu0 %v12261_v7  ;;  %9320 = vmatpush1.bf16.msra.mxu1 %v12264_v27 }
0x1521   :  { %9290 = vmatprep.subr.bf16.mxu0 %v12269_v60  ;;  %9322 = vmatprep.subr.bf16.mxu1 %v12271_v33 }
0x1522   :  { %5352 = vmatprep.mubr.f32.mxu0 %v13390_v11  ;;  %5423 = vmatprep.mubr.f32.mxu1 %v13390_v11 }
0x1524   :  { %9292 = vmatpush1.bf16.msra.mxu0 %v12273_v53  ;;  %9324 = vmatpush1.bf16.msra.mxu1 %v12276_v32 }
0x1525   :  { %9294 = vmatprep.subr.bf16.mxu0 %v12281_v40  ;;  %9326 = vmatprep.subr.bf16.mxu1 %v12283_v45 }
0x1528   :  { %9296 = vmatpush1.bf16.msra.mxu0 %v12285_v15  ;;  %9328 = vmatpush1.bf16.msra.mxu1 %v12288_v18 }
0x1529   :  { %9298 = vmatprep.subr.bf16.mxu0 %v12293_v36  ;;  %9330 = vmatprep.subr.bf16.mxu1 %v12295_v23 }
0x152c   :  { %9300 = vmatpush1.bf16.msra.mxu0 %v12297_v26  ;;  %9332 = vmatpush1.bf16.msra.mxu1 %v12300_v2 }
0x152d   :  { %9302 = vmatprep.subr.bf16.mxu0 %v12305_v3  ;;  %9334 = vmatprep.subr.bf16.mxu1 %v12307_v6 }
0x1530   :  { %9304 = vmatpush1.bf16.msra.mxu0 %v12309_v30  ;;  %9336 = vmatpush1.bf16.msra.mxu1 %v12312_v22 }
0x1531   :  { %9306 = vmatprep.subr.bf16.mxu0 %v12317_v42  ;;  %9338 = vmatprep.subr.bf16.mxu1 %v12319_v49 }
0x1534   :  { %9308 = vmatpush1.bf16.msra.mxu0 %v12321_v50  ;;  %9340 = vmatpush1.bf16.msra.mxu1 %v12324_v21 }
0x1535   :  { %9310 = vmatprep.subr.bf16.mxu0 %v12329_v1  ;;  %9342 = vmatprep.subr.bf16.mxu1 %v12331_v29 }
0x1538   :  { %9312 = vmatpush1.bf16.msra.mxu0 %v12333_v59  ;;  %9344 = vmatpush1.bf16.msra.mxu1 %v12336_v43 }
0x1539   :  { %9314 = vmatprep.subr.bf16.mxu0 %v12341_v20  ;;  %9346 = vmatprep.subr.bf16.mxu1 %v12343_v44 }
0x153c   :  { %9316 = vmatpush1.bf16.msra.mxu0 %v12345_v54  ;;  %9348 = vmatpush1.bf16.msra.mxu1 %v12348_v62 }
0x153d   :  { %9350 = vmatprep.subr.bf16.mxu0 %v12257_v34  ;;  %9382 = vmatprep.subr.bf16.mxu1 %v12259_v48 }
0x15f2   :  { %v5177_v8 = vpop.f32.mrb[88].mxu0  ;;  %v5248_v56 = vpop.f32.mrb[88].mxu1 }
0x15f3   :  { %v5253_v63 = vadd.f32 %v5177_v8, %v4213_v10  ;;  %v5255_v17 = vadd.f32 %v5248_v56, %v4286_v24  ;;  %v5179_v47 = vpop.f32.mrb[89].mxu0  ;;  %v5250_v46 = vpop.f32.mrb[89].mxu1 }
0x15f4   :  { %v5254_v19 = vadd.f32 %v5179_v47, %v4215_v9  ;;  %v5256_v57 = vadd.f32 %v5250_v46, %v4288_v28  ;;  %v13493_v46 = vld [vmem:[#allocation45_spill] sm:$0xff] }
0x15f5   :  { %v7873_v25 = vmul.f32 -1.442695, %v5253_v63  ;;  %v7875_v39 = vmul.f32 -1.442695, %v5255_v17 }
0x15f6   :  { %v7874_v52 = vmul.f32 -1.442695, %v5254_v19  ;;  %v4290_v19 = vadd.f32 %v13493_v46, %v12470_v5 }
0x15f7   :  { %10519 = vpow2.f32 %v7873_v25 }
0x15f8   :  { %10521 = vpow2.f32 %v7874_v52  ;;  %v13495_v52 = vld [vmem:[#allocation47_spill] sm:$0xff] }
0x15f9   :  { %10523 = vtanh.f32 %v5256_v57  ;;  %v13494_v57 = vld [vmem:[#allocation46_spill] sm:$0xff] }
0x15fa   :  { %10525 = vpow2.f32 %v7875_v39  ;;  %v4219_v25 = vadd.f32 %v13494_v57, %v12477_v0  ;;  %v4292_v39 = vadd.f32 %v13495_v52, %v12480_v38 }
0x1601   :  { %v10520_v13 = vpop.eup %10519 }
0x1602   :  { %v5266_v58 = vadd.f32 1.0, %v10520_v13  ;;  %v10522_v37 = vpop.eup %10521 }
0x1603   :  { %v5267_v35 = vadd.f32 1.0, %v10522_v37  ;;  %v10524_v4 = vpop.eup %10523 }
0x1604   :  { %10527 = vrcp.f32 %v5266_v58  ;;  %v10526_v10 = vpop.eup %10525 }
0x1605   :  { %10529 = vrcp.f32 %v5267_v35  ;;  %v5268_v9 = vadd.f32 1.0, %v10526_v10 }
0x1607   :  { %10531 = vrcp.f32 %v5268_v9 }
0x160e   :  { %v10528_v24 = vpop.eup %10527 }
0x160f   :  { %v5277_v16 = vmul.f32 %v10528_v24, %v10524_v4  ;;  %v10530_v55 = vpop.eup %10529 }
0x1610   :  { %v5276_v28 = vmul.f32 %v10530_v55, %v12640_v12  ;;  %v13492_v12 = vld [vmem:[#allocation44_spill] sm:$0xff] }
0x1611   :  { %v10532_v56 = vpop.eup %10531  ;;  %v4217_v47 = vadd.f32 %v13492_v12, %v12467_v31 }
0x1612   :  { %v12690_v8 = vadd.f32 %v5277_v16, %v5276_v28 }
0x1614   :  { %10533 = vtanh.f32 %v12690_v8 }
0x161e   :  { %v10534_v63 = vpop.eup %10533 }
0x161f   :  { %v12693_v17 = vmul.f32 %v10534_v63, %v10532_v56 }
0x1621   :  { %5353 = vmatmul.mubr.f32.vlgmr.msra.gmra.mrb[90].mxu0 %v12693_v17  ;;  %5424 = vmatmul.mubr.f32.vlgmr.msra.gmra.mrb[90].mxu1 %v12693_v17 }
0x1622   :  { %9352 = vmatpush1.bf16.msra.mxu0 %v12261_v7  ;;  %9384 = vmatpush1.bf16.msra.mxu1 %v12264_v27 }
0x1623   :  { %9354 = vmatprep.subr.bf16.mxu0 %v12269_v60  ;;  %9386 = vmatprep.subr.bf16.mxu1 %v12271_v33 }
0x1624   :  { %5529 = vmatprep.mubr.f32.mxu0 %v13390_v11  ;;  %5600 = vmatprep.mubr.f32.mxu1 %v13390_v11 }
0x1626   :  { %9356 = vmatpush1.bf16.msra.mxu0 %v12273_v53  ;;  %9388 = vmatpush1.bf16.msra.mxu1 %v12276_v32 }
0x1627   :  { %9358 = vmatprep.subr.bf16.mxu0 %v12281_v40  ;;  %9390 = vmatprep.subr.bf16.mxu1 %v12283_v45 }
0x162a   :  { %9360 = vmatpush1.bf16.msra.mxu0 %v12285_v15  ;;  %9392 = vmatpush1.bf16.msra.mxu1 %v12288_v18 }
0x162b   :  { %9362 = vmatprep.subr.bf16.mxu0 %v12293_v36  ;;  %9394 = vmatprep.subr.bf16.mxu1 %v12295_v23 }
0x162e   :  { %9364 = vmatpush1.bf16.msra.mxu0 %v12297_v26  ;;  %9396 = vmatpush1.bf16.msra.mxu1 %v12300_v2 }
0x162f   :  { %9366 = vmatprep.subr.bf16.mxu0 %v12305_v3  ;;  %9398 = vmatprep.subr.bf16.mxu1 %v12307_v6 }
0x1632   :  { %9368 = vmatpush1.bf16.msra.mxu0 %v12309_v30  ;;  %9400 = vmatpush1.bf16.msra.mxu1 %v12312_v22 }
0x1633   :  { %9370 = vmatprep.subr.bf16.mxu0 %v12317_v42  ;;  %9402 = vmatprep.subr.bf16.mxu1 %v12319_v49 }
0x1636   :  { %9372 = vmatpush1.bf16.msra.mxu0 %v12321_v50  ;;  %9404 = vmatpush1.bf16.msra.mxu1 %v12324_v21 }
0x1637   :  { %9374 = vmatprep.subr.bf16.mxu0 %v12329_v1  ;;  %9406 = vmatprep.subr.bf16.mxu1 %v12331_v29 }
0x163a   :  { %9376 = vmatpush1.bf16.msra.mxu0 %v12333_v59  ;;  %9408 = vmatpush1.bf16.msra.mxu1 %v12336_v43 }
0x163b   :  { %9378 = vmatprep.subr.bf16.mxu0 %v12341_v20  ;;  %9410 = vmatprep.subr.bf16.mxu1 %v12343_v44 }
0x163e   :  { %9380 = vmatpush1.bf16.msra.mxu0 %v12345_v54  ;;  %9412 = vmatpush1.bf16.msra.mxu1 %v12348_v62 }
0x163f   :  { %9414 = vmatprep.subr.bf16.mxu0 %v12257_v34  ;;  %9446 = vmatprep.subr.bf16.mxu1 %v12259_v48 }
0x16f4   :  { %v5354_v13 = vpop.f32.mrb[90].mxu0  ;;  %v5425_v58 = vpop.f32.mrb[90].mxu1 }
0x16f5   :  { %v5430_v37 = vadd.f32 %v5354_v13, %v4217_v47  ;;  %v5432_v35 = vadd.f32 %v5425_v58, %v4290_v19  ;;  %v5356_v4 = vpop.f32.mrb[91].mxu0  ;;  %v5427_v34 = vpop.f32.mrb[91].mxu1 }
0x16f6   :  { %v5431_v10 = vadd.f32 %v5356_v4, %v4219_v25  ;;  %v5433_v48 = vadd.f32 %v5427_v34, %v4292_v39 }
0x16f7   :  { %v7876_v24 = vmul.f32 -1.442695, %v5430_v37  ;;  %v7878_v55 = vmul.f32 -1.442695, %v5432_v35 }
0x16f8   :  { %v7877_v16 = vmul.f32 -1.442695, %v5431_v10 }
0x16f9   :  { %10535 = vpow2.f32 %v7876_v24  ;;  %v10154_v24 = vld [vmem:[#allocation21 + $0x8] ss:$16 sps:$4 sm:$0xff]  }
0x16fa   :  { %10537 = vpow2.f32 %v7877_v16 }
0x16fb   :  { %10539 = vtanh.f32 %v5433_v48  ;;  %v10151_v48 = vld [vmem:[#allocation21] ss:$16 sps:$4 sm:$0xff]  }
0x16fc   :  { %10541 = vpow2.f32 %v7878_v55  ;;  %v10159_v55 = vld [vmem:[#allocation21 + $0x24] ss:$16 sps:$4 sm:$0xff]  }
0x1703   :  { %v10536_v9 = vpop.eup %10535 }
0x1704   :  { %v5443_v28 = vadd.f32 1.0, %v10536_v9  ;;  %v10538_v56 = vpop.eup %10537  ;;  %v10162_v9 = vld [vmem:[#allocation21 + $0x2c] ss:$16 sps:$4 sm:$0xff]  }
0x1705   :  { %v5444_v63 = vadd.f32 1.0, %v10538_v56  ;;  %v10540_v12 = vpop.eup %10539  ;;  %v10160_v56 = vld [vmem:[#allocation21 + $0x28] ss:$16 sps:$4 sm:$0xff]  }
0x1706   :  { %10543 = vrcp.f32 %v5443_v28  ;;  %v10542_v47 = vpop.eup %10541  ;;  %v10157_v28 = vld [vmem:[#allocation21 + $0x20] ss:$16 sps:$4 sm:$0xff]  }
0x1707   :  { %10545 = vrcp.f32 %v5444_v63  ;;  %v5445_v25 = vadd.f32 1.0, %v10542_v47  ;;  %v10165_v63 = vld [vmem:[#allocation21 + $0x44] ss:$16 sps:$4 sm:$0xff]   ;;  %v13500_v47 = vmov 0  }
0x1709   :  { %10547 = vrcp.f32 %v5445_v25  ;;  %v10174_v25 = vld [vmem:[#allocation21 + $0x6c] ss:$16 sps:$4 sm:$0xff]  }
0x1710   :  { %v10544_v46 = vpop.eup %10543 }
0x1711   :  { %v5454_v19 = vmul.f32 %v10544_v46, %v10540_v12  ;;  %v10546_v57 = vpop.eup %10545  ;;  %v10168_v12 = vld [vmem:[#allocation21 + $0x4c] ss:$16 sps:$4 sm:$0xff]   ;;  %v10163_v46 = vld [vmem:[#allocation21 + $0x40] ss:$16 sps:$4 sm:$0xff]  }
0x1712   :  { %v5453_v52 = vmul.f32 %v10546_v57, %v12690_v8  ;;  %v10171_v57 = vld [vmem:[#allocation21 + $0x64] ss:$16 sps:$4 sm:$0xff]  }
0x1713   :  { %v10548_v13 = vpop.eup %10547 }
0x1714   :  { %v12740_v39 = vadd.f32 %v5454_v19, %v5453_v52  ;;  %v10166_v19 = vld [vmem:[#allocation21 + $0x48] ss:$16 sps:$4 sm:$0xff]   ;;  %v10169_v52 = vld [vmem:[#allocation21 + $0x60] ss:$16 sps:$4 sm:$0xff]  }
0x1716   :  { %10549 = vtanh.f32 %v12740_v39 }
0x1720   :  { %v10550_v58 = vpop.eup %10549 }
0x1721   :  { %v12743_v37 = vmul.f32 %v10550_v58, %v10548_v13  ;;  %v10177_v13 = vld [vmem:[#allocation21 + $0x84] ss:$16 sps:$4 sm:$0xff]   ;;  %v10180_v58 = vld [vmem:[#allocation21 + $0x8c] ss:$16 sps:$4 sm:$0xff]  }
0x1723   :  { %5530 = vmatmul.mubr.f32.vlgmr.msra.gmra.mrb[92].mxu0 %v12743_v37  ;;  %5601 = vmatmul.mubr.f32.vlgmr.msra.gmra.mrb[92].mxu1 %v12743_v37 }
0x1724   :  { %9416 = vmatpush1.bf16.msra.mxu0 %v12261_v7  ;;  %9448 = vmatpush1.bf16.msra.mxu1 %v12264_v27  ;;  %v10153_v7 = vld [vmem:[#allocation21 + $0x4] ss:$16 sps:$4 sm:$0xff]   ;;  %v10156_v27 = vld [vmem:[#allocation21 + $0xc] ss:$16 sps:$4 sm:$0xff]  }
0x1725   :  { %9418 = vmatprep.subr.bf16.mxu0 %v12269_v60  ;;  %9450 = vmatprep.subr.bf16.mxu1 %v12271_v33  ;;  %v13496_v60 = vld [vmem:[#allocation48_spill] sm:$0xff] }
0x1726   :  { %5706 = vmatprep.mubr.f32.mxu0 %v13390_v11  ;;  %5777 = vmatprep.mubr.f32.mxu1 %v13390_v11  ;;  %v4223_v33 = vadd.f32 %v13496_v60, %v12467_v31  ;;  %v10183_v60 = vld [vmem:[#allocation21 + $0xa4] ss:$16 sps:$4 sm:$0xff]  }
0x1728   :  { %9420 = vmatpush1.bf16.msra.mxu0 %v12273_v53  ;;  %9452 = vmatpush1.bf16.msra.mxu1 %v12276_v32  ;;  %v13497_v53 = vld [vmem:[#allocation49_spill] sm:$0xff] }
0x1729   :  { %9422 = vmatprep.subr.bf16.mxu0 %v12281_v40  ;;  %9454 = vmatprep.subr.bf16.mxu1 %v12283_v45  ;;  %v4296_v32 = vadd.f32 %v13497_v53, %v12470_v5  ;;  %v13498_v40 = vld [vmem:[#allocation50_spill] sm:$0xff]  ;;  %v10181_v53 = vld [vmem:[#allocation21 + $0xa0] ss:$16 sps:$4 sm:$0xff]  }
0x172a   :  { %v4225_v45 = vadd.f32 %v13498_v40, %v12477_v0  ;;  %v10189_v40 = vld [vmem:[#allocation21 + $0xc4] ss:$16 sps:$4 sm:$0xff]  }
0x172c   :  { %9424 = vmatpush1.bf16.msra.mxu0 %v12285_v15  ;;  %9456 = vmatpush1.bf16.msra.mxu1 %v12288_v18  ;;  %v13499_v15 = vld [vmem:[#allocation51_spill] sm:$0xff] }
0x172d   :  { %9426 = vmatprep.subr.bf16.mxu0 %v12293_v36  ;;  %9458 = vmatprep.subr.bf16.mxu1 %v12295_v23  ;;  %v4298_v18 = vadd.f32 %v13499_v15, %v12480_v38  ;;  %v10187_v15 = vld [vmem:[#allocation21 + $0xc0] ss:$16 sps:$4 sm:$0xff]  }
0x1730   :  { %9428 = vmatpush1.bf16.msra.mxu0 %v12297_v26  ;;  %9460 = vmatpush1.bf16.msra.mxu1 %v12300_v2 }
0x1731   :  { %9430 = vmatprep.subr.bf16.mxu0 %v12305_v3  ;;  %9462 = vmatprep.subr.bf16.mxu1 %v12307_v6 }
0x1734   :  { %9432 = vmatpush1.bf16.msra.mxu0 %v12309_v30  ;;  %9464 = vmatpush1.bf16.msra.mxu1 %v12312_v22 }
0x1735   :  { %9434 = vmatprep.subr.bf16.mxu0 %v12317_v42  ;;  %9466 = vmatprep.subr.bf16.mxu1 %v12319_v49 }
0x1738   :  { %9436 = vmatpush1.bf16.msra.mxu0 %v12321_v50  ;;  %9468 = vmatpush1.bf16.msra.mxu1 %v12324_v21 }
0x1739   :  { %9438 = vmatprep.subr.bf16.mxu0 %v12329_v1  ;;  %9470 = vmatprep.subr.bf16.mxu1 %v12331_v29 }
0x173c   :  { %9440 = vmatpush1.bf16.msra.mxu0 %v12333_v59  ;;  %9472 = vmatpush1.bf16.msra.mxu1 %v12336_v43 }
0x173d   :  { %9442 = vmatprep.subr.bf16.mxu0 %v12341_v20  ;;  %9474 = vmatprep.subr.bf16.mxu1 %v12343_v44 }
0x1740   :  { %9444 = vmatpush1.bf16.msra.mxu0 %v12345_v54  ;;  %9476 = vmatpush1.bf16.msra.mxu1 %v12348_v62 }
0x1741   :  { %6040 = vmatprep.subr.bf16.mxu0 %v10153_v7  ;;  %6113 = vmatprep.subr.bf16.mxu1 %v10156_v27  ;;  %v10175_v7 = vld [vmem:[#allocation21 + $0x80] ss:$16 sps:$4 sm:$0xff]   ;;  %v10178_v27 = vld [vmem:[#allocation21 + $0x88] ss:$16 sps:$4 sm:$0xff]  }
0x17f6   :  { %v5531_v36 = vpop.f32.mrb[92].mxu0  ;;  %v5602_v23 = vpop.f32.mrb[92].mxu1 }
0x17f7   :  { %v5607_v26 = vadd.f32 %v5531_v36, %v4223_v33  ;;  %v5609_v2 = vadd.f32 %v5602_v23, %v4296_v32  ;;  %v5533_v3 = vpop.f32.mrb[93].mxu0  ;;  %v5604_v6 = vpop.f32.mrb[93].mxu1  ;;  %v10186_v33 = vld [vmem:[#allocation21 + $0xac] ss:$16 sps:$4 sm:$0xff]   ;;  %v10184_v32 = vld [vmem:[#allocation21 + $0xa8] ss:$16 sps:$4 sm:$0xff]  }
0x17f8   :  { %v5608_v30 = vadd.f32 %v5533_v3, %v4225_v45  ;;  %v5610_v22 = vadd.f32 %v5604_v6, %v4298_v18  ;;  %v10192_v45 = vld [vmem:[#allocation21 + $0xcc] ss:$16 sps:$4 sm:$0xff]   ;;  %v10190_v18 = vld [vmem:[#allocation21 + $0xc8] ss:$16 sps:$4 sm:$0xff]   ;;  %v10195_v36 = vld [vmem:[#allocation21 + $0xe4] ss:$16 sps:$4 sm:$0xff]   ;;  %v5822_v3 = vpack.c.bf16 %v12543_v61, %v12493_v51  ;;  %v5823_v6 = vpack.c.bf16 %v12643_v14, %v12593_v41 }
0x17f9   :  { %v7879_v42 = vmul.f32 -1.442695, %v5607_v26  ;;  %v7881_v50 = vmul.f32 -1.442695, %v5609_v2  ;;  %v10198_v23 = vld [vmem:[#allocation21 + $0xec] ss:$16 sps:$4 sm:$0xff]  }
0x17fa   :  { %v7880_v49 = vmul.f32 -1.442695, %v5608_v30  ;;  %v10193_v26 = vld [vmem:[#allocation21 + $0xe0] ss:$16 sps:$4 sm:$0xff]   ;;  %v10196_v2 = vld [vmem:[#allocation21 + $0xe8] ss:$16 sps:$4 sm:$0xff]   ;;  %v5824_v30 = vpack.c.bf16 %v12743_v37, %v12693_v17 }
0x17fb   :  { %10551 = vpow2.f32 %v7879_v42  ;;  %v6219_v51 = vld [vmem:[#allocation23 + $0x8] sm:$0xff]  ;;  %v6225_v41 = vld [vmem:[#allocation23 + $0x38] sm:$0xff]  ;;  %v6218_v14 = vld [vmem:[#allocation23] sm:$0xff] }
0x17fc   :  { %10553 = vpow2.f32 %v7880_v49  ;;  %v6223_v61 = vld [vmem:[#allocation23 + $0x28] sm:$0xff]  ;;  %v6222_v49 = vld [vmem:[#allocation23 + $0x20] sm:$0xff]  ;;  %v6224_v17 = vld [vmem:[#allocation23 + $0x30] sm:$0xff] }
0x17fd   :  { %10555 = vtanh.f32 %v5610_v22  ;;  %v6221_v22 = vld [vmem:[#allocation23 + $0x18] sm:$0xff]  ;;  %v12809_v42 = vpack.c.bf16 %v6223_v61, %v6219_v51  ;;  %v6252_v51 = vld [vmem:[#allocation23 + $0x110] sm:$0xff] }
0x17fe   :  { %10557 = vpow2.f32 %v7881_v50  ;;  %v12811_v50 = vpack.c.bf16 %v6225_v41, %v6221_v22  ;;  %v6256_v61 = vld [vmem:[#allocation23 + $0x130] sm:$0xff]  ;;  %v6259_v41 = vld [vmem:[#allocation23 + $0x148] sm:$0xff] }
0x17ff   :  { %v12864_v22 = vpack.c.bf16 %v6256_v61, %v6252_v51  ;;  %v13501_v61 = vld [vmem:[#allocation52_spill] sm:$0xff] }
0x1805   :  { %v10552_v21 = vpop.eup %10551 }
0x1806   :  { %v5620_v1 = vadd.f32 1.0, %v10552_v21  ;;  %v10554_v29 = vpop.eup %10553  ;;  %v12813_v21 = vpack.c.bf16 %v6222_v49, %v6218_v14  ;;  %v6263_v14 = vld [vmem:[#allocation23 + $0x168] sm:$0xff]  ;;  %v6261_v49 = vld [vmem:[#allocation23 + $0x158] sm:$0xff] }
0x1807   :  { %v5621_v59 = vadd.f32 1.0, %v10554_v29  ;;  %v10556_v43 = vpop.eup %10555  ;;  %v6227_v29 = vld [vmem:[#allocation23 + $0x48] sm:$0xff] }
0x1808   :  { %10559 = vrcp.f32 %v5620_v1  ;;  %v10558_v20 = vpop.eup %10557  ;;  %v6220_v1 = vld [vmem:[#allocation23 + $0x10] sm:$0xff] }
0x1809   :  { %10561 = vrcp.f32 %v5621_v59  ;;  %v5622_v8 = vadd.f32 1.0, %v10558_v20  ;;  %v12816_v37 = vpack.c.bf16 %v6224_v17, %v6220_v1  ;;  %v6231_v59 = vld [vmem:[#allocation23 + $0x68] sm:$0xff]  ;;  %v12869_v1 = vpack.c.bf16 %v6263_v14, %v6259_v41  ;;  %v6265_v17 = vld [vmem:[#allocation23 + $0x178] sm:$0xff]  ;;  %v13502_v14 = vld [vmem:[#allocation53_spill] sm:$0xff] }
0x180a   :  { %v12821_v20 = vpack.c.bf16 %v6231_v59, %v6227_v29  ;;  %v6258_v29 = vld [vmem:[#allocation23 + $0x140] sm:$0xff]  ;;  %v4227_v41 = vadd.f32 %v13501_v61, %v12467_v31 }
0x180b   :  { %10563 = vrcp.f32 %v5622_v8  ;;  %v6262_v59 = vld [vmem:[#allocation23 + $0x160] sm:$0xff] }
0x1812   :  { %v10560_v44 = vpop.eup %10559 }
0x1813   :  { %v5631_v54 = vmul.f32 %v10560_v44, %v10556_v43  ;;  %v10562_v62 = vpop.eup %10561  ;;  %v6229_v43 = vld [vmem:[#allocation23 + $0x58] sm:$0xff] }
0x1814   :  { %v5630_v35 = vmul.f32 %v10562_v62, %v12740_v39  ;;  %v10172_v39 = vld [vmem:[#allocation21 + $0x68] ss:$16 sps:$4 sm:$0xff]   ;;  %v6230_v62 = vld [vmem:[#allocation23 + $0x60] sm:$0xff] }
0x1815   :  { %v10564_v34 = vpop.eup %10563  ;;  %v6233_v44 = vld [vmem:[#allocation23 + $0x78] sm:$0xff] }
0x1816   :  { %v12788_v4 = vadd.f32 %v5631_v54, %v5630_v35  ;;  %v6226_v54 = vld [vmem:[#allocation23 + $0x40] sm:$0xff]  ;;  %v12823_v8 = vpack.c.bf16 %v6233_v44, %v6229_v43  ;;  %v12871_v43 = vpack.c.bf16 %v6265_v17, %v6261_v49  ;;  %v12873_v44 = vpack.c.bf16 %v6262_v59, %v6258_v29  ;;  %v13503_v17 = vld [vmem:[#allocation54_spill] sm:$0xff] }
0x1817   :  { %v12825_v35 = vpack.c.bf16 %v6230_v62, %v6226_v54  ;;  %v6260_v54 = vld [vmem:[#allocation23 + $0x150] sm:$0xff]  ;;  %v4300_v49 = vadd.f32 %v13502_v14, %v12470_v5  ;;  %v4229_v29 = vadd.f32 %v13503_v17, %v12477_v0  ;;  %v13504_v59 = vld [vmem:[#allocation55_spill] sm:$0xff] }
0x1818   :  { %10565 = vtanh.f32 %v12788_v4  ;;  %v6264_v62 = vld [vmem:[#allocation23 + $0x170] sm:$0xff] }
0x1822   :  { %v10566_v10 = vpop.eup %10565 }
0x1823   :  { %v12791_v16 = vmul.f32 %v10566_v10, %v10564_v34  ;;  %v6228_v34 = vld [vmem:[#allocation23 + $0x50] sm:$0xff] }
0x1824   :  { %v6232_v10 = vld [vmem:[#allocation23 + $0x70] sm:$0xff] }
0x1825   :  { %5707 = vmatmul.mubr.f32.vlgmr.msra.gmra.mrb[94].mxu0 %v12791_v16  ;;  %5778 = vmatmul.mubr.f32.vlgmr.msra.gmra.mrb[94].mxu1 %v12791_v16 }
0x1826   :  { %6041 = vmatpush1.bf16.msra.mxu0 %v10151_v48  ;;  %6114 = vmatpush1.bf16.msra.mxu1 %v10154_v24  ;;  %v12828_v48 = vpack.c.bf16 %v6232_v10, %v6228_v34  ;;  %v6235_v24 = vld [vmem:[#allocation23 + $0x88] sm:$0xff]  ;;  %v12876_v34 = vpack.c.bf16 %v6264_v62, %v6260_v54  ;;  %v4302_v54 = vadd.f32 %v13504_v59, %v12480_v38 }
0x1827   :  { %6042 = vmatprep.subr.bf16.mxu0 %v10159_v55  ;;  %6115 = vmatprep.subr.bf16.mxu1 %v10162_v9  ;;  %v6239_v55 = vld [vmem:[#allocation23 + $0xa8] sm:$0xff]  ;;  %v6237_v9 = vld [vmem:[#allocation23 + $0x98] sm:$0xff] }
0x1828   :  { %6072 = vmatprep.mubr.bf16.mxu0 %v13500_v47  ;;  %6145 = vmatprep.mubr.bf16.mxu1 %v13500_v47  ;;  %v6267_v10 = vld [vmem:[#allocation23 + $0x188] sm:$0xff] }
0x182a   :  { %6043 = vmatpush1.bf16.msra.mxu0 %v10157_v28  ;;  %6116 = vmatpush1.bf16.msra.mxu1 %v10160_v56  ;;  %v12833_v28 = vpack.c.bf16 %v6239_v55, %v6235_v24  ;;  %v6241_v56 = vld [vmem:[#allocation23 + $0xb8] sm:$0xff]  ;;  %v6271_v24 = vld [vmem:[#allocation23 + $0x1a8] sm:$0xff] }
0x182b   :  { %6044 = vmatprep.subr.bf16.mxu0 %v10165_v63  ;;  %6117 = vmatprep.subr.bf16.mxu1 %v10168_v12  ;;  %v6234_v63 = vld [vmem:[#allocation23 + $0x80] sm:$0xff]  ;;  %v6269_v55 = vld [vmem:[#allocation23 + $0x198] sm:$0xff] }
0x182c   :  { %v6238_v12 = vld [vmem:[#allocation23 + $0xa0] sm:$0xff] }
0x182e   :  { %6045 = vmatpush1.bf16.msra.mxu0 %v10163_v46  ;;  %6118 = vmatpush1.bf16.msra.mxu1 %v10166_v19  ;;  %v12837_v46 = vpack.c.bf16 %v6238_v12, %v6234_v63  ;;  %v6236_v19 = vld [vmem:[#allocation23 + $0x90] sm:$0xff]  ;;  %v6266_v63 = vld [vmem:[#allocation23 + $0x180] sm:$0xff] }
0x182f   :  { %6046 = vmatprep.subr.bf16.mxu0 %v10171_v57  ;;  %6119 = vmatprep.subr.bf16.mxu1 %v10174_v25  ;;  %v6240_v57 = vld [vmem:[#allocation23 + $0xb0] sm:$0xff]  ;;  %v6270_v12 = vld [vmem:[#allocation23 + $0x1a0] sm:$0xff] }
0x1830   :  { %v12840_v25 = vpack.c.bf16 %v6240_v57, %v6236_v19  ;;  %v12885_v57 = vpack.c.bf16 %v6270_v12, %v6266_v63 }
0x1832   :  { %6047 = vmatpush1.bf16.msra.mxu0 %v10169_v52  ;;  %6120 = vmatpush1.bf16.msra.mxu1 %v10172_v39  ;;  %v6243_v52 = vld [vmem:[#allocation23 + $0xc8] sm:$0xff] }
0x1833   :  { %6048 = vmatprep.subr.bf16.mxu0 %v10177_v13  ;;  %6121 = vmatprep.subr.bf16.mxu1 %v10180_v58  ;;  %v6247_v39 = vld [vmem:[#allocation23 + $0xe8] sm:$0xff]  ;;  %v6245_v13 = vld [vmem:[#allocation23 + $0xd8] sm:$0xff] }
0x1834   :  { %v12845_v58 = vpack.c.bf16 %v6247_v39, %v6243_v52  ;;  %v6268_v52 = vld [vmem:[#allocation23 + $0x190] sm:$0xff] }
0x1835   :  { %v6272_v39 = vld [vmem:[#allocation23 + $0x1b0] sm:$0xff] }
0x1836   :  { %6049 = vmatpush1.bf16.msra.mxu0 %v10175_v7  ;;  %6122 = vmatpush1.bf16.msra.mxu1 %v10178_v27  ;;  %v6249_v7 = vld [vmem:[#allocation23 + $0xf8] sm:$0xff]  ;;  %v6242_v27 = vld [vmem:[#allocation23 + $0xc0] sm:$0xff] }
0x1837   :  { %6050 = vmatprep.subr.bf16.mxu0 %v10183_v60  ;;  %6123 = vmatprep.subr.bf16.mxu1 %v10186_v33  ;;  %v6246_v60 = vld [vmem:[#allocation23 + $0xe0] sm:$0xff]  ;;  %v12847_v33 = vpack.c.bf16 %v6249_v7, %v6245_v13  ;;  %v12888_v13 = vpack.c.bf16 %v6272_v39, %v6268_v52  ;;  %v6275_v7 = vld [vmem:[#allocation23 + $0x1c8] sm:$0xff] }
0x183a   :  { %6051 = vmatpush1.bf16.msra.mxu0 %v10181_v53  ;;  %6124 = vmatpush1.bf16.msra.mxu1 %v10184_v32  ;;  %v12849_v53 = vpack.c.bf16 %v6246_v60, %v6242_v27  ;;  %v6244_v32 = vld [vmem:[#allocation23 + $0xd0] sm:$0xff]  ;;  %v6279_v27 = vld [vmem:[#allocation23 + $0x1e8] sm:$0xff]  ;;  %v6277_v60 = vld [vmem:[#allocation23 + $0x1d8] sm:$0xff] }
0x183b   :  { %6052 = vmatprep.subr.bf16.mxu0 %v10189_v40  ;;  %6125 = vmatprep.subr.bf16.mxu1 %v10192_v45  ;;  %v6248_v40 = vld [vmem:[#allocation23 + $0xf0] sm:$0xff] }
0x183c   :  { %v12852_v45 = vpack.c.bf16 %v6248_v40, %v6244_v32  ;;  %v12893_v32 = vpack.c.bf16 %v6279_v27, %v6275_v7  ;;  %v6281_v40 = vld [vmem:[#allocation23 + $0x1f8] sm:$0xff] }
0x183e   :  { %6053 = vmatpush1.bf16.msra.mxu0 %v10187_v15  ;;  %6126 = vmatpush1.bf16.msra.mxu1 %v10190_v18  ;;  %v6251_v15 = vld [vmem:[#allocation23 + $0x108] sm:$0xff] }
0x183f   :  { %6054 = vmatprep.subr.bf16.mxu0 %v10195_v36  ;;  %6127 = vmatprep.subr.bf16.mxu1 %v10198_v23  ;;  %v6255_v18 = vld [vmem:[#allocation23 + $0x128] sm:$0xff]  ;;  %v6253_v36 = vld [vmem:[#allocation23 + $0x118] sm:$0xff] }
0x1840   :  { %v12857_v23 = vpack.c.bf16 %v6255_v18, %v6251_v15  ;;  %v6274_v15 = vld [vmem:[#allocation23 + $0x1c0] sm:$0xff] }
0x1841   :  { %v6278_v18 = vld [vmem:[#allocation23 + $0x1e0] sm:$0xff] }
0x1842   :  { %6055 = vmatpush1.bf16.msra.mxu0 %v10193_v26  ;;  %6128 = vmatpush1.bf16.msra.mxu1 %v10196_v2  ;;  %v6257_v26 = vld [vmem:[#allocation23 + $0x138] sm:$0xff]  ;;  %v6250_v2 = vld [vmem:[#allocation23 + $0x100] sm:$0xff] }
0x1843   :  { %9478 = vmatprep.subr.bf16.mxu0 %v12809_v42  ;;  %9510 = vmatprep.subr.bf16.mxu1 %v12811_v50 }
0x1845   :  { %6073 = vmatmul.mubr.bf16.vlgmr.msra.gmra.mrb[96].mxu0 %v5822_v3  ;;  %6146 = vmatmul.mubr.bf16.vlgmr.msra.gmra.mrb[96].mxu1 %v5822_v3  ;;  %v6254_v3 = vld [vmem:[#allocation23 + $0x120] sm:$0xff] }
0x1846   :  { %6082 = vmatprep.mubr.bf16.mxu0 %v13500_v47  ;;  %6155 = vmatprep.mubr.bf16.mxu1 %v13500_v47 }
0x1847   :  { %9480 = vmatpush1.bf16.msra.mxu0 %v12813_v21  ;;  %9512 = vmatpush1.bf16.msra.mxu1 %v12816_v37 }
0x1848   :  { %9482 = vmatprep.subr.bf16.mxu0 %v12821_v20  ;;  %9514 = vmatprep.subr.bf16.mxu1 %v12823_v8 }
0x184b   :  { %9484 = vmatpush1.bf16.msra.mxu0 %v12825_v35  ;;  %9516 = vmatpush1.bf16.msra.mxu1 %v12828_v48 }
0x184c   :  { %9486 = vmatprep.subr.bf16.mxu0 %v12833_v28 }
0x184d   :  { %6083 = vmatmul.mubr.bf16.gmra.mrb[100].mxu0 %v5823_v6  ;;  %6156 = vmatmul.mubr.bf16.gmra.mrb[100].mxu1 %v5823_v6  ;;  %v12859_v6 = vpack.c.bf16 %v6257_v26, %v6253_v36  ;;  %v12895_v36 = vpack.c.bf16 %v6281_v40, %v6277_v60  ;;  %v12897_v26 = vpack.c.bf16 %v6278_v18, %v6274_v15 }
0x184e   :  { %6092 = vmatprep.mubr.bf16.mxu0 %v13500_v47  ;;  %6165 = vmatprep.mubr.bf16.mxu1 %v13500_v47 }
0x184f   :  { %9488 = vmatpush1.bf16.msra.mxu0 %v12837_v46 }
0x1850   :  { %9490 = vmatprep.subr.bf16.mxu0 %v12845_v58 }
0x1853   :  { %9492 = vmatpush1.bf16.msra.mxu0 %v12849_v53 }
0x1854   :  { %9494 = vmatprep.subr.bf16.mxu0 %v12857_v23 }
0x1855   :  { %6093 = vmatmul.mubr.bf16.gmra.mrb[104].mxu0 %v5824_v30  ;;  %6166 = vmatmul.mubr.bf16.gmra.mrb[104].mxu1 %v5824_v30  ;;  %v12861_v30 = vpack.c.bf16 %v6254_v3, %v6250_v2  ;;  %v6276_v2 = vld [vmem:[#allocation23 + $0x1d0] sm:$0xff] }
0x1856   :  { %6102 = vmatprep.mubr.bf16.mxu0 %v13500_v47  ;;  %6175 = vmatprep.mubr.bf16.mxu1 %v13500_v47  ;;  %v12835_v47 = vpack.c.bf16 %v6241_v56, %v6237_v9  ;;  %v12881_v9 = vpack.c.bf16 %v6271_v24, %v6267_v10  ;;  %v6273_v56 = vld [vmem:[#allocation23 + $0x1b8] sm:$0xff]  ;;  %v6280_v3 = vld [vmem:[#allocation23 + $0x1f0] sm:$0xff] }
0x1857   :  { %9496 = vmatpush1.bf16.msra.mxu0 %v12861_v30  ;;  %v12883_v19 = vpack.c.bf16 %v6273_v56, %v6269_v55  ;;  %v12900_v51 = vpack.c.bf16 %v6280_v3, %v6276_v2 }
0x1858   :  { %9518 = vmatprep.subr.bf16.mxu1 %v12835_v47  ;;  %9498 = vmatprep.subr.bf16.mxu0 %v12869_v1 }
0x1859   :  { %9520 = vmatpush1.bf16.msra.mxu1 %v12840_v25 }
0x185a   :  { %9522 = vmatprep.subr.bf16.mxu1 %v12847_v33 }
0x185b   :  { %9500 = vmatpush1.bf16.msra.mxu0 %v12873_v44 }
0x185c   :  { %9502 = vmatprep.subr.bf16.mxu0 %v12881_v9 }
0x185d   :  { %9524 = vmatpush1.bf16.msra.mxu1 %v12852_v45 }
0x185e   :  { %9526 = vmatprep.subr.bf16.mxu1 %v12859_v6 }
0x185f   :  { %9504 = vmatpush1.bf16.msra.mxu0 %v12885_v57 }
0x1860   :  { %9506 = vmatprep.subr.bf16.mxu0 %v12893_v32 }
0x1861   :  { %9528 = vmatpush1.bf16.msra.mxu1 %v12864_v22 }
0x1862   :  { %9530 = vmatprep.subr.bf16.mxu1 %v12871_v43 }
0x1863   :  { %9508 = vmatpush1.bf16.msra.mxu0 %v12897_v26 }
0x1864   :  { %9542 = vmatprep.subr.bf16.mxu0 %v12809_v42 }
0x1865   :  { %9532 = vmatpush1.bf16.msra.mxu1 %v12876_v34 }
0x1866   :  { %9534 = vmatprep.subr.bf16.mxu1 %v12883_v19 }
0x1869   :  { %9536 = vmatpush1.bf16.msra.mxu1 %v12888_v13 }
0x186a   :  { %9538 = vmatprep.subr.bf16.mxu1 %v12895_v36 }
0x186d   :  { %9540 = vmatpush1.bf16.msra.mxu1 %v12900_v51 }
0x186e   :  { %9574 = vmatprep.subr.bf16.mxu1 %v12811_v50 }
0x18f8   :  { %v5708_v62 = vpop.f32.mrb[94].mxu0  ;;  %v5779_v10 = vpop.f32.mrb[94].mxu1 }
0x18f9   :  { %v5784_v24 = vadd.f32 %v5708_v62, %v4227_v41  ;;  %v5786_v55 = vadd.f32 %v5779_v10, %v4300_v49  ;;  %v5710_v56 = vpop.f32.mrb[95].mxu0  ;;  %v5781_v63 = vpop.f32.mrb[95].mxu1 }
0x18fa   :  { %v5785_v12 = vadd.f32 %v5710_v56, %v4229_v29  ;;  %v5787_v52 = vadd.f32 %v5781_v63, %v4302_v54 }
0x18fb   :  { %v7882_v39 = vmul.f32 -1.442695, %v5784_v24  ;;  %v7884_v31 = vmul.f32 -1.442695, %v5786_v55 }
0x18fc   :  { %v7883_v7 = vmul.f32 -1.442695, %v5785_v12 }
0x18fd   :  { %10567 = vpow2.f32 %v7882_v39 }
0x18fe   :  { %10569 = vpow2.f32 %v7883_v7 }
0x18ff   :  { %10571 = vtanh.f32 %v5787_v52 }
0x1900   :  { %10573 = vpow2.f32 %v7884_v31 }
0x1907   :  { %v10568_v5 = vpop.eup %10567 }
0x1908   :  { %v5797_v27 = vadd.f32 1.0, %v10568_v5  ;;  %v10570_v0 = vpop.eup %10569 }
0x1909   :  { %v5798_v38 = vadd.f32 1.0, %v10570_v0  ;;  %v10572_v60 = vpop.eup %10571 }
0x190a   :  { %10575 = vrcp.f32 %v5797_v27  ;;  %v10574_v40 = vpop.eup %10573 }
0x190b   :  { %10577 = vrcp.f32 %v5798_v38  ;;  %v5799_v3 = vadd.f32 1.0, %v10574_v40 }
0x190d   :  { %10579 = vrcp.f32 %v5799_v3 }
0x1914   :  { %v10576_v15 = vpop.eup %10575 }
0x1915   :  { %v5808_v18 = vmul.f32 %v10576_v15, %v10572_v60  ;;  %v10578_v2 = vpop.eup %10577 }
0x1916   :  { %v5807_v61 = vmul.f32 %v10578_v2, %v12788_v4 }
0x1917   :  { %v10580_v7 = vpop.eup %10579 }
0x1918   :  { %v12916_v41 = vpop.f32.mrb[96].mxu0  ;;  %v12918_v14 = vpop.f32.mrb[96].mxu1  ;;  %v5809_v49 = vadd.f32 %v5808_v18, %v5807_v61 }
0x1919   :  { %v12920_v17 = vpop.f32.mrb[97].mxu0  ;;  %v12922_v29 = vpop.f32.mrb[97].mxu1 }
0x191a   :  { %v12924_v59 = vpop.f32.mrb[98].mxu0  ;;  %v12926_v54 = vpop.f32.mrb[98].mxu1  ;;  %10581 = vtanh.f32 %v5809_v49 }
0x191b   :  { %v12928_v62 = vpop.f32.mrb[99].mxu0  ;;  %v12930_v10 = vpop.f32.mrb[99].mxu1 }
0x1920   :  { %v12932_v4 = vpop.f32.mrb[100].mxu0  ;;  %v12934_v24 = vpop.f32.mrb[100].mxu1 }
0x1921   :  { %v12936_v55 = vpop.f32.mrb[101].mxu0  ;;  %v12938_v56 = vpop.f32.mrb[101].mxu1 }
0x1922   :  { %13505 = vst [vmem:[#allocation35_spill] sm:$0xff] %v12938_v56  ;;  %v12940_v63 = vpop.f32.mrb[102].mxu0  ;;  %v12942_v12 = vpop.f32.mrb[102].mxu1 }
0x1923   :  { %13506 = vst [vmem:[#allocation36_spill] sm:$0xff] %v12940_v63  ;;  %13507 = vst [vmem:[#allocation37_spill] sm:$0xff] %v12942_v12  ;;  %v12944_v52 = vpop.f32.mrb[103].mxu0  ;;  %v12946_v39 = vpop.f32.mrb[103].mxu1 }
0x1924   :  { %13508 = vst [vmem:[#allocation38_spill] sm:$0xff] %v12944_v52  ;;  %13509 = vst [vmem:[#allocation39_spill] sm:$0xff] %v12946_v39  ;;  %v10582_v31 = vpop.eup %10581 }
0x1925   :  { %v5811_v5 = vmul.f32 %v10582_v31, %v10580_v7 }
0x1927   :  { %v5825_v38 = vpack.c.bf16 %v5811_v5, %v12791_v16  ;;  %v5858_v16 = vld [vmem:[%s13351_s12] sm:$0xf]  ;;  %s10960_s12 = smov [#allocation24]  }
0x1928   :  { %v12948_v27 = vpop.f32.mrb[104].mxu0  ;;  %v12950_v0 = vpop.f32.mrb[104].mxu1  ;;  %s7701_s4 = sshll.u32 %s10960_s12, 4  ;;  %s7702_s4 = int_to_ptr.vmem [resolvable:$true] %s7701_s4 }
0x1929   :  { %13510 = vst [vmem:[#allocation40_spill] sm:$0xff] %v12948_v27  ;;  %13511 = vst [vmem:[#allocation41_spill] sm:$0xff] %v12950_v0  ;;  %v12953_v60 = vpop.f32.mrb[105].mxu0  ;;  %v12955_v40 = vpop.f32.mrb[105].mxu1  ;;  %6103 = vmatmul.mubr.bf16.gmra.mrb[108].mxu0 %v5825_v38  ;;  %6176 = vmatmul.mubr.bf16.gmra.mrb[108].mxu1 %v5825_v38  ;;  %s10909_s23 = scalar_lea.vmem %s7702_s4, 1024  ;;  %p10914_p3 = scmp.lt.s32.totalorder %s7702_s4, %s7702_s4 }
0x192a   :  { %13512 = vst [vmem:[#allocation42_spill] sm:$0xff] %v12953_v60  ;;  %13513 = vst [vmem:[#allocation43_spill] sm:$0xff] %v12955_v40  ;;  %v12957_v15 = vpop.f32.mrb[106].mxu0  ;;  %v12959_v18 = vpop.f32.mrb[106].mxu1  ;;  %6350 = vmatprep.mubr.f32.mxu0 %v13390_v11  ;;  %6421 = vmatprep.mubr.f32.mxu1 %v13390_v11  ;;  %p10910_p2 = scmp.ne.s32.totalorder %s7702_s4, %s10909_s23  ;;  %p10915_p4 = scmp.lt.s32.totalorder %s10909_s23, %s10909_s23 }
0x192b   :  { %13514 = vst [vmem:[#allocation44_spill] sm:$0xff] %v12957_v15  ;;  %13515 = vst [vmem:[#allocation45_spill] sm:$0xff] %v12959_v18  ;;  %v12961_v2 = vpop.f32.mrb[107].mxu0  ;;  %v12963_v3 = vpop.f32.mrb[107].mxu1  ;;  %v13525_v18 = vld [vmem:[#allocation31_spill] sm:$0xff] }
0x192c   :  { %13516 = vst [vmem:[#allocation46_spill] sm:$0xff] %v12961_v2  ;;  %13517 = vst [vmem:[#allocation47_spill] sm:$0xff] %v12963_v3  ;;  %v13524_v3 = vld [vmem:[#allocation33_spill] sm:$0xff]  ;;  %v13022_v15 = vrot.slane %v5858_v16, %v13525_v18  ;;  %p10916_p5 = por %p10915_p4, %p10914_p3 }
0x192d   :  { %v13019_v2 = vrot.slane %v5858_v16, %v13524_v3 }
0x192e   :  { %v6148_v3 = vadd.f32 %v12918_v14, %v13022_v15  ;;  %p10917_p6 = pnand %p10916_p5, %p10910_p2 }
0x1931   :  { %6351 = vmatmul.mubr.f32.vlgmr.msra.gmra.mrb[112].mxu0 %v13390_v11  ;;  %6422 = vmatmul.mubr.f32.vlgmr.msra.gmra.mrb[112].mxu1 %v13390_v11 }
0x1932   :  { %9544 = vmatpush1.bf16.msra.mxu0 %v12813_v21  ;;  %9576 = vmatpush1.bf16.msra.mxu1 %v12816_v37 }
0x1933   :  { %9546 = vmatprep.subr.bf16.mxu0 %v12821_v20  ;;  %9578 = vmatprep.subr.bf16.mxu1 %v12823_v8 }
0x1934   :  { %6526 = vmatprep.mubr.f32.mxu0 %v13390_v11  ;;  %6597 = vmatprep.mubr.f32.mxu1 %v13390_v11 }
0x1936   :  { %9548 = vmatpush1.bf16.msra.mxu0 %v12825_v35  ;;  %9580 = vmatpush1.bf16.msra.mxu1 %v12828_v48 }
0x1937   :  { %9550 = vmatprep.subr.bf16.mxu0 %v12833_v28  ;;  %9582 = vmatprep.subr.bf16.mxu1 %v12835_v47 }
0x193a   :  { %9552 = vmatpush1.bf16.msra.mxu0 %v12837_v46  ;;  %9584 = vmatpush1.bf16.msra.mxu1 %v12840_v25 }
0x193b   :  { %9554 = vmatprep.subr.bf16.mxu0 %v12845_v58  ;;  %9586 = vmatprep.subr.bf16.mxu1 %v12847_v33 }
0x193e   :  { %9556 = vmatpush1.bf16.msra.mxu0 %v12849_v53  ;;  %9588 = vmatpush1.bf16.msra.mxu1 %v12852_v45 }
0x193f   :  { %9558 = vmatprep.subr.bf16.mxu0 %v12857_v23  ;;  %9590 = vmatprep.subr.bf16.mxu1 %v12859_v6 }
0x1942   :  { %9560 = vmatpush1.bf16.msra.mxu0 %v12861_v30  ;;  %9592 = vmatpush1.bf16.msra.mxu1 %v12864_v22 }
0x1943   :  { %9562 = vmatprep.subr.bf16.mxu0 %v12869_v1  ;;  %9594 = vmatprep.subr.bf16.mxu1 %v12871_v43 }
0x1946   :  { %9564 = vmatpush1.bf16.msra.mxu0 %v12873_v44  ;;  %9596 = vmatpush1.bf16.msra.mxu1 %v12876_v34 }
0x1947   :  { %9566 = vmatprep.subr.bf16.mxu0 %v12881_v9  ;;  %9598 = vmatprep.subr.bf16.mxu1 %v12883_v19 }
0x194a   :  { %9568 = vmatpush1.bf16.msra.mxu0 %v12885_v57  ;;  %9600 = vmatpush1.bf16.msra.mxu1 %v12888_v13 }
0x194b   :  { %9570 = vmatprep.subr.bf16.mxu0 %v12893_v32  ;;  %9602 = vmatprep.subr.bf16.mxu1 %v12895_v36 }
0x194e   :  { %9572 = vmatpush1.bf16.msra.mxu0 %v12897_v26  ;;  %9604 = vmatpush1.bf16.msra.mxu1 %v12900_v51 }
0x194f   :  { %9606 = vmatprep.subr.bf16.mxu0 %v12809_v42  ;;  %9638 = vmatprep.subr.bf16.mxu1 %v12811_v50 }
0x19fc   :  { %v13006_v61 = vpop.f32.mrb[108].mxu0  ;;  %v13008_v49 = vpop.f32.mrb[108].mxu1 }
0x19fd   :  { %13518 = vst [vmem:[#allocation48_spill] sm:$0xff] %v13006_v61  ;;  %13519 = vst [vmem:[#allocation49_spill] sm:$0xff] %v13008_v49  ;;  %v13010_v7 = vpop.f32.mrb[109].mxu0  ;;  %v13012_v31 = vpop.f32.mrb[109].mxu1  ;;  %v13528_v61 = vld [vmem:[#allocation34_spill] sm:$0xff] }
0x19fe   :  { %13520 = vst [vmem:[#allocation50_spill] sm:$0xff] %v13010_v7  ;;  %13521 = vst [vmem:[#allocation51_spill] sm:$0xff] %v13012_v31  ;;  %v13014_v5 = vpop.f32.mrb[110].mxu0  ;;  %v13016_v38 = vpop.f32.mrb[110].mxu1  ;;  %v13029_v49 = vrot.slane %v5858_v16, %v13528_v61  ;;  %v13529_v7 = vld [vmem:[#allocation32_spill] sm:$0xff] }
0x19ff   :  { %13522 = vst [vmem:[#allocation52_spill] sm:$0xff] %v13014_v5  ;;  %13523 = vst [vmem:[#allocation53_spill] sm:$0xff] %v13016_v38  ;;  %v13024_v40 = vpop.f32.mrb[111].mxu0  ;;  %v13026_v60 = vpop.f32.mrb[111].mxu1  ;;  %v13032_v0 = vrot.slane %v5858_v16, %v13529_v7  ;;  %v6075_v5 = vadd.f32 %v12916_v41, %v13019_v2 }
0x1a00   :  { %13526 = vst [vmem:[#allocation54_spill] sm:$0xff] %v13024_v40  ;;  %13527 = vst [vmem:[#allocation55_spill] sm:$0xff] %v13026_v60  ;;  %v6077_v18 = vadd.f32 %v12920_v17, %v13029_v49 }
0x1a01   :  { %v6150_v40 = vadd.f32 %v12922_v29, %v13032_v0 }
0x1a04   :  { %v6352_v38 = vpop.f32.mrb[112].mxu0  ;;  %v6423_v60 = vpop.f32.mrb[112].mxu1 }
0x1a05   :  { %v6428_v31 = vadd.f32 %v6352_v38, %v6075_v5  ;;  %v6430_v61 = vadd.f32 %v6423_v60, %v6148_v3  ;;  %v6354_v27 = vpop.f32.mrb[113].mxu0  ;;  %v6425_v39 = vpop.f32.mrb[113].mxu1 }
0x1a06   :  { %v6429_v16 = vadd.f32 %v6354_v27, %v6077_v18  ;;  %v6431_v7 = vadd.f32 %v6425_v39, %v6150_v40  ;;  %v6081_v18 = vadd.f32 %v12928_v62, %v13029_v49 }
0x1a07   :  { %v7917_v52 = vmul.f32 -1.442695, %v6428_v31  ;;  %v7919_v41 = vmul.f32 -1.442695, %v6430_v61  ;;  %v6154_v61 = vadd.f32 %v12930_v10, %v13032_v0 }
0x1a08   :  { %v7918_v12 = vmul.f32 -1.442695, %v6429_v16 }
0x1a09   :  { %10583 = vpow2.f32 %v7917_v52 }
0x1a0a   :  { %10585 = vpow2.f32 %v7918_v12 }
0x1a0b   :  { %10587 = vtanh.f32 %v6431_v7 }
0x1a0c   :  { %10589 = vpow2.f32 %v7919_v41 }
0x1a13   :  { %v10584_v14 = vpop.eup %10583 }
0x1a14   :  { %v6441_v63 = vadd.f32 1.0, %v10584_v14  ;;  %v10586_v17 = vpop.eup %10585 }
0x1a15   :  { %v6442_v29 = vadd.f32 1.0, %v10586_v17  ;;  %v10588_v56 = vpop.eup %10587 }
0x1a16   :  { %10591 = vrcp.f32 %v6441_v63  ;;  %v10590_v5 = vpop.eup %10589  ;;  %v6152_v63 = vadd.f32 %v12926_v54, %v13022_v15 }
0x1a17   :  { %10593 = vrcp.f32 %v6442_v29  ;;  %v6443_v27 = vadd.f32 1.0, %v10590_v5 }
0x1a19   :  { %10595 = vrcp.f32 %v6443_v27 }
0x1a20   :  { %v10592_v60 = vpop.eup %10591 }
0x1a21   :  { %v6452_v38 = vmul.f32 %v10592_v60, %v10588_v56  ;;  %v10594_v3 = vpop.eup %10593  ;;  %v6079_v56 = vadd.f32 %v12924_v59, %v13019_v2 }
0x1a22   :  { %v6451_v39 = vmul.f32 0.0, %v10594_v3 }
0x1a23   :  { %v10596_v12 = vpop.eup %10595 }
0x1a24   :  { %v13042_v40 = vadd.f32 %v6452_v38, %v6451_v39 }
0x1a26   :  { %10597 = vtanh.f32 %v13042_v40 }
0x1a30   :  { %v10598_v52 = vpop.eup %10597 }
0x1a31   :  { %v6455_v31 = vmul.f32 %v10598_v52, %v10596_v12 }
0x1a33   :  { %6456 = vst [vmem:[#allocation24] sm:$0xff] %v6455_v31  ;;  %6527 = vmatmul.mubr.f32.vlgmr.msra.gmra.mrb[114].mxu0 %v6455_v31  ;;  %6598 = vmatmul.mubr.f32.vlgmr.msra.gmra.mrb[114].mxu1 %v6455_v31 }
0x1a34   :  { %9608 = vmatpush1.bf16.msra.mxu0 %v12813_v21  ;;  %9640 = vmatpush1.bf16.msra.mxu1 %v12816_v37 }
0x1a35   :  { %9610 = vmatprep.subr.bf16.mxu0 %v12821_v20  ;;  %9642 = vmatprep.subr.bf16.mxu1 %v12823_v8 }
0x1a36   :  { %6703 = vmatprep.mubr.f32.mxu0 %v13390_v11  ;;  %6774 = vmatprep.mubr.f32.mxu1 %v13390_v11 }
0x1a38   :  { %9612 = vmatpush1.bf16.msra.mxu0 %v12825_v35  ;;  %9644 = vmatpush1.bf16.msra.mxu1 %v12828_v48 }
0x1a39   :  { %9614 = vmatprep.subr.bf16.mxu0 %v12833_v28  ;;  %9646 = vmatprep.subr.bf16.mxu1 %v12835_v47 }
0x1a3c   :  { %9616 = vmatpush1.bf16.msra.mxu0 %v12837_v46  ;;  %9648 = vmatpush1.bf16.msra.mxu1 %v12840_v25 }
0x1a3d   :  { %9618 = vmatprep.subr.bf16.mxu0 %v12845_v58  ;;  %9650 = vmatprep.subr.bf16.mxu1 %v12847_v33 }
0x1a40   :  { %9620 = vmatpush1.bf16.msra.mxu0 %v12849_v53  ;;  %9652 = vmatpush1.bf16.msra.mxu1 %v12852_v45 }
0x1a41   :  { %9622 = vmatprep.subr.bf16.mxu0 %v12857_v23  ;;  %9654 = vmatprep.subr.bf16.mxu1 %v12859_v6 }
0x1a44   :  { %9624 = vmatpush1.bf16.msra.mxu0 %v12861_v30  ;;  %9656 = vmatpush1.bf16.msra.mxu1 %v12864_v22 }
0x1a45   :  { %9626 = vmatprep.subr.bf16.mxu0 %v12869_v1  ;;  %9658 = vmatprep.subr.bf16.mxu1 %v12871_v43 }
0x1a48   :  { %9628 = vmatpush1.bf16.msra.mxu0 %v12873_v44  ;;  %9660 = vmatpush1.bf16.msra.mxu1 %v12876_v34 }
0x1a49   :  { %9630 = vmatprep.subr.bf16.mxu0 %v12881_v9  ;;  %9662 = vmatprep.subr.bf16.mxu1 %v12883_v19 }
0x1a4c   :  { %9632 = vmatpush1.bf16.msra.mxu0 %v12885_v57  ;;  %9664 = vmatpush1.bf16.msra.mxu1 %v12888_v13 }
0x1a4d   :  { %9634 = vmatprep.subr.bf16.mxu0 %v12893_v32  ;;  %9666 = vmatprep.subr.bf16.mxu1 %v12895_v36 }
0x1a50   :  { %9636 = vmatpush1.bf16.msra.mxu0 %v12897_v26  ;;  %9668 = vmatpush1.bf16.msra.mxu1 %v12900_v51 }
0x1a51   :  { %9670 = vmatprep.subr.bf16.mxu0 %v12809_v42  ;;  %9702 = vmatprep.subr.bf16.mxu1 %v12811_v50 }
0x1b06   :  { %v6528_v16 = vpop.f32.mrb[114].mxu0  ;;  %v6599_v7 = vpop.f32.mrb[114].mxu1 }
0x1b07   :  { %v6604_v41 = vadd.f32 %v6528_v16, %v6079_v56  ;;  %v6606_v14 = vadd.f32 %v6599_v7, %v6152_v63  ;;  %v6530_v17 = vpop.f32.mrb[115].mxu0  ;;  %v6601_v29 = vpop.f32.mrb[115].mxu1 }
0x1b08   :  { %v6605_v5 = vadd.f32 %v6530_v17, %v6081_v18  ;;  %v6607_v60 = vadd.f32 %v6601_v29, %v6154_v61  ;;  %v6087_v17 = vadd.f32 %v12936_v55, %v13029_v49  ;;  %v13530_v29 = vld [vmem:[#allocation35_spill] sm:$0xff] }
0x1b09   :  { %v7920_v38 = vmul.f32 -1.442695, %v6604_v41  ;;  %v7922_v59 = vmul.f32 -1.442695, %v6606_v14  ;;  %v6158_v14 = vadd.f32 %v12934_v24, %v13022_v15 }
0x1b0a   :  { %v7921_v3 = vmul.f32 -1.442695, %v6605_v5  ;;  %v6160_v5 = vadd.f32 %v13530_v29, %v13032_v0 }
0x1b0b   :  { %10599 = vpow2.f32 %v7920_v38 }
0x1b0c   :  { %10601 = vpow2.f32 %v7921_v3 }
0x1b0d   :  { %10603 = vtanh.f32 %v6607_v60 }
0x1b0e   :  { %10605 = vpow2.f32 %v7922_v59 }
0x1b15   :  { %v10600_v54 = vpop.eup %10599 }
0x1b16   :  { %v6617_v27 = vadd.f32 1.0, %v10600_v54  ;;  %v10602_v62 = vpop.eup %10601 }
0x1b17   :  { %v6618_v10 = vadd.f32 1.0, %v10602_v62  ;;  %v10604_v39 = vpop.eup %10603 }
0x1b18   :  { %10607 = vrcp.f32 %v6617_v27  ;;  %v10606_v12 = vpop.eup %10605 }
0x1b19   :  { %10609 = vrcp.f32 %v6618_v10  ;;  %v6619_v63 = vadd.f32 1.0, %v10606_v12 }
0x1b1b   :  { %10611 = vrcp.f32 %v6619_v63 }
0x1b22   :  { %v10608_v52 = vpop.eup %10607 }
0x1b23   :  { %v6628_v31 = vmul.f32 %v10608_v52, %v10604_v39  ;;  %v10610_v56 = vpop.eup %10609 }
0x1b24   :  { %v6627_v18 = vmul.f32 %v10610_v56, %v13042_v40  ;;  %v6085_v40 = vadd.f32 %v12932_v4, %v13019_v2 }
0x1b25   :  { %v10612_v16 = vpop.eup %10611 }
0x1b26   :  { %v13088_v61 = vadd.f32 %v6628_v31, %v6627_v18 }
0x1b28   :  { %10613 = vtanh.f32 %v13088_v61 }
0x1b32   :  { %v10614_v7 = vpop.eup %10613 }
0x1b33   :  { %v6631_v41 = vmul.f32 %v10614_v7, %v10612_v16 }
0x1b35   :  { %6633 = vst [vmem:[#allocation24 + $0x8] sm:$0xff] %v6631_v41  ;;  %6704 = vmatmul.mubr.f32.vlgmr.msra.gmra.mrb[116].mxu0 %v6631_v41  ;;  %6775 = vmatmul.mubr.f32.vlgmr.msra.gmra.mrb[116].mxu1 %v6631_v41 }
0x1b36   :  { %9672 = vmatpush1.bf16.msra.mxu0 %v12813_v21  ;;  %9704 = vmatpush1.bf16.msra.mxu1 %v12816_v37 }
0x1b37   :  { %9674 = vmatprep.subr.bf16.mxu0 %v12821_v20  ;;  %9706 = vmatprep.subr.bf16.mxu1 %v12823_v8 }
0x1b38   :  { %6880 = vmatprep.mubr.f32.mxu0 %v13390_v11  ;;  %6951 = vmatprep.mubr.f32.mxu1 %v13390_v11 }
0x1b3a   :  { %9676 = vmatpush1.bf16.msra.mxu0 %v12825_v35  ;;  %9708 = vmatpush1.bf16.msra.mxu1 %v12828_v48 }
0x1b3b   :  { %9678 = vmatprep.subr.bf16.mxu0 %v12833_v28  ;;  %9710 = vmatprep.subr.bf16.mxu1 %v12835_v47 }
0x1b3e   :  { %9680 = vmatpush1.bf16.msra.mxu0 %v12837_v46  ;;  %9712 = vmatpush1.bf16.msra.mxu1 %v12840_v25 }
0x1b3f   :  { %9682 = vmatprep.subr.bf16.mxu0 %v12845_v58  ;;  %9714 = vmatprep.subr.bf16.mxu1 %v12847_v33 }
0x1b42   :  { %9684 = vmatpush1.bf16.msra.mxu0 %v12849_v53  ;;  %9716 = vmatpush1.bf16.msra.mxu1 %v12852_v45 }
0x1b43   :  { %9686 = vmatprep.subr.bf16.mxu0 %v12857_v23  ;;  %9718 = vmatprep.subr.bf16.mxu1 %v12859_v6 }
0x1b46   :  { %9688 = vmatpush1.bf16.msra.mxu0 %v12861_v30  ;;  %9720 = vmatpush1.bf16.msra.mxu1 %v12864_v22 }
0x1b47   :  { %9690 = vmatprep.subr.bf16.mxu0 %v12869_v1  ;;  %9722 = vmatprep.subr.bf16.mxu1 %v12871_v43 }
0x1b4a   :  { %9692 = vmatpush1.bf16.msra.mxu0 %v12873_v44  ;;  %9724 = vmatpush1.bf16.msra.mxu1 %v12876_v34 }
0x1b4b   :  { %9694 = vmatprep.subr.bf16.mxu0 %v12881_v9  ;;  %9726 = vmatprep.subr.bf16.mxu1 %v12883_v19 }
0x1b4e   :  { %9696 = vmatpush1.bf16.msra.mxu0 %v12885_v57  ;;  %9728 = vmatpush1.bf16.msra.mxu1 %v12888_v13 }
0x1b4f   :  { %9698 = vmatprep.subr.bf16.mxu0 %v12893_v32  ;;  %9730 = vmatprep.subr.bf16.mxu1 %v12895_v36 }
0x1b52   :  { %9700 = vmatpush1.bf16.msra.mxu0 %v12897_v26  ;;  %9732 = vmatpush1.bf16.msra.mxu1 %v12900_v51 }
0x1b53   :  { %9734 = vmatprep.subr.bf16.mxu0 %v12809_v42  ;;  %9766 = vmatprep.subr.bf16.mxu1 %v12811_v50 }
0x1c08   :  { %v6705_v60 = vpop.f32.mrb[116].mxu0  ;;  %v6776_v38 = vpop.f32.mrb[116].mxu1 }
0x1c09   :  { %v6781_v3 = vadd.f32 %v6705_v60, %v6085_v40  ;;  %v6783_v59 = vadd.f32 %v6776_v38, %v6158_v14  ;;  %v6707_v54 = vpop.f32.mrb[117].mxu0  ;;  %v6778_v27 = vpop.f32.mrb[117].mxu1  ;;  %v13532_v38 = vld [vmem:[#allocation37_spill] sm:$0xff] }
0x1c0a   :  { %v6782_v62 = vadd.f32 %v6707_v54, %v6087_v17  ;;  %v6784_v10 = vadd.f32 %v6778_v27, %v6160_v5  ;;  %v13534_v27 = vld [vmem:[#allocation39_spill] sm:$0xff] }
0x1c0b   :  { %v7923_v39 = vmul.f32 -1.442695, %v6781_v3  ;;  %v7925_v4 = vmul.f32 -1.442695, %v6783_v59  ;;  %v6162_v3 = vadd.f32 %v13532_v38, %v13022_v15  ;;  %v13533_v59 = vld [vmem:[#allocation38_spill] sm:$0xff] }
0x1c0c   :  { %v7924_v12 = vmul.f32 -1.442695, %v6782_v62  ;;  %v6091_v54 = vadd.f32 %v13533_v59, %v13029_v49  ;;  %v6164_v62 = vadd.f32 %v13534_v27, %v13032_v0 }
0x1c0d   :  { %10615 = vpow2.f32 %v7923_v39 }
0x1c0e   :  { %10617 = vpow2.f32 %v7924_v12 }
0x1c0f   :  { %10619 = vtanh.f32 %v6784_v10 }
0x1c10   :  { %10621 = vpow2.f32 %v7925_v4 }
0x1c17   :  { %v10616_v24 = vpop.eup %10615 }
0x1c18   :  { %v6794_v52 = vadd.f32 1.0, %v10616_v24  ;;  %v10618_v55 = vpop.eup %10617 }
0x1c19   :  { %v6795_v31 = vadd.f32 1.0, %v10618_v55  ;;  %v10620_v56 = vpop.eup %10619 }
0x1c1a   :  { %10623 = vrcp.f32 %v6794_v52  ;;  %v10622_v63 = vpop.eup %10621 }
0x1c1b   :  { %10625 = vrcp.f32 %v6795_v31  ;;  %v6796_v41 = vadd.f32 1.0, %v10622_v63 }
0x1c1d   :  { %10627 = vrcp.f32 %v6796_v41 }
0x1c24   :  { %v10624_v18 = vpop.eup %10623 }
0x1c25   :  { %v6805_v16 = vmul.f32 %v10624_v18, %v10620_v56  ;;  %v10626_v7 = vpop.eup %10625 }
0x1c26   :  { %v6804_v40 = vmul.f32 %v10626_v7, %v13088_v61  ;;  %v13531_v61 = vld [vmem:[#allocation36_spill] sm:$0xff] }
0x1c27   :  { %v10628_v17 = vpop.eup %10627  ;;  %v6089_v60 = vadd.f32 %v13531_v61, %v13019_v2 }
0x1c28   :  { %v13134_v14 = vadd.f32 %v6805_v16, %v6804_v40 }
0x1c2a   :  { %10629 = vtanh.f32 %v13134_v14 }
0x1c34   :  { %v10630_v29 = vpop.eup %10629 }
0x1c35   :  { %v6808_v5 = vmul.f32 %v10630_v29, %v10628_v17 }
0x1c37   :  { %6810 = vst [vmem:[#allocation24 + $0x10] sm:$0xff] %v6808_v5  ;;  %6881 = vmatmul.mubr.f32.vlgmr.msra.gmra.mrb[118].mxu0 %v6808_v5  ;;  %6952 = vmatmul.mubr.f32.vlgmr.msra.gmra.mrb[118].mxu1 %v6808_v5 }
0x1c38   :  { %9736 = vmatpush1.bf16.msra.mxu0 %v12813_v21  ;;  %9768 = vmatpush1.bf16.msra.mxu1 %v12816_v37 }
0x1c39   :  { %9738 = vmatprep.subr.bf16.mxu0 %v12821_v20  ;;  %9770 = vmatprep.subr.bf16.mxu1 %v12823_v8 }
0x1c3a   :  { %7057 = vmatprep.mubr.f32.mxu0 %v13390_v11  ;;  %7128 = vmatprep.mubr.f32.mxu1 %v13390_v11 }
0x1c3c   :  { %9740 = vmatpush1.bf16.msra.mxu0 %v12825_v35  ;;  %9772 = vmatpush1.bf16.msra.mxu1 %v12828_v48 }
0x1c3d   :  { %9742 = vmatprep.subr.bf16.mxu0 %v12833_v28  ;;  %9774 = vmatprep.subr.bf16.mxu1 %v12835_v47 }
0x1c40   :  { %9744 = vmatpush1.bf16.msra.mxu0 %v12837_v46  ;;  %9776 = vmatpush1.bf16.msra.mxu1 %v12840_v25 }
0x1c41   :  { %9746 = vmatprep.subr.bf16.mxu0 %v12845_v58  ;;  %9778 = vmatprep.subr.bf16.mxu1 %v12847_v33 }
0x1c44   :  { %9748 = vmatpush1.bf16.msra.mxu0 %v12849_v53  ;;  %9780 = vmatpush1.bf16.msra.mxu1 %v12852_v45 }
0x1c45   :  { %9750 = vmatprep.subr.bf16.mxu0 %v12857_v23  ;;  %9782 = vmatprep.subr.bf16.mxu1 %v12859_v6 }
0x1c48   :  { %9752 = vmatpush1.bf16.msra.mxu0 %v12861_v30  ;;  %9784 = vmatpush1.bf16.msra.mxu1 %v12864_v22 }
0x1c49   :  { %9754 = vmatprep.subr.bf16.mxu0 %v12869_v1  ;;  %9786 = vmatprep.subr.bf16.mxu1 %v12871_v43 }
0x1c4c   :  { %9756 = vmatpush1.bf16.msra.mxu0 %v12873_v44  ;;  %9788 = vmatpush1.bf16.msra.mxu1 %v12876_v34 }
0x1c4d   :  { %9758 = vmatprep.subr.bf16.mxu0 %v12881_v9  ;;  %9790 = vmatprep.subr.bf16.mxu1 %v12883_v19 }
0x1c50   :  { %9760 = vmatpush1.bf16.msra.mxu0 %v12885_v57  ;;  %9792 = vmatpush1.bf16.msra.mxu1 %v12888_v13 }
0x1c51   :  { %9762 = vmatprep.subr.bf16.mxu0 %v12893_v32  ;;  %9794 = vmatprep.subr.bf16.mxu1 %v12895_v36 }
0x1c54   :  { %9764 = vmatpush1.bf16.msra.mxu0 %v12897_v26  ;;  %9796 = vmatpush1.bf16.msra.mxu1 %v12900_v51 }
0x1c55   :  { %9798 = vmatprep.subr.bf16.mxu0 %v12809_v42  ;;  %9830 = vmatprep.subr.bf16.mxu1 %v12811_v50 }
0x1d0a   :  { %v6882_v10 = vpop.f32.mrb[118].mxu0  ;;  %v6953_v39 = vpop.f32.mrb[118].mxu1 }
0x1d0b   :  { %v6958_v12 = vadd.f32 %v6882_v10, %v6089_v60  ;;  %v6960_v4 = vadd.f32 %v6953_v39, %v6162_v3  ;;  %v6884_v24 = vpop.f32.mrb[119].mxu0  ;;  %v6955_v52 = vpop.f32.mrb[119].mxu1  ;;  %v13536_v39 = vld [vmem:[#allocation41_spill] sm:$0xff] }
0x1d0c   :  { %v6959_v55 = vadd.f32 %v6884_v24, %v6091_v54  ;;  %v6961_v31 = vadd.f32 %v6955_v52, %v6164_v62  ;;  %v13538_v52 = vld [vmem:[#allocation43_spill] sm:$0xff] }
0x1d0d   :  { %v7926_v56 = vmul.f32 -1.442695, %v6958_v12  ;;  %v7928_v18 = vmul.f32 -1.442695, %v6960_v4  ;;  %v6168_v12 = vadd.f32 %v13536_v39, %v13022_v15  ;;  %v13537_v4 = vld [vmem:[#allocation42_spill] sm:$0xff] }
0x1d0e   :  { %v7927_v63 = vmul.f32 -1.442695, %v6959_v55  ;;  %v6097_v24 = vadd.f32 %v13537_v4, %v13029_v49  ;;  %v6170_v55 = vadd.f32 %v13538_v52, %v13032_v0 }
0x1d0f   :  { %10631 = vpow2.f32 %v7926_v56 }
0x1d10   :  { %10633 = vpow2.f32 %v7927_v63 }
0x1d11   :  { %10635 = vtanh.f32 %v6961_v31 }
0x1d12   :  { %10637 = vpow2.f32 %v7928_v18 }
0x1d19   :  { %v10632_v16 = vpop.eup %10631 }
0x1d1a   :  { %v6971_v7 = vadd.f32 1.0, %v10632_v16  ;;  %v10634_v41 = vpop.eup %10633 }
0x1d1b   :  { %v6972_v40 = vadd.f32 1.0, %v10634_v41  ;;  %v10636_v17 = vpop.eup %10635 }
0x1d1c   :  { %10639 = vrcp.f32 %v6971_v7  ;;  %v10638_v29 = vpop.eup %10637 }
0x1d1d   :  { %10641 = vrcp.f32 %v6972_v40  ;;  %v6973_v38 = vadd.f32 1.0, %v10638_v29 }
0x1d1f   :  { %10643 = vrcp.f32 %v6973_v38 }
0x1d26   :  { %v10640_v5 = vpop.eup %10639 }
0x1d27   :  { %v6982_v61 = vmul.f32 %v10640_v5, %v10636_v17  ;;  %v10642_v60 = vpop.eup %10641 }
0x1d28   :  { %v6981_v3 = vmul.f32 %v10642_v60, %v13134_v14  ;;  %v13535_v14 = vld [vmem:[#allocation40_spill] sm:$0xff] }
0x1d29   :  { %v10644_v54 = vpop.eup %10643  ;;  %v6095_v10 = vadd.f32 %v13535_v14, %v13019_v2 }
0x1d2a   :  { %v13180_v59 = vadd.f32 %v6982_v61, %v6981_v3 }
0x1d2c   :  { %10645 = vtanh.f32 %v13180_v59 }
0x1d36   :  { %v10646_v27 = vpop.eup %10645 }
0x1d37   :  { %v6985_v62 = vmul.f32 %v10646_v27, %v10644_v54 }
0x1d39   :  { %6987 = vst [vmem:[#allocation24 + $0x18] sm:$0xff] %v6985_v62  ;;  %7058 = vmatmul.mubr.f32.vlgmr.msra.gmra.mrb[120].mxu0 %v6985_v62  ;;  %7129 = vmatmul.mubr.f32.vlgmr.msra.gmra.mrb[120].mxu1 %v6985_v62 }
0x1d3a   :  { %9800 = vmatpush1.bf16.msra.mxu0 %v12813_v21  ;;  %9832 = vmatpush1.bf16.msra.mxu1 %v12816_v37 }
0x1d3b   :  { %9802 = vmatprep.subr.bf16.mxu0 %v12821_v20  ;;  %9834 = vmatprep.subr.bf16.mxu1 %v12823_v8 }
0x1d3c   :  { %7234 = vmatprep.mubr.f32.mxu0 %v13390_v11  ;;  %7305 = vmatprep.mubr.f32.mxu1 %v13390_v11 }
0x1d3e   :  { %9804 = vmatpush1.bf16.msra.mxu0 %v12825_v35  ;;  %9836 = vmatpush1.bf16.msra.mxu1 %v12828_v48 }
0x1d3f   :  { %9806 = vmatprep.subr.bf16.mxu0 %v12833_v28  ;;  %9838 = vmatprep.subr.bf16.mxu1 %v12835_v47 }
0x1d42   :  { %9808 = vmatpush1.bf16.msra.mxu0 %v12837_v46  ;;  %9840 = vmatpush1.bf16.msra.mxu1 %v12840_v25 }
0x1d43   :  { %9810 = vmatprep.subr.bf16.mxu0 %v12845_v58  ;;  %9842 = vmatprep.subr.bf16.mxu1 %v12847_v33 }
0x1d46   :  { %9812 = vmatpush1.bf16.msra.mxu0 %v12849_v53  ;;  %9844 = vmatpush1.bf16.msra.mxu1 %v12852_v45 }
0x1d47   :  { %9814 = vmatprep.subr.bf16.mxu0 %v12857_v23  ;;  %9846 = vmatprep.subr.bf16.mxu1 %v12859_v6 }
0x1d4a   :  { %9816 = vmatpush1.bf16.msra.mxu0 %v12861_v30  ;;  %9848 = vmatpush1.bf16.msra.mxu1 %v12864_v22 }
0x1d4b   :  { %9818 = vmatprep.subr.bf16.mxu0 %v12869_v1  ;;  %9850 = vmatprep.subr.bf16.mxu1 %v12871_v43 }
0x1d4e   :  { %9820 = vmatpush1.bf16.msra.mxu0 %v12873_v44  ;;  %9852 = vmatpush1.bf16.msra.mxu1 %v12876_v34 }
0x1d4f   :  { %9822 = vmatprep.subr.bf16.mxu0 %v12881_v9  ;;  %9854 = vmatprep.subr.bf16.mxu1 %v12883_v19 }
0x1d52   :  { %9824 = vmatpush1.bf16.msra.mxu0 %v12885_v57  ;;  %9856 = vmatpush1.bf16.msra.mxu1 %v12888_v13 }
0x1d53   :  { %9826 = vmatprep.subr.bf16.mxu0 %v12893_v32  ;;  %9858 = vmatprep.subr.bf16.mxu1 %v12895_v36 }
0x1d56   :  { %9828 = vmatpush1.bf16.msra.mxu0 %v12897_v26  ;;  %9860 = vmatpush1.bf16.msra.mxu1 %v12900_v51 }
0x1d57   :  { %9862 = vmatprep.subr.bf16.mxu0 %v12809_v42  ;;  %9894 = vmatprep.subr.bf16.mxu1 %v12811_v50 }
0x1e0c   :  { %v7059_v31 = vpop.f32.mrb[120].mxu0  ;;  %v7130_v56 = vpop.f32.mrb[120].mxu1 }
0x1e0d   :  { %v7135_v63 = vadd.f32 %v7059_v31, %v6095_v10  ;;  %v7137_v18 = vadd.f32 %v7130_v56, %v6168_v12  ;;  %v7061_v16 = vpop.f32.mrb[121].mxu0  ;;  %v7132_v7 = vpop.f32.mrb[121].mxu1  ;;  %v13540_v56 = vld [vmem:[#allocation45_spill] sm:$0xff] }
0x1e0e   :  { %v7136_v41 = vadd.f32 %v7061_v16, %v6097_v24  ;;  %v7138_v40 = vadd.f32 %v7132_v7, %v6170_v55  ;;  %v13542_v7 = vld [vmem:[#allocation47_spill] sm:$0xff] }
0x1e0f   :  { %v7929_v17 = vmul.f32 -1.442695, %v7135_v63  ;;  %v7931_v5 = vmul.f32 -1.442695, %v7137_v18  ;;  %v6172_v63 = vadd.f32 %v13540_v56, %v13022_v15  ;;  %v13541_v18 = vld [vmem:[#allocation46_spill] sm:$0xff] }
0x1e10   :  { %v7930_v29 = vmul.f32 -1.442695, %v7136_v41  ;;  %v6101_v16 = vadd.f32 %v13541_v18, %v13029_v49  ;;  %v6174_v41 = vadd.f32 %v13542_v7, %v13032_v0 }
0x1e11   :  { %10647 = vpow2.f32 %v7929_v17 }
0x1e12   :  { %10649 = vpow2.f32 %v7930_v29 }
0x1e13   :  { %10651 = vtanh.f32 %v7138_v40 }
0x1e14   :  { %10653 = vpow2.f32 %v7931_v5 }
0x1e1b   :  { %v10648_v61 = vpop.eup %10647 }
0x1e1c   :  { %v7148_v60 = vadd.f32 1.0, %v10648_v61  ;;  %v10650_v38 = vpop.eup %10649 }
0x1e1d   :  { %v7149_v3 = vadd.f32 1.0, %v10650_v38  ;;  %v10652_v54 = vpop.eup %10651 }
0x1e1e   :  { %10655 = vrcp.f32 %v7148_v60  ;;  %v10654_v27 = vpop.eup %10653 }
0x1e1f   :  { %10657 = vrcp.f32 %v7149_v3  ;;  %v7150_v39 = vadd.f32 1.0, %v10654_v27 }
0x1e21   :  { %10659 = vrcp.f32 %v7150_v39 }
0x1e28   :  { %v10656_v62 = vpop.eup %10655 }
0x1e29   :  { %v7159_v14 = vmul.f32 %v10656_v62, %v10652_v54  ;;  %v10658_v10 = vpop.eup %10657 }
0x1e2a   :  { %v7158_v12 = vmul.f32 %v10658_v10, %v13180_v59  ;;  %v13539_v59 = vld [vmem:[#allocation44_spill] sm:$0xff] }
0x1e2b   :  { %v10660_v24 = vpop.eup %10659  ;;  %v6099_v31 = vadd.f32 %v13539_v59, %v13019_v2 }
0x1e2c   :  { %v13226_v4 = vadd.f32 %v7159_v14, %v7158_v12 }
0x1e2e   :  { %10661 = vtanh.f32 %v13226_v4 }
0x1e38   :  { %v10662_v52 = vpop.eup %10661 }
0x1e39   :  { %v7162_v55 = vmul.f32 %v10662_v52, %v10660_v24 }
0x1e3b   :  { %7164 = vst [vmem:[#allocation24 + $0x20] sm:$0xff] %v7162_v55  ;;  %7235 = vmatmul.mubr.f32.vlgmr.msra.gmra.mrb[122].mxu0 %v7162_v55  ;;  %7306 = vmatmul.mubr.f32.vlgmr.msra.gmra.mrb[122].mxu1 %v7162_v55 }
0x1e3c   :  { %9864 = vmatpush1.bf16.msra.mxu0 %v12813_v21  ;;  %9896 = vmatpush1.bf16.msra.mxu1 %v12816_v37 }
0x1e3d   :  { %9866 = vmatprep.subr.bf16.mxu0 %v12821_v20  ;;  %9898 = vmatprep.subr.bf16.mxu1 %v12823_v8 }
0x1e3e   :  { %7411 = vmatprep.mubr.f32.mxu0 %v13390_v11  ;;  %7482 = vmatprep.mubr.f32.mxu1 %v13390_v11 }
0x1e40   :  { %9868 = vmatpush1.bf16.msra.mxu0 %v12825_v35  ;;  %9900 = vmatpush1.bf16.msra.mxu1 %v12828_v48 }
0x1e41   :  { %9870 = vmatprep.subr.bf16.mxu0 %v12833_v28  ;;  %9902 = vmatprep.subr.bf16.mxu1 %v12835_v47 }
0x1e44   :  { %9872 = vmatpush1.bf16.msra.mxu0 %v12837_v46  ;;  %9904 = vmatpush1.bf16.msra.mxu1 %v12840_v25 }
0x1e45   :  { %9874 = vmatprep.subr.bf16.mxu0 %v12845_v58  ;;  %9906 = vmatprep.subr.bf16.mxu1 %v12847_v33 }
0x1e48   :  { %9876 = vmatpush1.bf16.msra.mxu0 %v12849_v53  ;;  %9908 = vmatpush1.bf16.msra.mxu1 %v12852_v45 }
0x1e49   :  { %9878 = vmatprep.subr.bf16.mxu0 %v12857_v23  ;;  %9910 = vmatprep.subr.bf16.mxu1 %v12859_v6 }
0x1e4c   :  { %9880 = vmatpush1.bf16.msra.mxu0 %v12861_v30  ;;  %9912 = vmatpush1.bf16.msra.mxu1 %v12864_v22 }
0x1e4d   :  { %9882 = vmatprep.subr.bf16.mxu0 %v12869_v1  ;;  %9914 = vmatprep.subr.bf16.mxu1 %v12871_v43 }
0x1e50   :  { %9884 = vmatpush1.bf16.msra.mxu0 %v12873_v44  ;;  %9916 = vmatpush1.bf16.msra.mxu1 %v12876_v34 }
0x1e51   :  { %9886 = vmatprep.subr.bf16.mxu0 %v12881_v9  ;;  %9918 = vmatprep.subr.bf16.mxu1 %v12883_v19 }
0x1e54   :  { %9888 = vmatpush1.bf16.msra.mxu0 %v12885_v57  ;;  %9920 = vmatpush1.bf16.msra.mxu1 %v12888_v13 }
0x1e55   :  { %9890 = vmatprep.subr.bf16.mxu0 %v12893_v32  ;;  %9922 = vmatprep.subr.bf16.mxu1 %v12895_v36 }
0x1e58   :  { %9892 = vmatpush1.bf16.msra.mxu0 %v12897_v26  ;;  %9924 = vmatpush1.bf16.msra.mxu1 %v12900_v51 }
0x1e59   :  { %9926 = vmatprep.subr.bf16.mxu0 %v12809_v42  ;;  %9958 = vmatprep.subr.bf16.mxu1 %v12811_v50 }
0x1f0e   :  { %v7236_v40 = vpop.f32.mrb[122].mxu0  ;;  %v7307_v17 = vpop.f32.mrb[122].mxu1 }
0x1f0f   :  { %v7312_v29 = vadd.f32 %v7236_v40, %v6099_v31  ;;  %v7314_v5 = vadd.f32 %v7307_v17, %v6172_v63  ;;  %v7238_v61 = vpop.f32.mrb[123].mxu0  ;;  %v7309_v42 = vpop.f32.mrb[123].mxu1  ;;  %v13547_v40 = vld [vmem:[#allocation52_spill] sm:$0xff] }
0x1f10   :  { %v7313_v60 = vadd.f32 %v7238_v61, %v6101_v16  ;;  %v7315_v50 = vadd.f32 %v7309_v42, %v6174_v41  ;;  %v6109_v17 = vadd.f32 %v13547_v40, %v13019_v2  ;;  %v13549_v61 = vld [vmem:[#allocation54_spill] sm:$0xff] }
0x1f11   :  { %v7932_v38 = vmul.f32 -1.442695, %v7312_v29  ;;  %v7934_v54 = vmul.f32 -1.442695, %v7314_v5  ;;  %v13548_v29 = vld [vmem:[#allocation53_spill] sm:$0xff]  ;;  %v6111_v42 = vadd.f32 %v13549_v61, %v13029_v49 }
0x1f12   :  { %v7933_v3 = vmul.f32 -1.442695, %v7313_v60  ;;  %v6182_v5 = vadd.f32 %v13548_v29, %v13022_v15  ;;  %v13550_v60 = vld [vmem:[#allocation55_spill] sm:$0xff] }
0x1f13   :  { %10663 = vpow2.f32 %v7932_v38 }
0x1f14   :  { %10665 = vpow2.f32 %v7933_v3 }
0x1f15   :  { %10667 = vtanh.f32 %v7315_v50  ;;  %v6184_v50 = vadd.f32 %v13550_v60, %v13032_v0 }
0x1f16   :  { %10669 = vpow2.f32 %v7934_v54 }
0x1f1d   :  { %v10664_v27 = vpop.eup %10663 }
0x1f1e   :  { %v7325_v62 = vadd.f32 1.0, %v10664_v27  ;;  %v10666_v14 = vpop.eup %10665 }
0x1f1f   :  { %v7326_v10 = vadd.f32 1.0, %v10666_v14  ;;  %v10668_v39 = vpop.eup %10667 }
0x1f20   :  { %10671 = vrcp.f32 %v7325_v62  ;;  %v10670_v12 = vpop.eup %10669 }
0x1f21   :  { %10673 = vrcp.f32 %v7326_v10  ;;  %v7327_v59 = vadd.f32 1.0, %v10670_v12 }
0x1f23   :  { %10675 = vrcp.f32 %v7327_v59 }
0x1f2a   :  { %v10672_v24 = vpop.eup %10671 }
0x1f2b   :  { %v7336_v52 = vmul.f32 %v10672_v24, %v10668_v39  ;;  %v10674_v55 = vpop.eup %10673 }
0x1f2c   :  { %v7335_v31 = vmul.f32 %v10674_v55, %v13226_v4 }
0x1f2d   :  { %v10676_v63 = vpop.eup %10675 }
0x1f2e   :  { %v13272_v56 = vadd.f32 %v7336_v52, %v7335_v31 }
0x1f30   :  { %10677 = vtanh.f32 %v13272_v56 }
0x1f3a   :  { %v10678_v18 = vpop.eup %10677 }
0x1f3b   :  { %v7339_v16 = vmul.f32 %v10678_v18, %v10676_v63 }
0x1f3d   :  { %7341 = vst [vmem:[#allocation24 + $0x28] sm:$0xff] %v7339_v16  ;;  %7412 = vmatmul.mubr.f32.vlgmr.msra.gmra.mrb[124].mxu0 %v7339_v16  ;;  %7483 = vmatmul.mubr.f32.vlgmr.msra.gmra.mrb[124].mxu1 %v7339_v16 }
0x1f3e   :  { %9928 = vmatpush1.bf16.msra.mxu0 %v12813_v21  ;;  %9960 = vmatpush1.bf16.msra.mxu1 %v12816_v37  ;;  %v13544_v37 = vld [vmem:[#allocation49_spill] sm:$0xff] }
0x1f3f   :  { %9930 = vmatprep.subr.bf16.mxu0 %v12821_v20  ;;  %9962 = vmatprep.subr.bf16.mxu1 %v12823_v8  ;;  %v6178_v20 = vadd.f32 %v13544_v37, %v13022_v15  ;;  %v13545_v8 = vld [vmem:[#allocation50_spill] sm:$0xff] }
0x1f40   :  { %7588 = vmatprep.mubr.f32.mxu0 %v13390_v11  ;;  %7659 = vmatprep.mubr.f32.mxu1 %v13390_v11  ;;  %v13543_v11 = vld [vmem:[#allocation48_spill] sm:$0xff] }
0x1f41   :  { %v6105_v21 = vadd.f32 %v13543_v11, %v13019_v2 }
0x1f42   :  { %9932 = vmatpush1.bf16.msra.mxu0 %v12825_v35  ;;  %9964 = vmatpush1.bf16.msra.mxu1 %v12828_v48  ;;  %v6107_v35 = vadd.f32 %v13545_v8, %v13029_v49  ;;  %v13546_v48 = vld [vmem:[#allocation51_spill] sm:$0xff] }
0x1f43   :  { %9934 = vmatprep.subr.bf16.mxu0 %v12833_v28  ;;  %9966 = vmatprep.subr.bf16.mxu1 %v12835_v47  ;;  %v6180_v28 = vadd.f32 %v13546_v48, %v13032_v0 }
0x1f46   :  { %9936 = vmatpush1.bf16.msra.mxu0 %v12837_v46  ;;  %9968 = vmatpush1.bf16.msra.mxu1 %v12840_v25 }
0x1f47   :  { %9938 = vmatprep.subr.bf16.mxu0 %v12845_v58  ;;  %9970 = vmatprep.subr.bf16.mxu1 %v12847_v33 }
0x1f4a   :  { %9940 = vmatpush1.bf16.msra.mxu0 %v12849_v53  ;;  %9972 = vmatpush1.bf16.msra.mxu1 %v12852_v45 }
0x1f4b   :  { %9942 = vmatprep.subr.bf16.mxu0 %v12857_v23  ;;  %9974 = vmatprep.subr.bf16.mxu1 %v12859_v6 }
0x1f4e   :  { %9944 = vmatpush1.bf16.msra.mxu0 %v12861_v30  ;;  %9976 = vmatpush1.bf16.msra.mxu1 %v12864_v22 }
0x1f4f   :  { %9946 = vmatprep.subr.bf16.mxu0 %v12869_v1  ;;  %9978 = vmatprep.subr.bf16.mxu1 %v12871_v43 }
0x1f52   :  { %9948 = vmatpush1.bf16.msra.mxu0 %v12873_v44  ;;  %9980 = vmatpush1.bf16.msra.mxu1 %v12876_v34 }
0x1f53   :  { %9950 = vmatprep.subr.bf16.mxu0 %v12881_v9  ;;  %9982 = vmatprep.subr.bf16.mxu1 %v12883_v19 }
0x1f56   :  { %9952 = vmatpush1.bf16.msra.mxu0 %v12885_v57  ;;  %9984 = vmatpush1.bf16.msra.mxu1 %v12888_v13 }
0x1f57   :  { %9954 = vmatprep.subr.bf16.mxu0 %v12893_v32  ;;  %9986 = vmatprep.subr.bf16.mxu1 %v12895_v36 }
0x1f5a   :  { %9956 = vmatpush1.bf16.msra.mxu0 %v12897_v26  ;;  %9988 = vmatpush1.bf16.msra.mxu1 %v12900_v51 }
0x2010   :  { %v7413_v47 = vpop.f32.mrb[124].mxu0  ;;  %v7484_v46 = vpop.f32.mrb[124].mxu1 }
0x2011   :  { %v7489_v25 = vadd.f32 %v7413_v47, %v6105_v21  ;;  %v7491_v58 = vadd.f32 %v7484_v46, %v6178_v20  ;;  %v7415_v33 = vpop.f32.mrb[125].mxu0  ;;  %v7486_v53 = vpop.f32.mrb[125].mxu1 }
0x2012   :  { %v7490_v45 = vadd.f32 %v7415_v33, %v6107_v35  ;;  %v7492_v23 = vadd.f32 %v7486_v53, %v6180_v28 }
0x2013   :  { %v7935_v6 = vmul.f32 -1.442695, %v7489_v25  ;;  %v7937_v22 = vmul.f32 -1.442695, %v7491_v58 }
0x2014   :  { %v7936_v30 = vmul.f32 -1.442695, %v7490_v45 }
0x2015   :  { %10679 = vpow2.f32 %v7935_v6 }
0x2016   :  { %10681 = vpow2.f32 %v7936_v30 }
0x2017   :  { %10683 = vtanh.f32 %v7492_v23 }
0x2018   :  { %10685 = vpow2.f32 %v7937_v22 }
0x201f   :  { %v10680_v1 = vpop.eup %10679 }
0x2020   :  { %v7502_v43 = vadd.f32 1.0, %v10680_v1  ;;  %v10682_v44 = vpop.eup %10681 }
0x2021   :  { %v7503_v34 = vadd.f32 1.0, %v10682_v44  ;;  %v10684_v9 = vpop.eup %10683 }
0x2022   :  { %10687 = vrcp.f32 %v7502_v43  ;;  %v10686_v19 = vpop.eup %10685 }
0x2023   :  { %10689 = vrcp.f32 %v7503_v34  ;;  %v7504_v36 = vadd.f32 1.0, %v10686_v19 }
0x2025   :  { %10691 = vrcp.f32 %v7504_v36 }
0x202c   :  { %v10688_v57 = vpop.eup %10687 }
0x202d   :  { %v7513_v13 = vmul.f32 %v10688_v57, %v10684_v9  ;;  %v10690_v32 = vpop.eup %10689 }
0x202e   :  { %v7512_v26 = vmul.f32 %v10690_v32, %v13272_v56 }
0x202f   :  { %v10692_v4 = vpop.eup %10691 }
0x2030   :  { %v7514_v51 = vadd.f32 %v7513_v13, %v7512_v26 }
0x2032   :  { %10693 = vtanh.f32 %v7514_v51 }
0x203c   :  { %v10694_v7 = vpop.eup %10693 }
0x203d   :  { %v7516_v41 = vmul.f32 %v10694_v7, %v10692_v4 }
0x203f   :  { %7518 = vst [vmem:[#allocation24 + $0x30] sm:$0xff] %v7516_v41  ;;  %7589 = vmatmul.mubr.f32.vlgmr.msra.gmra.mrb[126].mxu0 %v7516_v41  ;;  %7660 = vmatmul.mubr.f32.vlgmr.msra.gmra.mrb[126].mxu1 %v7516_v41 }
0x2112   :  { %v7590_v38 = vpop.f32.mrb[126].mxu0  ;;  %v7661_v3 = vpop.f32.mrb[126].mxu1 }
0x2113   :  { %v7666_v54 = vadd.f32 %v7590_v38, %v6109_v17  ;;  %v7668_v27 = vadd.f32 %v7661_v3, %v6182_v5  ;;  %v7592_v62 = vpop.f32.mrb[127].mxu0  ;;  %v7663_v14 = vpop.f32.mrb[127].mxu1 }
0x2114   :  { %v7667_v10 = vadd.f32 %v7592_v62, %v6111_v42  ;;  %v7669_v39 = vadd.f32 %v7663_v14, %v6184_v50 }
0x2115   :  { %v7938_v12 = vmul.f32 -1.442695, %v7666_v54  ;;  %v7940_v2 = vmul.f32 -1.442695, %v7668_v27 }
0x2116   :  { %v7939_v24 = vmul.f32 -1.442695, %v7667_v10 }
0x2117   :  { %10695 = vpow2.f32 %v7938_v12 }
0x2118   :  { %10697 = vpow2.f32 %v7939_v24 }
0x2119   :  { %10699 = vtanh.f32 %v7669_v39 }
0x211a   :  { %10701 = vpow2.f32 %v7940_v2 }
0x2121   :  { %v10696_v15 = vpop.eup %10695 }
0x2122   :  { %v7679_v52 = vadd.f32 1.0, %v10696_v15  ;;  %v10698_v49 = vpop.eup %10697 }
0x2123   :  { %v7680_v0 = vadd.f32 1.0, %v10698_v49  ;;  %v10700_v55 = vpop.eup %10699 }
0x2124   :  { %10703 = vrcp.f32 %v7679_v52  ;;  %v10702_v59 = vpop.eup %10701 }
0x2125   :  { %10705 = vrcp.f32 %v7680_v0  ;;  %v7681_v18 = vadd.f32 1.0, %v10702_v59 }
0x2127   :  { %10707 = vrcp.f32 %v7681_v18 }
0x212e   :  { %v10704_v31 = vpop.eup %10703 }
0x212f   :  { %v7690_v56 = vmul.f32 %v10704_v31, %v10700_v55  ;;  %v10706_v63 = vpop.eup %10705 }
0x2130   :  { %v7689_v16 = vmul.f32 %v10706_v63, %v7514_v51 }
0x2131   :  { %v10708_v21 = vpop.eup %10707 }
0x2132   :  { %v7691_v11 = vadd.f32 %v7690_v56, %v7689_v16 }
0x2134   :  { %10709 = vtanh.f32 %v7691_v11 }
0x213e   :  { %v10710_v37 = vpop.eup %10709 }
0x213f   :  { %v7693_v20 = vmul.f32 %v10710_v37, %v10708_v21 }
0x2141   :  { %7695 = vst [vmem:[#allocation24 + $0x38] sm:$0xff] %v7693_v20 }
0x2142   :  { %10920 = shalt.err (!%p10917_p6)
}
0x2143   :  { %s10921_s19 = scalar_lea.hbm %s13352_s13, 1024 }
0x2144   :  { %p10922_p7 = scmp.ne.s32.totalorder %s13352_s13, %s10921_s19  ;;  %p10925_p8 = scmp.lt.u32.totalorder %s10921_s19, %s13352_s13 }
0x2146   :  { %p10927_p9 = pnand %p10925_p8, %p10922_p7 }
0x2148   :  { %10930 = shalt.err (!%p10927_p9)
}
0x2149   :  { %7707 = dma.vmem_to_hbm [thread:$0]  %s7702_s4, 1024, %s13352_s13, [#allocation11], %s10950_s10, %s10950_s10, %s10951_s18  }
0x214a   :  { %10941 = dma.done.wait [#allocation11], 1024  }
0x214b   :  { %10942 = vsyncadd [#allocation11], 4294966272 }
0x214c   :  { %7711 = vsyncpa [#allocation10], 1 }
0x214d   :  { %7712 = vsyncpa [#allocation13], 1 }
0x214e   :  { %7713 = vsyncpa [#allocation16], 1 }
0x214f   :  { %7714 = vsyncpa [#allocation19], 1 }
0x2150   :  { %7715 = vsyncpa [#allocation22], 1 }
0x2151   :  { %7716 = vsyncpa [#allocation11], 1 }

</bundles_post_ra>
